<compile_context>
chip_gen: v7x
topology: tpu7x:2x2x1
jax: 0.10.0
libtpu: 0.0.40
codegen_flags: <defaults>
</compile_context>

<pallas_src>
import math

import jax
import jax.numpy as jnp
from jax.experimental import pallas as pl
from jax.experimental.pallas import tpu as pltpu

# ----------------------------- configuration -------------------------------
BATCH = 2
CH = 3
IMG = 32
PATCH = 16
NUM_PATCHES = (IMG // PATCH) ** 2          # 4
SEQ = NUM_PATCHES + 1                      # 5  (CLS + patches)
TOKENS = BATCH * SEQ                       # 10 flattened tokens
PATCH_DIM = CH * PATCH * PATCH             # 768
HIDDEN = 32                                # scaled-down ViT hidden size
NUM_HEADS = 4
HEAD_DIM = HIDDEN // NUM_HEADS
MLP_DIM = 4 * HIDDEN
NUM_LAYERS = 2
NUM_CLASSES = 4
LN_EPS = 1e-12                             # HF ViT layer_norm_eps
BN_EPS = 1e-5                              # nn.BatchNorm1d default
CLS_DIMS = [2 * HIDDEN, 1024, 512, 256, 128, NUM_CLASSES]


# ----------------------------- kernel helpers -------------------------------
def _layernorm(v, g, b):
    mu = jnp.mean(v, axis=-1, keepdims=True)
    var = jnp.mean(jnp.square(v - mu), axis=-1, keepdims=True)
    return (v - mu) * jax.lax.rsqrt(var + LN_EPS) * g + b


def _gelu(x):
    # TODO(synk): HF ViT uses the exact erf-based GELU; tanh approximation used
    # here for guaranteed Mosaic lowering (max abs diff ~1e-3 at these scales).
    return jax.nn.gelu(x, approximate=True)


# --------------------------- fully fused forward kernel ---------------------
def twin_kernel(patches_ref, patch_w_ref, tok_bias_ref,
                wqkv_ref, bqkv_ref, wo_ref, vecs_ref,
                w1_ref, b1_ref, w2_ref, fin_ref, pool_w_ref,
                cw1_ref, cbgb1_ref, cw2_ref, cbgb2_ref,
                cw3_ref, cbgb3_ref, cw4_ref, cbgb4_ref,
                cw5_ref, cb5_ref, o_ref):
    """Both ViT streams + classifier in one kernel (no grid).

    Stream slabs carry a leading stream axis of size 2:
      patches_ref : (2, TOKENS, PATCH_DIM)   zero rows at CLS positions
      tok_bias_ref: (2, TOKENS, HIDDEN)      cls+pos at CLS rows, patch_b+pos else
      wqkv_ref    : (2, L, HIDDEN, 3*HIDDEN) fused Q|K|V weights
      vecs_ref    : (2, L, 6, HIDDEN)        [ln1_g, ln1_b, ln2_g, ln2_b, bo, b2]
      fin_ref     : (2, 3, HIDDEN)           [lnf_g, lnf_b, pool_b]
    Classifier weights cw*_ref are bf16; cbgb*_ref rows: [lin bias, BN g, BN b].
    """
    scale = 1.0 / math.sqrt(HEAD_DIM)

    feats = []
    for sid in range(2):                                 # static unroll: 2 streams
        # Patch embedding + CLS token + positional embedding in one matmul+add.
        x = (jnp.dot(patches_ref[sid], patch_w_ref[sid],
                     preferred_element_type=jnp.float32) + tok_bias_ref[sid])

        for li in range(NUM_LAYERS):                     # static unroll (2)
            vecs = vecs_ref[sid, li]
            ln1_g, ln1_b = vecs[0:1], vecs[1:2]
            ln2_g, ln2_b = vecs[2:3], vecs[3:4]
            bo, b2 = vecs[4:5], vecs[5:6]

            # ---- attention (pre-LN) --------------------------------------
            h = _layernorm(x, ln1_g, ln1_b)
            qkv = (jnp.dot(h, wqkv_ref[sid, li],
                           preferred_element_type=jnp.float32)
                   + bqkv_ref[sid, li])                  # (TOKENS, 3H), 1 MXU push
            q = qkv[:, 0:HIDDEN]
            k = qkv[:, HIDDEN:2 * HIDDEN]
            v = qkv[:, 2 * HIDDEN:3 * HIDDEN]

            # Scores are block-diagonal per (batch, head): tiny static unroll.
            ctx_rows = []
            for bi in range(BATCH):
                r0 = bi * SEQ
                heads = []
                for hi in range(NUM_HEADS):
                    c0 = hi * HEAD_DIM
                    qh = q[r0:r0 + SEQ, c0:c0 + HEAD_DIM]
                    kh = k[r0:r0 + SEQ, c0:c0 + HEAD_DIM]
                    vh = v[r0:r0 + SEQ, c0:c0 + HEAD_DIM]
                    s = jnp.dot(qh, kh.T,
                                preferred_element_type=jnp.float32) * scale
                    p = jax.nn.softmax(s, axis=-1)
                    heads.append(jnp.dot(p, vh,
                                         preferred_element_type=jnp.float32))
                ctx_rows.append(jnp.concatenate(heads, axis=-1))
            ctx = jnp.concatenate(ctx_rows, axis=0)      # (TOKENS, HIDDEN)

            # Concat-heads output projection: single matmul over all tokens.
            attn = (jnp.dot(ctx, wo_ref[sid, li],
                            preferred_element_type=jnp.float32) + bo)
            x = x + attn                                 # residual 1

            # ---- MLP (pre-LN) --------------------------------------------
            h2 = _layernorm(x, ln2_g, ln2_b)
            m = _gelu(jnp.dot(h2, w1_ref[sid, li],
                              preferred_element_type=jnp.float32)
                      + b1_ref[sid, li])
            x = x + jnp.dot(m, w2_ref[sid, li],
                            preferred_element_type=jnp.float32) + b2

        # ---- final LayerNorm + tanh pooler on CLS rows only (LN is per-token)
        fin = fin_ref[sid]
        lnf_g, lnf_b, pool_b = fin[0:1], fin[1:2], fin[2:3]
        cls_rows = jnp.concatenate(
            [x[bi * SEQ:bi * SEQ + 1, :] for bi in range(BATCH)], axis=0)
        pooled = jnp.tanh(
            jnp.dot(_layernorm(cls_rows, lnf_g, lnf_b), pool_w_ref[sid],
                    preferred_element_type=jnp.float32) + pool_b)  # (B, H)
        feats.append(pooled.astype(jnp.bfloat16))

    # ---- classifier: cat(pre, post) -> [Lin, BN(eval), ReLU, Drop(id)] x4 -> Lin
    inv_std = 1.0 / math.sqrt(1.0 + BN_EPS)   # BN eval: running_mean=0, var=1

    def bn_relu(y, bgb):
        b, g, be = bgb[0:1], bgb[1:2], bgb[2:3]
        return jnp.maximum((y + b) * inv_std * g + be, 0.0)

    # concat fused: cat(pre, post) @ W1 == pre @ W1[:H] + post @ W1[H:]
    y = (jnp.dot(feats[0], cw1_ref[0], preferred_element_type=jnp.float32)
         + jnp.dot(feats[1], cw1_ref[1], preferred_element_type=jnp.float32))
    xc = bn_relu(y, cbgb1_ref[...])
    xc = bn_relu(jnp.dot(xc.astype(jnp.bfloat16), cw2_ref[...],
                         preferred_element_type=jnp.float32), cbgb2_ref[...])
    xc = bn_relu(jnp.dot(xc.astype(jnp.bfloat16), cw3_ref[...],
                         preferred_element_type=jnp.float32), cbgb3_ref[...])
    xc = bn_relu(jnp.dot(xc.astype(jnp.bfloat16), cw4_ref[...],
                         preferred_element_type=jnp.float32), cbgb4_ref[...])
    o_ref[...] = (jnp.dot(xc.astype(jnp.bfloat16), cw5_ref[...],
                          preferred_element_type=jnp.float32) + cb5_ref[...])


# ------------------------------ wrapper / glue -------------------------------
def prep_patches(img):
    """NCHW image -> (TOKENS, PATCH_DIM) with a zero row reserved for CLS."""
    b, c, h, w = img.shape
    nh, nw = h // PATCH, w // PATCH
    p = img.reshape(b, c, nh, PATCH, nw, PATCH)
    p = p.transpose(0, 2, 4, 1, 3, 5)                    # (B, nh, nw, C, P, P)
    p = p.reshape(b, nh * nw, c * PATCH * PATCH)
    p = jnp.concatenate([jnp.zeros((b, 1, p.shape[-1]), p.dtype), p], axis=1)
    return p.reshape(b * SEQ, PATCH_DIM)


@jax.jit
def twin_vit_forward(pre_img, post_img, sp, cp):
    # Patch extraction is a single XLA reshape/transpose per stream; everything
    # else (both backbones + classifier) is one fused Pallas launch.
    patches = jnp.stack([prep_patches(pre_img), prep_patches(post_img)], axis=0)

    args = (patches, sp["patch_w"], sp["tok_bias"], sp["wqkv"], sp["bqkv"],
            sp["wo"], sp["vecs"], sp["w1"], sp["b1"], sp["w2"],
            sp["fin"], sp["pool_w"],
            cp["w1"], cp["bgb1"], cp["w2"], cp["bgb2"], cp["w3"], cp["bgb3"],
            cp["w4"], cp["bgb4"], cp["w5"], cp["b5"])

    # TODO(synk): the single-launch fusion runs both streams sequentially on one
    # TensorCore; on v7x a 2-way "parallel" grid could use both TCs at the cost
    # of a second launch + an HBM round trip for the pooled features.
    return pl.pallas_call(
        twin_kernel,
        out_shape=jax.ShapeDtypeStruct((BATCH, NUM_CLASSES), jnp.float32),
        in_specs=[pl.BlockSpec(memory_space=pltpu.MemorySpace.VMEM)
                  for _ in args],
        out_specs=pl.BlockSpec(memory_space=pltpu.MemorySpace.VMEM),
    )(*args)


# ----------------------------- deterministic init ----------------------------
def _dense(key, shape, scale=0.02):
    return (scale * jax.random.normal(key, shape)).astype(jnp.float32)


def init_stream_params(key):
    """Packed per-stream parameters (no stream axis yet)."""
    keys = iter(jax.random.split(key, 3 + 6 * NUM_LAYERS + 1))
    patch_w = _dense(next(keys), (PATCH_DIM, HIDDEN))
    patch_b = jnp.zeros((1, HIDDEN), jnp.float32)
    cls = _dense(next(keys), (1, HIDDEN))
    pos = _dense(next(keys), (SEQ, HIDDEN))
    # Per-token bias: CLS row gets cls+pos[0]; patch rows get patch_b+pos[i].
    tok_bias_seq = jnp.concatenate([cls + pos[0:1], pos[1:] + patch_b], axis=0)
    tok_bias = jnp.tile(tok_bias_seq, (BATCH, 1))        # (TOKENS, HIDDEN)

    ones_h = jnp.ones((HIDDEN,), jnp.float32)
    zeros_h = jnp.zeros((HIDDEN,), jnp.float32)
    wqkv, bqkv, wo, vecs, w1, b1, w2 = [], [], [], [], [], [], []
    for _ in range(NUM_LAYERS):
        wq = _dense(next(keys), (HIDDEN, HIDDEN))
        wk = _dense(next(keys), (HIDDEN, HIDDEN))
        wv = _dense(next(keys), (HIDDEN, HIDDEN))
        wqkv.append(jnp.concatenate([wq, wk, wv], axis=1))       # (H, 3H)
        bqkv.append(jnp.zeros((1, 3 * HIDDEN), jnp.float32))
        wo.append(_dense(next(keys), (HIDDEN, HIDDEN)))
        # rows: ln1_g, ln1_b, ln2_g, ln2_b, bo, b2
        vecs.append(jnp.stack([ones_h, zeros_h, ones_h, zeros_h,
                               zeros_h, zeros_h]))
        w1.append(_dense(next(keys), (HIDDEN, MLP_DIM)))
        b1.append(jnp.zeros((1, MLP_DIM), jnp.float32))
        w2.append(_dense(next(keys), (MLP_DIM, HIDDEN)))
    fin = jnp.stack([ones_h, zeros_h, zeros_h])                  # lnf_g, lnf_b, pool_b
    pool_w = _dense(next(keys), (HIDDEN, HIDDEN))
    return {
        "patch_w": patch_w, "tok_bias": tok_bias,
        "wqkv": jnp.stack(wqkv), "bqkv": jnp.stack(bqkv), "wo": jnp.stack(wo),
        "vecs": jnp.stack(vecs), "w1": jnp.stack(w1), "b1": jnp.stack(b1),
        "w2": jnp.stack(w2), "fin": fin, "pool_w": pool_w,
    }


def stack_streams(p_pre, p_post):
    return jax.tree_util.tree_map(lambda a, b: jnp.stack([a, b], axis=0),
                                  p_pre, p_post)


def init_classifier_params(key):
    keys = iter(jax.random.split(key, 6))
    d = CLS_DIMS

    def bgb(n):   # [linear bias, BN gamma, BN beta]  (BN running stats at init)
        return jnp.stack([jnp.zeros(n), jnp.ones(n), jnp.zeros(n)]
                         ).astype(jnp.float32)

    w1 = _dense(next(keys), (d[0], d[1]))
    return {
        "w1": w1.reshape(2, HIDDEN, d[1]).astype(jnp.bfloat16),  # [pre | post]
        "bgb1": bgb(d[1]),
        "w2": _dense(next(keys), (d[1], d[2])).astype(jnp.bfloat16),
        "bgb2": bgb(d[2]),
        "w3": _dense(next(keys), (d[2], d[3])).astype(jnp.bfloat16),
        "bgb3": bgb(d[3]),
        "w4": _dense(next(keys), (d[3], d[4])).astype(jnp.bfloat16),
        "bgb4": bgb(d[4]),
        "w5": _dense(next(keys), (d[4], d[5])).astype(jnp.bfloat16),
        "b5": jnp.zeros((1, d[5]), jnp.float32),
    }


# ----------------------------------- main ------------------------------------
if __name__ == "__main__":
    root = jax.random.PRNGKey(0)
    k_img_pre, k_img_post, k_vit_pre, k_vit_post, k_cls = jax.random.split(root, 5)

    pre_img = jax.random.normal(k_img_pre, (BATCH, CH, IMG, IMG), jnp.float32)
    post_img = jax.random.normal(k_img_post, (BATCH, CH, IMG, IMG), jnp.float32)

    # Deterministic synthetic weights (no pretrained checkpoint loading).
    stream_params = stack_streams(init_stream_params(k_vit_pre),
                                  init_stream_params(k_vit_post))
    cls_params = init_classifier_params(k_cls)

    logits = twin_vit_forward(pre_img, post_img, stream_params, cls_params)
    logits = jax.block_until_ready(logits)
    assert logits.shape == (BATCH, NUM_CLASSES)
    assert bool(jnp.all(jnp.isfinite(logits)))
    print("KERNEL_OK")
</pallas_src>

<mosaic_0001>
module attributes {stable_mosaic.version = 11 : i64} {
  func.func @twin_kernel(%arg0: memref<2x10x768xf32, #tpu.memory_space<vmem>>, %arg1: memref<2x768x32xf32, #tpu.memory_space<vmem>>, %arg2: memref<2x10x32xf32, #tpu.memory_space<vmem>>, %arg3: memref<2x2x32x96xf32, #tpu.memory_space<vmem>>, %arg4: memref<2x2x1x96xf32, #tpu.memory_space<vmem>>, %arg5: memref<2x2x32x32xf32, #tpu.memory_space<vmem>>, %arg6: memref<2x2x6x32xf32, #tpu.memory_space<vmem>>, %arg7: memref<2x2x32x128xf32, #tpu.memory_space<vmem>>, %arg8: memref<2x2x1x128xf32, #tpu.memory_space<vmem>>, %arg9: memref<2x2x128x32xf32, #tpu.memory_space<vmem>>, %arg10: memref<2x3x32xf32, #tpu.memory_space<vmem>>, %arg11: memref<2x32x32xf32, #tpu.memory_space<vmem>>, %arg12: memref<2x32x1024xbf16, #tpu.memory_space<vmem>>, %arg13: memref<3x1024xf32, #tpu.memory_space<vmem>>, %arg14: memref<1024x512xbf16, #tpu.memory_space<vmem>>, %arg15: memref<3x512xf32, #tpu.memory_space<vmem>>, %arg16: memref<512x256xbf16, #tpu.memory_space<vmem>>, %arg17: memref<3x256xf32, #tpu.memory_space<vmem>>, %arg18: memref<256x128xbf16, #tpu.memory_space<vmem>>, %arg19: memref<3x128xf32, #tpu.memory_space<vmem>>, %arg20: memref<128x4xbf16, #tpu.memory_space<vmem>>, %arg21: memref<1x4xf32, #tpu.memory_space<vmem>>, %arg22: memref<2x4xf32, #tpu.memory_space<vmem>>) attributes {dimension_semantics = [], scalar_prefetch = 0 : i64, scratch_operands = 0 : i64, tpu.core_type = #tpu.core_type<tc>} {
    %c0 = arith.constant 0 : index
    %c0_0 = arith.constant 0 : index
    %c0_1 = arith.constant 0 : index
    %0 = vector.load %arg0[%c0, %c0_0, %c0_1] : memref<2x10x768xf32, #tpu.memory_space<vmem>>, vector<1x10x768xf32>
    %1 = vector.shape_cast %0 : vector<1x10x768xf32> to vector<10x768xf32>
    %c0_2 = arith.constant 0 : index
    %c0_3 = arith.constant 0 : index
    %c0_4 = arith.constant 0 : index
    %2 = vector.load %arg1[%c0_2, %c0_3, %c0_4] : memref<2x768x32xf32, #tpu.memory_space<vmem>>, vector<1x768x32xf32>
    %3 = vector.shape_cast %2 : vector<1x768x32xf32> to vector<768x32xf32>
    %cst = arith.constant dense<0.000000e+00> : vector<10x32xf32>
    %4 = tpu.matmul %1, %3, %cst {dimension_numbers = #tpu.dot_dimension_numbers<[1], [0], [0], [1], [0, 0, 1, 1], [], []>} : vector<10x768xf32>, vector<768x32xf32>, vector<10x32xf32> -> vector<10x32xf32>
    %c0_5 = arith.constant 0 : index
    %c0_6 = arith.constant 0 : index
    %c0_7 = arith.constant 0 : index
    %5 = vector.load %arg2[%c0_5, %c0_6, %c0_7] : memref<2x10x32xf32, #tpu.memory_space<vmem>>, vector<1x10x32xf32>
    %6 = vector.shape_cast %5 : vector<1x10x32xf32> to vector<10x32xf32>
    %7 = arith.addf %4, %6 : vector<10x32xf32>
    %c0_8 = arith.constant 0 : index
    %c0_9 = arith.constant 0 : index
    %c0_10 = arith.constant 0 : index
    %c0_11 = arith.constant 0 : index
    %8 = vector.load %arg6[%c0_8, %c0_9, %c0_10, %c0_11] : memref<2x2x6x32xf32, #tpu.memory_space<vmem>>, vector<1x1x6x32xf32>
    %9 = vector.shape_cast %8 : vector<1x1x6x32xf32> to vector<6x32xf32>
    %10 = vector.extract_strided_slice %9 {offsets = [0, 0], sizes = [1, 32], strides = [1, 1]} : vector<6x32xf32> to vector<1x32xf32>
    %11 = vector.extract_strided_slice %9 {offsets = [1, 0], sizes = [1, 32], strides = [1, 1]} : vector<6x32xf32> to vector<1x32xf32>
    %12 = vector.extract_strided_slice %9 {offsets = [2, 0], sizes = [1, 32], strides = [1, 1]} : vector<6x32xf32> to vector<1x32xf32>
    %13 = vector.extract_strided_slice %9 {offsets = [3, 0], sizes = [1, 32], strides = [1, 1]} : vector<6x32xf32> to vector<1x32xf32>
    %14 = vector.extract_strided_slice %9 {offsets = [4, 0], sizes = [1, 32], strides = [1, 1]} : vector<6x32xf32> to vector<1x32xf32>
    %15 = vector.extract_strided_slice %9 {offsets = [5, 0], sizes = [1, 32], strides = [1, 1]} : vector<6x32xf32> to vector<1x32xf32>
    %cst_12 = arith.constant dense<0.000000e+00> : vector<10xf32>
    %16 = vector.multi_reduction <add>, %7, %cst_12 [1] : vector<10x32xf32> to vector<10xf32>
    %17 = vector.shape_cast %16 : vector<10xf32> to vector<10x1xf32>
    %cst_13 = arith.constant 3.200000e+01 : f32
    %18 = vector.broadcast %cst_13 : f32 to vector<10x1xf32>
    %19 = arith.divf %17, %18 : vector<10x1xf32>
    %20 = vector.broadcast %19 : vector<10x1xf32> to vector<10x32xf32>
    %21 = arith.subf %7, %20 : vector<10x32xf32>
    %22 = arith.mulf %21, %21 : vector<10x32xf32>
    %cst_14 = arith.constant dense<0.000000e+00> : vector<10xf32>
    %23 = vector.multi_reduction <add>, %22, %cst_14 [1] : vector<10x32xf32> to vector<10xf32>
    %24 = vector.shape_cast %23 : vector<10xf32> to vector<10x1xf32>
    %cst_15 = arith.constant 3.200000e+01 : f32
    %25 = vector.broadcast %cst_15 : f32 to vector<10x1xf32>
    %26 = arith.divf %24, %25 : vector<10x1xf32>
    %27 = vector.broadcast %19 : vector<10x1xf32> to vector<10x32xf32>
    %28 = arith.subf %7, %27 : vector<10x32xf32>
    %cst_16 = arith.constant 9.99999996E-13 : f32
    %29 = vector.broadcast %cst_16 : f32 to vector<10x1xf32>
    %30 = arith.addf %26, %29 : vector<10x1xf32>
    %31 = math.rsqrt %30 : vector<10x1xf32>
    %32 = vector.broadcast %31 : vector<10x1xf32> to vector<10x32xf32>
    %33 = arith.mulf %28, %32 : vector<10x32xf32>
    %34 = vector.broadcast %10 : vector<1x32xf32> to vector<10x32xf32>
    %35 = arith.mulf %33, %34 : vector<10x32xf32>
    %36 = vector.broadcast %11 : vector<1x32xf32> to vector<10x32xf32>
    %37 = arith.addf %35, %36 : vector<10x32xf32>
    %c0_17 = arith.constant 0 : index
    %c0_18 = arith.constant 0 : index
    %c0_19 = arith.constant 0 : index
    %c0_20 = arith.constant 0 : index
    %38 = vector.load %arg3[%c0_17, %c0_18, %c0_19, %c0_20] : memref<2x2x32x96xf32, #tpu.memory_space<vmem>>, vector<1x1x32x96xf32>
    %39 = vector.shape_cast %38 : vector<1x1x32x96xf32> to vector<32x96xf32>
    %cst_21 = arith.constant dense<0.000000e+00> : vector<10x96xf32>
    %40 = tpu.matmul %37, %39, %cst_21 {dimension_numbers = #tpu.dot_dimension_numbers<[1], [0], [0], [1], [0, 0, 1, 1], [], []>} : vector<10x32xf32>, vector<32x96xf32>, vector<10x96xf32> -> vector<10x96xf32>
    %c0_22 = arith.constant 0 : index
    %c0_23 = arith.constant 0 : index
    %c0_24 = arith.constant 0 : index
    %c0_25 = arith.constant 0 : index
    %41 = vector.load %arg4[%c0_22, %c0_23, %c0_24, %c0_25] : memref<2x2x1x96xf32, #tpu.memory_space<vmem>>, vector<1x1x1x96xf32>
    %42 = vector.shape_cast %41 : vector<1x1x1x96xf32> to vector<1x96xf32>
    %43 = vector.broadcast %42 : vector<1x96xf32> to vector<10x96xf32>
    %44 = arith.addf %40, %43 : vector<10x96xf32>
    %45 = vector.extract_strided_slice %44 {offsets = [0, 0], sizes = [10, 32], strides = [1, 1]} : vector<10x96xf32> to vector<10x32xf32>
    %46 = vector.extract_strided_slice %44 {offsets = [0, 32], sizes = [10, 32], strides = [1, 1]} : vector<10x96xf32> to vector<10x32xf32>
    %47 = vector.extract_strided_slice %44 {offsets = [0, 64], sizes = [10, 32], strides = [1, 1]} : vector<10x96xf32> to vector<10x32xf32>
    %48 = vector.extract_strided_slice %45 {offsets = [0, 0], sizes = [5, 8], strides = [1, 1]} : vector<10x32xf32> to vector<5x8xf32>
    %49 = vector.extract_strided_slice %46 {offsets = [0, 0], sizes = [5, 8], strides = [1, 1]} : vector<10x32xf32> to vector<5x8xf32>
    %50 = vector.extract_strided_slice %47 {offsets = [0, 0], sizes = [5, 8], strides = [1, 1]} : vector<10x32xf32> to vector<5x8xf32>
    %51 = tpu.transpose %49, [1, 0] : vector<5x8xf32> -> vector<8x5xf32>
    %cst_26 = arith.constant dense<0.000000e+00> : vector<5x5xf32>
    %52 = tpu.matmul %48, %51, %cst_26 {dimension_numbers = #tpu.dot_dimension_numbers<[1], [0], [0], [1], [0, 0, 1, 1], [], []>} : vector<5x8xf32>, vector<8x5xf32>, vector<5x5xf32> -> vector<5x5xf32>
    %cst_27 = arith.constant 0.353553385 : f32
    %53 = vector.broadcast %cst_27 : f32 to vector<5x5xf32>
    %54 = arith.mulf %52, %53 : vector<5x5xf32>
    %cst_28 = arith.constant dense<0xFF800000> : vector<5xf32>
    %55 = vector.multi_reduction <maximumf>, %54, %cst_28 [1] : vector<5x5xf32> to vector<5xf32>
    %cst_29 = arith.constant 0xFF800000 : f32
    %56 = vector.broadcast %cst_29 : f32 to vector<5xf32>
    %57 = arith.maximumf %56, %55 : vector<5xf32>
    %58 = vector.shape_cast %57 : vector<5xf32> to vector<5x1xf32>
    %59 = vector.broadcast %58 : vector<5x1xf32> to vector<5x5xf32>
    %60 = arith.subf %54, %59 : vector<5x5xf32>
    %61 = math.exp %60 : vector<5x5xf32>
    %cst_30 = arith.constant dense<0.000000e+00> : vector<5xf32>
    %62 = vector.multi_reduction <add>, %61, %cst_30 [1] : vector<5x5xf32> to vector<5xf32>
    %63 = vector.shape_cast %62 : vector<5xf32> to vector<5x1xf32>
    %64 = vector.broadcast %63 : vector<5x1xf32> to vector<5x5xf32>
    %65 = arith.divf %61, %64 : vector<5x5xf32>
    %cst_31 = arith.constant dense<0.000000e+00> : vector<5x8xf32>
    %66 = tpu.matmul %65, %50, %cst_31 {dimension_numbers = #tpu.dot_dimension_numbers<[1], [0], [0], [1], [0, 0, 1, 1], [], []>} : vector<5x5xf32>, vector<5x8xf32>, vector<5x8xf32> -> vector<5x8xf32>
    %67 = vector.extract_strided_slice %45 {offsets = [0, 8], sizes = [5, 8], strides = [1, 1]} : vector<10x32xf32> to vector<5x8xf32>
    %68 = vector.extract_strided_slice %46 {offsets = [0, 8], sizes = [5, 8], strides = [1, 1]} : vector<10x32xf32> to vector<5x8xf32>
    %69 = vector.extract_strided_slice %47 {offsets = [0, 8], sizes = [5, 8], strides = [1, 1]} : vector<10x32xf32> to vector<5x8xf32>
    %70 = tpu.transpose %68, [1, 0] : vector<5x8xf32> -> vector<8x5xf32>
    %cst_32 = arith.constant dense<0.000000e+00> : vector<5x5xf32>
    %71 = tpu.matmul %67, %70, %cst_32 {dimension_numbers = #tpu.dot_dimension_numbers<[1], [0], [0], [1], [0, 0, 1, 1], [], []>} : vector<5x8xf32>, vector<8x5xf32>, vector<5x5xf32> -> vector<5x5xf32>
    %cst_33 = arith.constant 0.353553385 : f32
    %72 = vector.broadcast %cst_33 : f32 to vector<5x5xf32>
    %73 = arith.mulf %71, %72 : vector<5x5xf32>
    %cst_34 = arith.constant dense<0xFF800000> : vector<5xf32>
    %74 = vector.multi_reduction <maximumf>, %73, %cst_34 [1] : vector<5x5xf32> to vector<5xf32>
    %cst_35 = arith.constant 0xFF800000 : f32
    %75 = vector.broadcast %cst_35 : f32 to vector<5xf32>
    %76 = arith.maximumf %75, %74 : vector<5xf32>
    %77 = vector.shape_cast %76 : vector<5xf32> to vector<5x1xf32>
    %78 = vector.broadcast %77 : vector<5x1xf32> to vector<5x5xf32>
    %79 = arith.subf %73, %78 : vector<5x5xf32>
    %80 = math.exp %79 : vector<5x5xf32>
    %cst_36 = arith.constant dense<0.000000e+00> : vector<5xf32>
    %81 = vector.multi_reduction <add>, %80, %cst_36 [1] : vector<5x5xf32> to vector<5xf32>
    %82 = vector.shape_cast %81 : vector<5xf32> to vector<5x1xf32>
    %83 = vector.broadcast %82 : vector<5x1xf32> to vector<5x5xf32>
    %84 = arith.divf %80, %83 : vector<5x5xf32>
    %cst_37 = arith.constant dense<0.000000e+00> : vector<5x8xf32>
    %85 = tpu.matmul %84, %69, %cst_37 {dimension_numbers = #tpu.dot_dimension_numbers<[1], [0], [0], [1], [0, 0, 1, 1], [], []>} : vector<5x5xf32>, vector<5x8xf32>, vector<5x8xf32> -> vector<5x8xf32>
    %86 = vector.extract_strided_slice %45 {offsets = [0, 16], sizes = [5, 8], strides = [1, 1]} : vector<10x32xf32> to vector<5x8xf32>
    %87 = vector.extract_strided_slice %46 {offsets = [0, 16], sizes = [5, 8], strides = [1, 1]} : vector<10x32xf32> to vector<5x8xf32>
    %88 = vector.extract_strided_slice %47 {offsets = [0, 16], sizes = [5, 8], strides = [1, 1]} : vector<10x32xf32> to vector<5x8xf32>
    %89 = tpu.transpose %87, [1, 0] : vector<5x8xf32> -> vector<8x5xf32>
    %cst_38 = arith.constant dense<0.000000e+00> : vector<5x5xf32>
    %90 = tpu.matmul %86, %89, %cst_38 {dimension_numbers = #tpu.dot_dimension_numbers<[1], [0], [0], [1], [0, 0, 1, 1], [], []>} : vector<5x8xf32>, vector<8x5xf32>, vector<5x5xf32> -> vector<5x5xf32>
    %cst_39 = arith.constant 0.353553385 : f32
    %91 = vector.broadcast %cst_39 : f32 to vector<5x5xf32>
    %92 = arith.mulf %90, %91 : vector<5x5xf32>
    %cst_40 = arith.constant dense<0xFF800000> : vector<5xf32>
    %93 = vector.multi_reduction <maximumf>, %92, %cst_40 [1] : vector<5x5xf32> to vector<5xf32>
    %cst_41 = arith.constant 0xFF800000 : f32
    %94 = vector.broadcast %cst_41 : f32 to vector<5xf32>
    %95 = arith.maximumf %94, %93 : vector<5xf32>
    %96 = vector.shape_cast %95 : vector<5xf32> to vector<5x1xf32>
    %97 = vector.broadcast %96 : vector<5x1xf32> to vector<5x5xf32>
    %98 = arith.subf %92, %97 : vector<5x5xf32>
    %99 = math.exp %98 : vector<5x5xf32>
    %cst_42 = arith.constant dense<0.000000e+00> : vector<5xf32>
    %100 = vector.multi_reduction <add>, %99, %cst_42 [1] : vector<5x5xf32> to vector<5xf32>
    %101 = vector.shape_cast %100 : vector<5xf32> to vector<5x1xf32>
    %102 = vector.broadcast %101 : vector<5x1xf32> to vector<5x5xf32>
    %103 = arith.divf %99, %102 : vector<5x5xf32>
    %cst_43 = arith.constant dense<0.000000e+00> : vector<5x8xf32>
    %104 = tpu.matmul %103, %88, %cst_43 {dimension_numbers = #tpu.dot_dimension_numbers<[1], [0], [0], [1], [0, 0, 1, 1], [], []>} : vector<5x5xf32>, vector<5x8xf32>, vector<5x8xf32> -> vector<5x8xf32>
    %105 = vector.extract_strided_slice %45 {offsets = [0, 24], sizes = [5, 8], strides = [1, 1]} : vector<10x32xf32> to vector<5x8xf32>
    %106 = vector.extract_strided_slice %46 {offsets = [0, 24], sizes = [5, 8], strides = [1, 1]} : vector<10x32xf32> to vector<5x8xf32>
    %107 = vector.extract_strided_slice %47 {offsets = [0, 24], sizes = [5, 8], strides = [1, 1]} : vector<10x32xf32> to vector<5x8xf32>
    %108 = tpu.transpose %106, [1, 0] : vector<5x8xf32> -> vector<8x5xf32>
    %cst_44 = arith.constant dense<0.000000e+00> : vector<5x5xf32>
    %109 = tpu.matmul %105, %108, %cst_44 {dimension_numbers = #tpu.dot_dimension_numbers<[1], [0], [0], [1], [0, 0, 1, 1], [], []>} : vector<5x8xf32>, vector<8x5xf32>, vector<5x5xf32> -> vector<5x5xf32>
    %cst_45 = arith.constant 0.353553385 : f32
    %110 = vector.broadcast %cst_45 : f32 to vector<5x5xf32>
    %111 = arith.mulf %109, %110 : vector<5x5xf32>
    %cst_46 = arith.constant dense<0xFF800000> : vector<5xf32>
    %112 = vector.multi_reduction <maximumf>, %111, %cst_46 [1] : vector<5x5xf32> to vector<5xf32>
    %cst_47 = arith.constant 0xFF800000 : f32
    %113 = vector.broadcast %cst_47 : f32 to vector<5xf32>
    %114 = arith.maximumf %113, %112 : vector<5xf32>
    %115 = vector.shape_cast %114 : vector<5xf32> to vector<5x1xf32>
    %116 = vector.broadcast %115 : vector<5x1xf32> to vector<5x5xf32>
    %117 = arith.subf %111, %116 : vector<5x5xf32>
    %118 = math.exp %117 : vector<5x5xf32>
    %cst_48 = arith.constant dense<0.000000e+00> : vector<5xf32>
    %119 = vector.multi_reduction <add>, %118, %cst_48 [1] : vector<5x5xf32> to vector<5xf32>
    %120 = vector.shape_cast %119 : vector<5xf32> to vector<5x1xf32>
    %121 = vector.broadcast %120 : vector<5x1xf32> to vector<5x5xf32>
    %122 = arith.divf %118, %121 : vector<5x5xf32>
    %cst_49 = arith.constant dense<0.000000e+00> : vector<5x8xf32>
    %123 = tpu.matmul %122, %107, %cst_49 {dimension_numbers = #tpu.dot_dimension_numbers<[1], [0], [0], [1], [0, 0, 1, 1], [], []>} : vector<5x5xf32>, vector<5x8xf32>, vector<5x8xf32> -> vector<5x8xf32>
    %124 = tpu.concatenate %66, %85, %104, %123 in 1 : vector<5x8xf32>, vector<5x8xf32>, vector<5x8xf32>, vector<5x8xf32> -> vector<5x32xf32>
    %125 = vector.extract_strided_slice %45 {offsets = [5, 0], sizes = [5, 8], strides = [1, 1]} : vector<10x32xf32> to vector<5x8xf32>
    %126 = vector.extract_strided_slice %46 {offsets = [5, 0], sizes = [5, 8], strides = [1, 1]} : vector<10x32xf32> to vector<5x8xf32>
    %127 = vector.extract_strided_slice %47 {offsets = [5, 0], sizes = [5, 8], strides = [1, 1]} : vector<10x32xf32> to vector<5x8xf32>
    %128 = tpu.transpose %126, [1, 0] : vector<5x8xf32> -> vector<8x5xf32>
    %cst_50 = arith.constant dense<0.000000e+00> : vector<5x5xf32>
    %129 = tpu.matmul %125, %128, %cst_50 {dimension_numbers = #tpu.dot_dimension_numbers<[1], [0], [0], [1], [0, 0, 1, 1], [], []>} : vector<5x8xf32>, vector<8x5xf32>, vector<5x5xf32> -> vector<5x5xf32>
    %cst_51 = arith.constant 0.353553385 : f32
    %130 = vector.broadcast %cst_51 : f32 to vector<5x5xf32>
    %131 = arith.mulf %129, %130 : vector<5x5xf32>
    %cst_52 = arith.constant dense<0xFF800000> : vector<5xf32>
    %132 = vector.multi_reduction <maximumf>, %131, %cst_52 [1] : vector<5x5xf32> to vector<5xf32>
    %cst_53 = arith.constant 0xFF800000 : f32
    %133 = vector.broadcast %cst_53 : f32 to vector<5xf32>
    %134 = arith.maximumf %133, %132 : vector<5xf32>
    %135 = vector.shape_cast %134 : vector<5xf32> to vector<5x1xf32>
    %136 = vector.broadcast %135 : vector<5x1xf32> to vector<5x5xf32>
    %137 = arith.subf %131, %136 : vector<5x5xf32>
    %138 = math.exp %137 : vector<5x5xf32>
    %cst_54 = arith.constant dense<0.000000e+00> : vector<5xf32>
    %139 = vector.multi_reduction <add>, %138, %cst_54 [1] : vector<5x5xf32> to vector<5xf32>
    %140 = vector.shape_cast %139 : vector<5xf32> to vector<5x1xf32>
    %141 = vector.broadcast %140 : vector<5x1xf32> to vector<5x5xf32>
    %142 = arith.divf %138, %141 : vector<5x5xf32>
    %cst_55 = arith.constant dense<0.000000e+00> : vector<5x8xf32>
    %143 = tpu.matmul %142, %127, %cst_55 {dimension_numbers = #tpu.dot_dimension_numbers<[1], [0], [0], [1], [0, 0, 1, 1], [], []>} : vector<5x5xf32>, vector<5x8xf32>, vector<5x8xf32> -> vector<5x8xf32>
    %144 = vector.extract_strided_slice %45 {offsets = [5, 8], sizes = [5, 8], strides = [1, 1]} : vector<10x32xf32> to vector<5x8xf32>
    %145 = vector.extract_strided_slice %46 {offsets = [5, 8], sizes = [5, 8], strides = [1, 1]} : vector<10x32xf32> to vector<5x8xf32>
    %146 = vector.extract_strided_slice %47 {offsets = [5, 8], sizes = [5, 8], strides = [1, 1]} : vector<10x32xf32> to vector<5x8xf32>
    %147 = tpu.transpose %145, [1, 0] : vector<5x8xf32> -> vector<8x5xf32>
    %cst_56 = arith.constant dense<0.000000e+00> : vector<5x5xf32>
    %148 = tpu.matmul %144, %147, %cst_56 {dimension_numbers = #tpu.dot_dimension_numbers<[1], [0], [0], [1], [0, 0, 1, 1], [], []>} : vector<5x8xf32>, vector<8x5xf32>, vector<5x5xf32> -> vector<5x5xf32>
    %cst_57 = arith.constant 0.353553385 : f32
    %149 = vector.broadcast %cst_57 : f32 to vector<5x5xf32>
    %150 = arith.mulf %148, %149 : vector<5x5xf32>
    %cst_58 = arith.constant dense<0xFF800000> : vector<5xf32>
    %151 = vector.multi_reduction <maximumf>, %150, %cst_58 [1] : vector<5x5xf32> to vector<5xf32>
    %cst_59 = arith.constant 0xFF800000 : f32
    %152 = vector.broadcast %cst_59 : f32 to vector<5xf32>
    %153 = arith.maximumf %152, %151 : vector<5xf32>
    %154 = vector.shape_cast %153 : vector<5xf32> to vector<5x1xf32>
    %155 = vector.broadcast %154 : vector<5x1xf32> to vector<5x5xf32>
    %156 = arith.subf %150, %155 : vector<5x5xf32>
    %157 = math.exp %156 : vector<5x5xf32>
    %cst_60 = arith.constant dense<0.000000e+00> : vector<5xf32>
    %158 = vector.multi_reduction <add>, %157, %cst_60 [1] : vector<5x5xf32> to vector<5xf32>
    %159 = vector.shape_cast %158 : vector<5xf32> to vector<5x1xf32>
    %160 = vector.broadcast %159 : vector<5x1xf32> to vector<5x5xf32>
    %161 = arith.divf %157, %160 : vector<5x5xf32>
    %cst_61 = arith.constant dense<0.000000e+00> : vector<5x8xf32>
    %162 = tpu.matmul %161, %146, %cst_61 {dimension_numbers = #tpu.dot_dimension_numbers<[1], [0], [0], [1], [0, 0, 1, 1], [], []>} : vector<5x5xf32>, vector<5x8xf32>, vector<5x8xf32> -> vector<5x8xf32>
    %163 = vector.extract_strided_slice %45 {offsets = [5, 16], sizes = [5, 8], strides = [1, 1]} : vector<10x32xf32> to vector<5x8xf32>
    %164 = vector.extract_strided_slice %46 {offsets = [5, 16], sizes = [5, 8], strides = [1, 1]} : vector<10x32xf32> to vector<5x8xf32>
    %165 = vector.extract_strided_slice %47 {offsets = [5, 16], sizes = [5, 8], strides = [1, 1]} : vector<10x32xf32> to vector<5x8xf32>
    %166 = tpu.transpose %164, [1, 0] : vector<5x8xf32> -> vector<8x5xf32>
    %cst_62 = arith.constant dense<0.000000e+00> : vector<5x5xf32>
    %167 = tpu.matmul %163, %166, %cst_62 {dimension_numbers = #tpu.dot_dimension_numbers<[1], [0], [0], [1], [0, 0, 1, 1], [], []>} : vector<5x8xf32>, vector<8x5xf32>, vector<5x5xf32> -> vector<5x5xf32>
    %cst_63 = arith.constant 0.353553385 : f32
    %168 = vector.broadcast %cst_63 : f32 to vector<5x5xf32>
    %169 = arith.mulf %167, %168 : vector<5x5xf32>
    %cst_64 = arith.constant dense<0xFF800000> : vector<5xf32>
    %170 = vector.multi_reduction <maximumf>, %169, %cst_64 [1] : vector<5x5xf32> to vector<5xf32>
    %cst_65 = arith.constant 0xFF800000 : f32
    %171 = vector.broadcast %cst_65 : f32 to vector<5xf32>
    %172 = arith.maximumf %171, %170 : vector<5xf32>
    %173 = vector.shape_cast %172 : vector<5xf32> to vector<5x1xf32>
    %174 = vector.broadcast %173 : vector<5x1xf32> to vector<5x5xf32>
    %175 = arith.subf %169, %174 : vector<5x5xf32>
    %176 = math.exp %175 : vector<5x5xf32>
    %cst_66 = arith.constant dense<0.000000e+00> : vector<5xf32>
    %177 = vector.multi_reduction <add>, %176, %cst_66 [1] : vector<5x5xf32> to vector<5xf32>
    %178 = vector.shape_cast %177 : vector<5xf32> to vector<5x1xf32>
    %179 = vector.broadcast %178 : vector<5x1xf32> to vector<5x5xf32>
    %180 = arith.divf %176, %179 : vector<5x5xf32>
    %cst_67 = arith.constant dense<0.000000e+00> : vector<5x8xf32>
    %181 = tpu.matmul %180, %165, %cst_67 {dimension_numbers = #tpu.dot_dimension_numbers<[1], [0], [0], [1], [0, 0, 1, 1], [], []>} : vector<5x5xf32>, vector<5x8xf32>, vector<5x8xf32> -> vector<5x8xf32>
    %182 = vector.extract_strided_slice %45 {offsets = [5, 24], sizes = [5, 8], strides = [1, 1]} : vector<10x32xf32> to vector<5x8xf32>
    %183 = vector.extract_strided_slice %46 {offsets = [5, 24], sizes = [5, 8], strides = [1, 1]} : vector<10x32xf32> to vector<5x8xf32>
    %184 = vector.extract_strided_slice %47 {offsets = [5, 24], sizes = [5, 8], strides = [1, 1]} : vector<10x32xf32> to vector<5x8xf32>
    %185 = tpu.transpose %183, [1, 0] : vector<5x8xf32> -> vector<8x5xf32>
    %cst_68 = arith.constant dense<0.000000e+00> : vector<5x5xf32>
    %186 = tpu.matmul %182, %185, %cst_68 {dimension_numbers = #tpu.dot_dimension_numbers<[1], [0], [0], [1], [0, 0, 1, 1], [], []>} : vector<5x8xf32>, vector<8x5xf32>, vector<5x5xf32> -> vector<5x5xf32>
    %cst_69 = arith.constant 0.353553385 : f32
    %187 = vector.broadcast %cst_69 : f32 to vector<5x5xf32>
    %188 = arith.mulf %186, %187 : vector<5x5xf32>
    %cst_70 = arith.constant dense<0xFF800000> : vector<5xf32>
    %189 = vector.multi_reduction <maximumf>, %188, %cst_70 [1] : vector<5x5xf32> to vector<5xf32>
    %cst_71 = arith.constant 0xFF800000 : f32
    %190 = vector.broadcast %cst_71 : f32 to vector<5xf32>
    %191 = arith.maximumf %190, %189 : vector<5xf32>
    %192 = vector.shape_cast %191 : vector<5xf32> to vector<5x1xf32>
    %193 = vector.broadcast %192 : vector<5x1xf32> to vector<5x5xf32>
    %194 = arith.subf %188, %193 : vector<5x5xf32>
    %195 = math.exp %194 : vector<5x5xf32>
    %cst_72 = arith.constant dense<0.000000e+00> : vector<5xf32>
    %196 = vector.multi_reduction <add>, %195, %cst_72 [1] : vector<5x5xf32> to vector<5xf32>
    %197 = vector.shape_cast %196 : vector<5xf32> to vector<5x1xf32>
    %198 = vector.broadcast %197 : vector<5x1xf32> to vector<5x5xf32>
    %199 = arith.divf %195, %198 : vector<5x5xf32>
    %cst_73 = arith.constant dense<0.000000e+00> : vector<5x8xf32>
    %200 = tpu.matmul %199, %184, %cst_73 {dimension_numbers = #tpu.dot_dimension_numbers<[1], [0], [0], [1], [0, 0, 1, 1], [], []>} : vector<5x5xf32>, vector<5x8xf32>, vector<5x8xf32> -> vector<5x8xf32>
    %201 = tpu.concatenate %143, %162, %181, %200 in 1 : vector<5x8xf32>, vector<5x8xf32>, vector<5x8xf32>, vector<5x8xf32> -> vector<5x32xf32>
    %202 = tpu.concatenate %124, %201 in 0 : vector<5x32xf32>, vector<5x32xf32> -> vector<10x32xf32>
    %c0_74 = arith.constant 0 : index
    %c0_75 = arith.constant 0 : index
    %c0_76 = arith.constant 0 : index
    %c0_77 = arith.constant 0 : index
    %203 = vector.load %arg5[%c0_74, %c0_75, %c0_76, %c0_77] : memref<2x2x32x32xf32, #tpu.memory_space<vmem>>, vector<1x1x32x32xf32>
    %204 = vector.shape_cast %203 : vector<1x1x32x32xf32> to vector<32x32xf32>
    %cst_78 = arith.constant dense<0.000000e+00> : vector<10x32xf32>
    %205 = tpu.matmul %202, %204, %cst_78 {dimension_numbers = #tpu.dot_dimension_numbers<[1], [0], [0], [1], [0, 0, 1, 1], [], []>} : vector<10x32xf32>, vector<32x32xf32>, vector<10x32xf32> -> vector<10x32xf32>
    %206 = vector.broadcast %14 : vector<1x32xf32> to vector<10x32xf32>
    %207 = arith.addf %205, %206 : vector<10x32xf32>
    %208 = arith.addf %7, %207 : vector<10x32xf32>
    %cst_79 = arith.constant dense<0.000000e+00> : vector<10xf32>
    %209 = vector.multi_reduction <add>, %208, %cst_79 [1] : vector<10x32xf32> to vector<10xf32>
    %210 = vector.shape_cast %209 : vector<10xf32> to vector<10x1xf32>
    %cst_80 = arith.constant 3.200000e+01 : f32
    %211 = vector.broadcast %cst_80 : f32 to vector<10x1xf32>
    %212 = arith.divf %210, %211 : vector<10x1xf32>
    %213 = vector.broadcast %212 : vector<10x1xf32> to vector<10x32xf32>
    %214 = arith.subf %208, %213 : vector<10x32xf32>
    %215 = arith.mulf %214, %214 : vector<10x32xf32>
    %cst_81 = arith.constant dense<0.000000e+00> : vector<10xf32>
    %216 = vector.multi_reduction <add>, %215, %cst_81 [1] : vector<10x32xf32> to vector<10xf32>
    %217 = vector.shape_cast %216 : vector<10xf32> to vector<10x1xf32>
    %cst_82 = arith.constant 3.200000e+01 : f32
    %218 = vector.broadcast %cst_82 : f32 to vector<10x1xf32>
    %219 = arith.divf %217, %218 : vector<10x1xf32>
    %220 = vector.broadcast %212 : vector<10x1xf32> to vector<10x32xf32>
    %221 = arith.subf %208, %220 : vector<10x32xf32>
    %cst_83 = arith.constant 9.99999996E-13 : f32
    %222 = vector.broadcast %cst_83 : f32 to vector<10x1xf32>
    %223 = arith.addf %219, %222 : vector<10x1xf32>
    %224 = math.rsqrt %223 : vector<10x1xf32>
    %225 = vector.broadcast %224 : vector<10x1xf32> to vector<10x32xf32>
    %226 = arith.mulf %221, %225 : vector<10x32xf32>
    %227 = vector.broadcast %12 : vector<1x32xf32> to vector<10x32xf32>
    %228 = arith.mulf %226, %227 : vector<10x32xf32>
    %229 = vector.broadcast %13 : vector<1x32xf32> to vector<10x32xf32>
    %230 = arith.addf %228, %229 : vector<10x32xf32>
    %c0_84 = arith.constant 0 : index
    %c0_85 = arith.constant 0 : index
    %c0_86 = arith.constant 0 : index
    %c0_87 = arith.constant 0 : index
    %231 = vector.load %arg7[%c0_84, %c0_85, %c0_86, %c0_87] : memref<2x2x32x128xf32, #tpu.memory_space<vmem>>, vector<1x1x32x128xf32>
    %232 = vector.shape_cast %231 : vector<1x1x32x128xf32> to vector<32x128xf32>
    %cst_88 = arith.constant dense<0.000000e+00> : vector<10x128xf32>
    %233 = tpu.matmul %230, %232, %cst_88 {dimension_numbers = #tpu.dot_dimension_numbers<[1], [0], [0], [1], [0, 0, 1, 1], [], []>} : vector<10x32xf32>, vector<32x128xf32>, vector<10x128xf32> -> vector<10x128xf32>
    %c0_89 = arith.constant 0 : index
    %c0_90 = arith.constant 0 : index
    %c0_91 = arith.constant 0 : index
    %c0_92 = arith.constant 0 : index
    %234 = vector.load %arg8[%c0_89, %c0_90, %c0_91, %c0_92] : memref<2x2x1x128xf32, #tpu.memory_space<vmem>>, vector<1x1x1x128xf32>
    %235 = vector.shape_cast %234 : vector<1x1x1x128xf32> to vector<1x128xf32>
    %236 = vector.broadcast %235 : vector<1x128xf32> to vector<10x128xf32>
    %237 = arith.addf %233, %236 : vector<10x128xf32>
    %238 = arith.mulf %237, %237 : vector<10x128xf32>
    %239 = arith.mulf %237, %238 : vector<10x128xf32>
    %cst_93 = arith.constant 4.471500e-02 : f32
    %240 = vector.broadcast %cst_93 : f32 to vector<10x128xf32>
    %241 = arith.mulf %240, %239 : vector<10x128xf32>
    %242 = arith.addf %237, %241 : vector<10x128xf32>
    %cst_94 = arith.constant 0.797884583 : f32
    %243 = vector.broadcast %cst_94 : f32 to vector<10x128xf32>
    %244 = arith.mulf %243, %242 : vector<10x128xf32>
    %245 = math.tanh %244 : vector<10x128xf32>
    %cst_95 = arith.constant 1.000000e+00 : f32
    %246 = vector.broadcast %cst_95 : f32 to vector<10x128xf32>
    %247 = arith.addf %246, %245 : vector<10x128xf32>
    %cst_96 = arith.constant 5.000000e-01 : f32
    %248 = vector.broadcast %cst_96 : f32 to vector<10x128xf32>
    %249 = arith.mulf %248, %247 : vector<10x128xf32>
    %250 = arith.mulf %237, %249 : vector<10x128xf32>
    %c0_97 = arith.constant 0 : index
    %c0_98 = arith.constant 0 : index
    %c0_99 = arith.constant 0 : index
    %c0_100 = arith.constant 0 : index
    %251 = vector.load %arg9[%c0_97, %c0_98, %c0_99, %c0_100] : memref<2x2x128x32xf32, #tpu.memory_space<vmem>>, vector<1x1x128x32xf32>
    %252 = vector.shape_cast %251 : vector<1x1x128x32xf32> to vector<128x32xf32>
    %cst_101 = arith.constant dense<0.000000e+00> : vector<10x32xf32>
    %253 = tpu.matmul %250, %252, %cst_101 {dimension_numbers = #tpu.dot_dimension_numbers<[1], [0], [0], [1], [0, 0, 1, 1], [], []>} : vector<10x128xf32>, vector<128x32xf32>, vector<10x32xf32> -> vector<10x32xf32>
    %254 = arith.addf %208, %253 : vector<10x32xf32>
    %255 = vector.broadcast %15 : vector<1x32xf32> to vector<10x32xf32>
    %256 = arith.addf %254, %255 : vector<10x32xf32>
    %c0_102 = arith.constant 0 : index
    %c1 = arith.constant 1 : index
    %c0_103 = arith.constant 0 : index
    %c0_104 = arith.constant 0 : index
    %257 = vector.load %arg6[%c0_102, %c1, %c0_103, %c0_104] : memref<2x2x6x32xf32, #tpu.memory_space<vmem>>, vector<1x1x6x32xf32>
    %258 = vector.shape_cast %257 : vector<1x1x6x32xf32> to vector<6x32xf32>
    %259 = vector.extract_strided_slice %258 {offsets = [0, 0], sizes = [1, 32], strides = [1, 1]} : vector<6x32xf32> to vector<1x32xf32>
    %260 = vector.extract_strided_slice %258 {offsets = [1, 0], sizes = [1, 32], strides = [1, 1]} : vector<6x32xf32> to vector<1x32xf32>
    %261 = vector.extract_strided_slice %258 {offsets = [2, 0], sizes = [1, 32], strides = [1, 1]} : vector<6x32xf32> to vector<1x32xf32>
    %262 = vector.extract_strided_slice %258 {offsets = [3, 0], sizes = [1, 32], strides = [1, 1]} : vector<6x32xf32> to vector<1x32xf32>
    %263 = vector.extract_strided_slice %258 {offsets = [4, 0], sizes = [1, 32], strides = [1, 1]} : vector<6x32xf32> to vector<1x32xf32>
    %264 = vector.extract_strided_slice %258 {offsets = [5, 0], sizes = [1, 32], strides = [1, 1]} : vector<6x32xf32> to vector<1x32xf32>
    %cst_105 = arith.constant dense<0.000000e+00> : vector<10xf32>
    %265 = vector.multi_reduction <add>, %256, %cst_105 [1] : vector<10x32xf32> to vector<10xf32>
    %266 = vector.shape_cast %265 : vector<10xf32> to vector<10x1xf32>
    %cst_106 = arith.constant 3.200000e+01 : f32
    %267 = vector.broadcast %cst_106 : f32 to vector<10x1xf32>
    %268 = arith.divf %266, %267 : vector<10x1xf32>
    %269 = vector.broadcast %268 : vector<10x1xf32> to vector<10x32xf32>
    %270 = arith.subf %256, %269 : vector<10x32xf32>
    %271 = arith.mulf %270, %270 : vector<10x32xf32>
    %cst_107 = arith.constant dense<0.000000e+00> : vector<10xf32>
    %272 = vector.multi_reduction <add>, %271, %cst_107 [1] : vector<10x32xf32> to vector<10xf32>
    %273 = vector.shape_cast %272 : vector<10xf32> to vector<10x1xf32>
    %cst_108 = arith.constant 3.200000e+01 : f32
    %274 = vector.broadcast %cst_108 : f32 to vector<10x1xf32>
    %275 = arith.divf %273, %274 : vector<10x1xf32>
    %276 = vector.broadcast %268 : vector<10x1xf32> to vector<10x32xf32>
    %277 = arith.subf %256, %276 : vector<10x32xf32>
    %cst_109 = arith.constant 9.99999996E-13 : f32
    %278 = vector.broadcast %cst_109 : f32 to vector<10x1xf32>
    %279 = arith.addf %275, %278 : vector<10x1xf32>
    %280 = math.rsqrt %279 : vector<10x1xf32>
    %281 = vector.broadcast %280 : vector<10x1xf32> to vector<10x32xf32>
    %282 = arith.mulf %277, %281 : vector<10x32xf32>
    %283 = vector.broadcast %259 : vector<1x32xf32> to vector<10x32xf32>
    %284 = arith.mulf %282, %283 : vector<10x32xf32>
    %285 = vector.broadcast %260 : vector<1x32xf32> to vector<10x32xf32>
    %286 = arith.addf %284, %285 : vector<10x32xf32>
    %c0_110 = arith.constant 0 : index
    %c1_111 = arith.constant 1 : index
    %c0_112 = arith.constant 0 : index
    %c0_113 = arith.constant 0 : index
    %287 = vector.load %arg3[%c0_110, %c1_111, %c0_112, %c0_113] : memref<2x2x32x96xf32, #tpu.memory_space<vmem>>, vector<1x1x32x96xf32>
    %288 = vector.shape_cast %287 : vector<1x1x32x96xf32> to vector<32x96xf32>
    %cst_114 = arith.constant dense<0.000000e+00> : vector<10x96xf32>
    %289 = tpu.matmul %286, %288, %cst_114 {dimension_numbers = #tpu.dot_dimension_numbers<[1], [0], [0], [1], [0, 0, 1, 1], [], []>} : vector<10x32xf32>, vector<32x96xf32>, vector<10x96xf32> -> vector<10x96xf32>
    %c0_115 = arith.constant 0 : index
    %c1_116 = arith.constant 1 : index
    %c0_117 = arith.constant 0 : index
    %c0_118 = arith.constant 0 : index
    %290 = vector.load %arg4[%c0_115, %c1_116, %c0_117, %c0_118] : memref<2x2x1x96xf32, #tpu.memory_space<vmem>>, vector<1x1x1x96xf32>
    %291 = vector.shape_cast %290 : vector<1x1x1x96xf32> to vector<1x96xf32>
    %292 = vector.broadcast %291 : vector<1x96xf32> to vector<10x96xf32>
    %293 = arith.addf %289, %292 : vector<10x96xf32>
    %294 = vector.extract_strided_slice %293 {offsets = [0, 0], sizes = [10, 32], strides = [1, 1]} : vector<10x96xf32> to vector<10x32xf32>
    %295 = vector.extract_strided_slice %293 {offsets = [0, 32], sizes = [10, 32], strides = [1, 1]} : vector<10x96xf32> to vector<10x32xf32>
    %296 = vector.extract_strided_slice %293 {offsets = [0, 64], sizes = [10, 32], strides = [1, 1]} : vector<10x96xf32> to vector<10x32xf32>
    %297 = vector.extract_strided_slice %294 {offsets = [0, 0], sizes = [5, 8], strides = [1, 1]} : vector<10x32xf32> to vector<5x8xf32>
    %298 = vector.extract_strided_slice %295 {offsets = [0, 0], sizes = [5, 8], strides = [1, 1]} : vector<10x32xf32> to vector<5x8xf32>
    %299 = vector.extract_strided_slice %296 {offsets = [0, 0], sizes = [5, 8], strides = [1, 1]} : vector<10x32xf32> to vector<5x8xf32>
    %300 = tpu.transpose %298, [1, 0] : vector<5x8xf32> -> vector<8x5xf32>
    %cst_119 = arith.constant dense<0.000000e+00> : vector<5x5xf32>
    %301 = tpu.matmul %297, %300, %cst_119 {dimension_numbers = #tpu.dot_dimension_numbers<[1], [0], [0], [1], [0, 0, 1, 1], [], []>} : vector<5x8xf32>, vector<8x5xf32>, vector<5x5xf32> -> vector<5x5xf32>
    %cst_120 = arith.constant 0.353553385 : f32
    %302 = vector.broadcast %cst_120 : f32 to vector<5x5xf32>
    %303 = arith.mulf %301, %302 : vector<5x5xf32>
    %cst_121 = arith.constant dense<0xFF800000> : vector<5xf32>
    %304 = vector.multi_reduction <maximumf>, %303, %cst_121 [1] : vector<5x5xf32> to vector<5xf32>
    %cst_122 = arith.constant 0xFF800000 : f32
    %305 = vector.broadcast %cst_122 : f32 to vector<5xf32>
    %306 = arith.maximumf %305, %304 : vector<5xf32>
    %307 = vector.shape_cast %306 : vector<5xf32> to vector<5x1xf32>
    %308 = vector.broadcast %307 : vector<5x1xf32> to vector<5x5xf32>
    %309 = arith.subf %303, %308 : vector<5x5xf32>
    %310 = math.exp %309 : vector<5x5xf32>
    %cst_123 = arith.constant dense<0.000000e+00> : vector<5xf32>
    %311 = vector.multi_reduction <add>, %310, %cst_123 [1] : vector<5x5xf32> to vector<5xf32>
    %312 = vector.shape_cast %311 : vector<5xf32> to vector<5x1xf32>
    %313 = vector.broadcast %312 : vector<5x1xf32> to vector<5x5xf32>
    %314 = arith.divf %310, %313 : vector<5x5xf32>
    %cst_124 = arith.constant dense<0.000000e+00> : vector<5x8xf32>
    %315 = tpu.matmul %314, %299, %cst_124 {dimension_numbers = #tpu.dot_dimension_numbers<[1], [0], [0], [1], [0, 0, 1, 1], [], []>} : vector<5x5xf32>, vector<5x8xf32>, vector<5x8xf32> -> vector<5x8xf32>
    %316 = vector.extract_strided_slice %294 {offsets = [0, 8], sizes = [5, 8], strides = [1, 1]} : vector<10x32xf32> to vector<5x8xf32>
    %317 = vector.extract_strided_slice %295 {offsets = [0, 8], sizes = [5, 8], strides = [1, 1]} : vector<10x32xf32> to vector<5x8xf32>
    %318 = vector.extract_strided_slice %296 {offsets = [0, 8], sizes = [5, 8], strides = [1, 1]} : vector<10x32xf32> to vector<5x8xf32>
    %319 = tpu.transpose %317, [1, 0] : vector<5x8xf32> -> vector<8x5xf32>
    %cst_125 = arith.constant dense<0.000000e+00> : vector<5x5xf32>
    %320 = tpu.matmul %316, %319, %cst_125 {dimension_numbers = #tpu.dot_dimension_numbers<[1], [0], [0], [1], [0, 0, 1, 1], [], []>} : vector<5x8xf32>, vector<8x5xf32>, vector<5x5xf32> -> vector<5x5xf32>
    %cst_126 = arith.constant 0.353553385 : f32
    %321 = vector.broadcast %cst_126 : f32 to vector<5x5xf32>
    %322 = arith.mulf %320, %321 : vector<5x5xf32>
    %cst_127 = arith.constant dense<0xFF800000> : vector<5xf32>
    %323 = vector.multi_reduction <maximumf>, %322, %cst_127 [1] : vector<5x5xf32> to vector<5xf32>
    %cst_128 = arith.constant 0xFF800000 : f32
    %324 = vector.broadcast %cst_128 : f32 to vector<5xf32>
    %325 = arith.maximumf %324, %323 : vector<5xf32>
    %326 = vector.shape_cast %325 : vector<5xf32> to vector<5x1xf32>
    %327 = vector.broadcast %326 : vector<5x1xf32> to vector<5x5xf32>
    %328 = arith.subf %322, %327 : vector<5x5xf32>
    %329 = math.exp %328 : vector<5x5xf32>
    %cst_129 = arith.constant dense<0.000000e+00> : vector<5xf32>
    %330 = vector.multi_reduction <add>, %329, %cst_129 [1] : vector<5x5xf32> to vector<5xf32>
    %331 = vector.shape_cast %330 : vector<5xf32> to vector<5x1xf32>
    %332 = vector.broadcast %331 : vector<5x1xf32> to vector<5x5xf32>
    %333 = arith.divf %329, %332 : vector<5x5xf32>
    %cst_130 = arith.constant dense<0.000000e+00> : vector<5x8xf32>
    %334 = tpu.matmul %333, %318, %cst_130 {dimension_numbers = #tpu.dot_dimension_numbers<[1], [0], [0], [1], [0, 0, 1, 1], [], []>} : vector<5x5xf32>, vector<5x8xf32>, vector<5x8xf32> -> vector<5x8xf32>
    %335 = vector.extract_strided_slice %294 {offsets = [0, 16], sizes = [5, 8], strides = [1, 1]} : vector<10x32xf32> to vector<5x8xf32>
    %336 = vector.extract_strided_slice %295 {offsets = [0, 16], sizes = [5, 8], strides = [1, 1]} : vector<10x32xf32> to vector<5x8xf32>
    %337 = vector.extract_strided_slice %296 {offsets = [0, 16], sizes = [5, 8], strides = [1, 1]} : vector<10x32xf32> to vector<5x8xf32>
    %338 = tpu.transpose %336, [1, 0] : vector<5x8xf32> -> vector<8x5xf32>
    %cst_131 = arith.constant dense<0.000000e+00> : vector<5x5xf32>
    %339 = tpu.matmul %335, %338, %cst_131 {dimension_numbers = #tpu.dot_dimension_numbers<[1], [0], [0], [1], [0, 0, 1, 1], [], []>} : vector<5x8xf32>, vector<8x5xf32>, vector<5x5xf32> -> vector<5x5xf32>
    %cst_132 = arith.constant 0.353553385 : f32
    %340 = vector.broadcast %cst_132 : f32 to vector<5x5xf32>
    %341 = arith.mulf %339, %340 : vector<5x5xf32>
    %cst_133 = arith.constant dense<0xFF800000> : vector<5xf32>
    %342 = vector.multi_reduction <maximumf>, %341, %cst_133 [1] : vector<5x5xf32> to vector<5xf32>
    %cst_134 = arith.constant 0xFF800000 : f32
    %343 = vector.broadcast %cst_134 : f32 to vector<5xf32>
    %344 = arith.maximumf %343, %342 : vector<5xf32>
    %345 = vector.shape_cast %344 : vector<5xf32> to vector<5x1xf32>
    %346 = vector.broadcast %345 : vector<5x1xf32> to vector<5x5xf32>
    %347 = arith.subf %341, %346 : vector<5x5xf32>
    %348 = math.exp %347 : vector<5x5xf32>
    %cst_135 = arith.constant dense<0.000000e+00> : vector<5xf32>
    %349 = vector.multi_reduction <add>, %348, %cst_135 [1] : vector<5x5xf32> to vector<5xf32>
    %350 = vector.shape_cast %349 : vector<5xf32> to vector<5x1xf32>
    %351 = vector.broadcast %350 : vector<5x1xf32> to vector<5x5xf32>
    %352 = arith.divf %348, %351 : vector<5x5xf32>
    %cst_136 = arith.constant dense<0.000000e+00> : vector<5x8xf32>
    %353 = tpu.matmul %352, %337, %cst_136 {dimension_numbers = #tpu.dot_dimension_numbers<[1], [0], [0], [1], [0, 0, 1, 1], [], []>} : vector<5x5xf32>, vector<5x8xf32>, vector<5x8xf32> -> vector<5x8xf32>
    %354 = vector.extract_strided_slice %294 {offsets = [0, 24], sizes = [5, 8], strides = [1, 1]} : vector<10x32xf32> to vector<5x8xf32>
    %355 = vector.extract_strided_slice %295 {offsets = [0, 24], sizes = [5, 8], strides = [1, 1]} : vector<10x32xf32> to vector<5x8xf32>
    %356 = vector.extract_strided_slice %296 {offsets = [0, 24], sizes = [5, 8], strides = [1, 1]} : vector<10x32xf32> to vector<5x8xf32>
    %357 = tpu.transpose %355, [1, 0] : vector<5x8xf32> -> vector<8x5xf32>
    %cst_137 = arith.constant dense<0.000000e+00> : vector<5x5xf32>
    %358 = tpu.matmul %354, %357, %cst_137 {dimension_numbers = #tpu.dot_dimension_numbers<[1], [0], [0], [1], [0, 0, 1, 1], [], []>} : vector<5x8xf32>, vector<8x5xf32>, vector<5x5xf32> -> vector<5x5xf32>
    %cst_138 = arith.constant 0.353553385 : f32
    %359 = vector.broadcast %cst_138 : f32 to vector<5x5xf32>
    %360 = arith.mulf %358, %359 : vector<5x5xf32>
    %cst_139 = arith.constant dense<0xFF800000> : vector<5xf32>
    %361 = vector.multi_reduction <maximumf>, %360, %cst_139 [1] : vector<5x5xf32> to vector<5xf32>
    %cst_140 = arith.constant 0xFF800000 : f32
    %362 = vector.broadcast %cst_140 : f32 to vector<5xf32>
    %363 = arith.maximumf %362, %361 : vector<5xf32>
    %364 = vector.shape_cast %363 : vector<5xf32> to vector<5x1xf32>
    %365 = vector.broadcast %364 : vector<5x1xf32> to vector<5x5xf32>
    %366 = arith.subf %360, %365 : vector<5x5xf32>
    %367 = math.exp %366 : vector<5x5xf32>
    %cst_141 = arith.constant dense<0.000000e+00> : vector<5xf32>
    %368 = vector.multi_reduction <add>, %367, %cst_141 [1] : vector<5x5xf32> to vector<5xf32>
    %369 = vector.shape_cast %368 : vector<5xf32> to vector<5x1xf32>
    %370 = vector.broadcast %369 : vector<5x1xf32> to vector<5x5xf32>
    %371 = arith.divf %367, %370 : vector<5x5xf32>
    %cst_142 = arith.constant dense<0.000000e+00> : vector<5x8xf32>
    %372 = tpu.matmul %371, %356, %cst_142 {dimension_numbers = #tpu.dot_dimension_numbers<[1], [0], [0], [1], [0, 0, 1, 1], [], []>} : vector<5x5xf32>, vector<5x8xf32>, vector<5x8xf32> -> vector<5x8xf32>
    %373 = tpu.concatenate %315, %334, %353, %372 in 1 : vector<5x8xf32>, vector<5x8xf32>, vector<5x8xf32>, vector<5x8xf32> -> vector<5x32xf32>
    %374 = vector.extract_strided_slice %294 {offsets = [5, 0], sizes = [5, 8], strides = [1, 1]} : vector<10x32xf32> to vector<5x8xf32>
    %375 = vector.extract_strided_slice %295 {offsets = [5, 0], sizes = [5, 8], strides = [1, 1]} : vector<10x32xf32> to vector<5x8xf32>
    %376 = vector.extract_strided_slice %296 {offsets = [5, 0], sizes = [5, 8], strides = [1, 1]} : vector<10x32xf32> to vector<5x8xf32>
    %377 = tpu.transpose %375, [1, 0] : vector<5x8xf32> -> vector<8x5xf32>
    %cst_143 = arith.constant dense<0.000000e+00> : vector<5x5xf32>
    %378 = tpu.matmul %374, %377, %cst_143 {dimension_numbers = #tpu.dot_dimension_numbers<[1], [0], [0], [1], [0, 0, 1, 1], [], []>} : vector<5x8xf32>, vector<8x5xf32>, vector<5x5xf32> -> vector<5x5xf32>
    %cst_144 = arith.constant 0.353553385 : f32
    %379 = vector.broadcast %cst_144 : f32 to vector<5x5xf32>
    %380 = arith.mulf %378, %379 : vector<5x5xf32>
    %cst_145 = arith.constant dense<0xFF800000> : vector<5xf32>
    %381 = vector.multi_reduction <maximumf>, %380, %cst_145 [1] : vector<5x5xf32> to vector<5xf32>
    %cst_146 = arith.constant 0xFF800000 : f32
    %382 = vector.broadcast %cst_146 : f32 to vector<5xf32>
    %383 = arith.maximumf %382, %381 : vector<5xf32>
    %384 = vector.shape_cast %383 : vector<5xf32> to vector<5x1xf32>
    %385 = vector.broadcast %384 : vector<5x1xf32> to vector<5x5xf32>
    %386 = arith.subf %380, %385 : vector<5x5xf32>
    %387 = math.exp %386 : vector<5x5xf32>
    %cst_147 = arith.constant dense<0.000000e+00> : vector<5xf32>
    %388 = vector.multi_reduction <add>, %387, %cst_147 [1] : vector<5x5xf32> to vector<5xf32>
    %389 = vector.shape_cast %388 : vector<5xf32> to vector<5x1xf32>
    %390 = vector.broadcast %389 : vector<5x1xf32> to vector<5x5xf32>
    %391 = arith.divf %387, %390 : vector<5x5xf32>
    %cst_148 = arith.constant dense<0.000000e+00> : vector<5x8xf32>
    %392 = tpu.matmul %391, %376, %cst_148 {dimension_numbers = #tpu.dot_dimension_numbers<[1], [0], [0], [1], [0, 0, 1, 1], [], []>} : vector<5x5xf32>, vector<5x8xf32>, vector<5x8xf32> -> vector<5x8xf32>
    %393 = vector.extract_strided_slice %294 {offsets = [5, 8], sizes = [5, 8], strides = [1, 1]} : vector<10x32xf32> to vector<5x8xf32>
    %394 = vector.extract_strided_slice %295 {offsets = [5, 8], sizes = [5, 8], strides = [1, 1]} : vector<10x32xf32> to vector<5x8xf32>
    %395 = vector.extract_strided_slice %296 {offsets = [5, 8], sizes = [5, 8], strides = [1, 1]} : vector<10x32xf32> to vector<5x8xf32>
    %396 = tpu.transpose %394, [1, 0] : vector<5x8xf32> -> vector<8x5xf32>
    %cst_149 = arith.constant dense<0.000000e+00> : vector<5x5xf32>
    %397 = tpu.matmul %393, %396, %cst_149 {dimension_numbers = #tpu.dot_dimension_numbers<[1], [0], [0], [1], [0, 0, 1, 1], [], []>} : vector<5x8xf32>, vector<8x5xf32>, vector<5x5xf32> -> vector<5x5xf32>
    %cst_150 = arith.constant 0.353553385 : f32
    %398 = vector.broadcast %cst_150 : f32 to vector<5x5xf32>
    %399 = arith.mulf %397, %398 : vector<5x5xf32>
    %cst_151 = arith.constant dense<0xFF800000> : vector<5xf32>
    %400 = vector.multi_reduction <maximumf>, %399, %cst_151 [1] : vector<5x5xf32> to vector<5xf32>
    %cst_152 = arith.constant 0xFF800000 : f32
    %401 = vector.broadcast %cst_152 : f32 to vector<5xf32>
    %402 = arith.maximumf %401, %400 : vector<5xf32>
    %403 = vector.shape_cast %402 : vector<5xf32> to vector<5x1xf32>
    %404 = vector.broadcast %403 : vector<5x1xf32> to vector<5x5xf32>
    %405 = arith.subf %399, %404 : vector<5x5xf32>
    %406 = math.exp %405 : vector<5x5xf32>
    %cst_153 = arith.constant dense<0.000000e+00> : vector<5xf32>
    %407 = vector.multi_reduction <add>, %406, %cst_153 [1] : vector<5x5xf32> to vector<5xf32>
    %408 = vector.shape_cast %407 : vector<5xf32> to vector<5x1xf32>
    %409 = vector.broadcast %408 : vector<5x1xf32> to vector<5x5xf32>
    %410 = arith.divf %406, %409 : vector<5x5xf32>
    %cst_154 = arith.constant dense<0.000000e+00> : vector<5x8xf32>
    %411 = tpu.matmul %410, %395, %cst_154 {dimension_numbers = #tpu.dot_dimension_numbers<[1], [0], [0], [1], [0, 0, 1, 1], [], []>} : vector<5x5xf32>, vector<5x8xf32>, vector<5x8xf32> -> vector<5x8xf32>
    %412 = vector.extract_strided_slice %294 {offsets = [5, 16], sizes = [5, 8], strides = [1, 1]} : vector<10x32xf32> to vector<5x8xf32>
    %413 = vector.extract_strided_slice %295 {offsets = [5, 16], sizes = [5, 8], strides = [1, 1]} : vector<10x32xf32> to vector<5x8xf32>
    %414 = vector.extract_strided_slice %296 {offsets = [5, 16], sizes = [5, 8], strides = [1, 1]} : vector<10x32xf32> to vector<5x8xf32>
    %415 = tpu.transpose %413, [1, 0] : vector<5x8xf32> -> vector<8x5xf32>
    %cst_155 = arith.constant dense<0.000000e+00> : vector<5x5xf32>
    %416 = tpu.matmul %412, %415, %cst_155 {dimension_numbers = #tpu.dot_dimension_numbers<[1], [0], [0], [1], [0, 0, 1, 1], [], []>} : vector<5x8xf32>, vector<8x5xf32>, vector<5x5xf32> -> vector<5x5xf32>
    %cst_156 = arith.constant 0.353553385 : f32
    %417 = vector.broadcast %cst_156 : f32 to vector<5x5xf32>
    %418 = arith.mulf %416, %417 : vector<5x5xf32>
    %cst_157 = arith.constant dense<0xFF800000> : vector<5xf32>
    %419 = vector.multi_reduction <maximumf>, %418, %cst_157 [1] : vector<5x5xf32> to vector<5xf32>
    %cst_158 = arith.constant 0xFF800000 : f32
    %420 = vector.broadcast %cst_158 : f32 to vector<5xf32>
    %421 = arith.maximumf %420, %419 : vector<5xf32>
    %422 = vector.shape_cast %421 : vector<5xf32> to vector<5x1xf32>
    %423 = vector.broadcast %422 : vector<5x1xf32> to vector<5x5xf32>
    %424 = arith.subf %418, %423 : vector<5x5xf32>
    %425 = math.exp %424 : vector<5x5xf32>
    %cst_159 = arith.constant dense<0.000000e+00> : vector<5xf32>
    %426 = vector.multi_reduction <add>, %425, %cst_159 [1] : vector<5x5xf32> to vector<5xf32>
    %427 = vector.shape_cast %426 : vector<5xf32> to vector<5x1xf32>
    %428 = vector.broadcast %427 : vector<5x1xf32> to vector<5x5xf32>
    %429 = arith.divf %425, %428 : vector<5x5xf32>
    %cst_160 = arith.constant dense<0.000000e+00> : vector<5x8xf32>
    %430 = tpu.matmul %429, %414, %cst_160 {dimension_numbers = #tpu.dot_dimension_numbers<[1], [0], [0], [1], [0, 0, 1, 1], [], []>} : vector<5x5xf32>, vector<5x8xf32>, vector<5x8xf32> -> vector<5x8xf32>
    %431 = vector.extract_strided_slice %294 {offsets = [5, 24], sizes = [5, 8], strides = [1, 1]} : vector<10x32xf32> to vector<5x8xf32>
    %432 = vector.extract_strided_slice %295 {offsets = [5, 24], sizes = [5, 8], strides = [1, 1]} : vector<10x32xf32> to vector<5x8xf32>
    %433 = vector.extract_strided_slice %296 {offsets = [5, 24], sizes = [5, 8], strides = [1, 1]} : vector<10x32xf32> to vector<5x8xf32>
    %434 = tpu.transpose %432, [1, 0] : vector<5x8xf32> -> vector<8x5xf32>
    %cst_161 = arith.constant dense<0.000000e+00> : vector<5x5xf32>
    %435 = tpu.matmul %431, %434, %cst_161 {dimension_numbers = #tpu.dot_dimension_numbers<[1], [0], [0], [1], [0, 0, 1, 1], [], []>} : vector<5x8xf32>, vector<8x5xf32>, vector<5x5xf32> -> vector<5x5xf32>
    %cst_162 = arith.constant 0.353553385 : f32
    %436 = vector.broadcast %cst_162 : f32 to vector<5x5xf32>
    %437 = arith.mulf %435, %436 : vector<5x5xf32>
    %cst_163 = arith.constant dense<0xFF800000> : vector<5xf32>
    %438 = vector.multi_reduction <maximumf>, %437, %cst_163 [1] : vector<5x5xf32> to vector<5xf32>
    %cst_164 = arith.constant 0xFF800000 : f32
    %439 = vector.broadcast %cst_164 : f32 to vector<5xf32>
    %440 = arith.maximumf %439, %438 : vector<5xf32>
    %441 = vector.shape_cast %440 : vector<5xf32> to vector<5x1xf32>
    %442 = vector.broadcast %441 : vector<5x1xf32> to vector<5x5xf32>
    %443 = arith.subf %437, %442 : vector<5x5xf32>
    %444 = math.exp %443 : vector<5x5xf32>
    %cst_165 = arith.constant dense<0.000000e+00> : vector<5xf32>
    %445 = vector.multi_reduction <add>, %444, %cst_165 [1] : vector<5x5xf32> to vector<5xf32>
    %446 = vector.shape_cast %445 : vector<5xf32> to vector<5x1xf32>
    %447 = vector.broadcast %446 : vector<5x1xf32> to vector<5x5xf32>
    %448 = arith.divf %444, %447 : vector<5x5xf32>
    %cst_166 = arith.constant dense<0.000000e+00> : vector<5x8xf32>
    %449 = tpu.matmul %448, %433, %cst_166 {dimension_numbers = #tpu.dot_dimension_numbers<[1], [0], [0], [1], [0, 0, 1, 1], [], []>} : vector<5x5xf32>, vector<5x8xf32>, vector<5x8xf32> -> vector<5x8xf32>
    %450 = tpu.concatenate %392, %411, %430, %449 in 1 : vector<5x8xf32>, vector<5x8xf32>, vector<5x8xf32>, vector<5x8xf32> -> vector<5x32xf32>
    %451 = tpu.concatenate %373, %450 in 0 : vector<5x32xf32>, vector<5x32xf32> -> vector<10x32xf32>
    %c0_167 = arith.constant 0 : index
    %c1_168 = arith.constant 1 : index
    %c0_169 = arith.constant 0 : index
    %c0_170 = arith.constant 0 : index
    %452 = vector.load %arg5[%c0_167, %c1_168, %c0_169, %c0_170] : memref<2x2x32x32xf32, #tpu.memory_space<vmem>>, vector<1x1x32x32xf32>
    %453 = vector.shape_cast %452 : vector<1x1x32x32xf32> to vector<32x32xf32>
    %cst_171 = arith.constant dense<0.000000e+00> : vector<10x32xf32>
    %454 = tpu.matmul %451, %453, %cst_171 {dimension_numbers = #tpu.dot_dimension_numbers<[1], [0], [0], [1], [0, 0, 1, 1], [], []>} : vector<10x32xf32>, vector<32x32xf32>, vector<10x32xf32> -> vector<10x32xf32>
    %455 = vector.broadcast %263 : vector<1x32xf32> to vector<10x32xf32>
    %456 = arith.addf %454, %455 : vector<10x32xf32>
    %457 = arith.addf %256, %456 : vector<10x32xf32>
    %cst_172 = arith.constant dense<0.000000e+00> : vector<10xf32>
    %458 = vector.multi_reduction <add>, %457, %cst_172 [1] : vector<10x32xf32> to vector<10xf32>
    %459 = vector.shape_cast %458 : vector<10xf32> to vector<10x1xf32>
    %cst_173 = arith.constant 3.200000e+01 : f32
    %460 = vector.broadcast %cst_173 : f32 to vector<10x1xf32>
    %461 = arith.divf %459, %460 : vector<10x1xf32>
    %462 = vector.broadcast %461 : vector<10x1xf32> to vector<10x32xf32>
    %463 = arith.subf %457, %462 : vector<10x32xf32>
    %464 = arith.mulf %463, %463 : vector<10x32xf32>
    %cst_174 = arith.constant dense<0.000000e+00> : vector<10xf32>
    %465 = vector.multi_reduction <add>, %464, %cst_174 [1] : vector<10x32xf32> to vector<10xf32>
    %466 = vector.shape_cast %465 : vector<10xf32> to vector<10x1xf32>
    %cst_175 = arith.constant 3.200000e+01 : f32
    %467 = vector.broadcast %cst_175 : f32 to vector<10x1xf32>
    %468 = arith.divf %466, %467 : vector<10x1xf32>
    %469 = vector.broadcast %461 : vector<10x1xf32> to vector<10x32xf32>
    %470 = arith.subf %457, %469 : vector<10x32xf32>
    %cst_176 = arith.constant 9.99999996E-13 : f32
    %471 = vector.broadcast %cst_176 : f32 to vector<10x1xf32>
    %472 = arith.addf %468, %471 : vector<10x1xf32>
    %473 = math.rsqrt %472 : vector<10x1xf32>
    %474 = vector.broadcast %473 : vector<10x1xf32> to vector<10x32xf32>
    %475 = arith.mulf %470, %474 : vector<10x32xf32>
    %476 = vector.broadcast %261 : vector<1x32xf32> to vector<10x32xf32>
    %477 = arith.mulf %475, %476 : vector<10x32xf32>
    %478 = vector.broadcast %262 : vector<1x32xf32> to vector<10x32xf32>
    %479 = arith.addf %477, %478 : vector<10x32xf32>
    %c0_177 = arith.constant 0 : index
    %c1_178 = arith.constant 1 : index
    %c0_179 = arith.constant 0 : index
    %c0_180 = arith.constant 0 : index
    %480 = vector.load %arg7[%c0_177, %c1_178, %c0_179, %c0_180] : memref<2x2x32x128xf32, #tpu.memory_space<vmem>>, vector<1x1x32x128xf32>
    %481 = vector.shape_cast %480 : vector<1x1x32x128xf32> to vector<32x128xf32>
    %cst_181 = arith.constant dense<0.000000e+00> : vector<10x128xf32>
    %482 = tpu.matmul %479, %481, %cst_181 {dimension_numbers = #tpu.dot_dimension_numbers<[1], [0], [0], [1], [0, 0, 1, 1], [], []>} : vector<10x32xf32>, vector<32x128xf32>, vector<10x128xf32> -> vector<10x128xf32>
    %c0_182 = arith.constant 0 : index
    %c1_183 = arith.constant 1 : index
    %c0_184 = arith.constant 0 : index
    %c0_185 = arith.constant 0 : index
    %483 = vector.load %arg8[%c0_182, %c1_183, %c0_184, %c0_185] : memref<2x2x1x128xf32, #tpu.memory_space<vmem>>, vector<1x1x1x128xf32>
    %484 = vector.shape_cast %483 : vector<1x1x1x128xf32> to vector<1x128xf32>
    %485 = vector.broadcast %484 : vector<1x128xf32> to vector<10x128xf32>
    %486 = arith.addf %482, %485 : vector<10x128xf32>
    %487 = arith.mulf %486, %486 : vector<10x128xf32>
    %488 = arith.mulf %486, %487 : vector<10x128xf32>
    %cst_186 = arith.constant 4.471500e-02 : f32
    %489 = vector.broadcast %cst_186 : f32 to vector<10x128xf32>
    %490 = arith.mulf %489, %488 : vector<10x128xf32>
    %491 = arith.addf %486, %490 : vector<10x128xf32>
    %cst_187 = arith.constant 0.797884583 : f32
    %492 = vector.broadcast %cst_187 : f32 to vector<10x128xf32>
    %493 = arith.mulf %492, %491 : vector<10x128xf32>
    %494 = math.tanh %493 : vector<10x128xf32>
    %cst_188 = arith.constant 1.000000e+00 : f32
    %495 = vector.broadcast %cst_188 : f32 to vector<10x128xf32>
    %496 = arith.addf %495, %494 : vector<10x128xf32>
    %cst_189 = arith.constant 5.000000e-01 : f32
    %497 = vector.broadcast %cst_189 : f32 to vector<10x128xf32>
    %498 = arith.mulf %497, %496 : vector<10x128xf32>
    %499 = arith.mulf %486, %498 : vector<10x128xf32>
    %c0_190 = arith.constant 0 : index
    %c1_191 = arith.constant 1 : index
    %c0_192 = arith.constant 0 : index
    %c0_193 = arith.constant 0 : index
    %500 = vector.load %arg9[%c0_190, %c1_191, %c0_192, %c0_193] : memref<2x2x128x32xf32, #tpu.memory_space<vmem>>, vector<1x1x128x32xf32>
    %501 = vector.shape_cast %500 : vector<1x1x128x32xf32> to vector<128x32xf32>
    %cst_194 = arith.constant dense<0.000000e+00> : vector<10x32xf32>
    %502 = tpu.matmul %499, %501, %cst_194 {dimension_numbers = #tpu.dot_dimension_numbers<[1], [0], [0], [1], [0, 0, 1, 1], [], []>} : vector<10x128xf32>, vector<128x32xf32>, vector<10x32xf32> -> vector<10x32xf32>
    %503 = arith.addf %457, %502 : vector<10x32xf32>
    %504 = vector.broadcast %264 : vector<1x32xf32> to vector<10x32xf32>
    %505 = arith.addf %503, %504 : vector<10x32xf32>
    %c0_195 = arith.constant 0 : index
    %c0_196 = arith.constant 0 : index
    %c0_197 = arith.constant 0 : index
    %506 = vector.load %arg10[%c0_195, %c0_196, %c0_197] : memref<2x3x32xf32, #tpu.memory_space<vmem>>, vector<1x3x32xf32>
    %507 = vector.shape_cast %506 : vector<1x3x32xf32> to vector<3x32xf32>
    %508 = vector.extract_strided_slice %507 {offsets = [0, 0], sizes = [1, 32], strides = [1, 1]} : vector<3x32xf32> to vector<1x32xf32>
    %509 = vector.extract_strided_slice %507 {offsets = [1, 0], sizes = [1, 32], strides = [1, 1]} : vector<3x32xf32> to vector<1x32xf32>
    %510 = vector.extract_strided_slice %507 {offsets = [2, 0], sizes = [1, 32], strides = [1, 1]} : vector<3x32xf32> to vector<1x32xf32>
    %511 = vector.extract_strided_slice %505 {offsets = [0, 0], sizes = [1, 32], strides = [1, 1]} : vector<10x32xf32> to vector<1x32xf32>
    %512 = vector.extract_strided_slice %505 {offsets = [5, 0], sizes = [1, 32], strides = [1, 1]} : vector<10x32xf32> to vector<1x32xf32>
    %513 = tpu.concatenate %511, %512 in 0 : vector<1x32xf32>, vector<1x32xf32> -> vector<2x32xf32>
    %cst_198 = arith.constant dense<0.000000e+00> : vector<2xf32>
    %514 = vector.multi_reduction <add>, %513, %cst_198 [1] : vector<2x32xf32> to vector<2xf32>
    %515 = vector.shape_cast %514 : vector<2xf32> to vector<2x1xf32>
    %cst_199 = arith.constant 3.200000e+01 : f32
    %516 = vector.broadcast %cst_199 : f32 to vector<2x1xf32>
    %517 = arith.divf %515, %516 : vector<2x1xf32>
    %518 = vector.broadcast %517 : vector<2x1xf32> to vector<2x32xf32>
    %519 = arith.subf %513, %518 : vector<2x32xf32>
    %520 = arith.mulf %519, %519 : vector<2x32xf32>
    %cst_200 = arith.constant dense<0.000000e+00> : vector<2xf32>
    %521 = vector.multi_reduction <add>, %520, %cst_200 [1] : vector<2x32xf32> to vector<2xf32>
    %522 = vector.shape_cast %521 : vector<2xf32> to vector<2x1xf32>
    %cst_201 = arith.constant 3.200000e+01 : f32
    %523 = vector.broadcast %cst_201 : f32 to vector<2x1xf32>
    %524 = arith.divf %522, %523 : vector<2x1xf32>
    %525 = vector.broadcast %517 : vector<2x1xf32> to vector<2x32xf32>
    %526 = arith.subf %513, %525 : vector<2x32xf32>
    %cst_202 = arith.constant 9.99999996E-13 : f32
    %527 = vector.broadcast %cst_202 : f32 to vector<2x1xf32>
    %528 = arith.addf %524, %527 : vector<2x1xf32>
    %529 = math.rsqrt %528 : vector<2x1xf32>
    %530 = vector.broadcast %529 : vector<2x1xf32> to vector<2x32xf32>
    %531 = arith.mulf %526, %530 : vector<2x32xf32>
    %532 = vector.broadcast %508 : vector<1x32xf32> to vector<2x32xf32>
    %533 = arith.mulf %531, %532 : vector<2x32xf32>
    %534 = vector.broadcast %509 : vector<1x32xf32> to vector<2x32xf32>
    %535 = arith.addf %533, %534 : vector<2x32xf32>
    %c0_203 = arith.constant 0 : index
    %c0_204 = arith.constant 0 : index
    %c0_205 = arith.constant 0 : index
    %536 = vector.load %arg11[%c0_203, %c0_204, %c0_205] : memref<2x32x32xf32, #tpu.memory_space<vmem>>, vector<1x32x32xf32>
    %537 = vector.shape_cast %536 : vector<1x32x32xf32> to vector<32x32xf32>
    %cst_206 = arith.constant dense<0.000000e+00> : vector<2x32xf32>
    %538 = tpu.matmul %535, %537, %cst_206 {dimension_numbers = #tpu.dot_dimension_numbers<[1], [0], [0], [1], [0, 0, 1, 1], [], []>} : vector<2x32xf32>, vector<32x32xf32>, vector<2x32xf32> -> vector<2x32xf32>
    %539 = vector.broadcast %510 : vector<1x32xf32> to vector<2x32xf32>
    %540 = arith.addf %538, %539 : vector<2x32xf32>
    %541 = math.tanh %540 : vector<2x32xf32>
    %542 = arith.truncf %541 : vector<2x32xf32> to vector<2x32xbf16>
    %c1_207 = arith.constant 1 : index
    %c0_208 = arith.constant 0 : index
    %c0_209 = arith.constant 0 : index
    %543 = vector.load %arg0[%c1_207, %c0_208, %c0_209] : memref<2x10x768xf32, #tpu.memory_space<vmem>>, vector<1x10x768xf32>
    %544 = vector.shape_cast %543 : vector<1x10x768xf32> to vector<10x768xf32>
    %c1_210 = arith.constant 1 : index
    %c0_211 = arith.constant 0 : index
    %c0_212 = arith.constant 0 : index
    %545 = vector.load %arg1[%c1_210, %c0_211, %c0_212] : memref<2x768x32xf32, #tpu.memory_space<vmem>>, vector<1x768x32xf32>
    %546 = vector.shape_cast %545 : vector<1x768x32xf32> to vector<768x32xf32>
    %cst_213 = arith.constant dense<0.000000e+00> : vector<10x32xf32>
    %547 = tpu.matmul %544, %546, %cst_213 {dimension_numbers = #tpu.dot_dimension_numbers<[1], [0], [0], [1], [0, 0, 1, 1], [], []>} : vector<10x768xf32>, vector<768x32xf32>, vector<10x32xf32> -> vector<10x32xf32>
    %c1_214 = arith.constant 1 : index
    %c0_215 = arith.constant 0 : index
    %c0_216 = arith.constant 0 : index
    %548 = vector.load %arg2[%c1_214, %c0_215, %c0_216] : memref<2x10x32xf32, #tpu.memory_space<vmem>>, vector<1x10x32xf32>
    %549 = vector.shape_cast %548 : vector<1x10x32xf32> to vector<10x32xf32>
    %550 = arith.addf %547, %549 : vector<10x32xf32>
    %c1_217 = arith.constant 1 : index
    %c0_218 = arith.constant 0 : index
    %c0_219 = arith.constant 0 : index
    %c0_220 = arith.constant 0 : index
    %551 = vector.load %arg6[%c1_217, %c0_218, %c0_219, %c0_220] : memref<2x2x6x32xf32, #tpu.memory_space<vmem>>, vector<1x1x6x32xf32>
    %552 = vector.shape_cast %551 : vector<1x1x6x32xf32> to vector<6x32xf32>
    %553 = vector.extract_strided_slice %552 {offsets = [0, 0], sizes = [1, 32], strides = [1, 1]} : vector<6x32xf32> to vector<1x32xf32>
    %554 = vector.extract_strided_slice %552 {offsets = [1, 0], sizes = [1, 32], strides = [1, 1]} : vector<6x32xf32> to vector<1x32xf32>
    %555 = vector.extract_strided_slice %552 {offsets = [2, 0], sizes = [1, 32], strides = [1, 1]} : vector<6x32xf32> to vector<1x32xf32>
    %556 = vector.extract_strided_slice %552 {offsets = [3, 0], sizes = [1, 32], strides = [1, 1]} : vector<6x32xf32> to vector<1x32xf32>
    %557 = vector.extract_strided_slice %552 {offsets = [4, 0], sizes = [1, 32], strides = [1, 1]} : vector<6x32xf32> to vector<1x32xf32>
    %558 = vector.extract_strided_slice %552 {offsets = [5, 0], sizes = [1, 32], strides = [1, 1]} : vector<6x32xf32> to vector<1x32xf32>
    %cst_221 = arith.constant dense<0.000000e+00> : vector<10xf32>
    %559 = vector.multi_reduction <add>, %550, %cst_221 [1] : vector<10x32xf32> to vector<10xf32>
    %560 = vector.shape_cast %559 : vector<10xf32> to vector<10x1xf32>
    %cst_222 = arith.constant 3.200000e+01 : f32
    %561 = vector.broadcast %cst_222 : f32 to vector<10x1xf32>
    %562 = arith.divf %560, %561 : vector<10x1xf32>
    %563 = vector.broadcast %562 : vector<10x1xf32> to vector<10x32xf32>
    %564 = arith.subf %550, %563 : vector<10x32xf32>
    %565 = arith.mulf %564, %564 : vector<10x32xf32>
    %cst_223 = arith.constant dense<0.000000e+00> : vector<10xf32>
    %566 = vector.multi_reduction <add>, %565, %cst_223 [1] : vector<10x32xf32> to vector<10xf32>
    %567 = vector.shape_cast %566 : vector<10xf32> to vector<10x1xf32>
    %cst_224 = arith.constant 3.200000e+01 : f32
    %568 = vector.broadcast %cst_224 : f32 to vector<10x1xf32>
    %569 = arith.divf %567, %568 : vector<10x1xf32>
    %570 = vector.broadcast %562 : vector<10x1xf32> to vector<10x32xf32>
    %571 = arith.subf %550, %570 : vector<10x32xf32>
    %cst_225 = arith.constant 9.99999996E-13 : f32
    %572 = vector.broadcast %cst_225 : f32 to vector<10x1xf32>
    %573 = arith.addf %569, %572 : vector<10x1xf32>
    %574 = math.rsqrt %573 : vector<10x1xf32>
    %575 = vector.broadcast %574 : vector<10x1xf32> to vector<10x32xf32>
    %576 = arith.mulf %571, %575 : vector<10x32xf32>
    %577 = vector.broadcast %553 : vector<1x32xf32> to vector<10x32xf32>
    %578 = arith.mulf %576, %577 : vector<10x32xf32>
    %579 = vector.broadcast %554 : vector<1x32xf32> to vector<10x32xf32>
    %580 = arith.addf %578, %579 : vector<10x32xf32>
    %c1_226 = arith.constant 1 : index
    %c0_227 = arith.constant 0 : index
    %c0_228 = arith.constant 0 : index
    %c0_229 = arith.constant 0 : index
    %581 = vector.load %arg3[%c1_226, %c0_227, %c0_228, %c0_229] : memref<2x2x32x96xf32, #tpu.memory_space<vmem>>, vector<1x1x32x96xf32>
    %582 = vector.shape_cast %581 : vector<1x1x32x96xf32> to vector<32x96xf32>
    %cst_230 = arith.constant dense<0.000000e+00> : vector<10x96xf32>
    %583 = tpu.matmul %580, %582, %cst_230 {dimension_numbers = #tpu.dot_dimension_numbers<[1], [0], [0], [1], [0, 0, 1, 1], [], []>} : vector<10x32xf32>, vector<32x96xf32>, vector<10x96xf32> -> vector<10x96xf32>
    %c1_231 = arith.constant 1 : index
    %c0_232 = arith.constant 0 : index
    %c0_233 = arith.constant 0 : index
    %c0_234 = arith.constant 0 : index
    %584 = vector.load %arg4[%c1_231, %c0_232, %c0_233, %c0_234] : memref<2x2x1x96xf32, #tpu.memory_space<vmem>>, vector<1x1x1x96xf32>
    %585 = vector.shape_cast %584 : vector<1x1x1x96xf32> to vector<1x96xf32>
    %586 = vector.broadcast %585 : vector<1x96xf32> to vector<10x96xf32>
    %587 = arith.addf %583, %586 : vector<10x96xf32>
    %588 = vector.extract_strided_slice %587 {offsets = [0, 0], sizes = [10, 32], strides = [1, 1]} : vector<10x96xf32> to vector<10x32xf32>
    %589 = vector.extract_strided_slice %587 {offsets = [0, 32], sizes = [10, 32], strides = [1, 1]} : vector<10x96xf32> to vector<10x32xf32>
    %590 = vector.extract_strided_slice %587 {offsets = [0, 64], sizes = [10, 32], strides = [1, 1]} : vector<10x96xf32> to vector<10x32xf32>
    %591 = vector.extract_strided_slice %588 {offsets = [0, 0], sizes = [5, 8], strides = [1, 1]} : vector<10x32xf32> to vector<5x8xf32>
    %592 = vector.extract_strided_slice %589 {offsets = [0, 0], sizes = [5, 8], strides = [1, 1]} : vector<10x32xf32> to vector<5x8xf32>
    %593 = vector.extract_strided_slice %590 {offsets = [0, 0], sizes = [5, 8], strides = [1, 1]} : vector<10x32xf32> to vector<5x8xf32>
    %594 = tpu.transpose %592, [1, 0] : vector<5x8xf32> -> vector<8x5xf32>
    %cst_235 = arith.constant dense<0.000000e+00> : vector<5x5xf32>
    %595 = tpu.matmul %591, %594, %cst_235 {dimension_numbers = #tpu.dot_dimension_numbers<[1], [0], [0], [1], [0, 0, 1, 1], [], []>} : vector<5x8xf32>, vector<8x5xf32>, vector<5x5xf32> -> vector<5x5xf32>
    %cst_236 = arith.constant 0.353553385 : f32
    %596 = vector.broadcast %cst_236 : f32 to vector<5x5xf32>
    %597 = arith.mulf %595, %596 : vector<5x5xf32>
    %cst_237 = arith.constant dense<0xFF800000> : vector<5xf32>
    %598 = vector.multi_reduction <maximumf>, %597, %cst_237 [1] : vector<5x5xf32> to vector<5xf32>
    %cst_238 = arith.constant 0xFF800000 : f32
    %599 = vector.broadcast %cst_238 : f32 to vector<5xf32>
    %600 = arith.maximumf %599, %598 : vector<5xf32>
    %601 = vector.shape_cast %600 : vector<5xf32> to vector<5x1xf32>
    %602 = vector.broadcast %601 : vector<5x1xf32> to vector<5x5xf32>
    %603 = arith.subf %597, %602 : vector<5x5xf32>
    %604 = math.exp %603 : vector<5x5xf32>
    %cst_239 = arith.constant dense<0.000000e+00> : vector<5xf32>
    %605 = vector.multi_reduction <add>, %604, %cst_239 [1] : vector<5x5xf32> to vector<5xf32>
    %606 = vector.shape_cast %605 : vector<5xf32> to vector<5x1xf32>
    %607 = vector.broadcast %606 : vector<5x1xf32> to vector<5x5xf32>
    %608 = arith.divf %604, %607 : vector<5x5xf32>
    %cst_240 = arith.constant dense<0.000000e+00> : vector<5x8xf32>
    %609 = tpu.matmul %608, %593, %cst_240 {dimension_numbers = #tpu.dot_dimension_numbers<[1], [0], [0], [1], [0, 0, 1, 1], [], []>} : vector<5x5xf32>, vector<5x8xf32>, vector<5x8xf32> -> vector<5x8xf32>
    %610 = vector.extract_strided_slice %588 {offsets = [0, 8], sizes = [5, 8], strides = [1, 1]} : vector<10x32xf32> to vector<5x8xf32>
    %611 = vector.extract_strided_slice %589 {offsets = [0, 8], sizes = [5, 8], strides = [1, 1]} : vector<10x32xf32> to vector<5x8xf32>
    %612 = vector.extract_strided_slice %590 {offsets = [0, 8], sizes = [5, 8], strides = [1, 1]} : vector<10x32xf32> to vector<5x8xf32>
    %613 = tpu.transpose %611, [1, 0] : vector<5x8xf32> -> vector<8x5xf32>
    %cst_241 = arith.constant dense<0.000000e+00> : vector<5x5xf32>
    %614 = tpu.matmul %610, %613, %cst_241 {dimension_numbers = #tpu.dot_dimension_numbers<[1], [0], [0], [1], [0, 0, 1, 1], [], []>} : vector<5x8xf32>, vector<8x5xf32>, vector<5x5xf32> -> vector<5x5xf32>
    %cst_242 = arith.constant 0.353553385 : f32
    %615 = vector.broadcast %cst_242 : f32 to vector<5x5xf32>
    %616 = arith.mulf %614, %615 : vector<5x5xf32>
    %cst_243 = arith.constant dense<0xFF800000> : vector<5xf32>
    %617 = vector.multi_reduction <maximumf>, %616, %cst_243 [1] : vector<5x5xf32> to vector<5xf32>
    %cst_244 = arith.constant 0xFF800000 : f32
    %618 = vector.broadcast %cst_244 : f32 to vector<5xf32>
    %619 = arith.maximumf %618, %617 : vector<5xf32>
    %620 = vector.shape_cast %619 : vector<5xf32> to vector<5x1xf32>
    %621 = vector.broadcast %620 : vector<5x1xf32> to vector<5x5xf32>
    %622 = arith.subf %616, %621 : vector<5x5xf32>
    %623 = math.exp %622 : vector<5x5xf32>
    %cst_245 = arith.constant dense<0.000000e+00> : vector<5xf32>
    %624 = vector.multi_reduction <add>, %623, %cst_245 [1] : vector<5x5xf32> to vector<5xf32>
    %625 = vector.shape_cast %624 : vector<5xf32> to vector<5x1xf32>
    %626 = vector.broadcast %625 : vector<5x1xf32> to vector<5x5xf32>
    %627 = arith.divf %623, %626 : vector<5x5xf32>
    %cst_246 = arith.constant dense<0.000000e+00> : vector<5x8xf32>
    %628 = tpu.matmul %627, %612, %cst_246 {dimension_numbers = #tpu.dot_dimension_numbers<[1], [0], [0], [1], [0, 0, 1, 1], [], []>} : vector<5x5xf32>, vector<5x8xf32>, vector<5x8xf32> -> vector<5x8xf32>
    %629 = vector.extract_strided_slice %588 {offsets = [0, 16], sizes = [5, 8], strides = [1, 1]} : vector<10x32xf32> to vector<5x8xf32>
    %630 = vector.extract_strided_slice %589 {offsets = [0, 16], sizes = [5, 8], strides = [1, 1]} : vector<10x32xf32> to vector<5x8xf32>
    %631 = vector.extract_strided_slice %590 {offsets = [0, 16], sizes = [5, 8], strides = [1, 1]} : vector<10x32xf32> to vector<5x8xf32>
    %632 = tpu.transpose %630, [1, 0] : vector<5x8xf32> -> vector<8x5xf32>
    %cst_247 = arith.constant dense<0.000000e+00> : vector<5x5xf32>
    %633 = tpu.matmul %629, %632, %cst_247 {dimension_numbers = #tpu.dot_dimension_numbers<[1], [0], [0], [1], [0, 0, 1, 1], [], []>} : vector<5x8xf32>, vector<8x5xf32>, vector<5x5xf32> -> vector<5x5xf32>
    %cst_248 = arith.constant 0.353553385 : f32
    %634 = vector.broadcast %cst_248 : f32 to vector<5x5xf32>
    %635 = arith.mulf %633, %634 : vector<5x5xf32>
    %cst_249 = arith.constant dense<0xFF800000> : vector<5xf32>
    %636 = vector.multi_reduction <maximumf>, %635, %cst_249 [1] : vector<5x5xf32> to vector<5xf32>
    %cst_250 = arith.constant 0xFF800000 : f32
    %637 = vector.broadcast %cst_250 : f32 to vector<5xf32>
    %638 = arith.maximumf %637, %636 : vector<5xf32>
    %639 = vector.shape_cast %638 : vector<5xf32> to vector<5x1xf32>
    %640 = vector.broadcast %639 : vector<5x1xf32> to vector<5x5xf32>
    %641 = arith.subf %635, %640 : vector<5x5xf32>
    %642 = math.exp %641 : vector<5x5xf32>
    %cst_251 = arith.constant dense<0.000000e+00> : vector<5xf32>
    %643 = vector.multi_reduction <add>, %642, %cst_251 [1] : vector<5x5xf32> to vector<5xf32>
    %644 = vector.shape_cast %643 : vector<5xf32> to vector<5x1xf32>
    %645 = vector.broadcast %644 : vector<5x1xf32> to vector<5x5xf32>
    %646 = arith.divf %642, %645 : vector<5x5xf32>
    %cst_252 = arith.constant dense<0.000000e+00> : vector<5x8xf32>
    %647 = tpu.matmul %646, %631, %cst_252 {dimension_numbers = #tpu.dot_dimension_numbers<[1], [0], [0], [1], [0, 0, 1, 1], [], []>} : vector<5x5xf32>, vector<5x8xf32>, vector<5x8xf32> -> vector<5x8xf32>
    %648 = vector.extract_strided_slice %588 {offsets = [0, 24], sizes = [5, 8], strides = [1, 1]} : vector<10x32xf32> to vector<5x8xf32>
    %649 = vector.extract_strided_slice %589 {offsets = [0, 24], sizes = [5, 8], strides = [1, 1]} : vector<10x32xf32> to vector<5x8xf32>
    %650 = vector.extract_strided_slice %590 {offsets = [0, 24], sizes = [5, 8], strides = [1, 1]} : vector<10x32xf32> to vector<5x8xf32>
    %651 = tpu.transpose %649, [1, 0] : vector<5x8xf32> -> vector<8x5xf32>
    %cst_253 = arith.constant dense<0.000000e+00> : vector<5x5xf32>
    %652 = tpu.matmul %648, %651, %cst_253 {dimension_numbers = #tpu.dot_dimension_numbers<[1], [0], [0], [1], [0, 0, 1, 1], [], []>} : vector<5x8xf32>, vector<8x5xf32>, vector<5x5xf32> -> vector<5x5xf32>
    %cst_254 = arith.constant 0.353553385 : f32
    %653 = vector.broadcast %cst_254 : f32 to vector<5x5xf32>
    %654 = arith.mulf %652, %653 : vector<5x5xf32>
    %cst_255 = arith.constant dense<0xFF800000> : vector<5xf32>
    %655 = vector.multi_reduction <maximumf>, %654, %cst_255 [1] : vector<5x5xf32> to vector<5xf32>
    %cst_256 = arith.constant 0xFF800000 : f32
    %656 = vector.broadcast %cst_256 : f32 to vector<5xf32>
    %657 = arith.maximumf %656, %655 : vector<5xf32>
    %658 = vector.shape_cast %657 : vector<5xf32> to vector<5x1xf32>
    %659 = vector.broadcast %658 : vector<5x1xf32> to vector<5x5xf32>
    %660 = arith.subf %654, %659 : vector<5x5xf32>
    %661 = math.exp %660 : vector<5x5xf32>
    %cst_257 = arith.constant dense<0.000000e+00> : vector<5xf32>
    %662 = vector.multi_reduction <add>, %661, %cst_257 [1] : vector<5x5xf32> to vector<5xf32>
    %663 = vector.shape_cast %662 : vector<5xf32> to vector<5x1xf32>
    %664 = vector.broadcast %663 : vector<5x1xf32> to vector<5x5xf32>
    %665 = arith.divf %661, %664 : vector<5x5xf32>
    %cst_258 = arith.constant dense<0.000000e+00> : vector<5x8xf32>
    %666 = tpu.matmul %665, %650, %cst_258 {dimension_numbers = #tpu.dot_dimension_numbers<[1], [0], [0], [1], [0, 0, 1, 1], [], []>} : vector<5x5xf32>, vector<5x8xf32>, vector<5x8xf32> -> vector<5x8xf32>
    %667 = tpu.concatenate %609, %628, %647, %666 in 1 : vector<5x8xf32>, vector<5x8xf32>, vector<5x8xf32>, vector<5x8xf32> -> vector<5x32xf32>
    %668 = vector.extract_strided_slice %588 {offsets = [5, 0], sizes = [5, 8], strides = [1, 1]} : vector<10x32xf32> to vector<5x8xf32>
    %669 = vector.extract_strided_slice %589 {offsets = [5, 0], sizes = [5, 8], strides = [1, 1]} : vector<10x32xf32> to vector<5x8xf32>
    %670 = vector.extract_strided_slice %590 {offsets = [5, 0], sizes = [5, 8], strides = [1, 1]} : vector<10x32xf32> to vector<5x8xf32>
    %671 = tpu.transpose %669, [1, 0] : vector<5x8xf32> -> vector<8x5xf32>
    %cst_259 = arith.constant dense<0.000000e+00> : vector<5x5xf32>
    %672 = tpu.matmul %668, %671, %cst_259 {dimension_numbers = #tpu.dot_dimension_numbers<[1], [0], [0], [1], [0, 0, 1, 1], [], []>} : vector<5x8xf32>, vector<8x5xf32>, vector<5x5xf32> -> vector<5x5xf32>
    %cst_260 = arith.constant 0.353553385 : f32
    %673 = vector.broadcast %cst_260 : f32 to vector<5x5xf32>
    %674 = arith.mulf %672, %673 : vector<5x5xf32>
    %cst_261 = arith.constant dense<0xFF800000> : vector<5xf32>
    %675 = vector.multi_reduction <maximumf>, %674, %cst_261 [1] : vector<5x5xf32> to vector<5xf32>
    %cst_262 = arith.constant 0xFF800000 : f32
    %676 = vector.broadcast %cst_262 : f32 to vector<5xf32>
    %677 = arith.maximumf %676, %675 : vector<5xf32>
    %678 = vector.shape_cast %677 : vector<5xf32> to vector<5x1xf32>
    %679 = vector.broadcast %678 : vector<5x1xf32> to vector<5x5xf32>
    %680 = arith.subf %674, %679 : vector<5x5xf32>
    %681 = math.exp %680 : vector<5x5xf32>
    %cst_263 = arith.constant dense<0.000000e+00> : vector<5xf32>
    %682 = vector.multi_reduction <add>, %681, %cst_263 [1] : vector<5x5xf32> to vector<5xf32>
    %683 = vector.shape_cast %682 : vector<5xf32> to vector<5x1xf32>
    %684 = vector.broadcast %683 : vector<5x1xf32> to vector<5x5xf32>
    %685 = arith.divf %681, %684 : vector<5x5xf32>
    %cst_264 = arith.constant dense<0.000000e+00> : vector<5x8xf32>
    %686 = tpu.matmul %685, %670, %cst_264 {dimension_numbers = #tpu.dot_dimension_numbers<[1], [0], [0], [1], [0, 0, 1, 1], [], []>} : vector<5x5xf32>, vector<5x8xf32>, vector<5x8xf32> -> vector<5x8xf32>
    %687 = vector.extract_strided_slice %588 {offsets = [5, 8], sizes = [5, 8], strides = [1, 1]} : vector<10x32xf32> to vector<5x8xf32>
    %688 = vector.extract_strided_slice %589 {offsets = [5, 8], sizes = [5, 8], strides = [1, 1]} : vector<10x32xf32> to vector<5x8xf32>
    %689 = vector.extract_strided_slice %590 {offsets = [5, 8], sizes = [5, 8], strides = [1, 1]} : vector<10x32xf32> to vector<5x8xf32>
    %690 = tpu.transpose %688, [1, 0] : vector<5x8xf32> -> vector<8x5xf32>
    %cst_265 = arith.constant dense<0.000000e+00> : vector<5x5xf32>
    %691 = tpu.matmul %687, %690, %cst_265 {dimension_numbers = #tpu.dot_dimension_numbers<[1], [0], [0], [1], [0, 0, 1, 1], [], []>} : vector<5x8xf32>, vector<8x5xf32>, vector<5x5xf32> -> vector<5x5xf32>
    %cst_266 = arith.constant 0.353553385 : f32
    %692 = vector.broadcast %cst_266 : f32 to vector<5x5xf32>
    %693 = arith.mulf %691, %692 : vector<5x5xf32>
    %cst_267 = arith.constant dense<0xFF800000> : vector<5xf32>
    %694 = vector.multi_reduction <maximumf>, %693, %cst_267 [1] : vector<5x5xf32> to vector<5xf32>
    %cst_268 = arith.constant 0xFF800000 : f32
    %695 = vector.broadcast %cst_268 : f32 to vector<5xf32>
    %696 = arith.maximumf %695, %694 : vector<5xf32>
    %697 = vector.shape_cast %696 : vector<5xf32> to vector<5x1xf32>
    %698 = vector.broadcast %697 : vector<5x1xf32> to vector<5x5xf32>
    %699 = arith.subf %693, %698 : vector<5x5xf32>
    %700 = math.exp %699 : vector<5x5xf32>
    %cst_269 = arith.constant dense<0.000000e+00> : vector<5xf32>
    %701 = vector.multi_reduction <add>, %700, %cst_269 [1] : vector<5x5xf32> to vector<5xf32>
    %702 = vector.shape_cast %701 : vector<5xf32> to vector<5x1xf32>
    %703 = vector.broadcast %702 : vector<5x1xf32> to vector<5x5xf32>
    %704 = arith.divf %700, %703 : vector<5x5xf32>
    %cst_270 = arith.constant dense<0.000000e+00> : vector<5x8xf32>
    %705 = tpu.matmul %704, %689, %cst_270 {dimension_numbers = #tpu.dot_dimension_numbers<[1], [0], [0], [1], [0, 0, 1, 1], [], []>} : vector<5x5xf32>, vector<5x8xf32>, vector<5x8xf32> -> vector<5x8xf32>
    %706 = vector.extract_strided_slice %588 {offsets = [5, 16], sizes = [5, 8], strides = [1, 1]} : vector<10x32xf32> to vector<5x8xf32>
    %707 = vector.extract_strided_slice %589 {offsets = [5, 16], sizes = [5, 8], strides = [1, 1]} : vector<10x32xf32> to vector<5x8xf32>
    %708 = vector.extract_strided_slice %590 {offsets = [5, 16], sizes = [5, 8], strides = [1, 1]} : vector<10x32xf32> to vector<5x8xf32>
    %709 = tpu.transpose %707, [1, 0] : vector<5x8xf32> -> vector<8x5xf32>
    %cst_271 = arith.constant dense<0.000000e+00> : vector<5x5xf32>
    %710 = tpu.matmul %706, %709, %cst_271 {dimension_numbers = #tpu.dot_dimension_numbers<[1], [0], [0], [1], [0, 0, 1, 1], [], []>} : vector<5x8xf32>, vector<8x5xf32>, vector<5x5xf32> -> vector<5x5xf32>
    %cst_272 = arith.constant 0.353553385 : f32
    %711 = vector.broadcast %cst_272 : f32 to vector<5x5xf32>
    %712 = arith.mulf %710, %711 : vector<5x5xf32>
    %cst_273 = arith.constant dense<0xFF800000> : vector<5xf32>
    %713 = vector.multi_reduction <maximumf>, %712, %cst_273 [1] : vector<5x5xf32> to vector<5xf32>
    %cst_274 = arith.constant 0xFF800000 : f32
    %714 = vector.broadcast %cst_274 : f32 to vector<5xf32>
    %715 = arith.maximumf %714, %713 : vector<5xf32>
    %716 = vector.shape_cast %715 : vector<5xf32> to vector<5x1xf32>
    %717 = vector.broadcast %716 : vector<5x1xf32> to vector<5x5xf32>
    %718 = arith.subf %712, %717 : vector<5x5xf32>
    %719 = math.exp %718 : vector<5x5xf32>
    %cst_275 = arith.constant dense<0.000000e+00> : vector<5xf32>
    %720 = vector.multi_reduction <add>, %719, %cst_275 [1] : vector<5x5xf32> to vector<5xf32>
    %721 = vector.shape_cast %720 : vector<5xf32> to vector<5x1xf32>
    %722 = vector.broadcast %721 : vector<5x1xf32> to vector<5x5xf32>
    %723 = arith.divf %719, %722 : vector<5x5xf32>
    %cst_276 = arith.constant dense<0.000000e+00> : vector<5x8xf32>
    %724 = tpu.matmul %723, %708, %cst_276 {dimension_numbers = #tpu.dot_dimension_numbers<[1], [0], [0], [1], [0, 0, 1, 1], [], []>} : vector<5x5xf32>, vector<5x8xf32>, vector<5x8xf32> -> vector<5x8xf32>
    %725 = vector.extract_strided_slice %588 {offsets = [5, 24], sizes = [5, 8], strides = [1, 1]} : vector<10x32xf32> to vector<5x8xf32>
    %726 = vector.extract_strided_slice %589 {offsets = [5, 24], sizes = [5, 8], strides = [1, 1]} : vector<10x32xf32> to vector<5x8xf32>
    %727 = vector.extract_strided_slice %590 {offsets = [5, 24], sizes = [5, 8], strides = [1, 1]} : vector<10x32xf32> to vector<5x8xf32>
    %728 = tpu.transpose %726, [1, 0] : vector<5x8xf32> -> vector<8x5xf32>
    %cst_277 = arith.constant dense<0.000000e+00> : vector<5x5xf32>
    %729 = tpu.matmul %725, %728, %cst_277 {dimension_numbers = #tpu.dot_dimension_numbers<[1], [0], [0], [1], [0, 0, 1, 1], [], []>} : vector<5x8xf32>, vector<8x5xf32>, vector<5x5xf32> -> vector<5x5xf32>
    %cst_278 = arith.constant 0.353553385 : f32
    %730 = vector.broadcast %cst_278 : f32 to vector<5x5xf32>
    %731 = arith.mulf %729, %730 : vector<5x5xf32>
    %cst_279 = arith.constant dense<0xFF800000> : vector<5xf32>
    %732 = vector.multi_reduction <maximumf>, %731, %cst_279 [1] : vector<5x5xf32> to vector<5xf32>
    %cst_280 = arith.constant 0xFF800000 : f32
    %733 = vector.broadcast %cst_280 : f32 to vector<5xf32>
    %734 = arith.maximumf %733, %732 : vector<5xf32>
    %735 = vector.shape_cast %734 : vector<5xf32> to vector<5x1xf32>
    %736 = vector.broadcast %735 : vector<5x1xf32> to vector<5x5xf32>
    %737 = arith.subf %731, %736 : vector<5x5xf32>
    %738 = math.exp %737 : vector<5x5xf32>
    %cst_281 = arith.constant dense<0.000000e+00> : vector<5xf32>
    %739 = vector.multi_reduction <add>, %738, %cst_281 [1] : vector<5x5xf32> to vector<5xf32>
    %740 = vector.shape_cast %739 : vector<5xf32> to vector<5x1xf32>
    %741 = vector.broadcast %740 : vector<5x1xf32> to vector<5x5xf32>
    %742 = arith.divf %738, %741 : vector<5x5xf32>
    %cst_282 = arith.constant dense<0.000000e+00> : vector<5x8xf32>
    %743 = tpu.matmul %742, %727, %cst_282 {dimension_numbers = #tpu.dot_dimension_numbers<[1], [0], [0], [1], [0, 0, 1, 1], [], []>} : vector<5x5xf32>, vector<5x8xf32>, vector<5x8xf32> -> vector<5x8xf32>
    %744 = tpu.concatenate %686, %705, %724, %743 in 1 : vector<5x8xf32>, vector<5x8xf32>, vector<5x8xf32>, vector<5x8xf32> -> vector<5x32xf32>
    %745 = tpu.concatenate %667, %744 in 0 : vector<5x32xf32>, vector<5x32xf32> -> vector<10x32xf32>
    %c1_283 = arith.constant 1 : index
    %c0_284 = arith.constant 0 : index
    %c0_285 = arith.constant 0 : index
    %c0_286 = arith.constant 0 : index
    %746 = vector.load %arg5[%c1_283, %c0_284, %c0_285, %c0_286] : memref<2x2x32x32xf32, #tpu.memory_space<vmem>>, vector<1x1x32x32xf32>
    %747 = vector.shape_cast %746 : vector<1x1x32x32xf32> to vector<32x32xf32>
    %cst_287 = arith.constant dense<0.000000e+00> : vector<10x32xf32>
    %748 = tpu.matmul %745, %747, %cst_287 {dimension_numbers = #tpu.dot_dimension_numbers<[1], [0], [0], [1], [0, 0, 1, 1], [], []>} : vector<10x32xf32>, vector<32x32xf32>, vector<10x32xf32> -> vector<10x32xf32>
    %749 = vector.broadcast %557 : vector<1x32xf32> to vector<10x32xf32>
    %750 = arith.addf %748, %749 : vector<10x32xf32>
    %751 = arith.addf %550, %750 : vector<10x32xf32>
    %cst_288 = arith.constant dense<0.000000e+00> : vector<10xf32>
    %752 = vector.multi_reduction <add>, %751, %cst_288 [1] : vector<10x32xf32> to vector<10xf32>
    %753 = vector.shape_cast %752 : vector<10xf32> to vector<10x1xf32>
    %cst_289 = arith.constant 3.200000e+01 : f32
    %754 = vector.broadcast %cst_289 : f32 to vector<10x1xf32>
    %755 = arith.divf %753, %754 : vector<10x1xf32>
    %756 = vector.broadcast %755 : vector<10x1xf32> to vector<10x32xf32>
    %757 = arith.subf %751, %756 : vector<10x32xf32>
    %758 = arith.mulf %757, %757 : vector<10x32xf32>
    %cst_290 = arith.constant dense<0.000000e+00> : vector<10xf32>
    %759 = vector.multi_reduction <add>, %758, %cst_290 [1] : vector<10x32xf32> to vector<10xf32>
    %760 = vector.shape_cast %759 : vector<10xf32> to vector<10x1xf32>
    %cst_291 = arith.constant 3.200000e+01 : f32
    %761 = vector.broadcast %cst_291 : f32 to vector<10x1xf32>
    %762 = arith.divf %760, %761 : vector<10x1xf32>
    %763 = vector.broadcast %755 : vector<10x1xf32> to vector<10x32xf32>
    %764 = arith.subf %751, %763 : vector<10x32xf32>
    %cst_292 = arith.constant 9.99999996E-13 : f32
    %765 = vector.broadcast %cst_292 : f32 to vector<10x1xf32>
    %766 = arith.addf %762, %765 : vector<10x1xf32>
    %767 = math.rsqrt %766 : vector<10x1xf32>
    %768 = vector.broadcast %767 : vector<10x1xf32> to vector<10x32xf32>
    %769 = arith.mulf %764, %768 : vector<10x32xf32>
    %770 = vector.broadcast %555 : vector<1x32xf32> to vector<10x32xf32>
    %771 = arith.mulf %769, %770 : vector<10x32xf32>
    %772 = vector.broadcast %556 : vector<1x32xf32> to vector<10x32xf32>
    %773 = arith.addf %771, %772 : vector<10x32xf32>
    %c1_293 = arith.constant 1 : index
    %c0_294 = arith.constant 0 : index
    %c0_295 = arith.constant 0 : index
    %c0_296 = arith.constant 0 : index
    %774 = vector.load %arg7[%c1_293, %c0_294, %c0_295, %c0_296] : memref<2x2x32x128xf32, #tpu.memory_space<vmem>>, vector<1x1x32x128xf32>
    %775 = vector.shape_cast %774 : vector<1x1x32x128xf32> to vector<32x128xf32>
    %cst_297 = arith.constant dense<0.000000e+00> : vector<10x128xf32>
    %776 = tpu.matmul %773, %775, %cst_297 {dimension_numbers = #tpu.dot_dimension_numbers<[1], [0], [0], [1], [0, 0, 1, 1], [], []>} : vector<10x32xf32>, vector<32x128xf32>, vector<10x128xf32> -> vector<10x128xf32>
    %c1_298 = arith.constant 1 : index
    %c0_299 = arith.constant 0 : index
    %c0_300 = arith.constant 0 : index
    %c0_301 = arith.constant 0 : index
    %777 = vector.load %arg8[%c1_298, %c0_299, %c0_300, %c0_301] : memref<2x2x1x128xf32, #tpu.memory_space<vmem>>, vector<1x1x1x128xf32>
    %778 = vector.shape_cast %777 : vector<1x1x1x128xf32> to vector<1x128xf32>
    %779 = vector.broadcast %778 : vector<1x128xf32> to vector<10x128xf32>
    %780 = arith.addf %776, %779 : vector<10x128xf32>
    %781 = arith.mulf %780, %780 : vector<10x128xf32>
    %782 = arith.mulf %780, %781 : vector<10x128xf32>
    %cst_302 = arith.constant 4.471500e-02 : f32
    %783 = vector.broadcast %cst_302 : f32 to vector<10x128xf32>
    %784 = arith.mulf %783, %782 : vector<10x128xf32>
    %785 = arith.addf %780, %784 : vector<10x128xf32>
    %cst_303 = arith.constant 0.797884583 : f32
    %786 = vector.broadcast %cst_303 : f32 to vector<10x128xf32>
    %787 = arith.mulf %786, %785 : vector<10x128xf32>
    %788 = math.tanh %787 : vector<10x128xf32>
    %cst_304 = arith.constant 1.000000e+00 : f32
    %789 = vector.broadcast %cst_304 : f32 to vector<10x128xf32>
    %790 = arith.addf %789, %788 : vector<10x128xf32>
    %cst_305 = arith.constant 5.000000e-01 : f32
    %791 = vector.broadcast %cst_305 : f32 to vector<10x128xf32>
    %792 = arith.mulf %791, %790 : vector<10x128xf32>
    %793 = arith.mulf %780, %792 : vector<10x128xf32>
    %c1_306 = arith.constant 1 : index
    %c0_307 = arith.constant 0 : index
    %c0_308 = arith.constant 0 : index
    %c0_309 = arith.constant 0 : index
    %794 = vector.load %arg9[%c1_306, %c0_307, %c0_308, %c0_309] : memref<2x2x128x32xf32, #tpu.memory_space<vmem>>, vector<1x1x128x32xf32>
    %795 = vector.shape_cast %794 : vector<1x1x128x32xf32> to vector<128x32xf32>
    %cst_310 = arith.constant dense<0.000000e+00> : vector<10x32xf32>
    %796 = tpu.matmul %793, %795, %cst_310 {dimension_numbers = #tpu.dot_dimension_numbers<[1], [0], [0], [1], [0, 0, 1, 1], [], []>} : vector<10x128xf32>, vector<128x32xf32>, vector<10x32xf32> -> vector<10x32xf32>
    %797 = arith.addf %751, %796 : vector<10x32xf32>
    %798 = vector.broadcast %558 : vector<1x32xf32> to vector<10x32xf32>
    %799 = arith.addf %797, %798 : vector<10x32xf32>
    %c1_311 = arith.constant 1 : index
    %c1_312 = arith.constant 1 : index
    %c0_313 = arith.constant 0 : index
    %c0_314 = arith.constant 0 : index
    %800 = vector.load %arg6[%c1_311, %c1_312, %c0_313, %c0_314] : memref<2x2x6x32xf32, #tpu.memory_space<vmem>>, vector<1x1x6x32xf32>
    %801 = vector.shape_cast %800 : vector<1x1x6x32xf32> to vector<6x32xf32>
    %802 = vector.extract_strided_slice %801 {offsets = [0, 0], sizes = [1, 32], strides = [1, 1]} : vector<6x32xf32> to vector<1x32xf32>
    %803 = vector.extract_strided_slice %801 {offsets = [1, 0], sizes = [1, 32], strides = [1, 1]} : vector<6x32xf32> to vector<1x32xf32>
    %804 = vector.extract_strided_slice %801 {offsets = [2, 0], sizes = [1, 32], strides = [1, 1]} : vector<6x32xf32> to vector<1x32xf32>
    %805 = vector.extract_strided_slice %801 {offsets = [3, 0], sizes = [1, 32], strides = [1, 1]} : vector<6x32xf32> to vector<1x32xf32>
    %806 = vector.extract_strided_slice %801 {offsets = [4, 0], sizes = [1, 32], strides = [1, 1]} : vector<6x32xf32> to vector<1x32xf32>
    %807 = vector.extract_strided_slice %801 {offsets = [5, 0], sizes = [1, 32], strides = [1, 1]} : vector<6x32xf32> to vector<1x32xf32>
    %cst_315 = arith.constant dense<0.000000e+00> : vector<10xf32>
    %808 = vector.multi_reduction <add>, %799, %cst_315 [1] : vector<10x32xf32> to vector<10xf32>
    %809 = vector.shape_cast %808 : vector<10xf32> to vector<10x1xf32>
    %cst_316 = arith.constant 3.200000e+01 : f32
    %810 = vector.broadcast %cst_316 : f32 to vector<10x1xf32>
    %811 = arith.divf %809, %810 : vector<10x1xf32>
    %812 = vector.broadcast %811 : vector<10x1xf32> to vector<10x32xf32>
    %813 = arith.subf %799, %812 : vector<10x32xf32>
    %814 = arith.mulf %813, %813 : vector<10x32xf32>
    %cst_317 = arith.constant dense<0.000000e+00> : vector<10xf32>
    %815 = vector.multi_reduction <add>, %814, %cst_317 [1] : vector<10x32xf32> to vector<10xf32>
    %816 = vector.shape_cast %815 : vector<10xf32> to vector<10x1xf32>
    %cst_318 = arith.constant 3.200000e+01 : f32
    %817 = vector.broadcast %cst_318 : f32 to vector<10x1xf32>
    %818 = arith.divf %816, %817 : vector<10x1xf32>
    %819 = vector.broadcast %811 : vector<10x1xf32> to vector<10x32xf32>
    %820 = arith.subf %799, %819 : vector<10x32xf32>
    %cst_319 = arith.constant 9.99999996E-13 : f32
    %821 = vector.broadcast %cst_319 : f32 to vector<10x1xf32>
    %822 = arith.addf %818, %821 : vector<10x1xf32>
    %823 = math.rsqrt %822 : vector<10x1xf32>
    %824 = vector.broadcast %823 : vector<10x1xf32> to vector<10x32xf32>
    %825 = arith.mulf %820, %824 : vector<10x32xf32>
    %826 = vector.broadcast %802 : vector<1x32xf32> to vector<10x32xf32>
    %827 = arith.mulf %825, %826 : vector<10x32xf32>
    %828 = vector.broadcast %803 : vector<1x32xf32> to vector<10x32xf32>
    %829 = arith.addf %827, %828 : vector<10x32xf32>
    %c1_320 = arith.constant 1 : index
    %c1_321 = arith.constant 1 : index
    %c0_322 = arith.constant 0 : index
    %c0_323 = arith.constant 0 : index
    %830 = vector.load %arg3[%c1_320, %c1_321, %c0_322, %c0_323] : memref<2x2x32x96xf32, #tpu.memory_space<vmem>>, vector<1x1x32x96xf32>
    %831 = vector.shape_cast %830 : vector<1x1x32x96xf32> to vector<32x96xf32>
    %cst_324 = arith.constant dense<0.000000e+00> : vector<10x96xf32>
    %832 = tpu.matmul %829, %831, %cst_324 {dimension_numbers = #tpu.dot_dimension_numbers<[1], [0], [0], [1], [0, 0, 1, 1], [], []>} : vector<10x32xf32>, vector<32x96xf32>, vector<10x96xf32> -> vector<10x96xf32>
    %c1_325 = arith.constant 1 : index
    %c1_326 = arith.constant 1 : index
    %c0_327 = arith.constant 0 : index
    %c0_328 = arith.constant 0 : index
    %833 = vector.load %arg4[%c1_325, %c1_326, %c0_327, %c0_328] : memref<2x2x1x96xf32, #tpu.memory_space<vmem>>, vector<1x1x1x96xf32>
    %834 = vector.shape_cast %833 : vector<1x1x1x96xf32> to vector<1x96xf32>
    %835 = vector.broadcast %834 : vector<1x96xf32> to vector<10x96xf32>
    %836 = arith.addf %832, %835 : vector<10x96xf32>
    %837 = vector.extract_strided_slice %836 {offsets = [0, 0], sizes = [10, 32], strides = [1, 1]} : vector<10x96xf32> to vector<10x32xf32>
    %838 = vector.extract_strided_slice %836 {offsets = [0, 32], sizes = [10, 32], strides = [1, 1]} : vector<10x96xf32> to vector<10x32xf32>
    %839 = vector.extract_strided_slice %836 {offsets = [0, 64], sizes = [10, 32], strides = [1, 1]} : vector<10x96xf32> to vector<10x32xf32>
    %840 = vector.extract_strided_slice %837 {offsets = [0, 0], sizes = [5, 8], strides = [1, 1]} : vector<10x32xf32> to vector<5x8xf32>
    %841 = vector.extract_strided_slice %838 {offsets = [0, 0], sizes = [5, 8], strides = [1, 1]} : vector<10x32xf32> to vector<5x8xf32>
    %842 = vector.extract_strided_slice %839 {offsets = [0, 0], sizes = [5, 8], strides = [1, 1]} : vector<10x32xf32> to vector<5x8xf32>
    %843 = tpu.transpose %841, [1, 0] : vector<5x8xf32> -> vector<8x5xf32>
    %cst_329 = arith.constant dense<0.000000e+00> : vector<5x5xf32>
    %844 = tpu.matmul %840, %843, %cst_329 {dimension_numbers = #tpu.dot_dimension_numbers<[1], [0], [0], [1], [0, 0, 1, 1], [], []>} : vector<5x8xf32>, vector<8x5xf32>, vector<5x5xf32> -> vector<5x5xf32>
    %cst_330 = arith.constant 0.353553385 : f32
    %845 = vector.broadcast %cst_330 : f32 to vector<5x5xf32>
    %846 = arith.mulf %844, %845 : vector<5x5xf32>
    %cst_331 = arith.constant dense<0xFF800000> : vector<5xf32>
    %847 = vector.multi_reduction <maximumf>, %846, %cst_331 [1] : vector<5x5xf32> to vector<5xf32>
    %cst_332 = arith.constant 0xFF800000 : f32
    %848 = vector.broadcast %cst_332 : f32 to vector<5xf32>
    %849 = arith.maximumf %848, %847 : vector<5xf32>
    %850 = vector.shape_cast %849 : vector<5xf32> to vector<5x1xf32>
    %851 = vector.broadcast %850 : vector<5x1xf32> to vector<5x5xf32>
    %852 = arith.subf %846, %851 : vector<5x5xf32>
    %853 = math.exp %852 : vector<5x5xf32>
    %cst_333 = arith.constant dense<0.000000e+00> : vector<5xf32>
    %854 = vector.multi_reduction <add>, %853, %cst_333 [1] : vector<5x5xf32> to vector<5xf32>
    %855 = vector.shape_cast %854 : vector<5xf32> to vector<5x1xf32>
    %856 = vector.broadcast %855 : vector<5x1xf32> to vector<5x5xf32>
    %857 = arith.divf %853, %856 : vector<5x5xf32>
    %cst_334 = arith.constant dense<0.000000e+00> : vector<5x8xf32>
    %858 = tpu.matmul %857, %842, %cst_334 {dimension_numbers = #tpu.dot_dimension_numbers<[1], [0], [0], [1], [0, 0, 1, 1], [], []>} : vector<5x5xf32>, vector<5x8xf32>, vector<5x8xf32> -> vector<5x8xf32>
    %859 = vector.extract_strided_slice %837 {offsets = [0, 8], sizes = [5, 8], strides = [1, 1]} : vector<10x32xf32> to vector<5x8xf32>
    %860 = vector.extract_strided_slice %838 {offsets = [0, 8], sizes = [5, 8], strides = [1, 1]} : vector<10x32xf32> to vector<5x8xf32>
    %861 = vector.extract_strided_slice %839 {offsets = [0, 8], sizes = [5, 8], strides = [1, 1]} : vector<10x32xf32> to vector<5x8xf32>
    %862 = tpu.transpose %860, [1, 0] : vector<5x8xf32> -> vector<8x5xf32>
    %cst_335 = arith.constant dense<0.000000e+00> : vector<5x5xf32>
    %863 = tpu.matmul %859, %862, %cst_335 {dimension_numbers = #tpu.dot_dimension_numbers<[1], [0], [0], [1], [0, 0, 1, 1], [], []>} : vector<5x8xf32>, vector<8x5xf32>, vector<5x5xf32> -> vector<5x5xf32>
    %cst_336 = arith.constant 0.353553385 : f32
    %864 = vector.broadcast %cst_336 : f32 to vector<5x5xf32>
    %865 = arith.mulf %863, %864 : vector<5x5xf32>
    %cst_337 = arith.constant dense<0xFF800000> : vector<5xf32>
    %866 = vector.multi_reduction <maximumf>, %865, %cst_337 [1] : vector<5x5xf32> to vector<5xf32>
    %cst_338 = arith.constant 0xFF800000 : f32
    %867 = vector.broadcast %cst_338 : f32 to vector<5xf32>
    %868 = arith.maximumf %867, %866 : vector<5xf32>
    %869 = vector.shape_cast %868 : vector<5xf32> to vector<5x1xf32>
    %870 = vector.broadcast %869 : vector<5x1xf32> to vector<5x5xf32>
    %871 = arith.subf %865, %870 : vector<5x5xf32>
    %872 = math.exp %871 : vector<5x5xf32>
    %cst_339 = arith.constant dense<0.000000e+00> : vector<5xf32>
    %873 = vector.multi_reduction <add>, %872, %cst_339 [1] : vector<5x5xf32> to vector<5xf32>
    %874 = vector.shape_cast %873 : vector<5xf32> to vector<5x1xf32>
    %875 = vector.broadcast %874 : vector<5x1xf32> to vector<5x5xf32>
    %876 = arith.divf %872, %875 : vector<5x5xf32>
    %cst_340 = arith.constant dense<0.000000e+00> : vector<5x8xf32>
    %877 = tpu.matmul %876, %861, %cst_340 {dimension_numbers = #tpu.dot_dimension_numbers<[1], [0], [0], [1], [0, 0, 1, 1], [], []>} : vector<5x5xf32>, vector<5x8xf32>, vector<5x8xf32> -> vector<5x8xf32>
    %878 = vector.extract_strided_slice %837 {offsets = [0, 16], sizes = [5, 8], strides = [1, 1]} : vector<10x32xf32> to vector<5x8xf32>
    %879 = vector.extract_strided_slice %838 {offsets = [0, 16], sizes = [5, 8], strides = [1, 1]} : vector<10x32xf32> to vector<5x8xf32>
    %880 = vector.extract_strided_slice %839 {offsets = [0, 16], sizes = [5, 8], strides = [1, 1]} : vector<10x32xf32> to vector<5x8xf32>
    %881 = tpu.transpose %879, [1, 0] : vector<5x8xf32> -> vector<8x5xf32>
    %cst_341 = arith.constant dense<0.000000e+00> : vector<5x5xf32>
    %882 = tpu.matmul %878, %881, %cst_341 {dimension_numbers = #tpu.dot_dimension_numbers<[1], [0], [0], [1], [0, 0, 1, 1], [], []>} : vector<5x8xf32>, vector<8x5xf32>, vector<5x5xf32> -> vector<5x5xf32>
    %cst_342 = arith.constant 0.353553385 : f32
    %883 = vector.broadcast %cst_342 : f32 to vector<5x5xf32>
    %884 = arith.mulf %882, %883 : vector<5x5xf32>
    %cst_343 = arith.constant dense<0xFF800000> : vector<5xf32>
    %885 = vector.multi_reduction <maximumf>, %884, %cst_343 [1] : vector<5x5xf32> to vector<5xf32>
    %cst_344 = arith.constant 0xFF800000 : f32
    %886 = vector.broadcast %cst_344 : f32 to vector<5xf32>
    %887 = arith.maximumf %886, %885 : vector<5xf32>
    %888 = vector.shape_cast %887 : vector<5xf32> to vector<5x1xf32>
    %889 = vector.broadcast %888 : vector<5x1xf32> to vector<5x5xf32>
    %890 = arith.subf %884, %889 : vector<5x5xf32>
    %891 = math.exp %890 : vector<5x5xf32>
    %cst_345 = arith.constant dense<0.000000e+00> : vector<5xf32>
    %892 = vector.multi_reduction <add>, %891, %cst_345 [1] : vector<5x5xf32> to vector<5xf32>
    %893 = vector.shape_cast %892 : vector<5xf32> to vector<5x1xf32>
    %894 = vector.broadcast %893 : vector<5x1xf32> to vector<5x5xf32>
    %895 = arith.divf %891, %894 : vector<5x5xf32>
    %cst_346 = arith.constant dense<0.000000e+00> : vector<5x8xf32>
    %896 = tpu.matmul %895, %880, %cst_346 {dimension_numbers = #tpu.dot_dimension_numbers<[1], [0], [0], [1], [0, 0, 1, 1], [], []>} : vector<5x5xf32>, vector<5x8xf32>, vector<5x8xf32> -> vector<5x8xf32>
    %897 = vector.extract_strided_slice %837 {offsets = [0, 24], sizes = [5, 8], strides = [1, 1]} : vector<10x32xf32> to vector<5x8xf32>
    %898 = vector.extract_strided_slice %838 {offsets = [0, 24], sizes = [5, 8], strides = [1, 1]} : vector<10x32xf32> to vector<5x8xf32>
    %899 = vector.extract_strided_slice %839 {offsets = [0, 24], sizes = [5, 8], strides = [1, 1]} : vector<10x32xf32> to vector<5x8xf32>
    %900 = tpu.transpose %898, [1, 0] : vector<5x8xf32> -> vector<8x5xf32>
    %cst_347 = arith.constant dense<0.000000e+00> : vector<5x5xf32>
    %901 = tpu.matmul %897, %900, %cst_347 {dimension_numbers = #tpu.dot_dimension_numbers<[1], [0], [0], [1], [0, 0, 1, 1], [], []>} : vector<5x8xf32>, vector<8x5xf32>, vector<5x5xf32> -> vector<5x5xf32>
    %cst_348 = arith.constant 0.353553385 : f32
    %902 = vector.broadcast %cst_348 : f32 to vector<5x5xf32>
    %903 = arith.mulf %901, %902 : vector<5x5xf32>
    %cst_349 = arith.constant dense<0xFF800000> : vector<5xf32>
    %904 = vector.multi_reduction <maximumf>, %903, %cst_349 [1] : vector<5x5xf32> to vector<5xf32>
    %cst_350 = arith.constant 0xFF800000 : f32
    %905 = vector.broadcast %cst_350 : f32 to vector<5xf32>
    %906 = arith.maximumf %905, %904 : vector<5xf32>
    %907 = vector.shape_cast %906 : vector<5xf32> to vector<5x1xf32>
    %908 = vector.broadcast %907 : vector<5x1xf32> to vector<5x5xf32>
    %909 = arith.subf %903, %908 : vector<5x5xf32>
    %910 = math.exp %909 : vector<5x5xf32>
    %cst_351 = arith.constant dense<0.000000e+00> : vector<5xf32>
    %911 = vector.multi_reduction <add>, %910, %cst_351 [1] : vector<5x5xf32> to vector<5xf32>
    %912 = vector.shape_cast %911 : vector<5xf32> to vector<5x1xf32>
    %913 = vector.broadcast %912 : vector<5x1xf32> to vector<5x5xf32>
    %914 = arith.divf %910, %913 : vector<5x5xf32>
    %cst_352 = arith.constant dense<0.000000e+00> : vector<5x8xf32>
    %915 = tpu.matmul %914, %899, %cst_352 {dimension_numbers = #tpu.dot_dimension_numbers<[1], [0], [0], [1], [0, 0, 1, 1], [], []>} : vector<5x5xf32>, vector<5x8xf32>, vector<5x8xf32> -> vector<5x8xf32>
    %916 = tpu.concatenate %858, %877, %896, %915 in 1 : vector<5x8xf32>, vector<5x8xf32>, vector<5x8xf32>, vector<5x8xf32> -> vector<5x32xf32>
    %917 = vector.extract_strided_slice %837 {offsets = [5, 0], sizes = [5, 8], strides = [1, 1]} : vector<10x32xf32> to vector<5x8xf32>
    %918 = vector.extract_strided_slice %838 {offsets = [5, 0], sizes = [5, 8], strides = [1, 1]} : vector<10x32xf32> to vector<5x8xf32>
    %919 = vector.extract_strided_slice %839 {offsets = [5, 0], sizes = [5, 8], strides = [1, 1]} : vector<10x32xf32> to vector<5x8xf32>
    %920 = tpu.transpose %918, [1, 0] : vector<5x8xf32> -> vector<8x5xf32>
    %cst_353 = arith.constant dense<0.000000e+00> : vector<5x5xf32>
    %921 = tpu.matmul %917, %920, %cst_353 {dimension_numbers = #tpu.dot_dimension_numbers<[1], [0], [0], [1], [0, 0, 1, 1], [], []>} : vector<5x8xf32>, vector<8x5xf32>, vector<5x5xf32> -> vector<5x5xf32>
    %cst_354 = arith.constant 0.353553385 : f32
    %922 = vector.broadcast %cst_354 : f32 to vector<5x5xf32>
    %923 = arith.mulf %921, %922 : vector<5x5xf32>
    %cst_355 = arith.constant dense<0xFF800000> : vector<5xf32>
    %924 = vector.multi_reduction <maximumf>, %923, %cst_355 [1] : vector<5x5xf32> to vector<5xf32>
    %cst_356 = arith.constant 0xFF800000 : f32
    %925 = vector.broadcast %cst_356 : f32 to vector<5xf32>
    %926 = arith.maximumf %925, %924 : vector<5xf32>
    %927 = vector.shape_cast %926 : vector<5xf32> to vector<5x1xf32>
    %928 = vector.broadcast %927 : vector<5x1xf32> to vector<5x5xf32>
    %929 = arith.subf %923, %928 : vector<5x5xf32>
    %930 = math.exp %929 : vector<5x5xf32>
    %cst_357 = arith.constant dense<0.000000e+00> : vector<5xf32>
    %931 = vector.multi_reduction <add>, %930, %cst_357 [1] : vector<5x5xf32> to vector<5xf32>
    %932 = vector.shape_cast %931 : vector<5xf32> to vector<5x1xf32>
    %933 = vector.broadcast %932 : vector<5x1xf32> to vector<5x5xf32>
    %934 = arith.divf %930, %933 : vector<5x5xf32>
    %cst_358 = arith.constant dense<0.000000e+00> : vector<5x8xf32>
    %935 = tpu.matmul %934, %919, %cst_358 {dimension_numbers = #tpu.dot_dimension_numbers<[1], [0], [0], [1], [0, 0, 1, 1], [], []>} : vector<5x5xf32>, vector<5x8xf32>, vector<5x8xf32> -> vector<5x8xf32>
    %936 = vector.extract_strided_slice %837 {offsets = [5, 8], sizes = [5, 8], strides = [1, 1]} : vector<10x32xf32> to vector<5x8xf32>
    %937 = vector.extract_strided_slice %838 {offsets = [5, 8], sizes = [5, 8], strides = [1, 1]} : vector<10x32xf32> to vector<5x8xf32>
    %938 = vector.extract_strided_slice %839 {offsets = [5, 8], sizes = [5, 8], strides = [1, 1]} : vector<10x32xf32> to vector<5x8xf32>
    %939 = tpu.transpose %937, [1, 0] : vector<5x8xf32> -> vector<8x5xf32>
    %cst_359 = arith.constant dense<0.000000e+00> : vector<5x5xf32>
    %940 = tpu.matmul %936, %939, %cst_359 {dimension_numbers = #tpu.dot_dimension_numbers<[1], [0], [0], [1], [0, 0, 1, 1], [], []>} : vector<5x8xf32>, vector<8x5xf32>, vector<5x5xf32> -> vector<5x5xf32>
    %cst_360 = arith.constant 0.353553385 : f32
    %941 = vector.broadcast %cst_360 : f32 to vector<5x5xf32>
    %942 = arith.mulf %940, %941 : vector<5x5xf32>
    %cst_361 = arith.constant dense<0xFF800000> : vector<5xf32>
    %943 = vector.multi_reduction <maximumf>, %942, %cst_361 [1] : vector<5x5xf32> to vector<5xf32>
    %cst_362 = arith.constant 0xFF800000 : f32
    %944 = vector.broadcast %cst_362 : f32 to vector<5xf32>
    %945 = arith.maximumf %944, %943 : vector<5xf32>
    %946 = vector.shape_cast %945 : vector<5xf32> to vector<5x1xf32>
    %947 = vector.broadcast %946 : vector<5x1xf32> to vector<5x5xf32>
    %948 = arith.subf %942, %947 : vector<5x5xf32>
    %949 = math.exp %948 : vector<5x5xf32>
    %cst_363 = arith.constant dense<0.000000e+00> : vector<5xf32>
    %950 = vector.multi_reduction <add>, %949, %cst_363 [1] : vector<5x5xf32> to vector<5xf32>
    %951 = vector.shape_cast %950 : vector<5xf32> to vector<5x1xf32>
    %952 = vector.broadcast %951 : vector<5x1xf32> to vector<5x5xf32>
    %953 = arith.divf %949, %952 : vector<5x5xf32>
    %cst_364 = arith.constant dense<0.000000e+00> : vector<5x8xf32>
    %954 = tpu.matmul %953, %938, %cst_364 {dimension_numbers = #tpu.dot_dimension_numbers<[1], [0], [0], [1], [0, 0, 1, 1], [], []>} : vector<5x5xf32>, vector<5x8xf32>, vector<5x8xf32> -> vector<5x8xf32>
    %955 = vector.extract_strided_slice %837 {offsets = [5, 16], sizes = [5, 8], strides = [1, 1]} : vector<10x32xf32> to vector<5x8xf32>
    %956 = vector.extract_strided_slice %838 {offsets = [5, 16], sizes = [5, 8], strides = [1, 1]} : vector<10x32xf32> to vector<5x8xf32>
    %957 = vector.extract_strided_slice %839 {offsets = [5, 16], sizes = [5, 8], strides = [1, 1]} : vector<10x32xf32> to vector<5x8xf32>
    %958 = tpu.transpose %956, [1, 0] : vector<5x8xf32> -> vector<8x5xf32>
    %cst_365 = arith.constant dense<0.000000e+00> : vector<5x5xf32>
    %959 = tpu.matmul %955, %958, %cst_365 {dimension_numbers = #tpu.dot_dimension_numbers<[1], [0], [0], [1], [0, 0, 1, 1], [], []>} : vector<5x8xf32>, vector<8x5xf32>, vector<5x5xf32> -> vector<5x5xf32>
    %cst_366 = arith.constant 0.353553385 : f32
    %960 = vector.broadcast %cst_366 : f32 to vector<5x5xf32>
    %961 = arith.mulf %959, %960 : vector<5x5xf32>
    %cst_367 = arith.constant dense<0xFF800000> : vector<5xf32>
    %962 = vector.multi_reduction <maximumf>, %961, %cst_367 [1] : vector<5x5xf32> to vector<5xf32>
    %cst_368 = arith.constant 0xFF800000 : f32
    %963 = vector.broadcast %cst_368 : f32 to vector<5xf32>
    %964 = arith.maximumf %963, %962 : vector<5xf32>
    %965 = vector.shape_cast %964 : vector<5xf32> to vector<5x1xf32>
    %966 = vector.broadcast %965 : vector<5x1xf32> to vector<5x5xf32>
    %967 = arith.subf %961, %966 : vector<5x5xf32>
    %968 = math.exp %967 : vector<5x5xf32>
    %cst_369 = arith.constant dense<0.000000e+00> : vector<5xf32>
    %969 = vector.multi_reduction <add>, %968, %cst_369 [1] : vector<5x5xf32> to vector<5xf32>
    %970 = vector.shape_cast %969 : vector<5xf32> to vector<5x1xf32>
    %971 = vector.broadcast %970 : vector<5x1xf32> to vector<5x5xf32>
    %972 = arith.divf %968, %971 : vector<5x5xf32>
    %cst_370 = arith.constant dense<0.000000e+00> : vector<5x8xf32>
    %973 = tpu.matmul %972, %957, %cst_370 {dimension_numbers = #tpu.dot_dimension_numbers<[1], [0], [0], [1], [0, 0, 1, 1], [], []>} : vector<5x5xf32>, vector<5x8xf32>, vector<5x8xf32> -> vector<5x8xf32>
    %974 = vector.extract_strided_slice %837 {offsets = [5, 24], sizes = [5, 8], strides = [1, 1]} : vector<10x32xf32> to vector<5x8xf32>
    %975 = vector.extract_strided_slice %838 {offsets = [5, 24], sizes = [5, 8], strides = [1, 1]} : vector<10x32xf32> to vector<5x8xf32>
    %976 = vector.extract_strided_slice %839 {offsets = [5, 24], sizes = [5, 8], strides = [1, 1]} : vector<10x32xf32> to vector<5x8xf32>
    %977 = tpu.transpose %975, [1, 0] : vector<5x8xf32> -> vector<8x5xf32>
    %cst_371 = arith.constant dense<0.000000e+00> : vector<5x5xf32>
    %978 = tpu.matmul %974, %977, %cst_371 {dimension_numbers = #tpu.dot_dimension_numbers<[1], [0], [0], [1], [0, 0, 1, 1], [], []>} : vector<5x8xf32>, vector<8x5xf32>, vector<5x5xf32> -> vector<5x5xf32>
    %cst_372 = arith.constant 0.353553385 : f32
    %979 = vector.broadcast %cst_372 : f32 to vector<5x5xf32>
    %980 = arith.mulf %978, %979 : vector<5x5xf32>
    %cst_373 = arith.constant dense<0xFF800000> : vector<5xf32>
    %981 = vector.multi_reduction <maximumf>, %980, %cst_373 [1] : vector<5x5xf32> to vector<5xf32>
    %cst_374 = arith.constant 0xFF800000 : f32
    %982 = vector.broadcast %cst_374 : f32 to vector<5xf32>
    %983 = arith.maximumf %982, %981 : vector<5xf32>
    %984 = vector.shape_cast %983 : vector<5xf32> to vector<5x1xf32>
    %985 = vector.broadcast %984 : vector<5x1xf32> to vector<5x5xf32>
    %986 = arith.subf %980, %985 : vector<5x5xf32>
    %987 = math.exp %986 : vector<5x5xf32>
    %cst_375 = arith.constant dense<0.000000e+00> : vector<5xf32>
    %988 = vector.multi_reduction <add>, %987, %cst_375 [1] : vector<5x5xf32> to vector<5xf32>
    %989 = vector.shape_cast %988 : vector<5xf32> to vector<5x1xf32>
    %990 = vector.broadcast %989 : vector<5x1xf32> to vector<5x5xf32>
    %991 = arith.divf %987, %990 : vector<5x5xf32>
    %cst_376 = arith.constant dense<0.000000e+00> : vector<5x8xf32>
    %992 = tpu.matmul %991, %976, %cst_376 {dimension_numbers = #tpu.dot_dimension_numbers<[1], [0], [0], [1], [0, 0, 1, 1], [], []>} : vector<5x5xf32>, vector<5x8xf32>, vector<5x8xf32> -> vector<5x8xf32>
    %993 = tpu.concatenate %935, %954, %973, %992 in 1 : vector<5x8xf32>, vector<5x8xf32>, vector<5x8xf32>, vector<5x8xf32> -> vector<5x32xf32>
    %994 = tpu.concatenate %916, %993 in 0 : vector<5x32xf32>, vector<5x32xf32> -> vector<10x32xf32>
    %c1_377 = arith.constant 1 : index
    %c1_378 = arith.constant 1 : index
    %c0_379 = arith.constant 0 : index
    %c0_380 = arith.constant 0 : index
    %995 = vector.load %arg5[%c1_377, %c1_378, %c0_379, %c0_380] : memref<2x2x32x32xf32, #tpu.memory_space<vmem>>, vector<1x1x32x32xf32>
    %996 = vector.shape_cast %995 : vector<1x1x32x32xf32> to vector<32x32xf32>
    %cst_381 = arith.constant dense<0.000000e+00> : vector<10x32xf32>
    %997 = tpu.matmul %994, %996, %cst_381 {dimension_numbers = #tpu.dot_dimension_numbers<[1], [0], [0], [1], [0, 0, 1, 1], [], []>} : vector<10x32xf32>, vector<32x32xf32>, vector<10x32xf32> -> vector<10x32xf32>
    %998 = vector.broadcast %806 : vector<1x32xf32> to vector<10x32xf32>
    %999 = arith.addf %997, %998 : vector<10x32xf32>
    %1000 = arith.addf %799, %999 : vector<10x32xf32>
    %cst_382 = arith.constant dense<0.000000e+00> : vector<10xf32>
    %1001 = vector.multi_reduction <add>, %1000, %cst_382 [1] : vector<10x32xf32> to vector<10xf32>
    %1002 = vector.shape_cast %1001 : vector<10xf32> to vector<10x1xf32>
    %cst_383 = arith.constant 3.200000e+01 : f32
    %1003 = vector.broadcast %cst_383 : f32 to vector<10x1xf32>
    %1004 = arith.divf %1002, %1003 : vector<10x1xf32>
    %1005 = vector.broadcast %1004 : vector<10x1xf32> to vector<10x32xf32>
    %1006 = arith.subf %1000, %1005 : vector<10x32xf32>
    %1007 = arith.mulf %1006, %1006 : vector<10x32xf32>
    %cst_384 = arith.constant dense<0.000000e+00> : vector<10xf32>
    %1008 = vector.multi_reduction <add>, %1007, %cst_384 [1] : vector<10x32xf32> to vector<10xf32>
    %1009 = vector.shape_cast %1008 : vector<10xf32> to vector<10x1xf32>
    %cst_385 = arith.constant 3.200000e+01 : f32
    %1010 = vector.broadcast %cst_385 : f32 to vector<10x1xf32>
    %1011 = arith.divf %1009, %1010 : vector<10x1xf32>
    %1012 = vector.broadcast %1004 : vector<10x1xf32> to vector<10x32xf32>
    %1013 = arith.subf %1000, %1012 : vector<10x32xf32>
    %cst_386 = arith.constant 9.99999996E-13 : f32
    %1014 = vector.broadcast %cst_386 : f32 to vector<10x1xf32>
    %1015 = arith.addf %1011, %1014 : vector<10x1xf32>
    %1016 = math.rsqrt %1015 : vector<10x1xf32>
    %1017 = vector.broadcast %1016 : vector<10x1xf32> to vector<10x32xf32>
    %1018 = arith.mulf %1013, %1017 : vector<10x32xf32>
    %1019 = vector.broadcast %804 : vector<1x32xf32> to vector<10x32xf32>
    %1020 = arith.mulf %1018, %1019 : vector<10x32xf32>
    %1021 = vector.broadcast %805 : vector<1x32xf32> to vector<10x32xf32>
    %1022 = arith.addf %1020, %1021 : vector<10x32xf32>
    %c1_387 = arith.constant 1 : index
    %c1_388 = arith.constant 1 : index
    %c0_389 = arith.constant 0 : index
    %c0_390 = arith.constant 0 : index
    %1023 = vector.load %arg7[%c1_387, %c1_388, %c0_389, %c0_390] : memref<2x2x32x128xf32, #tpu.memory_space<vmem>>, vector<1x1x32x128xf32>
    %1024 = vector.shape_cast %1023 : vector<1x1x32x128xf32> to vector<32x128xf32>
    %cst_391 = arith.constant dense<0.000000e+00> : vector<10x128xf32>
    %1025 = tpu.matmul %1022, %1024, %cst_391 {dimension_numbers = #tpu.dot_dimension_numbers<[1], [0], [0], [1], [0, 0, 1, 1], [], []>} : vector<10x32xf32>, vector<32x128xf32>, vector<10x128xf32> -> vector<10x128xf32>
    %c1_392 = arith.constant 1 : index
    %c1_393 = arith.constant 1 : index
    %c0_394 = arith.constant 0 : index
    %c0_395 = arith.constant 0 : index
    %1026 = vector.load %arg8[%c1_392, %c1_393, %c0_394, %c0_395] : memref<2x2x1x128xf32, #tpu.memory_space<vmem>>, vector<1x1x1x128xf32>
    %1027 = vector.shape_cast %1026 : vector<1x1x1x128xf32> to vector<1x128xf32>
    %1028 = vector.broadcast %1027 : vector<1x128xf32> to vector<10x128xf32>
    %1029 = arith.addf %1025, %1028 : vector<10x128xf32>
    %1030 = arith.mulf %1029, %1029 : vector<10x128xf32>
    %1031 = arith.mulf %1029, %1030 : vector<10x128xf32>
    %cst_396 = arith.constant 4.471500e-02 : f32
    %1032 = vector.broadcast %cst_396 : f32 to vector<10x128xf32>
    %1033 = arith.mulf %1032, %1031 : vector<10x128xf32>
    %1034 = arith.addf %1029, %1033 : vector<10x128xf32>
    %cst_397 = arith.constant 0.797884583 : f32
    %1035 = vector.broadcast %cst_397 : f32 to vector<10x128xf32>
    %1036 = arith.mulf %1035, %1034 : vector<10x128xf32>
    %1037 = math.tanh %1036 : vector<10x128xf32>
    %cst_398 = arith.constant 1.000000e+00 : f32
    %1038 = vector.broadcast %cst_398 : f32 to vector<10x128xf32>
    %1039 = arith.addf %1038, %1037 : vector<10x128xf32>
    %cst_399 = arith.constant 5.000000e-01 : f32
    %1040 = vector.broadcast %cst_399 : f32 to vector<10x128xf32>
    %1041 = arith.mulf %1040, %1039 : vector<10x128xf32>
    %1042 = arith.mulf %1029, %1041 : vector<10x128xf32>
    %c1_400 = arith.constant 1 : index
    %c1_401 = arith.constant 1 : index
    %c0_402 = arith.constant 0 : index
    %c0_403 = arith.constant 0 : index
    %1043 = vector.load %arg9[%c1_400, %c1_401, %c0_402, %c0_403] : memref<2x2x128x32xf32, #tpu.memory_space<vmem>>, vector<1x1x128x32xf32>
    %1044 = vector.shape_cast %1043 : vector<1x1x128x32xf32> to vector<128x32xf32>
    %cst_404 = arith.constant dense<0.000000e+00> : vector<10x32xf32>
    %1045 = tpu.matmul %1042, %1044, %cst_404 {dimension_numbers = #tpu.dot_dimension_numbers<[1], [0], [0], [1], [0, 0, 1, 1], [], []>} : vector<10x128xf32>, vector<128x32xf32>, vector<10x32xf32> -> vector<10x32xf32>
    %1046 = arith.addf %1000, %1045 : vector<10x32xf32>
    %1047 = vector.broadcast %807 : vector<1x32xf32> to vector<10x32xf32>
    %1048 = arith.addf %1046, %1047 : vector<10x32xf32>
    %c1_405 = arith.constant 1 : index
    %c0_406 = arith.constant 0 : index
    %c0_407 = arith.constant 0 : index
    %1049 = vector.load %arg10[%c1_405, %c0_406, %c0_407] : memref<2x3x32xf32, #tpu.memory_space<vmem>>, vector<1x3x32xf32>
    %1050 = vector.shape_cast %1049 : vector<1x3x32xf32> to vector<3x32xf32>
    %1051 = vector.extract_strided_slice %1050 {offsets = [0, 0], sizes = [1, 32], strides = [1, 1]} : vector<3x32xf32> to vector<1x32xf32>
    %1052 = vector.extract_strided_slice %1050 {offsets = [1, 0], sizes = [1, 32], strides = [1, 1]} : vector<3x32xf32> to vector<1x32xf32>
    %1053 = vector.extract_strided_slice %1050 {offsets = [2, 0], sizes = [1, 32], strides = [1, 1]} : vector<3x32xf32> to vector<1x32xf32>
    %1054 = vector.extract_strided_slice %1048 {offsets = [0, 0], sizes = [1, 32], strides = [1, 1]} : vector<10x32xf32> to vector<1x32xf32>
    %1055 = vector.extract_strided_slice %1048 {offsets = [5, 0], sizes = [1, 32], strides = [1, 1]} : vector<10x32xf32> to vector<1x32xf32>
    %1056 = tpu.concatenate %1054, %1055 in 0 : vector<1x32xf32>, vector<1x32xf32> -> vector<2x32xf32>
    %cst_408 = arith.constant dense<0.000000e+00> : vector<2xf32>
    %1057 = vector.multi_reduction <add>, %1056, %cst_408 [1] : vector<2x32xf32> to vector<2xf32>
    %1058 = vector.shape_cast %1057 : vector<2xf32> to vector<2x1xf32>
    %cst_409 = arith.constant 3.200000e+01 : f32
    %1059 = vector.broadcast %cst_409 : f32 to vector<2x1xf32>
    %1060 = arith.divf %1058, %1059 : vector<2x1xf32>
    %1061 = vector.broadcast %1060 : vector<2x1xf32> to vector<2x32xf32>
    %1062 = arith.subf %1056, %1061 : vector<2x32xf32>
    %1063 = arith.mulf %1062, %1062 : vector<2x32xf32>
    %cst_410 = arith.constant dense<0.000000e+00> : vector<2xf32>
    %1064 = vector.multi_reduction <add>, %1063, %cst_410 [1] : vector<2x32xf32> to vector<2xf32>
    %1065 = vector.shape_cast %1064 : vector<2xf32> to vector<2x1xf32>
    %cst_411 = arith.constant 3.200000e+01 : f32
    %1066 = vector.broadcast %cst_411 : f32 to vector<2x1xf32>
    %1067 = arith.divf %1065, %1066 : vector<2x1xf32>
    %1068 = vector.broadcast %1060 : vector<2x1xf32> to vector<2x32xf32>
    %1069 = arith.subf %1056, %1068 : vector<2x32xf32>
    %cst_412 = arith.constant 9.99999996E-13 : f32
    %1070 = vector.broadcast %cst_412 : f32 to vector<2x1xf32>
    %1071 = arith.addf %1067, %1070 : vector<2x1xf32>
    %1072 = math.rsqrt %1071 : vector<2x1xf32>
    %1073 = vector.broadcast %1072 : vector<2x1xf32> to vector<2x32xf32>
    %1074 = arith.mulf %1069, %1073 : vector<2x32xf32>
    %1075 = vector.broadcast %1051 : vector<1x32xf32> to vector<2x32xf32>
    %1076 = arith.mulf %1074, %1075 : vector<2x32xf32>
    %1077 = vector.broadcast %1052 : vector<1x32xf32> to vector<2x32xf32>
    %1078 = arith.addf %1076, %1077 : vector<2x32xf32>
    %c1_413 = arith.constant 1 : index
    %c0_414 = arith.constant 0 : index
    %c0_415 = arith.constant 0 : index
    %1079 = vector.load %arg11[%c1_413, %c0_414, %c0_415] : memref<2x32x32xf32, #tpu.memory_space<vmem>>, vector<1x32x32xf32>
    %1080 = vector.shape_cast %1079 : vector<1x32x32xf32> to vector<32x32xf32>
    %cst_416 = arith.constant dense<0.000000e+00> : vector<2x32xf32>
    %1081 = tpu.matmul %1078, %1080, %cst_416 {dimension_numbers = #tpu.dot_dimension_numbers<[1], [0], [0], [1], [0, 0, 1, 1], [], []>} : vector<2x32xf32>, vector<32x32xf32>, vector<2x32xf32> -> vector<2x32xf32>
    %1082 = vector.broadcast %1053 : vector<1x32xf32> to vector<2x32xf32>
    %1083 = arith.addf %1081, %1082 : vector<2x32xf32>
    %1084 = math.tanh %1083 : vector<2x32xf32>
    %1085 = arith.truncf %1084 : vector<2x32xf32> to vector<2x32xbf16>
    %c0_417 = arith.constant 0 : index
    %c0_418 = arith.constant 0 : index
    %c0_419 = arith.constant 0 : index
    %1086 = vector.load %arg12[%c0_417, %c0_418, %c0_419] : memref<2x32x1024xbf16, #tpu.memory_space<vmem>>, vector<1x32x1024xbf16>
    %1087 = vector.shape_cast %1086 : vector<1x32x1024xbf16> to vector<32x1024xbf16>
    %cst_420 = arith.constant dense<0.000000e+00> : vector<2x1024xf32>
    %1088 = tpu.matmul %542, %1087, %cst_420 {dimension_numbers = #tpu.dot_dimension_numbers<[1], [0], [0], [1], [0, 0, 1, 1], [], []>} : vector<2x32xbf16>, vector<32x1024xbf16>, vector<2x1024xf32> -> vector<2x1024xf32>
    %c1_421 = arith.constant 1 : index
    %c0_422 = arith.constant 0 : index
    %c0_423 = arith.constant 0 : index
    %1089 = vector.load %arg12[%c1_421, %c0_422, %c0_423] : memref<2x32x1024xbf16, #tpu.memory_space<vmem>>, vector<1x32x1024xbf16>
    %1090 = vector.shape_cast %1089 : vector<1x32x1024xbf16> to vector<32x1024xbf16>
    %cst_424 = arith.constant dense<0.000000e+00> : vector<2x1024xf32>
    %1091 = tpu.matmul %1085, %1090, %cst_424 {dimension_numbers = #tpu.dot_dimension_numbers<[1], [0], [0], [1], [0, 0, 1, 1], [], []>} : vector<2x32xbf16>, vector<32x1024xbf16>, vector<2x1024xf32> -> vector<2x1024xf32>
    %1092 = arith.addf %1088, %1091 : vector<2x1024xf32>
    %c0_425 = arith.constant 0 : index
    %c0_426 = arith.constant 0 : index
    %1093 = vector.load %arg13[%c0_425, %c0_426] : memref<3x1024xf32, #tpu.memory_space<vmem>>, vector<3x1024xf32>
    %1094 = vector.extract_strided_slice %1093 {offsets = [0, 0], sizes = [1, 1024], strides = [1, 1]} : vector<3x1024xf32> to vector<1x1024xf32>
    %1095 = vector.extract_strided_slice %1093 {offsets = [1, 0], sizes = [1, 1024], strides = [1, 1]} : vector<3x1024xf32> to vector<1x1024xf32>
    %1096 = vector.extract_strided_slice %1093 {offsets = [2, 0], sizes = [1, 1024], strides = [1, 1]} : vector<3x1024xf32> to vector<1x1024xf32>
    %1097 = vector.broadcast %1094 : vector<1x1024xf32> to vector<2x1024xf32>
    %1098 = arith.addf %1092, %1097 : vector<2x1024xf32>
    %cst_427 = arith.constant 0.999994993 : f32
    %1099 = vector.broadcast %cst_427 : f32 to vector<2x1024xf32>
    %1100 = arith.mulf %1098, %1099 : vector<2x1024xf32>
    %1101 = vector.broadcast %1095 : vector<1x1024xf32> to vector<2x1024xf32>
    %1102 = arith.mulf %1100, %1101 : vector<2x1024xf32>
    %1103 = vector.broadcast %1096 : vector<1x1024xf32> to vector<2x1024xf32>
    %1104 = arith.addf %1102, %1103 : vector<2x1024xf32>
    %cst_428 = arith.constant 0.000000e+00 : f32
    %1105 = vector.broadcast %cst_428 : f32 to vector<2x1024xf32>
    %1106 = arith.maximumf %1104, %1105 : vector<2x1024xf32>
    %1107 = arith.truncf %1106 : vector<2x1024xf32> to vector<2x1024xbf16>
    %c0_429 = arith.constant 0 : index
    %c0_430 = arith.constant 0 : index
    %1108 = vector.load %arg14[%c0_429, %c0_430] : memref<1024x512xbf16, #tpu.memory_space<vmem>>, vector<1024x512xbf16>
    %cst_431 = arith.constant dense<0.000000e+00> : vector<2x512xf32>
    %1109 = tpu.matmul %1107, %1108, %cst_431 {dimension_numbers = #tpu.dot_dimension_numbers<[1], [0], [0], [1], [0, 0, 1, 1], [], []>} : vector<2x1024xbf16>, vector<1024x512xbf16>, vector<2x512xf32> -> vector<2x512xf32>
    %c0_432 = arith.constant 0 : index
    %c0_433 = arith.constant 0 : index
    %1110 = vector.load %arg15[%c0_432, %c0_433] : memref<3x512xf32, #tpu.memory_space<vmem>>, vector<3x512xf32>
    %1111 = vector.extract_strided_slice %1110 {offsets = [0, 0], sizes = [1, 512], strides = [1, 1]} : vector<3x512xf32> to vector<1x512xf32>
    %1112 = vector.extract_strided_slice %1110 {offsets = [1, 0], sizes = [1, 512], strides = [1, 1]} : vector<3x512xf32> to vector<1x512xf32>
    %1113 = vector.extract_strided_slice %1110 {offsets = [2, 0], sizes = [1, 512], strides = [1, 1]} : vector<3x512xf32> to vector<1x512xf32>
    %1114 = vector.broadcast %1111 : vector<1x512xf32> to vector<2x512xf32>
    %1115 = arith.addf %1109, %1114 : vector<2x512xf32>
    %cst_434 = arith.constant 0.999994993 : f32
    %1116 = vector.broadcast %cst_434 : f32 to vector<2x512xf32>
    %1117 = arith.mulf %1115, %1116 : vector<2x512xf32>
    %1118 = vector.broadcast %1112 : vector<1x512xf32> to vector<2x512xf32>
    %1119 = arith.mulf %1117, %1118 : vector<2x512xf32>
    %1120 = vector.broadcast %1113 : vector<1x512xf32> to vector<2x512xf32>
    %1121 = arith.addf %1119, %1120 : vector<2x512xf32>
    %cst_435 = arith.constant 0.000000e+00 : f32
    %1122 = vector.broadcast %cst_435 : f32 to vector<2x512xf32>
    %1123 = arith.maximumf %1121, %1122 : vector<2x512xf32>
    %1124 = arith.truncf %1123 : vector<2x512xf32> to vector<2x512xbf16>
    %c0_436 = arith.constant 0 : index
    %c0_437 = arith.constant 0 : index
    %1125 = vector.load %arg16[%c0_436, %c0_437] : memref<512x256xbf16, #tpu.memory_space<vmem>>, vector<512x256xbf16>
    %cst_438 = arith.constant dense<0.000000e+00> : vector<2x256xf32>
    %1126 = tpu.matmul %1124, %1125, %cst_438 {dimension_numbers = #tpu.dot_dimension_numbers<[1], [0], [0], [1], [0, 0, 1, 1], [], []>} : vector<2x512xbf16>, vector<512x256xbf16>, vector<2x256xf32> -> vector<2x256xf32>
    %c0_439 = arith.constant 0 : index
    %c0_440 = arith.constant 0 : index
    %1127 = vector.load %arg17[%c0_439, %c0_440] : memref<3x256xf32, #tpu.memory_space<vmem>>, vector<3x256xf32>
    %1128 = vector.extract_strided_slice %1127 {offsets = [0, 0], sizes = [1, 256], strides = [1, 1]} : vector<3x256xf32> to vector<1x256xf32>
    %1129 = vector.extract_strided_slice %1127 {offsets = [1, 0], sizes = [1, 256], strides = [1, 1]} : vector<3x256xf32> to vector<1x256xf32>
    %1130 = vector.extract_strided_slice %1127 {offsets = [2, 0], sizes = [1, 256], strides = [1, 1]} : vector<3x256xf32> to vector<1x256xf32>
    %1131 = vector.broadcast %1128 : vector<1x256xf32> to vector<2x256xf32>
    %1132 = arith.addf %1126, %1131 : vector<2x256xf32>
    %cst_441 = arith.constant 0.999994993 : f32
    %1133 = vector.broadcast %cst_441 : f32 to vector<2x256xf32>
    %1134 = arith.mulf %1132, %1133 : vector<2x256xf32>
    %1135 = vector.broadcast %1129 : vector<1x256xf32> to vector<2x256xf32>
    %1136 = arith.mulf %1134, %1135 : vector<2x256xf32>
    %1137 = vector.broadcast %1130 : vector<1x256xf32> to vector<2x256xf32>
    %1138 = arith.addf %1136, %1137 : vector<2x256xf32>
    %cst_442 = arith.constant 0.000000e+00 : f32
    %1139 = vector.broadcast %cst_442 : f32 to vector<2x256xf32>
    %1140 = arith.maximumf %1138, %1139 : vector<2x256xf32>
    %1141 = arith.truncf %1140 : vector<2x256xf32> to vector<2x256xbf16>
    %c0_443 = arith.constant 0 : index
    %c0_444 = arith.constant 0 : index
    %1142 = vector.load %arg18[%c0_443, %c0_444] : memref<256x128xbf16, #tpu.memory_space<vmem>>, vector<256x128xbf16>
    %cst_445 = arith.constant dense<0.000000e+00> : vector<2x128xf32>
    %1143 = tpu.matmul %1141, %1142, %cst_445 {dimension_numbers = #tpu.dot_dimension_numbers<[1], [0], [0], [1], [0, 0, 1, 1], [], []>} : vector<2x256xbf16>, vector<256x128xbf16>, vector<2x128xf32> -> vector<2x128xf32>
    %c0_446 = arith.constant 0 : index
    %c0_447 = arith.constant 0 : index
    %1144 = vector.load %arg19[%c0_446, %c0_447] : memref<3x128xf32, #tpu.memory_space<vmem>>, vector<3x128xf32>
    %1145 = vector.extract_strided_slice %1144 {offsets = [0, 0], sizes = [1, 128], strides = [1, 1]} : vector<3x128xf32> to vector<1x128xf32>
    %1146 = vector.extract_strided_slice %1144 {offsets = [1, 0], sizes = [1, 128], strides = [1, 1]} : vector<3x128xf32> to vector<1x128xf32>
    %1147 = vector.extract_strided_slice %1144 {offsets = [2, 0], sizes = [1, 128], strides = [1, 1]} : vector<3x128xf32> to vector<1x128xf32>
    %1148 = vector.broadcast %1145 : vector<1x128xf32> to vector<2x128xf32>
    %1149 = arith.addf %1143, %1148 : vector<2x128xf32>
    %cst_448 = arith.constant 0.999994993 : f32
    %1150 = vector.broadcast %cst_448 : f32 to vector<2x128xf32>
    %1151 = arith.mulf %1149, %1150 : vector<2x128xf32>
    %1152 = vector.broadcast %1146 : vector<1x128xf32> to vector<2x128xf32>
    %1153 = arith.mulf %1151, %1152 : vector<2x128xf32>
    %1154 = vector.broadcast %1147 : vector<1x128xf32> to vector<2x128xf32>
    %1155 = arith.addf %1153, %1154 : vector<2x128xf32>
    %cst_449 = arith.constant 0.000000e+00 : f32
    %1156 = vector.broadcast %cst_449 : f32 to vector<2x128xf32>
    %1157 = arith.maximumf %1155, %1156 : vector<2x128xf32>
    %1158 = arith.truncf %1157 : vector<2x128xf32> to vector<2x128xbf16>
    %c0_450 = arith.constant 0 : index
    %c0_451 = arith.constant 0 : index
    %1159 = vector.load %arg20[%c0_450, %c0_451] : memref<128x4xbf16, #tpu.memory_space<vmem>>, vector<128x4xbf16>
    %cst_452 = arith.constant dense<0.000000e+00> : vector<2x4xf32>
    %1160 = tpu.matmul %1158, %1159, %cst_452 {dimension_numbers = #tpu.dot_dimension_numbers<[1], [0], [0], [1], [0, 0, 1, 1], [], []>} : vector<2x128xbf16>, vector<128x4xbf16>, vector<2x4xf32> -> vector<2x4xf32>
    %c0_453 = arith.constant 0 : index
    %c0_454 = arith.constant 0 : index
    %1161 = vector.load %arg21[%c0_453, %c0_454] : memref<1x4xf32, #tpu.memory_space<vmem>>, vector<1x4xf32>
    %1162 = vector.broadcast %1161 : vector<1x4xf32> to vector<2x4xf32>
    %1163 = arith.addf %1160, %1162 : vector<2x4xf32>
    %c0_455 = arith.constant 0 : index
    %c0_456 = arith.constant 0 : index
    %1164 = vector.load %arg22[%c0_455, %c0_456] : memref<2x4xf32, #tpu.memory_space<vmem>>, vector<2x4xf32>
    tpu.vector_store %arg22[%c0_455, %c0_456], %1163 {strides = array<i32>} : memref<2x4xf32, #tpu.memory_space<vmem>>, vector<2x4xf32>,
    return
  }
}

</mosaic_0001>

<bundles_post_ra>
// kernel: twin_vit_forward.1
= control target key start
LH: loop header
LB: loop body
LE: loop exit
PB: predicated region body
PF: predicated region fallthrough
CT: control target
= control target key end

     0   :  { %s18613_s0 = inlined_call_operand.vmem [shape: f32[2,10,768], index: 0, kind: input, shape index: {}]   ;;  %s18614_s1 = inlined_call_operand.vmem [shape: f32[2,768,32], index: 1, kind: input, shape index: {}]   ;;  %s18615_s2 = inlined_call_operand.vmem [shape: f32[2,10,32], index: 2, kind: input, shape index: {}]   ;;  %s18616_s3 = inlined_call_operand.vmem [shape: f32[2,2,32,96], index: 3, kind: input, shape index: {}]   ;;  %s18617_s4 = inlined_call_operand.vmem [shape: f32[2,2,1,96], index: 4, kind: input, shape index: {}]   ;;  %s18618_s5 = inlined_call_operand.vmem [shape: f32[2,2,32,32], index: 5, kind: input, shape index: {}]   ;;  %s18619_s6 = inlined_call_operand.vmem [shape: f32[2,2,6,32], index: 6, kind: input, shape index: {}]   ;;  %s18620_s7 = inlined_call_operand.vmem [shape: f32[2,2,32,128], index: 7, kind: input, shape index: {}]   ;;  %s18621_s8 = inlined_call_operand.vmem [shape: f32[2,2,1,128], index: 8, kind: input, shape index: {}]   ;;  %s18622_s9 = inlined_call_operand.vmem [shape: f32[2,2,128,32], index: 9, kind: input, shape index: {}]   ;;  %s18623_s10 = inlined_call_operand.vmem [shape: f32[2,3,32], index: 10, kind: input, shape index: {}]   ;;  %s18624_s11 = inlined_call_operand.vmem [shape: f32[2,32,32], index: 11, kind: input, shape index: {}]   ;;  %s18625_s12 = inlined_call_operand.vmem [shape: bf16[2,32,1024], index: 12, kind: input, shape index: {}]   ;;  %s18626_s13 = inlined_call_operand.vmem [shape: f32[3,1024], index: 13, kind: input, shape index: {}]   ;;  %s18627_s14 = inlined_call_operand.vmem [shape: bf16[1024,512], index: 14, kind: input, shape index: {}]   ;;  %s18628_s15 = inlined_call_operand.vmem [shape: f32[3,512], index: 15, kind: input, shape index: {}]   ;;  %s18629_s16 = inlined_call_operand.vmem [shape: bf16[512,256], index: 16, kind: input, shape index: {}]   ;;  %s18630_s17 = inlined_call_operand.vmem [shape: f32[3,256], index: 17, kind: input, shape index: {}]   ;;  %s18631_s18 = inlined_call_operand.vmem [shape: bf16[256,128], index: 18, kind: input, shape index: {}]   ;;  %s18632_s19 = inlined_call_operand.vmem [shape: f32[3,128], index: 19, kind: input, shape index: {}]   ;;  %s18633_s20 = inlined_call_operand.vmem [shape: bf16[128,4], index: 20, kind: input, shape index: {}]   ;;  %s18634_s21 = inlined_call_operand.vmem [shape: f32[1,4], index: 21, kind: input, shape index: {}]   ;;  %s18635_s22 = inlined_call_operand.hbm [shape: f32[2,4], index: 22, kind: output, shape index: {}]  }
   0x1   :  { %18689 = sst [smem:[#allocation5_spill]] %s18613_s0 }
   0x2   :  { %18690 = sst [smem:[#allocation6_spill]] %s18614_s1 }
   0x3   :  { %18691 = sst [smem:[#allocation7_spill]] %s18615_s2 }
   0x4   :  { %18692 = sst [smem:[#allocation8_spill]] %s18616_s3 }
   0x5   :  { %18693 = sst [smem:[#allocation9_spill]] %s18617_s4 }
   0x6   :  { %18694 = sst [smem:[#allocation10_spill]] %s18618_s5 }
   0x7   :  { %18695 = sst [smem:[#allocation11_spill]] %s18619_s6 }
   0x8   :  { %18696 = sst [smem:[#allocation12_spill]] %s18620_s7 }
   0x9   :  { %18697 = sst [smem:[#allocation13_spill]] %s18623_s10 }
   0xa   :  { %18698 = sst [smem:[#allocation14_spill]] %s18624_s11 }
   0xb   :  { %18699 = sst [smem:[#allocation15_spill]] %s18625_s12 }
   0xc   :  { %18700 = sst [smem:[#allocation16_spill]] %s18626_s13 }
   0xd   :  { %18701 = sst [smem:[#allocation17_spill]] %s18627_s14 }
   0xe   :  { %18702 = sst [smem:[#allocation18_spill]] %s18628_s15 }
   0xf   :  { %18703 = sst [smem:[#allocation19_spill]] %s18629_s16 }
  0x10   :  { %18704 = sst [smem:[#allocation20_spill]] %s18630_s17 }
  0x11   :  { %18705 = sst [smem:[#allocation21_spill]] %s18631_s18 }
  0x12   :  { %18706 = sst [smem:[#allocation22_spill]] %s18632_s19 }
  0x13   :  { %18707 = sst [smem:[#allocation23_spill]] %s18633_s20 }
  0x14   :  { %18708 = sst [smem:[#allocation24_spill]] %s18634_s21 }
  0x15   :  { %18709 = sst [smem:[#allocation25_spill]] %s18635_s22 }
  0x16   :  { %s18710_s29 = sld [smem:[#allocation6_spill]]  ;;  %s18711_s25 = sld [smem:[#allocation5_spill]] }
  0x1c   :  { %v101_v0 = vld [vmem:[%s18710_s29 + $0x80] sm:$0xff]  ;;  %v102_v1 = vld [vmem:[%s18710_s29 + $0x88] sm:$0xff]  ;;  %v103_v5 = vld [vmem:[%s18710_s29 + $0x90] sm:$0xff] }
  0x1d   :  { %v85_v2 = vld [vmem:[%s18710_s29] sm:$0xff]  ;;  %v13938_v3 = vpack.c.bf16 %v102_v1, %v101_v0  ;;  %v86_v4 = vld [vmem:[%s18710_s29 + $0x8] sm:$0xff]  ;;  %v104_v6 = vld [vmem:[%s18710_s29 + $0x98] sm:$0xff] }
  0x1e   :  { %v13940_v7 = vpack.c.bf16 %v86_v4, %v85_v2  ;;  %v13942_v8 = vpack.c.bf16 %v104_v6, %v103_v5  ;;  %v87_v9 = vld [vmem:[%s18710_s29 + $0x10] sm:$0xff]  ;;  %v88_v10 = vld [vmem:[%s18710_s29 + $0x18] sm:$0xff]  ;;  %v105_v11 = vld [vmem:[%s18710_s29 + $0xa0] sm:$0xff] }
  0x1f   :  { %13939 = vmatprep.subr.bf16.mxu0 %v13938_v3  ;;  %v106_v12 = vld [vmem:[%s18710_s29 + $0xa8] sm:$0xff]  ;;  %v13944_v13 = vpack.c.bf16 %v88_v10, %v87_v9  ;;  %v89_v15 = vld [vmem:[%s18710_s29 + $0x20] sm:$0xff]  ;;  %v107_v17 = vld [vmem:[%s18710_s29 + $0xb0] sm:$0xff] }
  0x20   :  { %13941 = vmatpush3.bf16.msra.mxu0 %v13940_v7  ;;  %v13946_v14 = vpack.c.bf16 %v106_v12, %v105_v11  ;;  %v90_v16 = vld [vmem:[%s18710_s29 + $0x28] sm:$0xff]  ;;  %v108_v18 = vld [vmem:[%s18710_s29 + $0xb8] sm:$0xff]  ;;  %v91_v21 = vld [vmem:[%s18710_s29 + $0x30] sm:$0xff] }
  0x21   :  { %13943 = vmatprep.subr.bf16.mxu0 %v13942_v8  ;;  %v13948_v19 = vpack.c.bf16 %v90_v16, %v89_v15  ;;  %v13950_v20 = vpack.c.bf16 %v108_v18, %v107_v17  ;;  %v92_v22 = vld [vmem:[%s18710_s29 + $0x38] sm:$0xff]  ;;  %v109_v23 = vld [vmem:[%s18710_s29 + $0xc0] sm:$0xff]  ;;  %v110_v24 = vld [vmem:[%s18710_s29 + $0xc8] sm:$0xff] }
  0x22   :  { %v74_v25 = vld [vmem:[%s18711_s25 + $0x8] sm:$0xff]  ;;  %v13952_v26 = vpack.c.bf16 %v92_v22, %v91_v21  ;;  %v13954_v27 = vpack.c.bf16 %v110_v24, %v109_v23  ;;  %v93_v28 = vld [vmem:[%s18710_s29 + $0x40] sm:$0xff]  ;;  %v111_v30 = vld [vmem:[%s18710_s29 + $0xd0] sm:$0xff] }
  0x23   :  { %247 = vmatprep.mubr.f32.mxu0 %v74_v25  ;;  %v94_v29 = vld [vmem:[%s18710_s29 + $0x48] sm:$0xff]  ;;  %v112_v31 = vld [vmem:[%s18710_s29 + $0xd8] sm:$0xff]  ;;  %v95_v34 = vld [vmem:[%s18710_s29 + $0x50] sm:$0xff] }
  0x24   :  { %13945 = vmatpush3.bf16.msra.mxu0 %v13944_v13  ;;  %v13956_v32 = vpack.c.bf16 %v94_v29, %v93_v28  ;;  %v13958_v33 = vpack.c.bf16 %v112_v31, %v111_v30  ;;  %v96_v35 = vld [vmem:[%s18710_s29 + $0x58] sm:$0xff]  ;;  %v113_v36 = vld [vmem:[%s18710_s29 + $0xe0] sm:$0xff]  ;;  %v114_v37 = vld [vmem:[%s18710_s29 + $0xe8] sm:$0xff] }
  0x25   :  { %13947 = vmatprep.subr.bf16.mxu0 %v13946_v14  ;;  %v13960_v38 = vpack.c.bf16 %v96_v35, %v95_v34  ;;  %v13962_v39 = vpack.c.bf16 %v114_v37, %v113_v36  ;;  %v97_v40 = vld [vmem:[%s18710_s29 + $0x60] sm:$0xff]  ;;  %v98_v41 = vld [vmem:[%s18710_s29 + $0x68] sm:$0xff]  ;;  %v115_v42 = vld [vmem:[%s18710_s29 + $0xf0] sm:$0xff] }
  0x26   :  { %v116_v43 = vld [vmem:[%s18710_s29 + $0xf8] sm:$0xff]  ;;  %v13964_v44 = vpack.c.bf16 %v98_v41, %v97_v40  ;;  %v99_v46 = vld [vmem:[%s18710_s29 + $0x70] sm:$0xff]  ;;  %v133_v48 = vld [vmem:[%s18710_s29 + $0x180] sm:$0xff] }
  0x27   :  { %v13966_v45 = vpack.c.bf16 %v116_v43, %v115_v42  ;;  %v100_v47 = vld [vmem:[%s18710_s29 + $0x78] sm:$0xff]  ;;  %v134_v49 = vld [vmem:[%s18710_s29 + $0x188] sm:$0xff]  ;;  %v117_v52 = vld [vmem:[%s18710_s29 + $0x100] sm:$0xff] }
  0x28   :  { %13949 = vmatpush3.bf16.msra.mxu0 %v13948_v19  ;;  %v13968_v50 = vpack.c.bf16 %v100_v47, %v99_v46  ;;  %v13970_v51 = vpack.c.bf16 %v134_v49, %v133_v48  ;;  %v118_v53 = vld [vmem:[%s18710_s29 + $0x108] sm:$0xff]  ;;  %v135_v54 = vld [vmem:[%s18710_s29 + $0x190] sm:$0xff]  ;;  %v136_v55 = vld [vmem:[%s18710_s29 + $0x198] sm:$0xff] }
  0x29   :  { %13951 = vmatprep.subr.bf16.mxu0 %v13950_v20  ;;  %v73_v56 = vld [vmem:[%s18711_s25] sm:$0xff]  ;;  %v13972_v57 = vpack.c.bf16 %v118_v53, %v117_v52  ;;  %v13974_v58 = vpack.c.bf16 %v136_v55, %v135_v54  ;;  %v119_v59 = vld [vmem:[%s18710_s29 + $0x110] sm:$0xff]  ;;  %v120_v60 = vld [vmem:[%s18710_s29 + $0x118] sm:$0xff] }
  0x2a   :  { %v80_v61 = vld [vmem:[%s18711_s25 + $0x38] sm:$0x3]  ;;  %v137_v62 = vld [vmem:[%s18710_s29 + $0x1a0] sm:$0xff]  ;;  %v138_v63 = vld [vmem:[%s18710_s29 + $0x1a8] sm:$0xff]  ;;  %v13976_v4 = vpack.c.bf16 %v120_v60, %v119_v59 }
  0x2b   :  { %v121_v0 = vld [vmem:[%s18710_s29 + $0x120] sm:$0xff]  ;;  %v122_v1 = vld [vmem:[%s18710_s29 + $0x128] sm:$0xff]  ;;  %v79_v2 = vld [vmem:[%s18711_s25 + $0x30] sm:$0x3]  ;;  %v13978_v7 = vpack.c.bf16 %v138_v63, %v137_v62 }
  0x2c   :  { %13953 = vmatpush3.bf16.msra.mxu0 %v13952_v26  ;;  %v76_v3 = vld [vmem:[%s18711_s25 + $0x18] sm:$0xff]  ;;  %v139_v5 = vld [vmem:[%s18710_s29 + $0x1b0] sm:$0xff]  ;;  %v13980_v10 = vpack.c.bf16 %v122_v1, %v121_v0  ;;  %v141_v11 = vld [vmem:[%s18710_s29 + $0x1c0] sm:$0xff] }
  0x2d   :  { %13955 = vmatprep.subr.bf16.mxu0 %v13954_v27  ;;  %v140_v6 = vld [vmem:[%s18710_s29 + $0x1b8] sm:$0xff]  ;;  %v123_v8 = vld [vmem:[%s18710_s29 + $0x130] sm:$0xff]  ;;  %v142_v12 = vld [vmem:[%s18710_s29 + $0x1c8] sm:$0xff] }
  0x2e   :  { %v124_v9 = vld [vmem:[%s18710_s29 + $0x138] sm:$0xff]  ;;  %v13982_v13 = vpack.c.bf16 %v140_v6, %v139_v5  ;;  %v125_v14 = vld [vmem:[%s18710_s29 + $0x140] sm:$0xff]  ;;  %v126_v15 = vld [vmem:[%s18710_s29 + $0x148] sm:$0xff]  ;;  %v13986_v19 = vpack.c.bf16 %v142_v12, %v141_v11 }
  0x2f   :  { %v13984_v16 = vpack.c.bf16 %v124_v9, %v123_v8  ;;  %v143_v17 = vld [vmem:[%s18710_s29 + $0x1d0] sm:$0xff]  ;;  %v144_v18 = vld [vmem:[%s18710_s29 + $0x1d8] sm:$0xff]  ;;  %v13988_v22 = vpack.c.bf16 %v126_v15, %v125_v14  ;;  %v145_v23 = vld [vmem:[%s18710_s29 + $0x1e0] sm:$0xff] }
  0x30   :  { %13957 = vmatpush3.bf16.msra.mxu0 %v13956_v32  ;;  %v127_v20 = vld [vmem:[%s18710_s29 + $0x150] sm:$0xff]  ;;  %v128_v21 = vld [vmem:[%s18710_s29 + $0x158] sm:$0xff]  ;;  %v146_v24 = vld [vmem:[%s18710_s29 + $0x1e8] sm:$0xff]  ;;  %v13990_v25 = vpack.c.bf16 %v144_v18, %v143_v17 }
  0x31   :  { %13959 = vmatprep.subr.bf16.mxu0 %v13958_v33  ;;  %v129_v26 = vld [vmem:[%s18710_s29 + $0x160] sm:$0xff]  ;;  %v130_v27 = vld [vmem:[%s18710_s29 + $0x168] sm:$0xff]  ;;  %v13992_v28 = vpack.c.bf16 %v128_v21, %v127_v20  ;;  %v147_v29 = vld [vmem:[%s18710_s29 + $0x1f0] sm:$0xff]  ;;  %v13994_v31 = vpack.c.bf16 %v146_v24, %v145_v23 }
  0x32   :  { %v148_v30 = vld [vmem:[%s18710_s29 + $0x1f8] sm:$0xff]  ;;  %v131_v32 = vld [vmem:[%s18710_s29 + $0x170] sm:$0xff]  ;;  %v13996_v34 = vpack.c.bf16 %v130_v27, %v129_v26  ;;  %v165_v35 = vld [vmem:[%s18710_s29 + $0x280] sm:$0xff] }
  0x33   :  { %v132_v33 = vld [vmem:[%s18710_s29 + $0x178] sm:$0xff]  ;;  %v166_v36 = vld [vmem:[%s18710_s29 + $0x288] sm:$0xff]  ;;  %v13998_v37 = vpack.c.bf16 %v148_v30, %v147_v29  ;;  %v167_v41 = vld [vmem:[%s18710_s29 + $0x290] sm:$0xff] }
  0x34   :  { %13961 = vmatpush3.bf16.msra.mxu0 %v13960_v38  ;;  %v149_v38 = vld [vmem:[%s18710_s29 + $0x200] sm:$0xff]  ;;  %v14000_v40 = vpack.c.bf16 %v132_v33, %v131_v32  ;;  %v168_v42 = vld [vmem:[%s18710_s29 + $0x298] sm:$0xff]  ;;  %v14002_v43 = vpack.c.bf16 %v166_v36, %v165_v35  ;;  %v151_v46 = vld [vmem:[%s18710_s29 + $0x210] sm:$0xff] }
  0x35   :  { %13963 = vmatprep.subr.bf16.mxu0 %v13962_v39  ;;  %v150_v39 = vld [vmem:[%s18710_s29 + $0x208] sm:$0xff]  ;;  %v152_v47 = vld [vmem:[%s18710_s29 + $0x218] sm:$0xff]  ;;  %v169_v49 = vld [vmem:[%s18710_s29 + $0x2a0] sm:$0xff] }
  0x36   :  { %v14004_v48 = vpack.c.bf16 %v150_v39, %v149_v38  ;;  %v81_v52 = vld [vmem:[%s18711_s25 + $0x40] sm:$0x3]  ;;  %v154_v54 = vld [vmem:[%s18710_s29 + $0x228] sm:$0xff]  ;;  %v155_v60 = vld [vmem:[%s18710_s29 + $0x230] sm:$0xff] }
  0x37   :  { %v153_v53 = vld [vmem:[%s18710_s29 + $0x220] sm:$0xff]  ;;  %v78_v55 = vld [vmem:[%s18711_s25 + $0x28] sm:$0xff]  ;;  %v175_v5 = vld [vmem:[%s18710_s29 + $0x2d0] sm:$0xff] }
  0x38   :  { %13965 = vmatpush3.bf16.msra.mxu0 %v13964_v44  ;;  %v75_v44 = vld [vmem:[%s18711_s25 + $0x10] sm:$0xff]  ;;  %v14012_v62 = vpack.c.bf16 %v154_v54, %v153_v53  ;;  %v173_v63 = vld [vmem:[%s18710_s29 + $0x2c0] sm:$0xff]  ;;  %v174_v0 = vld [vmem:[%s18710_s29 + $0x2c8] sm:$0xff] }
  0x39   :  { %13967 = vmatprep.subr.bf16.mxu0 %v13966_v45  ;;  %v82_v45 = vld [vmem:[%s18711_s25 + $0x48] sm:$0x3]  ;;  %v176_v6 = vld [vmem:[%s18710_s29 + $0x2d8] sm:$0xff]  ;;  %v159_v8 = vld [vmem:[%s18710_s29 + $0x250] sm:$0xff] }
  0x3a   :  { %v160_v9 = vld [vmem:[%s18710_s29 + $0x258] sm:$0xff]  ;;  %v177_v11 = vld [vmem:[%s18710_s29 + $0x2e0] sm:$0xff]  ;;  %v178_v12 = vld [vmem:[%s18710_s29 + $0x2e8] sm:$0xff] }
  0x3b   :  { %v161_v14 = vld [vmem:[%s18710_s29 + $0x260] sm:$0xff]  ;;  %v162_v15 = vld [vmem:[%s18710_s29 + $0x268] sm:$0xff]  ;;  %v179_v17 = vld [vmem:[%s18710_s29 + $0x2f0] sm:$0xff] }
  0x3c   :  { %13969 = vmatpush3.bf16.msra.mxu0 %v13968_v50  ;;  %v170_v50 = vld [vmem:[%s18710_s29 + $0x2a8] sm:$0xff]  ;;  %v180_v18 = vld [vmem:[%s18710_s29 + $0x2f8] sm:$0xff]  ;;  %v163_v20 = vld [vmem:[%s18710_s29 + $0x270] sm:$0xff] }
  0x3d   :  { %13971 = vmatprep.subr.bf16.mxu0 %v13970_v51  ;;  %v14006_v51 = vpack.c.bf16 %v168_v42, %v167_v41  ;;  %v14010_v59 = vpack.c.bf16 %v170_v50, %v169_v49  ;;  %v164_v21 = vld [vmem:[%s18710_s29 + $0x278] sm:$0xff]  ;;  %v14030_v23 = vpack.c.bf16 %v180_v18, %v179_v17  ;;  %v83_v27 = vld [vmem:[%s18711_s25 + $0x50] sm:$0x3] }
  0x3e   :  { %v14032_v24 = vpack.c.bf16 %v164_v21, %v163_v20  ;;  %v84_v26 = vld [vmem:[%s18711_s25 + $0x58] sm:$0x3] }
  0x3f   :  { %248 = vmatmul.mubr.f32.vlgmr.msra.gmra.mrb[0].mxu0 %v73_v56  ;;  %v14008_v56 = vpack.c.bf16 %v152_v47, %v151_v46 }
  0x40   :  { %13973 = vmatpush3.bf16.msra.mxu0 %v13972_v57  ;;  %252 = vmatprep.mubr.f32.mxu0 %v80_v61  ;;  %v171_v57 = vld [vmem:[%s18710_s29 + $0x2b0] sm:$0xff]  ;;  %v156_v61 = vld [vmem:[%s18710_s29 + $0x238] sm:$0xff] }
  0x41   :  { %13975 = vmatprep.subr.bf16.mxu0 %v13974_v58  ;;  %v172_v58 = vld [vmem:[%s18710_s29 + $0x2b8] sm:$0xff] }
  0x42   :  { %v14014_v1 = vpack.c.bf16 %v172_v58, %v171_v57 }
  0x43   :  { %253 = vmatmul.mubr.f32.gmra.mrb[2].mxu0 %v79_v2  ;;  %v157_v2 = vld [vmem:[%s18710_s29 + $0x240] sm:$0xff] }
  0x44   :  { %13977 = vmatpush3.bf16.msra.mxu0 %v13976_v4  ;;  %322 = vmatprep.mubr.f32.mxu0 %v76_v3  ;;  %v158_v3 = vld [vmem:[%s18710_s29 + $0x248] sm:$0xff]  ;;  %v14016_v4 = vpack.c.bf16 %v156_v61, %v155_v60 }
  0x45   :  { %13979 = vmatprep.subr.bf16.mxu0 %v13978_v7  ;;  %v14018_v7 = vpack.c.bf16 %v174_v0, %v173_v63 }
  0x48   :  { %13981 = vmatpush3.bf16.msra.mxu0 %v13980_v10  ;;  %v14020_v10 = vpack.c.bf16 %v158_v3, %v157_v2 }
  0x49   :  { %13983 = vmatprep.subr.bf16.mxu0 %v13982_v13  ;;  %v14022_v13 = vpack.c.bf16 %v176_v6, %v175_v5 }
  0x4c   :  { %13985 = vmatpush3.bf16.msra.mxu0 %v13984_v16  ;;  %v14024_v16 = vpack.c.bf16 %v160_v9, %v159_v8 }
  0x4d   :  { %13987 = vmatprep.subr.bf16.mxu0 %v13986_v19  ;;  %v14026_v19 = vpack.c.bf16 %v178_v12, %v177_v11 }
  0x50   :  { %13989 = vmatpush3.bf16.msra.mxu0 %v13988_v22  ;;  %v14028_v22 = vpack.c.bf16 %v162_v15, %v161_v14 }
  0x51   :  { %13991 = vmatprep.subr.bf16.mxu0 %v13990_v25  ;;  %v77_v25 = vld [vmem:[%s18711_s25 + $0x20] sm:$0xff] }
  0x54   :  { %13993 = vmatpush3.bf16.msra.mxu0 %v13992_v28 }
  0x55   :  { %13995 = vmatprep.subr.bf16.mxu0 %v13994_v31 }
  0x58   :  { %13997 = vmatpush3.bf16.msra.mxu0 %v13996_v34 }
  0x59   :  { %13999 = vmatprep.subr.bf16.mxu0 %v13998_v37 }
  0x5c   :  { %14001 = vmatpush3.bf16.msra.mxu0 %v14000_v40 }
  0x5d   :  { %14003 = vmatprep.subr.bf16.mxu0 %v14002_v43 }
  0x5f   :  { %323 = vmatmul.mubr.f32.vlgmr.msra.gmra.mrb[4].mxu0 %v75_v44 }
  0x60   :  { %14005 = vmatpush3.bf16.msra.mxu0 %v14004_v48  ;;  %327 = vmatprep.mubr.f32.mxu0 %v82_v45 }
  0x61   :  { %14007 = vmatprep.subr.bf16.mxu0 %v14006_v51 }
  0x63   :  { %328 = vmatmul.mubr.f32.gmra.mrb[6].mxu0 %v81_v52 }
  0x64   :  { %14009 = vmatpush3.bf16.msra.mxu0 %v14008_v56  ;;  %397 = vmatprep.mubr.f32.mxu0 %v78_v55 }
  0x65   :  { %14011 = vmatprep.subr.bf16.mxu0 %v14010_v59 }
  0x68   :  { %14013 = vmatpush3.bf16.msra.mxu0 %v14012_v62 }
  0x69   :  { %14015 = vmatprep.subr.bf16.mxu0 %v14014_v1 }
  0x6c   :  { %14017 = vmatpush3.bf16.msra.mxu0 %v14016_v4 }
  0x6d   :  { %14019 = vmatprep.subr.bf16.mxu0 %v14018_v7 }
  0x70   :  { %14021 = vmatpush3.bf16.msra.mxu0 %v14020_v10 }
  0x71   :  { %14023 = vmatprep.subr.bf16.mxu0 %v14022_v13 }
  0x74   :  { %14025 = vmatpush3.bf16.msra.mxu0 %v14024_v16 }
  0x75   :  { %14027 = vmatprep.subr.bf16.mxu0 %v14026_v19 }
  0x78   :  { %14029 = vmatpush3.bf16.msra.mxu0 %v14028_v22 }
  0x79   :  { %14031 = vmatprep.subr.bf16.mxu0 %v14030_v23 }
  0x7c   :  { %14033 = vmatpush3.bf16.msra.mxu0 %v14032_v24 }
  0x7f   :  { %398 = vmatmul.mubr.f32.vlgmr.msra.gmra.mrb[8].mxu0 %v77_v25 }
  0x80   :  { %402 = vmatprep.mubr.f32.mxu0 %v84_v26 }
  0x83   :  { %403 = vmatmul.mubr.f32.gmra.mrb[10].mxu0 %v83_v27 }
  0x84   :  { %27 = vsyncpa [#allocation3], 0  ;;  %s18712_s24 = sld [smem:[#allocation7_spill]]  ;;  %vm409_vm0 = vcmask 261120   ;;  %vm413_vm1 = vcmask 254976   ;;  %s18713_s3 = sld [smem:[#allocation8_spill]]  ;;  %v438_v10 = vlaneseq }
  0x85   :  { %s18714_s26 = sld [smem:[#allocation11_spill]]  ;;  %vm15133_vm2 = vmmov 0   ;;  %s18715_s28 = sld [smem:[#allocation9_spill]]  ;;  %vm545_vm3 = vcmask 64512   ;;  %vm621_vm4 = vcmask 36864   ;;  %vm639_vm5 = vcmask 1044480  }
  0x86   :  { %v15620_v14 = vshrl.u32 %v438_v10, 7  ;;  %s18645_s30 = smov 96   ;;  %s18669_s4 = smov 88   ;;  %vm635_vm6 = vcmask 39936   ;;  %vm1231_vm7 = vcmask 1042432   ;;  %vm1226_vm8 = vcmask 130048  }
  0x87   :  { %s18643_s0 = smov 64   ;;  %s18661_s23 = smov 120   ;;  %vm1228_vm9 = vcmask 195584   ;;  %vm4104_vm10 = vcmask 1040384   ;;  %vm11976_vm11 = vcmask 25600  }
  0x88   :  { %v15623_v16 = vsub.s32 0, %v15620_v14  ;;  %v15631_v18 = vsub.s32 1, %v15620_v14  ;;  %s18655_s1 = smov 56   ;;  %s18649_s5 = smov 112  }
  0x89   :  { %s18659_s6 = smov 80   ;;  %s18657_s2 = smov 72  }
  0x8a   :  { %v181_v34 = vld [vmem:[%s18712_s24] sm:$0xff]  ;;  %v182_v39 = vld [vmem:[%s18712_s24 + $0x8] sm:$0x3]  ;;  %v452_v4 = vld [vmem:[%s18713_s3 + $0x10] sm:$0xff]  ;;  %s18647_s27 = smov 104   ;;  %s18718_s21 = smov 96  }
  0x8b   :  { %v450_v2 = vld [vmem:[%s18713_s3] sm:$0xff]  ;;  %v451_v3 = vld [vmem:[%s18713_s3 + $0x8] sm:$0xff]  ;;  %v453_v6 = vld [vmem:[%s18713_s3 + $0x18] sm:$0xff]  ;;  %s18719_s22 = smov 88   ;;  %s18720_s19 = smov 120  }
  0x8c   :  { %v14034_v5 = vpack.c.bf16 %v451_v3, %v450_v2  ;;  %v14038_v7 = vpack.c.bf16 %v453_v6, %v452_v4  ;;  %v15628_v17 = vld [vmem:[%s18714_s26] sm:$0x3f]  ;;  %s18728_s20 = smov 8   ;;  %s18729_s15 = smov 16  }
  0x8d   :  { %v441_v19 = vrot.slane %v15628_v17, %v15623_v16  ;;  %v447_v22 = vrot.slane %v15628_v17, %v15631_v18  ;;  %s18730_s13 = smov 24   ;;  %s18731_s14 = smov 56  }
  0x8e   :  { %14035 = vmatprep.subr.bf16.mxu1 %v14034_v5  ;;  %s18732_s17 = sld [smem:[#allocation10_spill]]  ;;  %s18734_s12 = smov 24  }
  0x8f   :  { %14037 = vmatpush3.bf16.msra.mxu1 %v14034_v5  ;;  %s18735_s16 = sld [smem:[#allocation12_spill]] }
  0x90   :  { %14039 = vmatprep.subr.bf16.mxu1 %v14038_v7 }
  0x93   :  { %14041 = vmatpush3.bf16.msra.mxu1 %v14038_v7 }
 0x112   :  { %v12795_v28 = vpop.f32.mrb[0].mxu0 }
 0x113   :  { %v12796_v29 = vpop.f32.mrb[1].mxu0 }
 0x114   :  { %v12797_v30 = vadd.f32 %v12796_v29, %v12795_v28  ;;  %v15132_v29 = vmov 0.0  }
 0x115   :  { %13315 = vmatprep.subr.mxu1 %v15132_v29  ;;  %13360 = vmatprep.subr.mxu0 %v15132_v29 }
 0x116   :  { %v12798_v31 = vpop.f32.mrb[2].mxu0  ;;  %v250_v37 = vadd.f32 %v12797_v30, %v181_v34  ;;  %13362 = vmatprep.mubr.msk.f32.mxu0 %vm15133_vm2, %v15132_v29  ;;  %v11992_v30 = vld [vmem:[%s18715_s28] ss:$0 sm:$0xff] }
 0x117   :  { %v12799_v32 = vpop.f32.mrb[3].mxu0 }
 0x118   :  { %v12800_v33 = vadd.f32 %v12799_v32, %v12798_v31 }
 0x11a   :  { %v255_v43 = vadd.f32 %v12800_v33, %v182_v39 }
 0x132   :  { %v12833_v35 = vpop.f32.mrb[4].mxu0 }
 0x133   :  { %v12834_v36 = vpop.f32.mrb[5].mxu0 }
 0x134   :  { %v12835_v38 = vadd.f32 %v12834_v36, %v12833_v35 }
 0x136   :  { %v325_v40 = vadd.f32 %v12835_v38, %v250_v37  ;;  %v12836_v41 = vpop.f32.mrb[6].mxu0 }
 0x137   :  { %v12837_v42 = vpop.f32.mrb[7].mxu0 }
 0x138   :  { %v12838_v44 = vadd.f32 %v12837_v42, %v12836_v41 }
 0x13a   :  { %v330_v45 = vadd.f32 %v12838_v44, %v255_v43 }
 0x152   :  { %v12871_v46 = vpop.f32.mrb[8].mxu0 }
 0x153   :  { %v12872_v47 = vpop.f32.mrb[9].mxu0 }
 0x154   :  { %v12873_v48 = vadd.f32 %v12872_v47, %v12871_v46 }
 0x156   :  { %v15596_v49 = vadd.f32 %v12873_v48, %v325_v40  ;;  %v12874_v50 = vpop.f32.mrb[10].mxu0 }
 0x157   :  { %v12875_v51 = vpop.f32.mrb[11].mxu0 }
 0x158   :  { %v12876_v52 = vadd.f32 %v12875_v51, %v12874_v50  ;;  %v410_v53 = vsel %vm409_vm0, %v15596_v49, 0.0 }
 0x159   :  { %411 = vadd.xlane.f32.xlu0 %v410_v53 }
 0x15a   :  { %v15600_v54 = vadd.f32 %v12876_v52, %v330_v45 }
 0x15c   :  { %v414_v55 = vsel %vm413_vm1, %v15600_v54, 0.0 }
 0x15d   :  { %415 = vadd.xlane.f32.xlu0 %v414_v55 }
 0x1e6   :  { %v412_v56 = vpop.xlane.xlu0 %411 }
 0x1e7   :  { %v418_v57 = vmul.f32 0.03125, %v412_v56 }
 0x1e9   :  { %v420_v58 = vsub.f32 %v15596_v49, %v418_v57 }
 0x1ea   :  { %v416_v59 = vpop.xlane.xlu0 %415 }
 0x1eb   :  { %v419_v60 = vmul.f32 0.03125, %v416_v59  ;;  %v422_v61 = vmul.f32 %v420_v58, %v420_v58 }
 0x1ed   :  { %v421_v62 = vsub.f32 %v15600_v54, %v419_v60  ;;  %v424_v63 = vsel %vm409_vm0, %v422_v61, 0.0 }
 0x1ee   :  { %425 = vadd.xlane.f32.xlu1 %v424_v63 }
 0x1ef   :  { %v423_v0 = vmul.f32 %v421_v62, %v421_v62 }
 0x1f1   :  { %v427_v1 = vsel %vm413_vm1, %v423_v0, 0.0 }
 0x1f2   :  { %428 = vadd.xlane.f32.xlu1 %v427_v1 }
 0x27b   :  { %v426_v8 = vpop.xlane.xlu1 %425 }
 0x27c   :  { %v430_v9 = vmul.f32 0.03125, %v426_v8 }
 0x27e   :  { %v432_v11 = vadd.f32 1e-12, %v430_v9 }
 0x27f   :  { %v429_v12 = vpop.xlane.xlu1 %428 }
 0x280   :  { %14923 = vrsqrt.f32 %v432_v11  ;;  %v431_v13 = vmul.f32 0.03125, %v429_v12 }
 0x282   :  { %v433_v15 = vadd.f32 1e-12, %v431_v13 }
 0x284   :  { %14925 = vrsqrt.f32 %v433_v15 }
 0x28a   :  { %v14924_v20 = vpop.eup %14923 }
 0x28b   :  { %v436_v21 = vmul.f32 %v14924_v20, %v420_v58 }
 0x28d   :  { %v442_v23 = vmul.f32 %v441_v19, %v436_v21 }
 0x28e   :  { %v14926_v24 = vpop.eup %14925 }
 0x28f   :  { %v437_v25 = vmul.f32 %v14926_v24, %v421_v62  ;;  %v448_v26 = vadd.f32 %v447_v22, %v442_v23 }
 0x291   :  { %v443_v27 = vmul.f32 %v441_v19, %v437_v25  ;;  %13312 = vmatprep.mubr.msk.f32.mxu1 %vm409_vm0, %v448_v26 }
 0x293   :  { %v449_v28 = vadd.f32 %v447_v22, %v443_v27 }
 0x295   :  { %13313 = vmatmul.mubr.msk.f32.vlgmr.msra.gmra.mrb[0].mxu1 %vm409_vm0, %v449_v28 }
 0x296   :  { %13317 = vmatprep.mubr.msk.f32.mxu1 %vm15133_vm2, %v15132_v29 }
 0x368   :  { %v13314_v31 = vpop.f32.mrb[0].mxu1 }
 0x369   :  { %v15648_v32 = vadd.f32 %v13314_v31, %v11992_v30  ;;  %v533_v33 = vpop.f32.mrb[1].mxu1 }
 0x36a   :  { %v15650_v34 = vadd.f32 %v11992_v30, %v533_v33 }
 0x36b   :  { %v1233_v12 = vrot.slane %v15648_v32, 5 }
 0x36c   :  { %543 = vrot.lane.b32.xlu0 %v15650_v34, %s18645_s30  ;;  %v1232_v13 = vrot.slane %v15650_v34, 5 }
 0x36e   :  { %v15708_v15 = vsel %vm1231_vm7, %v1232_v13, %v1233_v12 }
 0x370   :  { %714 = vrot.lane.b32.xlu0 %v15650_v34, %s18669_s4 }
 0x3de   :  { %v544_v35 = vpop.permute.xlu0 %543 }
 0x3df   :  { %13316 = vmatpush3.xpose.msk.msra.mxu1 %vm545_vm3, %v544_v35 }
 0x3e0   :  { %13320 = vmatprep.subr.mxu1 %v15132_v29 }
 0x3e2   :  { %13318 = vmatmul.mubr.msk.f32.vlgmr.msra.gmra.mrb[2].mxu1 %vm545_vm3, %v15650_v34  ;;  %v715_v50 = vpop.permute.xlu0 %714 }
 0x3e3   :  { %13322 = vmatprep.mubr.msk.f32.mxu1 %vm15133_vm2, %v15132_v29 }
 0x4b5   :  { %v616_v36 = vpop.f32.mrb[2].mxu1 }
 0x4b6   :  { %v620_v37 = vmul.f32 0.35355338, %v616_v36  ;;  %v13319_v38 = vpop.f32.mrb[3].mxu1 }
 0x4b8   :  { %v622_v39 = vsel %vm621_vm4, %v620_v37, -inf }
 0x4b9   :  { %623 = vmax.xlane.f32.xlu1 %v622_v39 }
 0x4ca   :  { %633 = vrot.lane.b32.xlu1 %v15650_v34, %s18643_s0  ;;  %s18651_s0 = smov 48  }
 0x546   :  { %v624_v40 = vpop.xlane.xlu1 %623 }
 0x547   :  { %v625_v41 = vsub.f32 %v620_v37, %v624_v40 }
 0x549   :  { %v626_v42 = vmul.f32 1.442695, %v625_v41 }
 0x54a   :  { %v634_v43 = vpop.permute.xlu1 %633 }
 0x54b   :  { %14927 = vpow2.f32 %v626_v42  ;;  %13321 = vmatpush3.msk.msra.mxu1 %vm639_vm5, %v634_v43 }
 0x54c   :  { %13325 = vmatprep.subr.mxu1 %v15132_v29 }
 0x555   :  { %v14928_v44 = vpop.eup %14927 }
 0x556   :  { %v628_v45 = vsel %vm621_vm4, %v14928_v44, 0.0 }
 0x557   :  { %629 = vadd.xlane.f32.xlu1 %v628_v45 }
 0x568   :  { %712 = vrot.lane.b32.xlu1 %v15650_v34, %s18661_s23 }
 0x5e4   :  { %v630_v46 = vpop.xlane.xlu1 %629 }
 0x5e5   :  { %14929 = vrcp.f32 %v630_v46 }
 0x5e8   :  { %v713_v51 = vpop.permute.xlu1 %712 }
 0x5ef   :  { %v14930_v47 = vpop.eup %14929 }
 0x5f0   :  { %v632_v48 = vmul.f32 %v14930_v47, %v14928_v44 }
 0x5f2   :  { %13323 = vmatmul.mubr.msk.f32.vlgmr.msra.gmra.mrb[4].mxu1 %vm635_vm6, %v632_v48 }
 0x5f3   :  { %13326 = vmatpush3.xpose.msk.msra.mxu1 %vm545_vm3, %v715_v50  ;;  %13327 = vmatprep.mubr.msk.f32.mxu1 %vm15133_vm2, %v15132_v29 }
 0x5f4   :  { %13330 = vmatprep.subr.mxu1 %v15132_v29 }
 0x5f6   :  { %13328 = vmatmul.mubr.msk.f32.vlgmr.msra.gmra.mrb[6].mxu1 %vm545_vm3, %v713_v51 }
 0x5f7   :  { %13332 = vmatprep.mubr.msk.f32.mxu1 %vm15133_vm2, %v15132_v29 }
 0x6c5   :  { %v15678_v52 = vpop.f32.mrb[4].mxu1 }
 0x6c6   :  { %v13324_v53 = vpop.f32.mrb[5].mxu1 }
 0x6c9   :  { %v786_v55 = vpop.f32.mrb[6].mxu1 }
 0x6ca   :  { %v790_v56 = vmul.f32 0.35355338, %v786_v55  ;;  %v13329_v57 = vpop.f32.mrb[7].mxu1 }
 0x6cc   :  { %v791_v58 = vsel %vm621_vm4, %v790_v56, -inf }
 0x6cd   :  { %792 = vmax.xlane.f32.xlu0 %v791_v58 }
 0x6e3   :  { %802 = vrot.lane.b32.xlu0 %v15650_v34, %s18655_s1 }
 0x6e7   :  { %879 = vrot.lane.b32.xlu0 %v15650_v34, %s18649_s5 }
 0x75a   :  { %v793_v59 = vpop.xlane.xlu0 %792 }
 0x75b   :  { %v794_v60 = vsub.f32 %v790_v56, %v793_v59 }
 0x75d   :  { %v795_v61 = vmul.f32 1.442695, %v794_v60 }
 0x75e   :  { %v803_v62 = vpop.permute.xlu0 %802 }
 0x75f   :  { %14931 = vpow2.f32 %v795_v61  ;;  %13331 = vmatpush3.msk.msra.mxu1 %vm639_vm5, %v803_v62 }
 0x760   :  { %13335 = vmatprep.subr.mxu1 %v15132_v29 }
 0x762   :  { %v880_v5 = vpop.permute.xlu0 %879 }
 0x769   :  { %v14932_v63 = vpop.eup %14931 }
 0x76a   :  { %v797_v0 = vsel %vm621_vm4, %v14932_v63, 0.0 }
 0x76b   :  { %798 = vadd.xlane.f32.xlu1 %v797_v0 }
 0x77c   :  { %881 = vrot.lane.b32.xlu1 %v15650_v34, %s18659_s6 }
 0x7f8   :  { %v799_v1 = vpop.xlane.xlu1 %798 }
 0x7f9   :  { %14933 = vrcp.f32 %v799_v1 }
 0x7fc   :  { %v882_v4 = vpop.permute.xlu1 %881 }
 0x803   :  { %v14934_v2 = vpop.eup %14933 }
 0x804   :  { %v801_v3 = vmul.f32 %v14934_v2, %v14932_v63 }
 0x806   :  { %13333 = vmatmul.mubr.msk.f32.vlgmr.msra.gmra.mrb[8].mxu1 %vm635_vm6, %v801_v3 }
 0x807   :  { %13336 = vmatpush3.xpose.msk.msra.mxu1 %vm545_vm3, %v882_v4  ;;  %13337 = vmatprep.mubr.msk.f32.mxu1 %vm15133_vm2, %v15132_v29 }
 0x808   :  { %13340 = vmatprep.subr.mxu1 %v15132_v29 }
 0x80a   :  { %13338 = vmatmul.mubr.msk.f32.vlgmr.msra.gmra.mrb[10].mxu1 %vm545_vm3, %v880_v5 }
 0x80b   :  { %13342 = vmatprep.mubr.msk.f32.mxu1 %vm15133_vm2, %v15132_v29 }
 0x8d9   :  { %v15698_v6 = vpop.f32.mrb[8].mxu1 }
 0x8da   :  { %v13334_v7 = vpop.f32.mrb[9].mxu1 }
 0x8dd   :  { %v953_v8 = vpop.f32.mrb[10].mxu1 }
 0x8de   :  { %v957_v9 = vmul.f32 0.35355338, %v953_v8  ;;  %v13339_v10 = vpop.f32.mrb[11].mxu1 }
 0x8e0   :  { %v958_v11 = vsel %vm621_vm4, %v957_v9, -inf }
 0x8e1   :  { %959 = vmax.xlane.f32.xlu1 %v958_v11 }
 0x8f2   :  { %1048 = vrot.lane.b32.xlu1 %v15650_v34, %s18657_s2 }
 0x8f6   :  { %1046 = vrot.lane.b32.xlu1 %v15650_v34, %s18647_s27 }
 0x8fa   :  { %1235 = vrot.lane.b32.xlu1 %v15708_v15, %s18645_s30  ;;  %s18653_s30 = smov 40  }
 0x96e   :  { %v960_v19 = vpop.xlane.xlu1 %959 }
 0x96f   :  { %v961_v20 = vsub.f32 %v957_v9, %v960_v19 }
 0x971   :  { %v962_v21 = vmul.f32 1.442695, %v961_v20 }
 0x972   :  { %v1049_v27 = vpop.permute.xlu1 %1048 }
 0x973   :  { %14935 = vpow2.f32 %v962_v21 }
 0x976   :  { %v1047_v30 = vpop.permute.xlu1 %1046 }
 0x97a   :  { %v1236_v43 = vpop.permute.xlu1 %1235 }
 0x97d   :  { %v14936_v22 = vpop.eup %14935 }
 0x97e   :  { %v964_v23 = vsel %vm621_vm4, %v14936_v22, 0.0 }
 0x97f   :  { %965 = vadd.xlane.f32.xlu0 %v964_v23 }
 0x995   :  { %969 = vrot.lane.b32.xlu0 %v15650_v34, %s18651_s0 }
 0xa0c   :  { %v966_v24 = vpop.xlane.xlu0 %965 }
 0xa0d   :  { %14937 = vrcp.f32 %v966_v24 }
 0xa10   :  { %v970_v25 = vpop.permute.xlu0 %969 }
 0xa11   :  { %13341 = vmatpush3.msk.msra.mxu1 %vm639_vm5, %v970_v25 }
 0xa12   :  { %13345 = vmatprep.subr.mxu1 %v15132_v29 }
 0xa17   :  { %v14938_v26 = vpop.eup %14937 }
 0xa18   :  { %v968_v28 = vmul.f32 %v14938_v26, %v14936_v22 }
 0xa1a   :  { %13343 = vmatmul.mubr.msk.f32.vlgmr.msra.gmra.mrb[12].mxu1 %vm635_vm6, %v968_v28 }
 0xa1b   :  { %13346 = vmatpush3.xpose.msk.msra.mxu1 %vm545_vm3, %v1049_v27  ;;  %13347 = vmatprep.mubr.msk.f32.mxu1 %vm15133_vm2, %v15132_v29 }
 0xa1c   :  { %13350 = vmatprep.subr.mxu1 %v15132_v29 }
 0xa1e   :  { %13348 = vmatmul.mubr.msk.f32.vlgmr.msra.gmra.mrb[14].mxu1 %vm545_vm3, %v1047_v30 }
 0xa1f   :  { %13352 = vmatprep.mubr.msk.f32.mxu1 %vm15133_vm2, %v15132_v29 }
 0xaed   :  { %v15725_v31 = vpop.f32.mrb[12].mxu1 }
 0xaee   :  { %v13344_v32 = vpop.f32.mrb[13].mxu1 }
 0xaf1   :  { %v1120_v33 = vpop.f32.mrb[14].mxu1 }
 0xaf2   :  { %v1124_v35 = vmul.f32 0.35355338, %v1120_v33  ;;  %v13349_v36 = vpop.f32.mrb[15].mxu1 }
 0xaf4   :  { %v1125_v37 = vsel %vm621_vm4, %v1124_v35, -inf }
 0xaf5   :  { %1126 = vmax.xlane.f32.xlu0 %v1125_v37 }
 0xb0b   :  { %1136 = vrot.lane.b32.xlu0 %v15650_v34, %s18653_s30 }
 0xb0f   :  { %1402 = vrot.lane.b32.xlu0 %v15708_v15, %s18669_s4  ;;  %s18721_s4 = smov 80  }
 0xb13   :  { %1569 = vrot.lane.b32.xlu0 %v15708_v15, %s18659_s6  ;;  %s18726_s6 = smov 40  }
 0xb17   :  { %1736 = vrot.lane.b32.xlu0 %v15708_v15, %s18657_s2  ;;  %s18727_s2 = smov 48  }
 0xb82   :  { %v1127_v38 = vpop.xlane.xlu0 %1126 }
 0xb83   :  { %v1128_v39 = vsub.f32 %v1124_v35, %v1127_v38 }
 0xb85   :  { %v1129_v40 = vmul.f32 1.442695, %v1128_v39 }
 0xb86   :  { %v1137_v41 = vpop.permute.xlu0 %1136 }
 0xb87   :  { %14939 = vpow2.f32 %v1129_v40  ;;  %13351 = vmatpush3.msk.msra.mxu1 %vm639_vm5, %v1137_v41 }
 0xb88   :  { %13355 = vmatprep.subr.mxu1 %v15132_v29 }
 0xb8a   :  { %v1403_v47 = vpop.permute.xlu0 %1402 }
 0xb8e   :  { %v1570_v50 = vpop.permute.xlu0 %1569 }
 0xb91   :  { %v14940_v42 = vpop.eup %14939 }
 0xb92   :  { %v1131_v34 = vsel %vm621_vm4, %v14940_v42, 0.0  ;;  %v1737_v53 = vpop.permute.xlu0 %1736 }
 0xb93   :  { %1132 = vadd.xlane.f32.xlu1 %v1131_v34 }
 0xba4   :  { %1400 = vrot.lane.b32.xlu1 %v15708_v15, %s18661_s23  ;;  %s18667_s23 = smov 16  }
 0xba8   :  { %1567 = vrot.lane.b32.xlu1 %v15708_v15, %s18649_s5  ;;  %s18663_s5 = smov 8  }
 0xbac   :  { %1734 = vrot.lane.b32.xlu1 %v15708_v15, %s18647_s27  ;;  %s18716_s27 = smov 64  }
 0xc20   :  { %v1133_v44 = vpop.xlane.xlu1 %1132 }
 0xc21   :  { %14941 = vrcp.f32 %v1133_v44 }
 0xc24   :  { %v1401_v48 = vpop.permute.xlu1 %1400 }
 0xc28   :  { %v1568_v51 = vpop.permute.xlu1 %1567 }
 0xc2b   :  { %v14942_v45 = vpop.eup %14941 }
 0xc2c   :  { %v1135_v46 = vmul.f32 %v14942_v45, %v14940_v42  ;;  %v1735_v55 = vpop.permute.xlu1 %1734 }
 0xc2e   :  { %13353 = vmatmul.mubr.msk.f32.vlgmr.msra.gmra.mrb[16].mxu1 %vm635_vm6, %v1135_v46 }
 0xc2f   :  { %13356 = vmatpush3.xpose.msk.msra.mxu1 %vm545_vm3, %v1236_v43  ;;  %13357 = vmatprep.mubr.msk.f32.mxu1 %vm15133_vm2, %v15132_v29 }
 0xc30   :  { %13365 = vmatprep.subr.mxu1 %v15132_v29 }
 0xc32   :  { %13358 = vmatmul.mubr.msk.f32.vlgmr.msra.gmra.mrb[18].mxu1 %vm545_vm3, %v15708_v15 }
 0xc33   :  { %13366 = vmatpush3.xpose.msk.msra.mxu1 %vm545_vm3, %v1403_v47  ;;  %13367 = vmatprep.mubr.msk.f32.mxu1 %vm15133_vm2, %v15132_v29 }
 0xc34   :  { %13375 = vmatprep.subr.mxu1 %v15132_v29 }
 0xc36   :  { %13368 = vmatmul.mubr.msk.f32.vlgmr.msra.gmra.mrb[20].mxu1 %vm545_vm3, %v1401_v48 }
 0xc37   :  { %13376 = vmatpush3.xpose.msk.msra.mxu1 %vm545_vm3, %v1570_v50  ;;  %13377 = vmatprep.mubr.msk.f32.mxu1 %vm15133_vm2, %v15132_v29 }
 0xc38   :  { %13385 = vmatprep.subr.mxu1 %v15132_v29 }
 0xc3a   :  { %13378 = vmatmul.mubr.msk.f32.vlgmr.msra.gmra.mrb[22].mxu1 %vm545_vm3, %v1568_v51 }
 0xc3b   :  { %13386 = vmatpush3.xpose.msk.msra.mxu1 %vm545_vm3, %v1737_v53  ;;  %13387 = vmatprep.mubr.msk.f32.mxu1 %vm15133_vm2, %v15132_v29 }
 0xc3e   :  { %13388 = vmatmul.mubr.msk.f32.vlgmr.msra.gmra.mrb[24].mxu1 %vm545_vm3, %v1735_v55 }
 0xd01   :  { %v15766_v56 = vpop.f32.mrb[16].mxu1 }
 0xd02   :  { %v13354_v57 = vpop.f32.mrb[17].mxu1 }
 0xd05   :  { %v1307_v58 = vpop.f32.mrb[18].mxu1 }
 0xd06   :  { %v1311_v59 = vmul.f32 0.35355338, %v1307_v58  ;;  %v13359_v60 = vpop.f32.mrb[19].mxu1 }
 0xd08   :  { %v1312_v61 = vsel %vm621_vm4, %v1311_v59, -inf }
 0xd09   :  { %1313 = vmax.xlane.f32.xlu0 %v1312_v61  ;;  %v1474_v62 = vpop.f32.mrb[20].mxu1 }
 0xd0a   :  { %v1478_v63 = vmul.f32 0.35355338, %v1474_v62  ;;  %v13369_v0 = vpop.f32.mrb[21].mxu1 }
 0xd0c   :  { %v1479_v1 = vsel %vm621_vm4, %v1478_v63, -inf }
 0xd0d   :  { %1480 = vmax.xlane.f32.xlu1 %v1479_v1  ;;  %v1641_v2 = vpop.f32.mrb[22].mxu1 }
 0xd0e   :  { %v1645_v3 = vmul.f32 0.35355338, %v1641_v2  ;;  %v13379_v4 = vpop.f32.mrb[23].mxu1 }
 0xd10   :  { %v1646_v5 = vsel %vm621_vm4, %v1645_v3, -inf }
 0xd11   :  { %1647 = vmax.xlane.f32.xlu0 %v1646_v5  ;;  %v1808_v7 = vpop.f32.mrb[24].mxu1 }
 0xd12   :  { %v1812_v8 = vmul.f32 0.35355338, %v1808_v7  ;;  %v13389_v9 = vpop.f32.mrb[25].mxu1 }
 0xd14   :  { %v1813_v10 = vsel %vm621_vm4, %v1812_v8, -inf }
 0xd15   :  { %1814 = vmax.xlane.f32.xlu0 %v1813_v10 }
 0xd96   :  { %v1314_v11 = vpop.xlane.xlu0 %1313 }
 0xd97   :  { %v1315_v12 = vsub.f32 %v1311_v59, %v1314_v11 }
 0xd99   :  { %v1316_v13 = vmul.f32 1.442695, %v1315_v12 }
 0xd9a   :  { %v1481_v19 = vpop.xlane.xlu1 %1480 }
 0xd9b   :  { %14943 = vpow2.f32 %v1316_v13  ;;  %v1482_v20 = vsub.f32 %v1478_v63, %v1481_v19 }
 0xd9d   :  { %v1483_v21 = vmul.f32 1.442695, %v1482_v20 }
 0xd9e   :  { %v1648_v22 = vpop.xlane.xlu0 %1647 }
 0xd9f   :  { %14945 = vpow2.f32 %v1483_v21  ;;  %v1649_v23 = vsub.f32 %v1645_v3, %v1648_v22 }
 0xda1   :  { %v1650_v24 = vmul.f32 1.442695, %v1649_v23 }
 0xda2   :  { %v1815_v33 = vpop.xlane.xlu0 %1814 }
 0xda3   :  { %14947 = vpow2.f32 %v1650_v24  ;;  %v1816_v35 = vsub.f32 %v1812_v8, %v1815_v33  ;;  %v15833_v24 = vsub.s32 4, %v15620_v14 }
 0xda5   :  { %v14944_v25 = vpop.eup %14943  ;;  %v1817_v36 = vmul.f32 1.442695, %v1816_v35 }
 0xda6   :  { %v1318_v26 = vsel %vm621_vm4, %v14944_v25, 0.0 }
 0xda7   :  { %1319 = vadd.xlane.f32.xlu0 %v1318_v26  ;;  %14949 = vpow2.f32 %v1817_v36 }
 0xda9   :  { %v14946_v27 = vpop.eup %14945 }
 0xdaa   :  { %v1485_v28 = vsel %vm621_vm4, %v14946_v27, 0.0 }
 0xdab   :  { %1486 = vadd.xlane.f32.xlu1 %v1485_v28 }
 0xdad   :  { %v14948_v30 = vpop.eup %14947 }
 0xdae   :  { %v1652_v32 = vsel %vm621_vm4, %v14948_v30, 0.0 }
 0xdaf   :  { %1653 = vadd.xlane.f32.xlu0 %v1652_v32 }
 0xdb1   :  { %v14950_v37 = vpop.eup %14949 }
 0xdb2   :  { %v1819_v38 = vsel %vm621_vm4, %v14950_v37, 0.0 }
 0xdbc   :  { %1490 = vrot.lane.b32.xlu1 %v15708_v15, %s18655_s1  ;;  %s18717_s1 = sld [smem:[#allocation10_spill]] }
 0xdc0   :  { %1657 = vrot.lane.b32.xlu1 %v15708_v15, %s18651_s0  ;;  %s18725_s0 = smov 104  }
 0xdc2   :  { %v1920_v55 = vld [vmem:[%s18717_s1] sm:$0xff]  ;;  %v1921_v57 = vld [vmem:[%s18717_s1 + $0x8] sm:$0xff]  ;;  %v1922_v1 = vld [vmem:[%s18717_s1 + $0x10] sm:$0xff] }
 0xdc3   :  { %v14042_v58 = vpack.c.bf16 %v1921_v57, %v1920_v55  ;;  %v1923_v2 = vld [vmem:[%s18717_s1 + $0x18] sm:$0xff]  ;;  %v15864_v57 = vsub.s32 2, %v15620_v14 }
 0xdc4   :  { %v14046_v3 = vpack.c.bf16 %v1923_v2, %v1922_v1 }
 0xdc5   :  { %1323 = vrot.lane.b32.xlu0 %v15708_v15, %s18716_s27  ;;  %14043 = vmatprep.subr.bf16.mxu1 %v14042_v58 }
 0xdc6   :  { %14045 = vmatpush3.bf16.msra.mxu1 %v14042_v58  ;;  %v15867_v58 = vsub.s32 3, %v15620_v14 }
 0xdc7   :  { %14047 = vmatprep.subr.bf16.mxu1 %v14046_v3 }
 0xdc9   :  { %1214 = vrot.lane.b32.xlu0 %v15698_v6, %s18663_s5 }
 0xdca   :  { %14049 = vmatpush3.bf16.msra.mxu1 %v14046_v3 }
 0xde4   :  { %1820 = vadd.xlane.f32.xlu1 %v1819_v38 }
 0xdf5   :  { %1824 = vrot.lane.b32.xlu1 %v15708_v15, %s18653_s30  ;;  %s18724_s30 = smov 112  }
 0xe34   :  { %v1320_v39 = vpop.xlane.xlu0 %1319 }
 0xe35   :  { %14951 = vrcp.f32 %v1320_v39 }
 0xe38   :  { %v1487_v40 = vpop.xlane.xlu1 %1486 }
 0xe39   :  { %14953 = vrcp.f32 %v1487_v40 }
 0xe3c   :  { %v1654_v41 = vpop.xlane.xlu0 %1653  ;;  %v1491_v6 = vpop.permute.xlu1 %1490 }
 0xe3d   :  { %14955 = vrcp.f32 %v1654_v41 }
 0xe3f   :  { %v14952_v42 = vpop.eup %14951 }
 0xe40   :  { %v1322_v34 = vmul.f32 %v14952_v42, %v14944_v25  ;;  %v1324_v43 = vpop.permute.xlu0 %1323  ;;  %v1658_v45 = vpop.permute.xlu1 %1657  ;;  %v1927_v25 = vrot.slane %v15628_v17, %v15833_v24 }
 0xe41   :  { %13361 = vmatpush3.msk.msra.mxu0 %vm639_vm5, %v1324_v43  ;;  %v2049_v43 = vld [vmem:[%s18620_s7 + $0x8] sm:$0xff] }
 0xe42   :  { %13363 = vmatmul.mubr.msk.f32.vlgmr.msra.gmra.mrb[12].mxu0 %vm635_vm6, %v1322_v34  ;;  %13370 = vmatprep.subr.mxu0 %v15132_v29 }
 0xe43   :  { %v14954_v44 = vpop.eup %14953  ;;  %13371 = vmatpush3.msk.msra.mxu0 %vm639_vm5, %v1491_v6  ;;  %13372 = vmatprep.mubr.msk.f32.mxu0 %vm15133_vm2, %v15132_v29  ;;  %v2048_v6 = vld [vmem:[%s18620_s7] sm:$0xff] }
 0xe44   :  { %13380 = vmatprep.subr.mxu0 %v15132_v29  ;;  %v1489_v15 = vmul.f32 %v14954_v44, %v14946_v27  ;;  %v14050_v44 = vpack.c.bf16 %v2049_v43, %v2048_v6 }
 0xe46   :  { %13373 = vmatmul.mubr.msk.f32.vlgmr.msra.gmra.mrb[14].mxu0 %vm635_vm6, %v1489_v15  ;;  %v2050_v15 = vld [vmem:[%s18620_s7 + $0x10] sm:$0xff] }
 0xe47   :  { %v14956_v46 = vpop.eup %14955  ;;  %13381 = vmatpush3.msk.msra.mxu0 %vm639_vm5, %v1658_v45  ;;  %13382 = vmatprep.mubr.msk.f32.mxu0 %vm15133_vm2, %v15132_v29  ;;  %v2051_v45 = vld [vmem:[%s18620_s7 + $0x18] sm:$0xff] }
 0xe48   :  { %v1656_v47 = vmul.f32 %v14956_v46, %v14948_v30  ;;  %13390 = vmatprep.subr.mxu0 %v15132_v29  ;;  %v14054_v46 = vpack.c.bf16 %v2051_v45, %v2050_v15 }
 0xe4a   :  { %13383 = vmatmul.mubr.msk.f32.vlgmr.msra.gmra.mrb[16].mxu0 %vm635_vm6, %v1656_v47 }
 0xe4b   :  { %13392 = vmatprep.mubr.msk.f32.mxu0 %vm15133_vm2, %v15132_v29 }
 0xe71   :  { %v1821_v48 = vpop.xlane.xlu1 %1820 }
 0xe72   :  { %14957 = vrcp.f32 %v1821_v48 }
 0xe75   :  { %v1825_v50 = vpop.permute.xlu1 %1824 }
 0xe76   :  { %13391 = vmatpush3.msk.msra.mxu0 %vm639_vm5, %v1825_v50 }
 0xe77   :  { %14051 = vmatprep.subr.bf16.mxu0 %v14050_v44 }
 0xe7c   :  { %v14958_v51 = vpop.eup %14957 }
 0xe7d   :  { %v1823_v53 = vmul.f32 %v14958_v51, %v14950_v37 }
 0xe7f   :  { %13393 = vmatmul.mubr.msk.f32.vlgmr.msra.gmra.mrb[18].mxu0 %vm635_vm6, %v1823_v53 }
 0xe80   :  { %14053 = vmatpush3.bf16.msra.mxu0 %v14050_v44 }
 0xe81   :  { %14055 = vmatprep.subr.bf16.mxu0 %v14054_v46 }
 0xe84   :  { %14057 = vmatpush3.bf16.msra.mxu0 %v14054_v46 }
 0xf15   :  { %v1396_v59 = vpop.f32.mrb[12].mxu0 }
 0xf16   :  { %v13364_v60 = vpop.f32.mrb[13].mxu0 }
 0xf19   :  { %v1563_v61 = vpop.f32.mrb[14].mxu0 }
 0xf1a   :  { %1902 = vrot.lane.b32.xlu0 %v1563_v61, %s18663_s5  ;;  %v13374_v62 = vpop.f32.mrb[15].mxu0  ;;  %s18665_s5 = smov 24  }
 0xf1b   :  { %v2045_v62 = vrot.slane %v15628_v17, %v15867_v58 }
 0xf1d   :  { %v1730_v63 = vpop.f32.mrb[16].mxu0 }
 0xf1e   :  { %1218 = vrot.lane.b32.xlu0 %v15725_v31, %s18667_s23  ;;  %1906 = vrot.lane.b32.xlu1 %v1730_v63, %s18667_s23  ;;  %v13384_v0 = vpop.f32.mrb[17].mxu0  ;;  %v1215_v31 = vpop.permute.xlu0 %1214  ;;  %s18722_s23 = smov 72  }
 0xf1f   :  { %v1225_v19 = vsel %vm545_vm3, %v15678_v52, %v1215_v31  ;;  %v2159_v31 = vld [vmem:[%s18622_s9 + $0x8] sm:$0xff] }
 0xf52   :  { %v1897_v4 = vpop.f32.mrb[18].mxu0 }
 0xf53   :  { %1910 = vrot.lane.b32.xlu1 %v1897_v4, %s18665_s5  ;;  %v13394_v5 = vpop.f32.mrb[19].mxu0 }
 0xf54   :  { %v2158_v5 = vld [vmem:[%s18622_s9] sm:$0xff] }
 0xf57   :  { %1222 = vrot.lane.b32.xlu1 %v15766_v56, %s18665_s5  ;;  %s18723_s5 = smov 56  }
 0xf8c   :  { %v1903_v7 = vpop.permute.xlu0 %1902 }
 0xf8d   :  { %v1913_v9 = vsel %vm545_vm3, %v1396_v59, %v1903_v7  ;;  %v2039_v59 = vrot.slane %v15628_v17, %v15864_v57  ;;  %v14058_v7 = vpack.c.bf16 %v2159_v31, %v2158_v5 }
 0xf8f   :  { %14059 = vmatprep.subr.bf16.mxu1 %v14058_v7 }
 0xf90   :  { %v1907_v8 = vpop.permute.xlu1 %1906  ;;  %v1219_v12 = vpop.permute.xlu0 %1218 }
 0xf91   :  { %v1914_v10 = vsel %vm1226_vm8, %v1913_v9, %v1907_v8  ;;  %v1227_v20 = vsel %vm1226_vm8, %v1225_v19, %v1219_v12  ;;  %v2160_v8 = vld [vmem:[%s18622_s9 + $0x10] sm:$0xff]  ;;  %v2161_v9 = vld [vmem:[%s18622_s9 + $0x18] sm:$0xff]  ;;  %v2163_v12 = vld [vmem:[%s18622_s9 + $0x28] sm:$0xff] }
 0xf92   :  { %v2164_v19 = vld [vmem:[%s18622_s9 + $0x30] sm:$0xff] }
 0xfc5   :  { %v1911_v11 = vpop.permute.xlu1 %1910 }
 0xfc6   :  { %v1915_v13 = vsel %vm1228_vm9, %v1914_v10, %v1911_v11  ;;  %v14062_v10 = vpack.c.bf16 %v2161_v9, %v2160_v8  ;;  %v2162_v11 = vld [vmem:[%s18622_s9 + $0x20] sm:$0xff] }
 0xfc7   :  { %v1917_v21 = vrot.slane %v1915_v13, 3  ;;  %v14066_v13 = vpack.c.bf16 %v2163_v12, %v2162_v11 }
 0xfc9   :  { %v1223_v56 = vpop.permute.xlu1 %1222 }
 0xfca   :  { %v1229_v22 = vsel %vm1228_vm9, %v1227_v20, %v1223_v56  ;;  %v2165_v20 = vld [vmem:[%s18622_s9 + $0x38] sm:$0xff]  ;;  %v2166_v56 = vld [vmem:[%s18622_s9 + $0x40] sm:$0xff] }
 0xfcb   :  { %v1919_v23 = vsel %vm639_vm5, %v1229_v22, %v1917_v21  ;;  %v2167_v22 = vld [vmem:[%s18622_s9 + $0x48] sm:$0xff] }
 0xfcc   :  { %13403 = vmatprep.mubr.msk.f32.mxu1 %vm409_vm0, %v1919_v23  ;;  %v2168_v23 = vld [vmem:[%s18622_s9 + $0x50] sm:$0xff] }
 0xfcd   :  { %13404 = vmatmul.mubr.msk.f32.vlgmr.msra.gmra.mrb[26].mxu1 %vm409_vm0, %v1917_v21  ;;  %v14070_v21 = vpack.c.bf16 %v2165_v20, %v2164_v19  ;;  %v12033_v20 = vld [vmem:[%s18713_s3 + $0x20] sm:$0xff] }
 0xfce   :  { %14061 = vmatpush3.bf16.msra.mxu1 %v14058_v7 }
 0xfcf   :  { %14063 = vmatprep.subr.bf16.mxu1 %v14062_v10 }
 0xfd2   :  { %14065 = vmatpush3.bf16.msra.mxu1 %v14062_v10 }
 0xfd3   :  { %14067 = vmatprep.subr.bf16.mxu1 %v14066_v13 }
 0xfd6   :  { %14069 = vmatpush3.bf16.msra.mxu1 %v14066_v13 }
 0xfd7   :  { %14071 = vmatprep.subr.bf16.mxu1 %v14070_v21 }
 0xfda   :  { %14073 = vmatpush3.bf16.msra.mxu1 %v14070_v21  ;;  %v12034_v21 = vld [vmem:[%s18713_s3 + $0x28] sm:$0xff] }
0x10a0   :  { %v13405_v26 = vpop.f32.mrb[26].mxu1 }
0x10a1   :  { %v2005_v52 = vadd.f32 %v13405_v26, %v1927_v25  ;;  %v1999_v27 = vpop.f32.mrb[27].mxu1  ;;  %v2169_v26 = vld [vmem:[%s18622_s9 + $0x58] sm:$0xff] }
0x10a2   :  { %v2000_v28 = vadd.f32 %v1999_v27, %v1927_v25  ;;  %v14074_v25 = vpack.c.bf16 %v2167_v22, %v2166_v56  ;;  %v2170_v27 = vld [vmem:[%s18622_s9 + $0x60] sm:$0xff]  ;;  %v14090_v56 = vpack.c.bf16 %v12034_v21, %v12033_v20  ;;  %v12035_v22 = vld [vmem:[%s18713_s3 + $0x30] sm:$0xff] }
0x10a3   :  { %v15838_v30 = vadd.f32 %v2005_v52, %v15600_v54  ;;  %v14078_v52 = vpack.c.bf16 %v2169_v26, %v2168_v23  ;;  %v12036_v23 = vld [vmem:[%s18713_s3 + $0x38] sm:$0xff] }
0x10a4   :  { %v15841_v32 = vadd.f32 %v2000_v28, %v15596_v49  ;;  %14075 = vmatprep.subr.bf16.mxu1 %v14074_v25  ;;  %v2171_v28 = vld [vmem:[%s18622_s9 + $0x68] sm:$0xff]  ;;  %14091 = vmatprep.subr.bf16.mxu0 %v14090_v56 }
0x10a5   :  { %v2013_v33 = vsel %vm413_vm1, %v15838_v30, 0.0  ;;  %14077 = vmatpush3.bf16.msra.mxu1 %v14074_v25  ;;  %v14094_v25 = vpack.c.bf16 %v12036_v23, %v12035_v22 }
0x10a6   :  { %2014 = vadd.xlane.f32.xlu1 %v2013_v33  ;;  %v2010_v35 = vsel %vm409_vm0, %v15841_v32, 0.0  ;;  %14079 = vmatprep.subr.bf16.mxu1 %v14078_v52  ;;  %v14082_v33 = vpack.c.bf16 %v2171_v28, %v2170_v27 }
0x10a7   :  { %2011 = vadd.xlane.f32.xlu0 %v2010_v35  ;;  %v2172_v35 = vld [vmem:[%s18622_s9 + $0x70] sm:$0xff] }
0x10a9   :  { %14081 = vmatpush3.bf16.msra.mxu1 %v14078_v52 }
0x10aa   :  { %14083 = vmatprep.subr.bf16.mxu1 %v14082_v33 }
0x10ad   :  { %14085 = vmatpush3.bf16.msra.mxu1 %v14082_v33 }
0x1133   :  { %v2015_v36 = vpop.xlane.xlu1 %2014 }
0x1134   :  { %v2017_v37 = vmul.f32 0.03125, %v2015_v36  ;;  %v2012_v38 = vpop.xlane.xlu0 %2011  ;;  %v2173_v36 = vld [vmem:[%s18622_s9 + $0x78] sm:$0xff] }
0x1135   :  { %v2016_v39 = vmul.f32 0.03125, %v2012_v38  ;;  %v12029_v38 = vld [vmem:[%s18621_s8] ss:$0 sm:$0xff] }
0x1136   :  { %v2019_v40 = vsub.f32 %v15838_v30, %v2017_v37  ;;  %v14086_v37 = vpack.c.bf16 %v2173_v36, %v2172_v35  ;;  %v15964_v36 = vld [vmem:[%s18714_s26 + $0x8] sm:$0x3f] }
0x1137   :  { %v2018_v54 = vsub.f32 %v15841_v32, %v2016_v39 }
0x1138   :  { %v2021_v42 = vmul.f32 %v2019_v40, %v2019_v40  ;;  %14087 = vmatprep.subr.bf16.mxu1 %v14086_v37 }
0x1139   :  { %v2020_v41 = vmul.f32 %v2018_v54, %v2018_v54  ;;  %14089 = vmatpush3.bf16.msra.mxu1 %v14086_v37  ;;  %v2288_v37 = vrot.slane %v15964_v36, %v15623_v16 }
0x113a   :  { %v2025_v34 = vsel %vm413_vm1, %v2021_v42, 0.0  ;;  %13493 = vmatprep.subr.mxu1 %v15132_v29 }
0x113b   :  { %v2022_v49 = vsel %vm409_vm0, %v2020_v41, 0.0 }
0x113c   :  { %2023 = vadd.xlane.f32.xlu0 %v2022_v49 }
0x1140   :  { %2026 = vadd.xlane.f32.xlu0 %v2025_v34 }
0x11c9   :  { %v2024_v47 = vpop.xlane.xlu0 %2023 }
0x11ca   :  { %v2028_v48 = vmul.f32 0.03125, %v2024_v47 }
0x11cc   :  { %v2030_v50 = vadd.f32 1e-12, %v2028_v48 }
0x11cd   :  { %v2027_v51 = vpop.xlane.xlu0 %2026 }
0x11ce   :  { %14959 = vrsqrt.f32 %v2030_v50  ;;  %v2029_v53 = vmul.f32 0.03125, %v2027_v51 }
0x11d0   :  { %v2031_v55 = vadd.f32 1e-12, %v2029_v53 }
0x11d2   :  { %14961 = vrsqrt.f32 %v2031_v55 }
0x11d8   :  { %v14960_v60 = vpop.eup %14959 }
0x11d9   :  { %v2034_v61 = vmul.f32 %v14960_v60, %v2018_v54 }
0x11db   :  { %v2040_v63 = vmul.f32 %v2039_v59, %v2034_v61 }
0x11dc   :  { %v14962_v0 = vpop.eup %14961 }
0x11dd   :  { %v2035_v1 = vmul.f32 %v14962_v0, %v2019_v40  ;;  %v2046_v2 = vadd.f32 %v2045_v62, %v2040_v63 }
0x11df   :  { %v2041_v3 = vmul.f32 %v2039_v59, %v2035_v1  ;;  %13414 = vmatprep.mubr.msk.f32.mxu0 %vm409_vm0, %v2046_v2 }
0x11e1   :  { %v2047_v4 = vadd.f32 %v2045_v62, %v2041_v3  ;;  %v15930_v62 = vsub.s32 5, %v15620_v14 }
0x11e3   :  { %13415 = vmatmul.mubr.msk.f32.vlgmr.msra.gmra.mrb[20].mxu0 %vm409_vm0, %v2047_v4  ;;  %v2254_v63 = vrot.slane %v15628_v17, %v15930_v62 }
0x11e4   :  { %14093 = vmatpush3.bf16.msra.mxu0 %v14090_v56 }
0x11e5   :  { %14095 = vmatprep.subr.bf16.mxu0 %v14094_v25 }
0x11e8   :  { %14097 = vmatpush3.bf16.msra.mxu0 %v14094_v25 }
0x11e9   :  { %13463 = vmatprep.subr.mxu0 %v15132_v29 }
0x12b6   :  { %v13416_v39 = vpop.f32.mrb[20].mxu0 }
0x12b7   :  { %v2137_v40 = vadd.f32 %v13416_v39, %v12029_v38  ;;  %v2131_v54 = vpop.f32.mrb[21].mxu0 }
0x12b8   :  { %v2132_v41 = vadd.f32 %v12029_v38, %v2131_v54 }
0x12b9   :  { %v2141_v49 = vmul.f32 %v2137_v40, %v2137_v40 }
0x12ba   :  { %v2140_v42 = vmul.f32 %v2132_v41, %v2132_v41 }
0x12bb   :  { %v2143_v34 = vmul.f32 %v2141_v49, %v2137_v40 }
0x12bc   :  { %v2142_v6 = vmul.f32 %v2140_v42, %v2132_v41 }
0x12bd   :  { %v2145_v43 = vmul.f32 0.044715, %v2143_v34 }
0x12be   :  { %v2144_v44 = vmul.f32 0.044715, %v2142_v6 }
0x12bf   :  { %v2147_v15 = vadd.f32 %v2145_v43, %v2137_v40  ;;  %v12038_v43 = vld [vmem:[%s18715_s28 + $0x1] ss:$0 sm:$0xff] }
0x12c0   :  { %v2146_v45 = vadd.f32 %v2144_v44, %v2132_v41 }
0x12c1   :  { %v2149_v46 = vmul.f32 0.7978846, %v2147_v15 }
0x12c2   :  { %v2148_v47 = vmul.f32 0.7978846, %v2146_v45 }
0x12c3   :  { %14963 = vtanh.f32 %v2149_v46 }
0x12c4   :  { %14965 = vtanh.f32 %v2148_v47 }
0x12cd   :  { %v14964_v48 = vpop.eup %14963 }
0x12ce   :  { %v14966_v50 = vpop.eup %14965  ;;  %v2153_v51 = vadd.f32 1.0, %v14964_v48 }
0x12cf   :  { %v2152_v53 = vadd.f32 1.0, %v14966_v50 }
0x12d0   :  { %v2155_v55 = vmul.f32 0.5, %v2153_v51 }
0x12d1   :  { %v2154_v59 = vmul.f32 0.5, %v2152_v53 }
0x12d2   :  { %v2157_v61 = vmul.f32 %v2155_v55, %v2137_v40 }
0x12d3   :  { %v2156_v60 = vmul.f32 %v2154_v59, %v2132_v41  ;;  %v2294_v41 = vrot.slane %v15964_v36, %v15631_v18 }
0x12d5   :  { %13449 = vmatprep.mubr.f32.mxu1 %v2156_v60 }
0x12d6   :  { %13450 = vmatmul.mubr.f32.vlgmr.msra.gmra.mrb[28].mxu1 %v2157_v61 }
0x12d7   :  { %13495 = vmatprep.mubr.msk.f32.mxu1 %vm15133_vm2, %v15132_v29 }
0x13a9   :  { %v13451_v0 = vpop.f32.mrb[28].mxu1 }
0x13aa   :  { %v2250_v1 = vadd.f32 %v13451_v0, %v15838_v30  ;;  %v2240_v2 = vpop.f32.mrb[29].mxu1 }
0x13ab   :  { %v2249_v3 = vadd.f32 %v2240_v2, %v15841_v32 }
0x13ac   :  { %v15936_v4 = vadd.f32 %v2254_v63, %v2250_v1 }
0x13ad   :  { %v15938_v5 = vadd.f32 %v2254_v63, %v2249_v3 }
0x13ae   :  { %v2262_v31 = vsel %vm413_vm1, %v15936_v4, 0.0 }
0x13af   :  { %2263 = vadd.xlane.f32.xlu1 %v2262_v31  ;;  %v2259_v7 = vsel %vm409_vm0, %v15938_v5, 0.0 }
0x13b0   :  { %2260 = vadd.xlane.f32.xlu0 %v2259_v7 }
0x143c   :  { %v2264_v8 = vpop.xlane.xlu1 %2263 }
0x143d   :  { %v2266_v17 = vmul.f32 0.03125, %v2264_v8  ;;  %v2261_v9 = vpop.xlane.xlu0 %2260 }
0x143e   :  { %v2265_v10 = vmul.f32 0.03125, %v2261_v9 }
0x143f   :  { %v2268_v30 = vsub.f32 %v15936_v4, %v2266_v17 }
0x1440   :  { %v2267_v32 = vsub.f32 %v15938_v5, %v2265_v10 }
0x1441   :  { %v2270_v11 = vmul.f32 %v2268_v30, %v2268_v30 }
0x1442   :  { %v2269_v12 = vmul.f32 %v2267_v32, %v2267_v32 }
0x1443   :  { %v2274_v13 = vsel %vm413_vm1, %v2270_v11, 0.0 }
0x1444   :  { %2275 = vadd.xlane.f32.xlu1 %v2274_v13  ;;  %v2271_v19 = vsel %vm409_vm0, %v2269_v12, 0.0 }
0x1445   :  { %2272 = vadd.xlane.f32.xlu0 %v2271_v19 }
0x14d1   :  { %v2276_v26 = vpop.xlane.xlu1 %2275 }
0x14d2   :  { %v2278_v52 = vmul.f32 0.03125, %v2276_v26  ;;  %v2273_v27 = vpop.xlane.xlu0 %2272 }
0x14d3   :  { %v2277_v28 = vmul.f32 0.03125, %v2273_v27 }
0x14d4   :  { %v2280_v33 = vadd.f32 1e-12, %v2278_v52 }
0x14d5   :  { %v2279_v35 = vadd.f32 1e-12, %v2277_v28 }
0x14d6   :  { %14967 = vrsqrt.f32 %v2280_v33 }
0x14d7   :  { %14969 = vrsqrt.f32 %v2279_v35 }
0x14e0   :  { %v14968_v38 = vpop.eup %14967 }
0x14e1   :  { %v14970_v39 = vpop.eup %14969  ;;  %v2284_v40 = vmul.f32 %v14968_v38, %v2268_v30 }
0x14e2   :  { %v2283_v54 = vmul.f32 %v14970_v39, %v2267_v32 }
0x14e3   :  { %v2290_v49 = vmul.f32 %v2288_v37, %v2284_v40 }
0x14e4   :  { %v2289_v42 = vmul.f32 %v2288_v37, %v2283_v54 }
0x14e5   :  { %v2296_v6 = vadd.f32 %v2294_v41, %v2290_v49 }
0x14e6   :  { %v2295_v34 = vadd.f32 %v2294_v41, %v2289_v42 }
0x14e8   :  { %13460 = vmatprep.mubr.msk.f32.mxu0 %vm409_vm0, %v2295_v34 }
0x14e9   :  { %13461 = vmatmul.mubr.msk.f32.vlgmr.msra.gmra.mrb[22].mxu0 %vm409_vm0, %v2296_v6 }
0x14ea   :  { %13465 = vmatprep.mubr.msk.f32.mxu0 %vm15133_vm2, %v15132_v29 }
0x15bc   :  { %v13462_v44 = vpop.f32.mrb[22].mxu0 }
0x15bd   :  { %v2388_v15 = vadd.f32 %v13462_v44, %v12038_v43  ;;  %v2382_v45 = vpop.f32.mrb[23].mxu0 }
0x15be   :  { %v15977_v46 = vadd.f32 %v12038_v43, %v2382_v45 }
0x15bf   :  { %v3075_v13 = vrot.slane %v2388_v15, 5 }
0x15c0   :  { %2392 = vrot.lane.b32.xlu0 %v15977_v46, %s18718_s21  ;;  %v3074_v19 = vrot.slane %v15977_v46, 5 }
0x15c2   :  { %v16024_v20 = vsel %vm1231_vm7, %v3074_v19, %v3075_v13 }
0x15c4   :  { %2559 = vrot.lane.b32.xlu0 %v15977_v46, %s18719_s22 }
0x1632   :  { %v2393_v47 = vpop.permute.xlu0 %2392 }
0x1633   :  { %13464 = vmatpush3.xpose.msk.msra.mxu0 %vm545_vm3, %v2393_v47 }
0x1634   :  { %13468 = vmatprep.subr.mxu0 %v15132_v29 }
0x1636   :  { %13466 = vmatmul.mubr.msk.f32.vlgmr.msra.gmra.mrb[24].mxu0 %vm545_vm3, %v15977_v46  ;;  %v2560_v17 = vpop.permute.xlu0 %2559 }
0x1637   :  { %13470 = vmatprep.mubr.msk.f32.mxu0 %vm15133_vm2, %v15132_v29 }
0x1709   :  { %v2464_v48 = vpop.f32.mrb[24].mxu0 }
0x170a   :  { %v2468_v50 = vmul.f32 0.35355338, %v2464_v48  ;;  %v13467_v51 = vpop.f32.mrb[25].mxu0 }
0x170c   :  { %v2469_v53 = vsel %vm621_vm4, %v2468_v50, -inf }
0x170d   :  { %2470 = vmax.xlane.f32.xlu1 %v2469_v53 }
0x171e   :  { %2480 = vrot.lane.b32.xlu1 %v15977_v46, %s18716_s27 }
0x179a   :  { %v2471_v55 = vpop.xlane.xlu1 %2470 }
0x179b   :  { %v2472_v59 = vsub.f32 %v2468_v50, %v2471_v55 }
0x179d   :  { %v2473_v60 = vmul.f32 1.442695, %v2472_v59 }
0x179e   :  { %v2481_v61 = vpop.permute.xlu1 %2480 }
0x179f   :  { %14971 = vpow2.f32 %v2473_v60  ;;  %13469 = vmatpush3.msk.msra.mxu0 %vm639_vm5, %v2481_v61 }
0x17a0   :  { %13473 = vmatprep.subr.mxu0 %v15132_v29 }
0x17a9   :  { %v14972_v63 = vpop.eup %14971 }
0x17aa   :  { %v2475_v0 = vsel %vm621_vm4, %v14972_v63, 0.0 }
0x17ab   :  { %2476 = vadd.xlane.f32.xlu1 %v2475_v0 }
0x17bc   :  { %2557 = vrot.lane.b32.xlu1 %v15977_v46, %s18720_s19 }
0x17c0   :  { %2726 = vrot.lane.b32.xlu1 %v15977_v46, %s18721_s4 }
0x17c4   :  { %2893 = vrot.lane.b32.xlu1 %v15977_v46, %s18722_s23 }
0x1838   :  { %v2477_v1 = vpop.xlane.xlu1 %2476 }
0x1839   :  { %14973 = vrcp.f32 %v2477_v1 }
0x183c   :  { %v2558_v2 = vpop.permute.xlu1 %2557 }
0x1840   :  { %v16001_v3 = vpop.permute.xlu1 %2726 }
0x1843   :  { %v14974_v31 = vpop.eup %14973 }
0x1844   :  { %v2894_v7 = vpop.permute.xlu1 %2893  ;;  %v2479_v8 = vmul.f32 %v14974_v31, %v14972_v63 }
0x1845   :  { %13494 = vmatpush3.xpose.msk.msra.mxu1 %vm545_vm3, %v2894_v7 }
0x1846   :  { %13471 = vmatmul.mubr.msk.f32.vlgmr.msra.gmra.mrb[26].mxu0 %vm635_vm6, %v2479_v8  ;;  %13503 = vmatprep.subr.mxu1 %v15132_v29 }
0x1847   :  { %13474 = vmatpush3.xpose.msk.msra.mxu0 %vm545_vm3, %v2560_v17  ;;  %13475 = vmatprep.mubr.msk.f32.mxu0 %vm15133_vm2, %v15132_v29 }
0x1848   :  { %13478 = vmatprep.subr.mxu0 %v15132_v29 }
0x184a   :  { %13476 = vmatmul.mubr.msk.f32.vlgmr.msra.gmra.mrb[28].mxu0 %vm545_vm3, %v2558_v2 }
0x184b   :  { %13480 = vmatprep.mubr.msk.f32.mxu0 %vm15133_vm2, %v15132_v29 }
0x1919   :  { %v16013_v9 = vpop.f32.mrb[26].mxu0 }
0x191a   :  { %v13472_v10 = vpop.f32.mrb[27].mxu0 }
0x191d   :  { %v2631_v30 = vpop.f32.mrb[28].mxu0 }
0x191e   :  { %v2635_v32 = vmul.f32 0.35355338, %v2631_v30  ;;  %v13477_v11 = vpop.f32.mrb[29].mxu0 }
0x1920   :  { %v2636_v12 = vsel %vm621_vm4, %v2635_v32, -inf }
0x1921   :  { %2637 = vmax.xlane.f32.xlu0 %v2636_v12 }
0x1937   :  { %2647 = vrot.lane.b32.xlu0 %v15977_v46, %s18723_s5 }
0x193b   :  { %2724 = vrot.lane.b32.xlu0 %v15977_v46, %s18724_s30 }
0x193f   :  { %2891 = vrot.lane.b32.xlu0 %v15977_v46, %s18725_s0 }
0x1943   :  { %3244 = vrot.lane.b32.xlu0 %v16024_v20, %s18719_s22 }
0x1947   :  { %3411 = vrot.lane.b32.xlu0 %v16024_v20, %s18721_s4 }
0x194b   :  { %3578 = vrot.lane.b32.xlu0 %v16024_v20, %s18722_s23 }
0x19ae   :  { %v2638_v21 = vpop.xlane.xlu0 %2637 }
0x19af   :  { %v2639_v56 = vsub.f32 %v2635_v32, %v2638_v21 }
0x19b1   :  { %v2640_v22 = vmul.f32 1.442695, %v2639_v56 }
0x19b2   :  { %v2648_v23 = vpop.permute.xlu0 %2647 }
0x19b3   :  { %14975 = vpow2.f32 %v2640_v22  ;;  %13479 = vmatpush3.msk.msra.mxu0 %vm639_vm5, %v2648_v23 }
0x19b4   :  { %13483 = vmatprep.subr.mxu0 %v15132_v29 }
0x19b6   :  { %v2725_v25 = vpop.permute.xlu0 %2724 }
0x19ba   :  { %v2892_v26 = vpop.permute.xlu0 %2891 }
0x19bb   :  { %13496 = vmatmul.mubr.msk.f32.vlgmr.msra.gmra.mrb[30].mxu1 %vm545_vm3, %v2892_v26 }
0x19bc   :  { %13505 = vmatprep.mubr.msk.f32.mxu1 %vm15133_vm2, %v15132_v29 }
0x19bd   :  { %v14976_v52 = vpop.eup %14975 }
0x19be   :  { %v2642_v27 = vsel %vm621_vm4, %v14976_v52, 0.0  ;;  %v3245_v33 = vpop.permute.xlu0 %3244 }
0x19bf   :  { %2643 = vadd.xlane.f32.xlu1 %v2642_v27 }
0x19c2   :  { %v3412_v38 = vpop.permute.xlu0 %3411 }
0x19c6   :  { %v3579_v41 = vpop.permute.xlu0 %3578 }
0x19d0   :  { %3077 = vrot.lane.b32.xlu1 %v16024_v20, %s18718_s21 }
0x19d4   :  { %3242 = vrot.lane.b32.xlu1 %v16024_v20, %s18720_s19 }
0x19d8   :  { %3409 = vrot.lane.b32.xlu1 %v16024_v20, %s18724_s30 }
0x19dc   :  { %3576 = vrot.lane.b32.xlu1 %v16024_v20, %s18725_s0 }
0x1a4c   :  { %v2644_v28 = vpop.xlane.xlu1 %2643 }
0x1a4d   :  { %14977 = vrcp.f32 %v2644_v28 }
0x1a50   :  { %v3078_v35 = vpop.permute.xlu1 %3077 }
0x1a51   :  { %13504 = vmatpush3.xpose.msk.msra.mxu1 %vm545_vm3, %v3078_v35 }
0x1a52   :  { %13513 = vmatprep.subr.mxu1 %v15132_v29 }
0x1a54   :  { %13506 = vmatmul.mubr.msk.f32.vlgmr.msra.gmra.mrb[32].mxu1 %vm545_vm3, %v16024_v20  ;;  %v3243_v37 = vpop.permute.xlu1 %3242 }
0x1a55   :  { %13514 = vmatpush3.xpose.msk.msra.mxu1 %vm545_vm3, %v3245_v33  ;;  %13515 = vmatprep.mubr.msk.f32.mxu1 %vm15133_vm2, %v15132_v29 }
0x1a56   :  { %13523 = vmatprep.subr.mxu1 %v15132_v29 }
0x1a57   :  { %v14978_v39 = vpop.eup %14977 }
0x1a58   :  { %13516 = vmatmul.mubr.msk.f32.vlgmr.msra.gmra.mrb[34].mxu1 %vm545_vm3, %v3243_v37  ;;  %v2646_v40 = vmul.f32 %v14978_v39, %v14976_v52  ;;  %v3410_v54 = vpop.permute.xlu1 %3409 }
0x1a59   :  { %13524 = vmatpush3.xpose.msk.msra.mxu1 %vm545_vm3, %v3412_v38  ;;  %13525 = vmatprep.mubr.msk.f32.mxu1 %vm15133_vm2, %v15132_v29 }
0x1a5a   :  { %13481 = vmatmul.mubr.msk.f32.vlgmr.msra.gmra.mrb[30].mxu0 %vm635_vm6, %v2646_v40  ;;  %13533 = vmatprep.subr.mxu1 %v15132_v29 }
0x1a5b   :  { %13484 = vmatpush3.xpose.msk.msra.mxu0 %vm545_vm3, %v16001_v3  ;;  %13485 = vmatprep.mubr.msk.f32.mxu0 %vm15133_vm2, %v15132_v29 }
0x1a5c   :  { %13526 = vmatmul.mubr.msk.f32.vlgmr.msra.gmra.mrb[36].mxu1 %vm545_vm3, %v3410_v54  ;;  %13488 = vmatprep.subr.mxu0 %v15132_v29  ;;  %v3577_v49 = vpop.permute.xlu1 %3576 }
0x1a5d   :  { %13534 = vmatpush3.xpose.msk.msra.mxu1 %vm545_vm3, %v3579_v41  ;;  %13535 = vmatprep.mubr.msk.f32.mxu1 %vm15133_vm2, %v15132_v29 }
0x1a5e   :  { %13486 = vmatmul.mubr.msk.f32.vlgmr.msra.gmra.mrb[32].mxu0 %vm545_vm3, %v2725_v25 }
0x1a5f   :  { %13490 = vmatprep.mubr.msk.f32.mxu0 %vm15133_vm2, %v15132_v29 }
0x1a60   :  { %13536 = vmatmul.mubr.msk.f32.vlgmr.msra.gmra.mrb[38].mxu1 %vm545_vm3, %v3577_v49 }
0x1a8e   :  { %v2965_v42 = vpop.f32.mrb[30].mxu1 }
0x1a8f   :  { %v2969_v34 = vmul.f32 0.35355338, %v2965_v42  ;;  %v13497_v6 = vpop.f32.mrb[31].mxu1 }
0x1a91   :  { %v2970_v43 = vsel %vm621_vm4, %v2969_v34, -inf }
0x1a92   :  { %2971 = vmax.xlane.f32.xlu1 %v2970_v43 }
0x1b1f   :  { %v2972_v44 = vpop.xlane.xlu1 %2971 }
0x1b20   :  { %v2973_v15 = vsub.f32 %v2969_v34, %v2972_v44 }
0x1b22   :  { %v2974_v48 = vmul.f32 1.442695, %v2973_v15 }
0x1b24   :  { %14979 = vpow2.f32 %v2974_v48 }
0x1b27   :  { %v3149_v45 = vpop.f32.mrb[32].mxu1 }
0x1b28   :  { %v13507_v47 = vpop.f32.mrb[33].mxu1  ;;  %v3153_v2 = vmul.f32 0.35355338, %v3149_v45 }
0x1b2a   :  { %v3154_v30 = vsel %vm621_vm4, %v3153_v2, -inf }
0x1b2b   :  { %v3316_v50 = vpop.f32.mrb[34].mxu1 }
0x1b2c   :  { %v13517_v51 = vpop.f32.mrb[35].mxu1  ;;  %v3320_v10 = vmul.f32 0.35355338, %v3316_v50 }
0x1b2d   :  { %v16074_v53 = vpop.f32.mrb[30].mxu0 }
0x1b2e   :  { %v13482_v55 = vpop.f32.mrb[31].mxu0  ;;  %v16078_v17 = vpop.eup %14979  ;;  %v3321_v12 = vsel %vm621_vm4, %v3320_v10, -inf }
0x1b2f   :  { %v3483_v59 = vpop.f32.mrb[36].mxu1  ;;  %v2976_v32 = vsel %vm621_vm4, %v16078_v17, 0.0 }
0x1b30   :  { %v13527_v60 = vpop.f32.mrb[37].mxu1  ;;  %v3487_v11 = vmul.f32 0.35355338, %v3483_v59 }
0x1b31   :  { %v2798_v61 = vpop.f32.mrb[32].mxu0 }
0x1b32   :  { %v2802_v63 = vmul.f32 0.35355338, %v2798_v61  ;;  %v13487_v0 = vpop.f32.mrb[33].mxu0  ;;  %v3488_v13 = vsel %vm621_vm4, %v3487_v11, -inf }
0x1b33   :  { %v3650_v1 = vpop.f32.mrb[38].mxu1 }
0x1b34   :  { %v3654_v3 = vmul.f32 0.35355338, %v3650_v1  ;;  %v13537_v31 = vpop.f32.mrb[39].mxu1  ;;  %v2803_v7 = vsel %vm621_vm4, %v2802_v63, -inf }
0x1b35   :  { %2804 = vmax.xlane.f32.xlu0 %v2803_v7 }
0x1b36   :  { %v3655_v8 = vsel %vm621_vm4, %v3654_v3, -inf }
0x1b37   :  { %3656 = vmax.xlane.f32.xlu1 %v3655_v8 }
0x1b39   :  { %3155 = vmax.xlane.f32.xlu0 %v3154_v30 }
0x1b3b   :  { %2977 = vadd.xlane.f32.xlu1 %v2976_v32 }
0x1b3d   :  { %3322 = vmax.xlane.f32.xlu0 %v3321_v12 }
0x1b41   :  { %3489 = vmax.xlane.f32.xlu0 %v3488_v13 }
0x1bc2   :  { %v2805_v19 = vpop.xlane.xlu0 %2804 }
0x1bc3   :  { %v2806_v27 = vsub.f32 %v2802_v63, %v2805_v19  ;;  %v12073_v19 = vld [vmem:[%s18717_s1 + $0x20] sm:$0xff] }
0x1bc4   :  { %v3657_v21 = vpop.xlane.xlu1 %3656 }
0x1bc5   :  { %v3658_v23 = vsub.f32 %v3654_v3, %v3657_v21  ;;  %v2807_v38 = vmul.f32 1.442695, %v2806_v27  ;;  %v12074_v21 = vld [vmem:[%s18717_s1 + $0x28] sm:$0xff] }
0x1bc6   :  { %v3156_v56 = vpop.xlane.xlu0 %3155 }
0x1bc7   :  { %v3157_v22 = vsub.f32 %v3153_v2, %v3156_v56  ;;  %v3659_v28 = vmul.f32 1.442695, %v3658_v23 }
0x1bc8   :  { %v2978_v47 = vpop.xlane.xlu1 %2977 }
0x1bc9   :  { %v3158_v25 = vmul.f32 1.442695, %v3157_v22  ;;  %v14098_v22 = vpack.c.bf16 %v12074_v21, %v12073_v19 }
0x1bca   :  { %v3323_v26 = vpop.xlane.xlu0 %3322 }
0x1bcb   :  { %14981 = vpow2.f32 %v3158_v25  ;;  %v3324_v52 = vsub.f32 %v3320_v10, %v3323_v26  ;;  %14099 = vmatprep.subr.bf16.mxu1 %v14098_v22  ;;  %v12075_v26 = vld [vmem:[%s18717_s1 + $0x30] sm:$0xff] }
0x1bcc   :  { %14101 = vmatpush3.bf16.msra.mxu1 %v14098_v22 }
0x1bcd   :  { %v3325_v33 = vmul.f32 1.442695, %v3324_v52  ;;  %v12076_v52 = vld [vmem:[%s18717_s1 + $0x38] sm:$0xff] }
0x1bce   :  { %v3490_v35 = vpop.xlane.xlu0 %3489  ;;  %v14102_v27 = vpack.c.bf16 %v12076_v52, %v12075_v26 }
0x1bcf   :  { %14983 = vpow2.f32 %v3325_v33  ;;  %v3491_v37 = vsub.f32 %v3487_v11, %v3490_v35 }
0x1bd0   :  { %14985 = vpow2.f32 %v3659_v28  ;;  %14103 = vmatprep.subr.bf16.mxu1 %v14102_v27 }
0x1bd1   :  { %v3492_v39 = vmul.f32 1.442695, %v3491_v37  ;;  %14105 = vmatpush3.bf16.msra.mxu1 %v14102_v27  ;;  %v3888_v27 = vrot.slane %v15964_v36, %v15867_v58 }
0x1bd3   :  { %14987 = vpow2.f32 %v3492_v39 }
0x1bd4   :  { %14989 = vpow2.f32 %v2807_v38 }
0x1bd5   :  { %v14982_v40 = vpop.eup %14981 }
0x1bd6   :  { %v3160_v54 = vsel %vm621_vm4, %v14982_v40, 0.0 }
0x1bd7   :  { %3161 = vadd.xlane.f32.xlu0 %v3160_v54 }
0x1bd9   :  { %v14984_v41 = vpop.eup %14983 }
0x1bda   :  { %v3327_v49 = vsel %vm621_vm4, %v14984_v41, 0.0  ;;  %v16087_v42 = vpop.eup %14985 }
0x1bdb   :  { %3328 = vadd.xlane.f32.xlu1 %v3327_v49  ;;  %v3661_v43 = vsel %vm621_vm4, %v16087_v42, 0.0 }
0x1bdd   :  { %v14988_v34 = vpop.eup %14987 }
0x1bde   :  { %v3494_v6 = vsel %vm621_vm4, %v14988_v34, 0.0  ;;  %v14990_v44 = vpop.eup %14989 }
0x1bdf   :  { %3495 = vadd.xlane.f32.xlu0 %v3494_v6  ;;  %3662 = vadd.xlane.f32.xlu1 %v3661_v43  ;;  %v2809_v15 = vsel %vm621_vm4, %v14990_v44, 0.0 }
0x1be3   :  { %2810 = vadd.xlane.f32.xlu0 %v2809_v15 }
0x1bf0   :  { %2981 = vrot.lane.b32.xlu1 %v15977_v46, %s18726_s6 }
0x1bf4   :  { %3165 = vrot.lane.b32.xlu1 %v16024_v20, %s18716_s27 }
0x1bf8   :  { %3332 = vrot.lane.b32.xlu1 %v16024_v20, %s18723_s5 }
0x1bf9   :  { %2814 = vrot.lane.b32.xlu0 %v15977_v46, %s18727_s2 }
0x1bfc   :  { %3666 = vrot.lane.b32.xlu1 %v16024_v20, %s18726_s6 }
0x1bfd   :  { %3499 = vrot.lane.b32.xlu0 %v16024_v20, %s18727_s2 }
0x1c01   :  { %3059 = vrot.lane.b32.xlu0 %v16074_v53, %s18728_s20 }
0x1c64   :  { %v3162_v45 = vpop.xlane.xlu0 %3161 }
0x1c68   :  { %v3329_v50 = vpop.xlane.xlu1 %3328 }
0x1c6c   :  { %v3496_v48 = vpop.xlane.xlu0 %3495  ;;  %v3663_v55 = vpop.xlane.xlu1 %3662 }
0x1c70   :  { %v2811_v51 = vpop.xlane.xlu0 %2810  ;;  %v2982_v46 = vpop.permute.xlu1 %2981 }
0x1c71   :  { %14991 = vrcp.f32 %v2811_v51  ;;  %v3770_v51 = vrot.slane %v15964_v36, %v15833_v24 }
0x1c72   :  { %14993 = vrcp.f32 %v2978_v47 }
0x1c73   :  { %14995 = vrcp.f32 %v3162_v45 }
0x1c74   :  { %v2815_v59 = vpop.permute.xlu0 %2814  ;;  %14997 = vrcp.f32 %v3329_v50  ;;  %v3166_v53 = vpop.permute.xlu1 %3165 }
0x1c75   :  { %13489 = vmatpush3.msk.msra.mxu0 %vm639_vm5, %v2815_v59  ;;  %14999 = vrcp.f32 %v3496_v48 }
0x1c76   :  { %13498 = vmatprep.subr.mxu0 %v15132_v29  ;;  %15001 = vrcp.f32 %v3663_v55 }
0x1c78   :  { %v3333_v3 = vpop.permute.xlu1 %3332  ;;  %v3500_v8 = vpop.permute.xlu0 %3499 }
0x1c7b   :  { %v14992_v60 = vpop.eup %14991 }
0x1c7c   :  { %v2813_v20 = vmul.f32 %v14992_v60, %v14990_v44  ;;  %v14994_v61 = vpop.eup %14993  ;;  %v3667_v30 = vpop.permute.xlu1 %3666 }
0x1c7d   :  { %v2980_v63 = vmul.f32 %v14994_v61, %v16078_v17  ;;  %v14996_v0 = vpop.eup %14995 }
0x1c7e   :  { %13491 = vmatmul.mubr.msk.f32.vlgmr.msra.gmra.mrb[34].mxu0 %vm635_vm6, %v2813_v20  ;;  %v3164_v1 = vmul.f32 %v14996_v0, %v14982_v40  ;;  %v14998_v2 = vpop.eup %14997  ;;  %v3060_v40 = vpop.permute.xlu0 %3059 }
0x1c7f   :  { %13499 = vmatpush3.msk.msra.mxu0 %vm639_vm5, %v2982_v46  ;;  %13500 = vmatprep.mubr.msk.f32.mxu0 %vm15133_vm2, %v15132_v29  ;;  %v3331_v31 = vmul.f32 %v14998_v2, %v14984_v41  ;;  %v15000_v7 = vpop.eup %14999  ;;  %v3070_v44 = vsel %vm545_vm3, %v16013_v9, %v3060_v40  ;;  %v12087_v40 = vld [vmem:[%s18622_s9 + $0x80] sm:$0xff] }
0x1c80   :  { %13508 = vmatprep.subr.mxu0 %v15132_v29  ;;  %v3498_v17 = vmul.f32 %v15000_v7, %v14988_v34  ;;  %v15002_v10 = vpop.eup %15001 }
0x1c81   :  { %v3665_v32 = vmul.f32 %v15002_v10, %v16087_v42  ;;  %v12080_v10 = vld [vmem:[%s18620_s7 + $0x28] sm:$0xff] }
0x1c82   :  { %13501 = vmatmul.mubr.msk.f32.vlgmr.msra.gmra.mrb[36].mxu0 %vm635_vm6, %v2980_v63 }
0x1c83   :  { %13509 = vmatpush3.msk.msra.mxu0 %vm639_vm5, %v3166_v53  ;;  %13510 = vmatprep.mubr.msk.f32.mxu0 %vm15133_vm2, %v15132_v29 }
0x1c84   :  { %13518 = vmatprep.subr.mxu0 %v15132_v29 }
0x1c86   :  { %13511 = vmatmul.mubr.msk.f32.vlgmr.msra.gmra.mrb[38].mxu0 %vm635_vm6, %v3164_v1 }
0x1c87   :  { %13519 = vmatpush3.msk.msra.mxu0 %vm639_vm5, %v3333_v3  ;;  %13520 = vmatprep.mubr.msk.f32.mxu0 %vm15133_vm2, %v15132_v29 }
0x1c88   :  { %13528 = vmatprep.subr.mxu0 %v15132_v29 }
0x1c8a   :  { %13521 = vmatmul.mubr.msk.f32.vlgmr.msra.gmra.mrb[40].mxu0 %vm635_vm6, %v3331_v31 }
0x1c8b   :  { %13529 = vmatpush3.msk.msra.mxu0 %vm639_vm5, %v3500_v8  ;;  %13530 = vmatprep.mubr.msk.f32.mxu0 %vm15133_vm2, %v15132_v29 }
0x1c8c   :  { %13538 = vmatprep.subr.mxu0 %v15132_v29 }
0x1c8e   :  { %13531 = vmatmul.mubr.msk.f32.vlgmr.msra.gmra.mrb[42].mxu0 %vm635_vm6, %v3498_v17  ;;  %v12079_v17 = vld [vmem:[%s18620_s7 + $0x20] sm:$0xff] }
0x1c8f   :  { %13539 = vmatpush3.msk.msra.mxu0 %vm639_vm5, %v3667_v30  ;;  %13540 = vmatprep.mubr.msk.f32.mxu0 %vm15133_vm2, %v15132_v29  ;;  %v14106_v30 = vpack.c.bf16 %v12080_v10, %v12079_v17 }
0x1c91   :  { %14107 = vmatprep.subr.bf16.mxu0 %v14106_v30 }
0x1c92   :  { %13541 = vmatmul.mubr.msk.f32.vlgmr.msra.gmra.mrb[44].mxu0 %vm635_vm6, %v3665_v32  ;;  %v12081_v32 = vld [vmem:[%s18620_s7 + $0x30] sm:$0xff] }
0x1c93   :  { %14109 = vmatpush3.bf16.msra.mxu0 %v14106_v30 }
0x1d51   :  { %v2887_v11 = vpop.f32.mrb[34].mxu0 }
0x1d52   :  { %v13492_v12 = vpop.f32.mrb[35].mxu0 }
0x1d55   :  { %v3054_v13 = vpop.f32.mrb[36].mxu0 }
0x1d56   :  { %v13502_v56 = vpop.f32.mrb[37].mxu0 }
0x1d59   :  { %v3238_v23 = vpop.f32.mrb[38].mxu0 }
0x1d5a   :  { %v13512_v25 = vpop.f32.mrb[39].mxu0 }
0x1d5b   :  { %v3882_v25 = vrot.slane %v15964_v36, %v15864_v57 }
0x1d5d   :  { %v3405_v28 = vpop.f32.mrb[40].mxu0 }
0x1d5e   :  { %3744 = vrot.lane.b32.xlu0 %v3405_v28, %s18728_s20  ;;  %v13522_v33 = vpop.f32.mrb[41].mxu0 }
0x1d61   :  { %v3572_v35 = vpop.f32.mrb[42].mxu0 }
0x1d62   :  { %3063 = vrot.lane.b32.xlu0 %v2887_v11, %s18729_s15  ;;  %3748 = vrot.lane.b32.xlu1 %v3572_v35, %s18729_s15  ;;  %v13532_v37 = vpop.f32.mrb[43].mxu0  ;;  %v12082_v11 = vld [vmem:[%s18620_s7 + $0x38] sm:$0xff]  ;;  %s18742_s15 = sld [smem:[#allocation21_spill]] }
0x1d63   :  { %v14110_v12 = vpack.c.bf16 %v12082_v11, %v12081_v32 }
0x1d65   :  { %v3739_v38 = vpop.f32.mrb[44].mxu0  ;;  %14111 = vmatprep.subr.bf16.mxu0 %v14110_v12 }
0x1d66   :  { %3752 = vrot.lane.b32.xlu1 %v3739_v38, %s18730_s13  ;;  %v13542_v39 = vpop.f32.mrb[45].mxu0  ;;  %14113 = vmatpush3.bf16.msra.mxu0 %v14110_v12 }
0x1d6a   :  { %3067 = vrot.lane.b32.xlu1 %v3054_v13, %s18730_s13  ;;  %s18743_s13 = sld [smem:[#allocation18_spill]] }
0x1dd0   :  { %v3745_v54 = vpop.permute.xlu0 %3744 }
0x1dd1   :  { %v3755_v49 = vsel %vm545_vm3, %v3238_v23, %v3745_v54  ;;  %v12088_v54 = vld [vmem:[%s18622_s9 + $0x88] sm:$0xff] }
0x1dd4   :  { %v3749_v41 = vpop.permute.xlu1 %3748  ;;  %v3064_v6 = vpop.permute.xlu0 %3063 }
0x1dd5   :  { %v3756_v42 = vsel %vm1226_vm8, %v3755_v49, %v3749_v41  ;;  %v3071_v15 = vsel %vm1226_vm8, %v3070_v44, %v3064_v6  ;;  %v14114_v41 = vpack.c.bf16 %v12088_v54, %v12087_v40  ;;  %v12089_v49 = vld [vmem:[%s18622_s9 + $0x90] sm:$0xff]  ;;  %v12091_v6 = vld [vmem:[%s18622_s9 + $0xa0] sm:$0xff] }
0x1dd7   :  { %14115 = vmatprep.subr.bf16.mxu1 %v14114_v41 }
0x1dd8   :  { %v3753_v34 = vpop.permute.xlu1 %3752 }
0x1dd9   :  { %v3757_v43 = vsel %vm1228_vm9, %v3756_v42, %v3753_v34  ;;  %v12090_v42 = vld [vmem:[%s18622_s9 + $0x98] sm:$0xff] }
0x1dda   :  { %v3759_v45 = vrot.slane %v3757_v43, 3  ;;  %v14118_v34 = vpack.c.bf16 %v12090_v42, %v12089_v49  ;;  %v12092_v43 = vld [vmem:[%s18622_s9 + $0xa8] sm:$0xff] }
0x1ddb   :  { %v14122_v44 = vpack.c.bf16 %v12092_v43, %v12091_v6  ;;  %v15148_v43 = vmov 0.0|0.0  }
0x1ddc   :  { %v3068_v47 = vpop.permute.xlu1 %3067  ;;  %14146 = vmatprep.subr.bf16.mxu0 %v15148_v43 }
0x1ddd   :  { %v3072_v48 = vsel %vm1228_vm9, %v3071_v15, %v3068_v47  ;;  %v12093_v15 = vld [vmem:[%s18622_s9 + $0xb0] sm:$0xff] }
0x1dde   :  { %v3761_v50 = vsel %vm639_vm5, %v3072_v48, %v3759_v45  ;;  %v12095_v48 = vld [vmem:[%s18622_s9 + $0xc0] sm:$0xff] }
0x1ddf   :  { %13551 = vmatprep.mubr.msk.f32.mxu1 %vm409_vm0, %v3761_v50  ;;  %v12096_v50 = vld [vmem:[%s18622_s9 + $0xc8] sm:$0xff] }
0x1de0   :  { %13552 = vmatmul.mubr.msk.f32.vlgmr.msra.gmra.mrb[40].mxu1 %vm409_vm0, %v3759_v45  ;;  %v12094_v45 = vld [vmem:[%s18622_s9 + $0xb8] sm:$0xff] }
0x1de1   :  { %14117 = vmatpush3.bf16.msra.mxu1 %v14114_v41  ;;  %v14126_v47 = vpack.c.bf16 %v12094_v45, %v12093_v15  ;;  %v4132_v15 = vld [vmem:[%s18624_s11 + $0x18] sm:$0xff]  ;;  %v12132_v45 = vld [vmem:[%s18710_s29 + $0x380] sm:$0xff] }
0x1de2   :  { %14119 = vmatprep.subr.bf16.mxu1 %v14118_v34 }
0x1de5   :  { %14121 = vmatpush3.bf16.msra.mxu1 %v14118_v34  ;;  %v4130_v34 = vld [vmem:[%s18624_s11 + $0x8] sm:$0xff] }
0x1de6   :  { %14123 = vmatprep.subr.bf16.mxu1 %v14122_v44 }
0x1de9   :  { %14125 = vmatpush3.bf16.msra.mxu1 %v14122_v44  ;;  %v4131_v44 = vld [vmem:[%s18624_s11 + $0x10] sm:$0xff] }
0x1dea   :  { %14127 = vmatprep.subr.bf16.mxu1 %v14126_v47 }
0x1ded   :  { %14129 = vmatpush3.bf16.msra.mxu1 %v14126_v47  ;;  %v14150_v47 = vpack.c.bf16 %v4132_v15, %v4131_v44  ;;  %v12107_v44 = vld [vmem:[%s18711_s25 + $0x78] sm:$0xff]  ;;  %v12106_v15 = vld [vmem:[%s18711_s25 + $0x70] sm:$0xff] }
0x1eb3   :  { %v13553_v55 = vpop.f32.mrb[40].mxu1 }
0x1eb4   :  { %v3848_v59 = vadd.f32 %v13553_v55, %v3770_v51  ;;  %v3842_v46 = vpop.f32.mrb[41].mxu1  ;;  %v14130_v55 = vpack.c.bf16 %v12096_v50, %v12095_v48  ;;  %v12133_v48 = vld [vmem:[%s18710_s29 + $0x388] sm:$0xff] }
0x1eb5   :  { %v3843_v60 = vadd.f32 %v3842_v46, %v3770_v51  ;;  %v12097_v51 = vld [vmem:[%s18622_s9 + $0xd0] sm:$0xff]  ;;  %v14152_v50 = vpack.c.bf16 %v12133_v48, %v12132_v45  ;;  %v12113_v45 = vld [vmem:[%s18711_s25 + $0xa8] sm:$0x3] }
0x1eb6   :  { %v3852_v9 = vadd.f32 %v3848_v59, %v15936_v4  ;;  %v12098_v59 = vld [vmem:[%s18622_s9 + $0xd8] sm:$0xff]  ;;  %14131 = vmatprep.subr.bf16.mxu1 %v14130_v55 }
0x1eb7   :  { %v16167_v20 = vadd.f32 %v3843_v60, %v15938_v5  ;;  %v14134_v46 = vpack.c.bf16 %v12098_v59, %v12097_v51  ;;  %v12099_v60 = vld [vmem:[%s18622_s9 + $0xe0] sm:$0xff]  ;;  %14133 = vmatpush3.bf16.msra.mxu1 %v14130_v55  ;;  %v12165_v55 = vld [vmem:[%s18710_s29 + $0x488] sm:$0xff] }
0x1eb8   :  { %v3856_v61 = vsel %vm413_vm1, %v3852_v9, 0.0  ;;  %v12164_v51 = vld [vmem:[%s18710_s29 + $0x480] sm:$0xff] }
0x1eb9   :  { %3857 = vadd.xlane.f32.xlu1 %v3856_v61  ;;  %v3853_v53 = vsel %vm409_vm0, %v16167_v20, 0.0  ;;  %14135 = vmatprep.subr.bf16.mxu1 %v14134_v46  ;;  %v14184_v59 = vpack.c.bf16 %v12165_v55, %v12164_v51  ;;  %v4100_v55 = vld [vmem:[%s18623_s10] sm:$0x7] }
0x1eba   :  { %3854 = vadd.xlane.f32.xlu0 %v3853_v53  ;;  %v12101_v53 = vld [vmem:[%s18622_s9 + $0xf0] sm:$0xff] }
0x1ebb   :  { %14137 = vmatpush3.bf16.msra.mxu1 %v14134_v46  ;;  %v12148_v46 = vld [vmem:[%s18710_s29 + $0x400] sm:$0xff] }
0x1f46   :  { %v3858_v63 = vpop.xlane.xlu1 %3857 }
0x1f47   :  { %v3860_v0 = vmul.f32 0.03125, %v3858_v63  ;;  %v3855_v1 = vpop.xlane.xlu0 %3854  ;;  %v12102_v63 = vld [vmem:[%s18622_s9 + $0xf8] sm:$0xff] }
0x1f48   :  { %v3859_v2 = vmul.f32 0.03125, %v3855_v1  ;;  %v12084_v1 = vld [vmem:[%s18621_s8 + $0x1] ss:$0 sm:$0xff] }
0x1f49   :  { %v3862_v3 = vsub.f32 %v3852_v9, %v3860_v0  ;;  %v12100_v9 = vld [vmem:[%s18622_s9 + $0xe8] sm:$0xff]  ;;  %v14142_v0 = vpack.c.bf16 %v12102_v63, %v12101_v53  ;;  %v12167_v53 = vld [vmem:[%s18710_s29 + $0x498] sm:$0xff] }
0x1f4a   :  { %v3861_v31 = vsub.f32 %v16167_v20, %v3859_v2  ;;  %v14138_v61 = vpack.c.bf16 %v12100_v9, %v12099_v60  ;;  %v12149_v60 = vld [vmem:[%s18710_s29 + $0x408] sm:$0xff] }
0x1f4b   :  { %v3864_v8 = vmul.f32 %v3862_v3, %v3862_v3  ;;  %v14186_v9 = vpack.c.bf16 %v12149_v60, %v12148_v46 }
0x1f4c   :  { %v3863_v7 = vmul.f32 %v3861_v31, %v3861_v31  ;;  %14139 = vmatprep.subr.bf16.mxu1 %v14138_v61 }
0x1f4d   :  { %v3868_v5 = vsel %vm413_vm1, %v3864_v8, 0.0  ;;  %14141 = vmatpush3.bf16.msra.mxu1 %v14138_v61  ;;  %v12166_v61 = vld [vmem:[%s18710_s29 + $0x490] sm:$0xff] }
0x1f4e   :  { %v3865_v4 = vsel %vm409_vm0, %v3863_v7, 0.0  ;;  %14143 = vmatprep.subr.bf16.mxu1 %v14142_v0  ;;  %v14188_v63 = vpack.c.bf16 %v12167_v53, %v12166_v61  ;;  %v12116_v61 = vld [vmem:[%s18710_s29 + $0x300] sm:$0xff]  ;;  %v12117_v53 = vld [vmem:[%s18710_s29 + $0x308] sm:$0xff] }
0x1f4f   :  { %3866 = vadd.xlane.f32.xlu0 %v3865_v4 }
0x1f51   :  { %14145 = vmatpush3.bf16.msra.mxu1 %v14142_v0  ;;  %v12150_v0 = vld [vmem:[%s18710_s29 + $0x410] sm:$0xff] }
0x1f52   :  { %14185 = vmatprep.subr.bf16.mxu1 %v14184_v59  ;;  %v4122_v59 = vrot.slane %v4100_v55, %v15623_v16 }
0x1f53   :  { %3869 = vadd.xlane.f32.xlu0 %v3868_v5 }
0x1fdc   :  { %v3867_v13 = vpop.xlane.xlu0 %3866 }
0x1fdd   :  { %v3871_v19 = vmul.f32 0.03125, %v3867_v13 }
0x1fdf   :  { %v3873_v21 = vadd.f32 1e-12, %v3871_v19 }
0x1fe0   :  { %v3870_v56 = vpop.xlane.xlu0 %3869 }
0x1fe1   :  { %15003 = vrsqrt.f32 %v3873_v21  ;;  %v3872_v22 = vmul.f32 0.03125, %v3870_v56 }
0x1fe3   :  { %v3874_v23 = vadd.f32 1e-12, %v3872_v22 }
0x1fe5   :  { %15005 = vrsqrt.f32 %v3874_v23 }
0x1feb   :  { %v15004_v26 = vpop.eup %15003 }
0x1fec   :  { %v3877_v52 = vmul.f32 %v15004_v26, %v3861_v31 }
0x1fee   :  { %v3883_v28 = vmul.f32 %v3882_v25, %v3877_v52 }
0x1fef   :  { %v15006_v33 = vpop.eup %15005 }
0x1ff0   :  { %v3878_v35 = vmul.f32 %v15006_v33, %v3862_v3  ;;  %v3889_v37 = vadd.f32 %v3888_v27, %v3883_v28  ;;  %v4098_v28 = vrot.slane %v15964_v36, %v15930_v62 }
0x1ff2   :  { %v3884_v38 = vmul.f32 %v3882_v25, %v3878_v35  ;;  %13562 = vmatprep.mubr.msk.f32.mxu0 %vm409_vm0, %v3889_v37 }
0x1ff4   :  { %v3890_v39 = vadd.f32 %v3888_v27, %v3884_v38 }
0x1ff6   :  { %13563 = vmatmul.mubr.msk.f32.vlgmr.msra.gmra.mrb[46].mxu0 %vm409_vm0, %v3890_v39 }
0x1ff7   :  { %13608 = vmatprep.mubr.msk.f32.mxu0 %vm15133_vm2, %v15132_v29 }
0x20c9   :  { %v13564_v2 = vpop.f32.mrb[46].mxu0 }
0x20ca   :  { %v3982_v3 = vadd.f32 %v13564_v2, %v12084_v1  ;;  %v3976_v31 = vpop.f32.mrb[47].mxu0 }
0x20cb   :  { %v3977_v7 = vadd.f32 %v12084_v1, %v3976_v31  ;;  %v12151_v1 = vld [vmem:[%s18710_s29 + $0x418] sm:$0xff]  ;;  %v12169_v31 = vld [vmem:[%s18710_s29 + $0x4a8] sm:$0xff] }
0x20cc   :  { %v3986_v4 = vmul.f32 %v3982_v3, %v3982_v3  ;;  %v14190_v2 = vpack.c.bf16 %v12151_v1, %v12150_v0  ;;  %v12135_v0 = vld [vmem:[%s18710_s29 + $0x398] sm:$0xff] }
0x20cd   :  { %v3985_v8 = vmul.f32 %v3977_v7, %v3977_v7 }
0x20ce   :  { %v3988_v5 = vmul.f32 %v3986_v4, %v3982_v3  ;;  %v12152_v4 = vld [vmem:[%s18710_s29 + $0x420] sm:$0xff] }
0x20cf   :  { %v3987_v17 = vmul.f32 %v3985_v8, %v3977_v7  ;;  %v12153_v8 = vld [vmem:[%s18710_s29 + $0x428] sm:$0xff] }
0x20d0   :  { %v3990_v10 = vmul.f32 0.044715, %v3988_v5  ;;  %v14194_v5 = vpack.c.bf16 %v12153_v8, %v12152_v4  ;;  %v12105_v4 = vld [vmem:[%s18711_s25 + $0x68] sm:$0xff]  ;;  %v12136_v8 = vld [vmem:[%s18710_s29 + $0x3a0] sm:$0xff] }
0x20d1   :  { %v3989_v30 = vmul.f32 0.044715, %v3987_v17  ;;  %v12170_v17 = vld [vmem:[%s18710_s29 + $0x4b0] sm:$0xff] }
0x20d2   :  { %v3992_v32 = vadd.f32 %v3990_v10, %v3982_v3  ;;  %v12171_v10 = vld [vmem:[%s18710_s29 + $0x4b8] sm:$0xff] }
0x20d3   :  { %v3991_v11 = vadd.f32 %v3989_v30, %v3977_v7  ;;  %v14196_v30 = vpack.c.bf16 %v12171_v10, %v12170_v17 }
0x20d4   :  { %v3994_v12 = vmul.f32 0.7978846, %v3992_v32  ;;  %v12154_v32 = vld [vmem:[%s18710_s29 + $0x430] sm:$0xff] }
0x20d5   :  { %v3993_v13 = vmul.f32 0.7978846, %v3991_v11  ;;  %v12155_v11 = vld [vmem:[%s18710_s29 + $0x438] sm:$0xff] }
0x20d6   :  { %15007 = vtanh.f32 %v3994_v12  ;;  %v14198_v12 = vpack.c.bf16 %v12155_v11, %v12154_v32  ;;  %v12121_v32 = vld [vmem:[%s18710_s29 + $0x328] sm:$0xff]  ;;  %v12138_v11 = vld [vmem:[%s18710_s29 + $0x3b0] sm:$0xff] }
0x20d7   :  { %15009 = vtanh.f32 %v3993_v13  ;;  %v12172_v13 = vld [vmem:[%s18710_s29 + $0x4c0] sm:$0xff] }
0x20e0   :  { %v15008_v19 = vpop.eup %15007 }
0x20e1   :  { %v15010_v21 = vpop.eup %15009  ;;  %v3998_v56 = vadd.f32 1.0, %v15008_v19  ;;  %v12173_v19 = vld [vmem:[%s18710_s29 + $0x4c8] sm:$0xff] }
0x20e2   :  { %v3997_v22 = vadd.f32 1.0, %v15010_v21  ;;  %v14200_v21 = vpack.c.bf16 %v12173_v19, %v12172_v13 }
0x20e3   :  { %v4000_v23 = vmul.f32 0.5, %v3998_v56  ;;  %v12156_v56 = vld [vmem:[%s18710_s29 + $0x440] sm:$0xff] }
0x20e4   :  { %v3999_v25 = vmul.f32 0.5, %v3997_v22  ;;  %v12157_v22 = vld [vmem:[%s18710_s29 + $0x448] sm:$0xff] }
0x20e5   :  { %v4002_v52 = vmul.f32 %v4000_v23, %v3982_v3  ;;  %v12168_v3 = vld [vmem:[%s18710_s29 + $0x4a0] sm:$0xff]  ;;  %v14202_v23 = vpack.c.bf16 %v12157_v22, %v12156_v56  ;;  %v12123_v56 = vld [vmem:[%s18710_s29 + $0x338] sm:$0xff] }
0x20e6   :  { %v4001_v26 = vmul.f32 %v3999_v25, %v3977_v7  ;;  %v14192_v7 = vpack.c.bf16 %v12169_v31, %v12168_v3  ;;  %v12174_v25 = vld [vmem:[%s18710_s29 + $0x4d0] sm:$0xff]  ;;  %v12140_v22 = vld [vmem:[%s18710_s29 + $0x3c0] sm:$0xff] }
0x20e7   :  { %v12118_v31 = vld [vmem:[%s18710_s29 + $0x310] sm:$0xff] }
0x20e8   :  { %13597 = vmatprep.mubr.f32.mxu1 %v4001_v26  ;;  %v12175_v26 = vld [vmem:[%s18710_s29 + $0x4d8] sm:$0xff] }
0x20e9   :  { %13598 = vmatmul.mubr.f32.vlgmr.msra.gmra.mrb[42].mxu1 %v4002_v52  ;;  %v14204_v52 = vpack.c.bf16 %v12175_v26, %v12174_v25 }
0x20ea   :  { %14187 = vmatpush3.bf16.msra.mxu1 %v14186_v9  ;;  %4464 = vmatprep.mubr.f32.mxu1 %v12107_v44  ;;  %v4127_v9 = vrot.slane %v4100_v55, %v15631_v18 }
0x20eb   :  { %14189 = vmatprep.subr.bf16.mxu1 %v14188_v63  ;;  %v12134_v63 = vld [vmem:[%s18710_s29 + $0x390] sm:$0xff] }
0x20ec   :  { %v14156_v3 = vpack.c.bf16 %v12135_v0, %v12134_v63  ;;  %v12182_v0 = vld [vmem:[%s18710_s29 + $0x510] sm:$0xff] }
0x20ee   :  { %14191 = vmatpush3.bf16.msra.mxu1 %v14190_v2 }
0x20ef   :  { %14193 = vmatprep.subr.bf16.mxu1 %v14192_v7  ;;  %v12119_v7 = vld [vmem:[%s18710_s29 + $0x318] sm:$0xff] }
0x20f0   :  { %v14158_v17 = vpack.c.bf16 %v12119_v7, %v12118_v31  ;;  %v12110_v7 = vld [vmem:[%s18711_s25 + $0x90] sm:$0x3] }
0x20f2   :  { %14195 = vmatpush3.bf16.msra.mxu1 %v14194_v5  ;;  %v12137_v5 = vld [vmem:[%s18710_s29 + $0x3a8] sm:$0xff] }
0x20f3   :  { %14197 = vmatprep.subr.bf16.mxu1 %v14196_v30  ;;  %v14160_v10 = vpack.c.bf16 %v12137_v5, %v12136_v8  ;;  %v12120_v30 = vld [vmem:[%s18710_s29 + $0x320] sm:$0xff]  ;;  %v12185_v5 = vld [vmem:[%s18710_s29 + $0x528] sm:$0xff] }
0x20f4   :  { %v14162_v13 = vpack.c.bf16 %v12121_v32, %v12120_v30  ;;  %v12184_v8 = vld [vmem:[%s18710_s29 + $0x520] sm:$0xff]  ;;  %v12203_v30 = vld [vmem:[%s18710_s29 + $0x5b8] sm:$0xff] }
0x20f5   :  { %v14226_v32 = vpack.c.bf16 %v12185_v5, %v12184_v8 }
0x20f6   :  { %14199 = vmatpush3.bf16.msra.mxu1 %v14198_v12  ;;  %v12139_v12 = vld [vmem:[%s18710_s29 + $0x3b8] sm:$0xff] }
0x20f7   :  { %14201 = vmatprep.subr.bf16.mxu1 %v14200_v21  ;;  %v14164_v19 = vpack.c.bf16 %v12139_v12, %v12138_v11  ;;  %v12122_v21 = vld [vmem:[%s18710_s29 + $0x330] sm:$0xff] }
0x20f8   :  { %v14166_v25 = vpack.c.bf16 %v12123_v56, %v12122_v21  ;;  %v12186_v12 = vld [vmem:[%s18710_s29 + $0x530] sm:$0xff]  ;;  %v12205_v21 = vld [vmem:[%s18710_s29 + $0x5c8] sm:$0xff] }
0x20fa   :  { %14203 = vmatpush3.bf16.msra.mxu1 %v14202_v23  ;;  %v12141_v23 = vld [vmem:[%s18710_s29 + $0x3c8] sm:$0xff] }
0x20fb   :  { %14205 = vmatprep.subr.bf16.mxu1 %v14204_v52  ;;  %v14168_v26 = vpack.c.bf16 %v12141_v23, %v12140_v22  ;;  %v12124_v52 = vld [vmem:[%s18710_s29 + $0x340] sm:$0xff] }
0x20fc   :  { %v12188_v23 = vld [vmem:[%s18710_s29 + $0x540] sm:$0xff] }
0x21bc   :  { %v13599_v27 = vpop.f32.mrb[42].mxu1 }
0x21bd   :  { %v4086_v33 = vpop.f32.mrb[43].mxu1  ;;  %v12158_v27 = vld [vmem:[%s18710_s29 + $0x450] sm:$0xff] }
0x21be   :  { %v4094_v35 = vadd.f32 %v4086_v33, %v16167_v20  ;;  %v4129_v20 = vld [vmem:[%s18624_s11] sm:$0xff]  ;;  %s18736_s11 = sld [smem:[#allocation14_spill]] }
0x21bf   :  { %v14147_v6 = vpack.c.bf16 %v4130_v34, %v4129_v20  ;;  %v12162_v20 = vld [vmem:[%s18710_s29 + $0x470] sm:$0xff]  ;;  %v12163_v34 = vld [vmem:[%s18710_s29 + $0x478] sm:$0xff] }
0x21c0   :  { %v4099_v37 = vadd.f32 %v4098_v28, %v4094_v35  ;;  %v12159_v28 = vld [vmem:[%s18710_s29 + $0x458] sm:$0xff]  ;;  %v12176_v35 = vld [vmem:[%s18710_s29 + $0x4e0] sm:$0xff] }
0x21c1   :  { %14148 = vmatpush3.bf16.msra.mxu0 %v14147_v6  ;;  %v14206_v33 = vpack.c.bf16 %v12159_v28, %v12158_v27  ;;  %v14214_v6 = vpack.c.bf16 %v12163_v34, %v12162_v20  ;;  %v12125_v27 = vld [vmem:[%s18710_s29 + $0x348] sm:$0xff]  ;;  %v12142_v28 = vld [vmem:[%s18710_s29 + $0x3d0] sm:$0xff] }
0x21c2   :  { %v4102_v38 = vrot.slane %v4099_v37, 4  ;;  %14149 = vmatprep.subr.bf16.mxu0 %v15148_v43  ;;  %v12129_v20 = vld [vmem:[%s18710_s29 + $0x368] sm:$0xff]  ;;  %v12146_v34 = vld [vmem:[%s18710_s29 + $0x3f0] sm:$0xff] }
0x21c3   :  { %14207 = vmatpush3.bf16.msra.mxu1 %v14206_v33  ;;  %v12143_v33 = vld [vmem:[%s18710_s29 + $0x3d8] sm:$0xff] }
0x21c4   :  { %v4105_v39 = vsel %vm4104_vm10, %v4099_v37, %v4102_v38  ;;  %v12177_v37 = vld [vmem:[%s18710_s29 + $0x4e8] sm:$0xff] }
0x21c5   :  { %v4106_v40 = vsel %vm413_vm1, %v4105_v39, 0.0  ;;  %14151 = vmatpush3.bf16.msra.mxu0 %v14150_v47  ;;  %v14208_v38 = vpack.c.bf16 %v12177_v37, %v12176_v35  ;;  %v12112_v47 = vld [vmem:[%s18711_s25 + $0xa0] sm:$0x3]  ;;  %v14170_v35 = vpack.c.bf16 %v12125_v27, %v12124_v52  ;;  %v14172_v37 = vpack.c.bf16 %v12143_v33, %v12142_v28  ;;  %v12207_v52 = vld [vmem:[%s18710_s29 + $0x5d8] sm:$0xff]  ;;  %v12190_v33 = vld [vmem:[%s18710_s29 + $0x550] sm:$0xff] }
0x21c6   :  { %4107 = vadd.xlane.f32.xlu0 %v4106_v40  ;;  %14153 = vmatprep.subr.bf16.mxu0 %v14152_v50  ;;  %v12161_v40 = vld [vmem:[%s18710_s29 + $0x468] sm:$0xff] }
0x21c7   :  { %14209 = vmatprep.subr.bf16.mxu1 %v14208_v38  ;;  %v12126_v38 = vld [vmem:[%s18710_s29 + $0x350] sm:$0xff] }
0x2253   :  { %v4108_v54 = vpop.xlane.xlu0 %4107 }
0x2254   :  { %v4109_v41 = vmul.f32 0.03125, %v4108_v54 }
0x2256   :  { %v16251_v49 = vsub.f32 %v4105_v39, %v4109_v41  ;;  %v12160_v39 = vld [vmem:[%s18710_s29 + $0x460] sm:$0xff]  ;;  %v12178_v41 = vld [vmem:[%s18710_s29 + $0x4f0] sm:$0xff] }
0x2257   :  { %v14210_v54 = vpack.c.bf16 %v12161_v40, %v12160_v39  ;;  %v12127_v39 = vld [vmem:[%s18710_s29 + $0x358] sm:$0xff]  ;;  %v12144_v40 = vld [vmem:[%s18710_s29 + $0x3e0] sm:$0xff] }
0x2258   :  { %v4111_v42 = vmul.f32 %v16251_v49, %v16251_v49 }
0x2259   :  { %14211 = vmatpush3.bf16.msra.mxu1 %v14210_v54  ;;  %v12145_v54 = vld [vmem:[%s18710_s29 + $0x3e8] sm:$0xff] }
0x225a   :  { %v4112_v36 = vsel %vm413_vm1, %v4111_v42, 0.0  ;;  %v12179_v42 = vld [vmem:[%s18710_s29 + $0x4f8] sm:$0xff] }
0x225b   :  { %4113 = vadd.xlane.f32.xlu1 %v4112_v36  ;;  %v14212_v36 = vpack.c.bf16 %v12179_v42, %v12178_v41  ;;  %v14174_v41 = vpack.c.bf16 %v12127_v39, %v12126_v38  ;;  %v14176_v42 = vpack.c.bf16 %v12145_v54, %v12144_v40  ;;  %v12209_v38 = vld [vmem:[%s18710_s29 + $0x5e8] sm:$0xff]  ;;  %v12192_v54 = vld [vmem:[%s18710_s29 + $0x560] sm:$0xff] }
0x225d   :  { %14213 = vmatprep.subr.bf16.mxu1 %v14212_v36  ;;  %v12128_v36 = vld [vmem:[%s18710_s29 + $0x360] sm:$0xff] }
0x225e   :  { %14215 = vmatpush3.bf16.msra.mxu1 %v14214_v6  ;;  %v12147_v6 = vld [vmem:[%s18710_s29 + $0x3f8] sm:$0xff]  ;;  %v14178_v44 = vpack.c.bf16 %v12129_v20, %v12128_v36 }
0x225f   :  { %v12211_v36 = vld [vmem:[%s18710_s29 + $0x5f8] sm:$0xff] }
0x2261   :  { %4465 = vmatmul.mubr.f32.vlgmr.msra.gmra.mrb[44].mxu1 %v12106_v15  ;;  %v14180_v15 = vpack.c.bf16 %v12147_v6, %v12146_v34  ;;  %v12194_v6 = vld [vmem:[%s18710_s29 + $0x570] sm:$0xff] }
0x2262   :  { %4469 = vmatprep.mubr.f32.mxu1 %v12113_v45  ;;  %v12130_v45 = vld [vmem:[%s18710_s29 + $0x370] sm:$0xff] }
0x2265   :  { %4470 = vmatmul.mubr.f32.gmra.mrb[46].mxu1 %v12112_v47  ;;  %v12131_v47 = vld [vmem:[%s18710_s29 + $0x378] sm:$0xff] }
0x22e8   :  { %v4114_v48 = vpop.xlane.xlu1 %4113 }
0x22e9   :  { %v4115_v50 = vmul.f32 0.03125, %v4114_v48  ;;  %v12196_v48 = vld [vmem:[%s18710_s29 + $0x580] sm:$0xff] }
0x22eb   :  { %v4116_v51 = vadd.f32 1e-12, %v4115_v50  ;;  %v12197_v50 = vld [vmem:[%s18710_s29 + $0x588] sm:$0xff] }
0x22ec   :  { %v14216_v55 = vpack.c.bf16 %v12197_v50, %v12196_v48  ;;  %v12114_v48 = vld [vmem:[%s18711_s25 + $0xb0] sm:$0x3] }
0x22ed   :  { %15011 = vrsqrt.f32 %v4116_v51  ;;  %v14182_v51 = vpack.c.bf16 %v12131_v47, %v12130_v45  ;;  %v12108_v45 = vld [vmem:[%s18711_s25 + $0x80] sm:$0xff]  ;;  %v12115_v47 = vld [vmem:[%s18711_s25 + $0xb8] sm:$0x3] }
0x22f7   :  { %v15012_v46 = vpop.eup %15011 }
0x22f8   :  { %v4118_v60 = vmul.f32 %v15012_v46, %v16251_v49  ;;  %v14154_v49 = vpack.c.bf16 %v12117_v53, %v12116_v61  ;;  %v12181_v46 = vld [vmem:[%s18710_s29 + $0x508] sm:$0xff]  ;;  %v12104_v61 = vld [vmem:[%s18711_s25 + $0x60] sm:$0xff] }
0x22fa   :  { %v4123_v1 = vmul.f32 %v4122_v59, %v4118_v60  ;;  %v12180_v59 = vld [vmem:[%s18710_s29 + $0x500] sm:$0xff]  ;;  %v12198_v60 = vld [vmem:[%s18710_s29 + $0x590] sm:$0xff] }
0x22fb   :  { %v14218_v53 = vpack.c.bf16 %v12181_v46, %v12180_v59 }
0x22fc   :  { %v4128_v2 = vadd.f32 %v4127_v9, %v4123_v1  ;;  %v12199_v9 = vld [vmem:[%s18710_s29 + $0x598] sm:$0xff] }
0x22fd   :  { %v14220_v63 = vpack.c.bf16 %v12199_v9, %v12198_v60  ;;  %v12183_v1 = vld [vmem:[%s18710_s29 + $0x518] sm:$0xff] }
0x22fe   :  { %13609 = vmatmul.mubr.msk.f32.vlgmr.msra.gmra.mrb[48].mxu0 %vm409_vm0, %v4128_v2  ;;  %v12200_v2 = vld [vmem:[%s18710_s29 + $0x5a0] sm:$0xff]  ;;  %v14222_v31 = vpack.c.bf16 %v12183_v1, %v12182_v0 }
0x22ff   :  { %14155 = vmatpush3.bf16.msra.mxu0 %v14154_v49  ;;  %4389 = vmatprep.mubr.f32.mxu0 %v12105_v4  ;;  %v12111_v49 = vld [vmem:[%s18711_s25 + $0x98] sm:$0x3] }
0x2300   :  { %14157 = vmatprep.subr.bf16.mxu0 %v14156_v3  ;;  %v12201_v3 = vld [vmem:[%s18710_s29 + $0x5a8] sm:$0xff] }
0x2301   :  { %v14224_v4 = vpack.c.bf16 %v12201_v3, %v12200_v2  ;;  %v12213_v3 = vld [vmem:[%s18712_s24 + $0x18] sm:$0x3] }
0x2303   :  { %14159 = vmatpush3.bf16.msra.mxu0 %v14158_v17  ;;  %v12109_v17 = vld [vmem:[%s18711_s25 + $0x88] sm:$0xff] }
0x2304   :  { %14161 = vmatprep.subr.bf16.mxu0 %v14160_v10  ;;  %v12202_v10 = vld [vmem:[%s18710_s29 + $0x5b0] sm:$0xff] }
0x2305   :  { %v14228_v11 = vpack.c.bf16 %v12203_v30, %v12202_v10 }
0x2307   :  { %14163 = vmatpush3.bf16.msra.mxu0 %v14162_v13  ;;  %v12187_v13 = vld [vmem:[%s18710_s29 + $0x538] sm:$0xff] }
0x2308   :  { %14165 = vmatprep.subr.bf16.mxu0 %v14164_v19  ;;  %v12204_v19 = vld [vmem:[%s18710_s29 + $0x5c0] sm:$0xff]  ;;  %v14230_v56 = vpack.c.bf16 %v12187_v13, %v12186_v12 }
0x2309   :  { %v14232_v22 = vpack.c.bf16 %v12205_v21, %v12204_v19 }
0x230b   :  { %14167 = vmatpush3.bf16.msra.mxu0 %v14166_v25  ;;  %v12189_v25 = vld [vmem:[%s18710_s29 + $0x548] sm:$0xff] }
0x230c   :  { %14169 = vmatprep.subr.bf16.mxu0 %v14168_v26  ;;  %v12206_v26 = vld [vmem:[%s18710_s29 + $0x5d0] sm:$0xff]  ;;  %v14234_v27 = vpack.c.bf16 %v12189_v25, %v12188_v23 }
0x230d   :  { %v14236_v28 = vpack.c.bf16 %v12207_v52, %v12206_v26 }
0x230f   :  { %14171 = vmatpush3.bf16.msra.mxu0 %v14170_v35  ;;  %v12191_v35 = vld [vmem:[%s18710_s29 + $0x558] sm:$0xff] }
0x2310   :  { %14173 = vmatprep.subr.bf16.mxu0 %v14172_v37  ;;  %v12208_v37 = vld [vmem:[%s18710_s29 + $0x5e0] sm:$0xff]  ;;  %v14238_v39 = vpack.c.bf16 %v12191_v35, %v12190_v33 }
0x2311   :  { %v14240_v40 = vpack.c.bf16 %v12209_v38, %v12208_v37  ;;  %v12215_v38 = vld [vmem:[%s18713_s3 + $0x40] sm:$0xff] }
0x2313   :  { %14175 = vmatpush3.bf16.msra.mxu0 %v14174_v41  ;;  %v12193_v41 = vld [vmem:[%s18710_s29 + $0x568] sm:$0xff] }
0x2314   :  { %14177 = vmatprep.subr.bf16.mxu0 %v14176_v42  ;;  %v12210_v42 = vld [vmem:[%s18710_s29 + $0x5f0] sm:$0xff]  ;;  %v14242_v20 = vpack.c.bf16 %v12193_v41, %v12192_v54  ;;  %v12218_v41 = vld [vmem:[%s18713_s3 + $0x58] sm:$0xff] }
0x2315   :  { %v14244_v34 = vpack.c.bf16 %v12211_v36, %v12210_v42  ;;  %v12217_v54 = vld [vmem:[%s18713_s3 + $0x50] sm:$0xff] }
0x2316   :  { %v14252_v42 = vpack.c.bf16 %v12218_v41, %v12217_v54 }
0x2317   :  { %14179 = vmatpush3.bf16.msra.mxu0 %v14178_v44  ;;  %v12195_v44 = vld [vmem:[%s18710_s29 + $0x578] sm:$0xff]  ;;  %s18733_s29 = smov 16  }
0x2318   :  { %14181 = vmatprep.subr.bf16.mxu0 %v14180_v15  ;;  %v14246_v15 = vpack.c.bf16 %v12195_v44, %v12194_v6 }
0x231b   :  { %14183 = vmatpush3.bf16.msra.mxu0 %v14182_v51 }
0x231c   :  { %14217 = vmatprep.subr.bf16.mxu0 %v14216_v55 }
0x231e   :  { %4390 = vmatmul.mubr.f32.vlgmr.msra.gmra.mrb[50].mxu0 %v12104_v61 }
0x231f   :  { %14219 = vmatpush3.bf16.msra.mxu0 %v14218_v53  ;;  %4394 = vmatprep.mubr.f32.mxu0 %v12111_v49 }
0x2320   :  { %14221 = vmatprep.subr.bf16.mxu0 %v14220_v63  ;;  %v12212_v63 = vld [vmem:[%s18712_s24 + $0x10] sm:$0xff] }
0x2322   :  { %4395 = vmatmul.mubr.f32.gmra.mrb[52].mxu0 %v12110_v7 }
0x2323   :  { %14223 = vmatpush3.bf16.msra.mxu0 %v14222_v31  ;;  %4539 = vmatprep.mubr.f32.mxu0 %v12109_v17 }
0x2324   :  { %14225 = vmatprep.subr.bf16.mxu0 %v14224_v4 }
0x2327   :  { %14227 = vmatpush3.bf16.msra.mxu0 %v14226_v32 }
0x2328   :  { %14229 = vmatprep.subr.bf16.mxu0 %v14228_v11 }
0x232b   :  { %14231 = vmatpush3.bf16.msra.mxu0 %v14230_v56 }
0x232c   :  { %14233 = vmatprep.subr.bf16.mxu0 %v14232_v22 }
0x232f   :  { %14235 = vmatpush3.bf16.msra.mxu0 %v14234_v27 }
0x2330   :  { %14237 = vmatprep.subr.bf16.mxu0 %v14236_v28 }
0x2333   :  { %14239 = vmatpush3.bf16.msra.mxu0 %v14238_v39  ;;  %v12216_v39 = vld [vmem:[%s18713_s3 + $0x48] sm:$0xff] }
0x2334   :  { %14241 = vmatprep.subr.bf16.mxu0 %v14240_v40  ;;  %v13088_v50 = vpop.f32.mrb[44].mxu1  ;;  %v14248_v40 = vpack.c.bf16 %v12216_v39, %v12215_v38 }
0x2335   :  { %v13089_v51 = vpop.f32.mrb[45].mxu1 }
0x2336   :  { %v13090_v55 = vadd.f32 %v13089_v51, %v13088_v50  ;;  %14249 = vmatprep.subr.bf16.mxu1 %v14248_v40 }
0x2337   :  { %14243 = vmatpush3.bf16.msra.mxu0 %v14242_v20  ;;  %14251 = vmatpush3.bf16.msra.mxu1 %v14248_v40 }
0x2338   :  { %14245 = vmatprep.subr.bf16.mxu0 %v14244_v34  ;;  %v13091_v59 = vpop.f32.mrb[46].mxu1  ;;  %14253 = vmatprep.subr.bf16.mxu1 %v14252_v42 }
0x2339   :  { %v13092_v46 = vpop.f32.mrb[47].mxu1 }
0x233a   :  { %v13093_v60 = vadd.f32 %v13092_v46, %v13091_v59 }
0x233b   :  { %14247 = vmatpush3.bf16.msra.mxu0 %v14246_v15  ;;  %14255 = vmatpush3.bf16.msra.mxu1 %v14252_v42 }
0x233c   :  { %13632 = vmatprep.subr.mxu0 %v15132_v29  ;;  %13622 = vmatprep.subr.mxu1 %v15132_v29 }
0x233e   :  { %4540 = vmatmul.mubr.f32.vlgmr.msra.gmra.mrb[54].mxu0 %v12108_v45  ;;  %v16640_v45 = vld [vmem:[%s18714_s26 + $0x10] sm:$0x3f] }
0x233f   :  { %4544 = vmatprep.mubr.f32.mxu0 %v12115_v47  ;;  %v4581_v47 = vrot.slane %v16640_v45, %v15623_v16  ;;  %v4587_v51 = vrot.slane %v16640_v45, %v15631_v18 }
0x2342   :  { %4545 = vmatmul.mubr.f32.gmra.mrb[56].mxu0 %v12114_v48 }
0x2343   :  { %13634 = vmatprep.mubr.msk.f32.mxu0 %vm15133_vm2, %v15132_v29 }
0x23d1   :  { %v16604_v9 = vpop.f32.mrb[48].mxu0 }
0x23d2   :  { %v13610_v61 = vpop.f32.mrb[49].mxu0 }
0x23f1   :  { %v13050_v53 = vpop.f32.mrb[50].mxu0 }
0x23f2   :  { %v13051_v0 = vpop.f32.mrb[51].mxu0 }
0x23f3   :  { %v13052_v1 = vadd.f32 %v13051_v0, %v13050_v53 }
0x23f5   :  { %v4392_v49 = vadd.f32 %v13052_v1, %v12212_v63  ;;  %v13053_v2 = vpop.f32.mrb[52].mxu0  ;;  %v12220_v63 = vld [vmem:[%s18715_s28 + $0x2] ss:$0 sm:$0xff] }
0x23f6   :  { %v13054_v31 = vpop.f32.mrb[53].mxu0 }
0x23f7   :  { %v4467_v7 = vadd.f32 %v13090_v55, %v4392_v49  ;;  %v13055_v4 = vadd.f32 %v13054_v31, %v13053_v2 }
0x23f9   :  { %v4397_v8 = vadd.f32 %v13055_v4, %v12213_v3 }
0x23fb   :  { %v4472_v5 = vadd.f32 %v13093_v60, %v4397_v8 }
0x2411   :  { %v13126_v17 = vpop.f32.mrb[54].mxu0 }
0x2412   :  { %v13127_v10 = vpop.f32.mrb[55].mxu0 }
0x2413   :  { %v13128_v30 = vadd.f32 %v13127_v10, %v13126_v17 }
0x2415   :  { %v16612_v32 = vadd.f32 %v13128_v30, %v4467_v7  ;;  %v13129_v11 = vpop.f32.mrb[56].mxu0 }
0x2416   :  { %v13130_v12 = vpop.f32.mrb[57].mxu0 }
0x2417   :  { %v13131_v13 = vadd.f32 %v13130_v12, %v13129_v11  ;;  %v4552_v19 = vsel %vm409_vm0, %v16612_v32, 0.0 }
0x2418   :  { %4553 = vadd.xlane.f32.xlu0 %v4552_v19 }
0x2419   :  { %v16616_v21 = vadd.f32 %v13131_v13, %v4472_v5 }
0x241b   :  { %v4555_v56 = vsel %vm413_vm1, %v16616_v21, 0.0 }
0x241c   :  { %4556 = vadd.xlane.f32.xlu1 %v4555_v56 }
0x24a5   :  { %v4554_v22 = vpop.xlane.xlu0 %4553 }
0x24a6   :  { %v4558_v23 = vmul.f32 0.03125, %v4554_v22 }
0x24a8   :  { %v4560_v25 = vsub.f32 %v16612_v32, %v4558_v23 }
0x24a9   :  { %v4557_v26 = vpop.xlane.xlu1 %4556 }
0x24aa   :  { %v4559_v52 = vmul.f32 0.03125, %v4557_v26  ;;  %v4562_v27 = vmul.f32 %v4560_v25, %v4560_v25 }
0x24ac   :  { %v4561_v28 = vsub.f32 %v16616_v21, %v4559_v52  ;;  %v4564_v33 = vsel %vm409_vm0, %v4562_v27, 0.0 }
0x24ad   :  { %4565 = vadd.xlane.f32.xlu0 %v4564_v33 }
0x24ae   :  { %v4563_v35 = vmul.f32 %v4561_v28, %v4561_v28 }
0x24b0   :  { %v4567_v37 = vsel %vm413_vm1, %v4563_v35, 0.0 }
0x24b1   :  { %4568 = vadd.xlane.f32.xlu1 %v4567_v37 }
0x253a   :  { %v4566_v36 = vpop.xlane.xlu0 %4565 }
0x253b   :  { %v4570_v20 = vmul.f32 0.03125, %v4566_v36 }
0x253d   :  { %v4572_v34 = vadd.f32 1e-12, %v4570_v20 }
0x253e   :  { %v4569_v6 = vpop.xlane.xlu1 %4568 }
0x253f   :  { %15013 = vrsqrt.f32 %v4572_v34  ;;  %v4571_v44 = vmul.f32 0.03125, %v4569_v6 }
0x2541   :  { %v4573_v15 = vadd.f32 1e-12, %v4571_v44 }
0x2543   :  { %15015 = vrsqrt.f32 %v4573_v15 }
0x2549   :  { %v15014_v48 = vpop.eup %15013 }
0x254a   :  { %v4576_v50 = vmul.f32 %v15014_v48, %v4560_v25 }
0x254c   :  { %v4582_v55 = vmul.f32 %v4581_v47, %v4576_v50 }
0x254d   :  { %v15016_v59 = vpop.eup %15015 }
0x254e   :  { %v4577_v46 = vmul.f32 %v15016_v59, %v4561_v28  ;;  %v4588_v60 = vadd.f32 %v4587_v51, %v4582_v55 }
0x2550   :  { %v4583_v61 = vmul.f32 %v4581_v47, %v4577_v46  ;;  %13619 = vmatprep.mubr.msk.f32.mxu1 %vm409_vm0, %v4588_v60 }
0x2552   :  { %v4589_v53 = vadd.f32 %v4587_v51, %v4583_v61 }
0x2554   :  { %13620 = vmatmul.mubr.msk.f32.vlgmr.msra.gmra.mrb[48].mxu1 %vm409_vm0, %v4589_v53 }
0x2555   :  { %13624 = vmatprep.mubr.msk.f32.mxu1 %vm15133_vm2, %v15132_v29 }
0x2627   :  { %v13621_v0 = vpop.f32.mrb[48].mxu1 }
0x2628   :  { %v4675_v1 = vpop.f32.mrb[49].mxu1  ;;  %v4681_v2 = vadd.f32 %v13621_v0, %v12220_v63 }
0x2629   :  { %v16653_v49 = vadd.f32 %v12220_v63, %v4675_v1 }
0x262a   :  { %v5368_v3 = vrot.slane %v4681_v2, 5 }
0x262b   :  { %4852 = vrot.lane.b32.xlu1 %v16653_v49, %s18719_s22  ;;  %4685 = vrot.lane.b32.xlu0 %v16653_v49, %s18718_s21  ;;  %v5367_v31 = vrot.slane %v16653_v49, 5 }
0x262d   :  { %v16669_v7 = vsel %vm1231_vm7, %v5367_v31, %v5368_v3 }
0x262f   :  { %4850 = vrot.lane.b32.xlu1 %v16653_v49, %s18720_s19  ;;  %5017 = vrot.lane.b32.xlu0 %v16653_v49, %s18724_s30 }
0x2633   :  { %5019 = vrot.lane.b32.xlu1 %v16653_v49, %s18721_s4  ;;  %5184 = vrot.lane.b32.xlu0 %v16653_v49, %s18725_s0 }
0x2637   :  { %5186 = vrot.lane.b32.xlu1 %v16653_v49, %s18722_s23  ;;  %5537 = vrot.lane.b32.xlu0 %v16669_v7, %s18719_s22 }
0x263b   :  { %5704 = vrot.lane.b32.xlu0 %v16669_v7, %s18721_s4  ;;  %5370 = vrot.lane.b32.xlu1 %v16669_v7, %s18718_s21 }
0x263f   :  { %5871 = vrot.lane.b32.xlu0 %v16669_v7, %s18722_s23  ;;  %5535 = vrot.lane.b32.xlu1 %v16669_v7, %s18720_s19 }
0x2643   :  { %5702 = vrot.lane.b32.xlu1 %v16669_v7, %s18724_s30 }
0x2647   :  { %5869 = vrot.lane.b32.xlu1 %v16669_v7, %s18725_s0 }
0x269d   :  { %v4853_v4 = vpop.permute.xlu1 %4852  ;;  %v4686_v8 = vpop.permute.xlu0 %4685 }
0x269e   :  { %13623 = vmatpush3.xpose.msk.msra.mxu1 %vm545_vm3, %v4686_v8  ;;  %13633 = vmatpush3.xpose.msk.msra.mxu0 %vm545_vm3, %v4853_v4 }
0x269f   :  { %13642 = vmatprep.subr.mxu0 %v15132_v29  ;;  %13627 = vmatprep.subr.mxu1 %v15132_v29 }
0x26a1   :  { %v4851_v5 = vpop.permute.xlu1 %4850  ;;  %13625 = vmatmul.mubr.msk.f32.vlgmr.msra.gmra.mrb[50].mxu1 %vm545_vm3, %v16653_v49  ;;  %v5018_v17 = vpop.permute.xlu0 %5017 }
0x26a2   :  { %13635 = vmatmul.mubr.msk.f32.vlgmr.msra.gmra.mrb[58].mxu0 %vm545_vm3, %v4851_v5  ;;  %13629 = vmatprep.mubr.msk.f32.mxu1 %vm15133_vm2, %v15132_v29 }
0x26a3   :  { %13644 = vmatprep.mubr.msk.f32.mxu0 %vm15133_vm2, %v15132_v29 }
0x26a5   :  { %v5020_v10 = vpop.permute.xlu1 %5019  ;;  %v5185_v30 = vpop.permute.xlu0 %5184 }
0x26a6   :  { %13643 = vmatpush3.xpose.msk.msra.mxu0 %vm545_vm3, %v5020_v10 }
0x26a7   :  { %13652 = vmatprep.subr.mxu0 %v15132_v29 }
0x26a9   :  { %v5187_v11 = vpop.permute.xlu1 %5186  ;;  %13645 = vmatmul.mubr.msk.f32.vlgmr.msra.gmra.mrb[60].mxu0 %vm545_vm3, %v5018_v17  ;;  %v5538_v12 = vpop.permute.xlu0 %5537 }
0x26aa   :  { %13653 = vmatpush3.xpose.msk.msra.mxu0 %vm545_vm3, %v5187_v11  ;;  %13654 = vmatprep.mubr.msk.f32.mxu0 %vm15133_vm2, %v15132_v29 }
0x26ab   :  { %13662 = vmatprep.subr.mxu0 %v15132_v29 }
0x26ad   :  { %13655 = vmatmul.mubr.msk.f32.vlgmr.msra.gmra.mrb[62].mxu0 %vm545_vm3, %v5185_v30  ;;  %v5371_v13 = vpop.permute.xlu1 %5370  ;;  %v5705_v56 = vpop.permute.xlu0 %5704 }
0x26ae   :  { %13663 = vmatpush3.xpose.msk.msra.mxu0 %vm545_vm3, %v5371_v13  ;;  %13664 = vmatprep.mubr.msk.f32.mxu0 %vm15133_vm2, %v15132_v29 }
0x26af   :  { %13672 = vmatprep.subr.mxu0 %v15132_v29 }
0x26b1   :  { %13665 = vmatmul.mubr.msk.f32.vlgmr.msra.gmra.mrb[64].mxu0 %vm545_vm3, %v16669_v7  ;;  %v5536_v19 = vpop.permute.xlu1 %5535  ;;  %v5872_v23 = vpop.permute.xlu0 %5871 }
0x26b2   :  { %13673 = vmatpush3.xpose.msk.msra.mxu0 %vm545_vm3, %v5538_v12  ;;  %13674 = vmatprep.mubr.msk.f32.mxu0 %vm15133_vm2, %v15132_v29 }
0x26b3   :  { %13682 = vmatprep.subr.mxu0 %v15132_v29 }
0x26b5   :  { %13675 = vmatmul.mubr.msk.f32.vlgmr.msra.gmra.mrb[66].mxu0 %vm545_vm3, %v5536_v19  ;;  %v5703_v22 = vpop.permute.xlu1 %5702 }
0x26b6   :  { %13683 = vmatpush3.xpose.msk.msra.mxu0 %vm545_vm3, %v5705_v56  ;;  %13684 = vmatprep.mubr.msk.f32.mxu0 %vm15133_vm2, %v15132_v29 }
0x26b7   :  { %13692 = vmatprep.subr.mxu0 %v15132_v29 }
0x26b9   :  { %13685 = vmatmul.mubr.msk.f32.vlgmr.msra.gmra.mrb[68].mxu0 %vm545_vm3, %v5703_v22  ;;  %v5870_v25 = vpop.permute.xlu1 %5869 }
0x26ba   :  { %13693 = vmatpush3.xpose.msk.msra.mxu0 %vm545_vm3, %v5872_v23  ;;  %13694 = vmatprep.mubr.msk.f32.mxu0 %vm15133_vm2, %v15132_v29 }
0x26bd   :  { %13695 = vmatmul.mubr.msk.f32.vlgmr.msra.gmra.mrb[70].mxu0 %vm545_vm3, %v5870_v25 }
0x2774   :  { %v4757_v26 = vpop.f32.mrb[50].mxu1 }
0x2775   :  { %v4761_v52 = vmul.f32 0.35355338, %v4757_v26  ;;  %v13626_v27 = vpop.f32.mrb[51].mxu1  ;;  %v4924_v28 = vpop.f32.mrb[58].mxu0 }
0x2776   :  { %v4928_v33 = vmul.f32 0.35355338, %v4924_v28  ;;  %v13636_v35 = vpop.f32.mrb[59].mxu0 }
0x2777   :  { %v4762_v37 = vsel %vm621_vm4, %v4761_v52, -inf }
0x2778   :  { %4763 = vmax.xlane.f32.xlu0 %v4762_v37  ;;  %v4929_v38 = vsel %vm621_vm4, %v4928_v33, -inf }
0x2779   :  { %4930 = vmax.xlane.f32.xlu1 %v4929_v38 }
0x277c   :  { %v5091_v39 = vpop.f32.mrb[60].mxu0 }
0x277d   :  { %v16728_v40 = vmul.f32 0.35355338, %v5091_v39  ;;  %v13646_v54 = vpop.f32.mrb[61].mxu0 }
0x277f   :  { %v5096_v41 = vsel %vm621_vm4, %v16728_v40, -inf }
0x2780   :  { %v5258_v42 = vpop.f32.mrb[62].mxu0  ;;  %5097 = vmax.xlane.f32.xlu0 %v5096_v41 }
0x2781   :  { %v5262_v36 = vmul.f32 0.35355338, %v5258_v42  ;;  %v13656_v20 = vpop.f32.mrb[63].mxu0 }
0x2783   :  { %v5263_v34 = vsel %vm621_vm4, %v5262_v36, -inf }
0x2784   :  { %5264 = vmax.xlane.f32.xlu0 %v5263_v34  ;;  %v5442_v6 = vpop.f32.mrb[64].mxu0 }
0x2785   :  { %v5446_v44 = vmul.f32 0.35355338, %v5442_v6  ;;  %v13666_v15 = vpop.f32.mrb[65].mxu0 }
0x2787   :  { %v5447_v47 = vsel %vm621_vm4, %v5446_v44, -inf }
0x2788   :  { %5448 = vmax.xlane.f32.xlu0 %v5447_v47  ;;  %v5609_v48 = vpop.f32.mrb[66].mxu0 }
0x2789   :  { %v5613_v50 = vmul.f32 0.35355338, %v5609_v48  ;;  %v13676_v51 = vpop.f32.mrb[67].mxu0 }
0x278b   :  { %v5614_v55 = vsel %vm621_vm4, %v5613_v50, -inf }
0x278c   :  { %5615 = vmax.xlane.f32.xlu1 %v5614_v55  ;;  %v5776_v59 = vpop.f32.mrb[68].mxu0 }
0x278d   :  { %v5780_v46 = vmul.f32 0.35355338, %v5776_v59  ;;  %v13686_v60 = vpop.f32.mrb[69].mxu0 }
0x278f   :  { %v5781_v61 = vsel %vm621_vm4, %v5780_v46, -inf }
0x2790   :  { %5782 = vmax.xlane.f32.xlu0 %v5781_v61  ;;  %v5943_v53 = vpop.f32.mrb[70].mxu0 }
0x2791   :  { %v13696_v63 = vpop.f32.mrb[71].mxu0  ;;  %v5947_v0 = vmul.f32 0.35355338, %v5943_v53 }
0x2793   :  { %v5948_v1 = vsel %vm621_vm4, %v5947_v0, -inf }
0x279d   :  { %4773 = vrot.lane.b32.xlu1 %v16653_v49, %s18716_s27 }
0x27c1   :  { %5949 = vmax.xlane.f32.xlu1 %v5948_v1 }
0x27d2   :  { %5107 = vrot.lane.b32.xlu1 %v16653_v49, %s18727_s2 }
0x27d6   :  { %5274 = vrot.lane.b32.xlu1 %v16653_v49, %s18726_s6 }
0x27da   :  { %5458 = vrot.lane.b32.xlu1 %v16669_v7, %s18716_s27 }
0x2805   :  { %v4764_v2 = vpop.xlane.xlu0 %4763 }
0x2806   :  { %v4765_v3 = vsub.f32 %v4761_v52, %v4764_v2  ;;  %v4931_v31 = vpop.xlane.xlu1 %4930 }
0x2807   :  { %v4932_v4 = vsub.f32 %v4928_v33, %v4931_v31 }
0x2808   :  { %v4766_v8 = vmul.f32 1.442695, %v4765_v3 }
0x2809   :  { %v4933_v5 = vmul.f32 1.442695, %v4932_v4 }
0x280a   :  { %15017 = vpow2.f32 %v4766_v8 }
0x280b   :  { %15019 = vpow2.f32 %v4933_v5 }
0x280d   :  { %v5098_v17 = vpop.xlane.xlu0 %5097 }
0x280e   :  { %v5099_v52 = vsub.f32 %v16728_v40, %v5098_v17 }
0x2810   :  { %v5100_v28 = vmul.f32 1.442695, %v5099_v52 }
0x2811   :  { %v5265_v10 = vpop.xlane.xlu0 %5264 }
0x2812   :  { %v5266_v30 = vsub.f32 %v5262_v36, %v5265_v10 }
0x2814   :  { %v15018_v11 = vpop.eup %15017  ;;  %v5267_v12 = vmul.f32 1.442695, %v5266_v30 }
0x2815   :  { %v16745_v13 = vpop.eup %15019  ;;  %v4768_v19 = vsel %vm621_vm4, %v15018_v11, 0.0  ;;  %v5449_v27 = vpop.xlane.xlu0 %5448 }
0x2816   :  { %15021 = vpow2.f32 %v5267_v12  ;;  %4769 = vadd.xlane.f32.xlu0 %v4768_v19  ;;  %v4935_v56 = vsel %vm621_vm4, %v16745_v13, 0.0  ;;  %v5450_v33 = vsub.f32 %v5446_v44, %v5449_v27 }
0x2817   :  { %4936 = vadd.xlane.f32.xlu1 %v4935_v56  ;;  %15023 = vpow2.f32 %v5100_v28 }
0x2818   :  { %v5451_v37 = vmul.f32 1.442695, %v5450_v33 }
0x2819   :  { %v5616_v22 = vpop.xlane.xlu1 %5615 }
0x281a   :  { %15025 = vpow2.f32 %v5451_v37  ;;  %v5617_v39 = vsub.f32 %v5613_v50, %v5616_v22 }
0x281c   :  { %v5618_v41 = vmul.f32 1.442695, %v5617_v39 }
0x281d   :  { %v4774_v23 = vpop.permute.xlu1 %4773  ;;  %v5783_v35 = vpop.xlane.xlu0 %5782 }
0x281e   :  { %13628 = vmatpush3.msk.msra.mxu1 %vm639_vm5, %v4774_v23  ;;  %v5784_v38 = vsub.f32 %v5780_v46, %v5783_v35 }
0x281f   :  { %13637 = vmatprep.subr.mxu1 %v15132_v29 }
0x2820   :  { %v16752_v25 = vpop.eup %15021  ;;  %v5785_v54 = vmul.f32 1.442695, %v5784_v38 }
0x2821   :  { %v5269_v26 = vsel %vm621_vm4, %v16752_v25, 0.0  ;;  %v15024_v42 = vpop.eup %15023 }
0x2822   :  { %5270 = vadd.xlane.f32.xlu1 %v5269_v26  ;;  %15027 = vpow2.f32 %v5785_v54 }
0x2823   :  { %15029 = vpow2.f32 %v5618_v41 }
0x2824   :  { %v15026_v36 = vpop.eup %15025 }
0x2825   :  { %v5453_v40 = vsel %vm621_vm4, %v15026_v36, 0.0 }
0x282c   :  { %4940 = vrot.lane.b32.xlu0 %v16653_v49, %s18731_s14  ;;  %v5102_v49 = vsel %vm621_vm4, %v15024_v42, 0.0  ;;  %v16763_v34 = vpop.eup %15027 }
0x282d   :  { %v5787_v15 = vsel %vm621_vm4, %v16763_v34, 0.0  ;;  %v15030_v47 = vpop.eup %15029 }
0x282e   :  { %v5620_v48 = vsel %vm621_vm4, %v15030_v47, 0.0 }
0x2833   :  { %5625 = vrot.lane.b32.xlu1 %v16669_v7, %s18731_s14 }
0x284b   :  { %5103 = vadd.xlane.f32.xlu0 %v5102_v49  ;;  %v12256_v49 = vld [vmem:[%s18732_s17 + $0x48] sm:$0xff] }
0x284e   :  { %v5950_v20 = vpop.xlane.xlu1 %5949 }
0x284f   :  { %v5951_v6 = vsub.f32 %v5947_v0, %v5950_v20  ;;  %5454 = vadd.xlane.f32.xlu0 %v5453_v40 }
0x2851   :  { %v5952_v44 = vmul.f32 1.442695, %v5951_v6  ;;  %v12257_v6 = vld [vmem:[%s18732_s17 + $0x50] sm:$0xff] }
0x2852   :  { %v5108_v55 = vpop.permute.xlu1 %5107 }
0x2853   :  { %15031 = vpow2.f32 %v5952_v44  ;;  %5788 = vadd.xlane.f32.xlu0 %v5787_v15  ;;  %v12258_v44 = vld [vmem:[%s18732_s17 + $0x58] sm:$0xff] }
0x2854   :  { %v14260_v15 = vpack.c.bf16 %v12258_v44, %v12257_v6  ;;  %v6175_v44 = vrot.slane %v16640_v45, %v15864_v57 }
0x2856   :  { %v5275_v59 = vpop.permute.xlu1 %5274 }
0x2857   :  { %5621 = vadd.xlane.f32.xlu1 %v5620_v48 }
0x285a   :  { %v5459_v46 = vpop.permute.xlu1 %5458 }
0x285d   :  { %v16768_v50 = vpop.eup %15031 }
0x285e   :  { %v5954_v51 = vsel %vm621_vm4, %v16768_v50, 0.0 }
0x285f   :  { %5955 = vadd.xlane.f32.xlu0 %v5954_v51 }
0x2868   :  { %5959 = vrot.lane.b32.xlu1 %v16669_v7, %s18726_s6 }
0x2875   :  { %5792 = vrot.lane.b32.xlu0 %v16669_v7, %s18727_s2 }
0x28a3   :  { %v4770_v60 = vpop.xlane.xlu0 %4769 }
0x28a4   :  { %15033 = vrcp.f32 %v4770_v60  ;;  %v4937_v61 = vpop.xlane.xlu1 %4936 }
0x28a5   :  { %15035 = vrcp.f32 %v4937_v61 }
0x28a7   :  { %v4941_v1 = vpop.permute.xlu0 %4940 }
0x28ae   :  { %v15034_v53 = vpop.eup %15033 }
0x28af   :  { %v4772_v63 = vmul.f32 %v15034_v53, %v15018_v11  ;;  %v15036_v0 = vpop.eup %15035  ;;  %v5271_v2 = vpop.xlane.xlu1 %5270 }
0x28b0   :  { %v4939_v7 = vmul.f32 %v15036_v0, %v16745_v13 }
0x28b1   :  { %13630 = vmatmul.mubr.msk.f32.vlgmr.msra.gmra.mrb[52].mxu1 %vm635_vm6, %v4772_v63 }
0x28b2   :  { %13638 = vmatpush3.msk.msra.mxu1 %vm639_vm5, %v4941_v1  ;;  %13639 = vmatprep.mubr.msk.f32.mxu1 %vm15133_vm2, %v15132_v29 }
0x28b3   :  { %13647 = vmatprep.subr.mxu1 %v15132_v29  ;;  %v5626_v4 = vpop.permute.xlu1 %5625 }
0x28b5   :  { %13640 = vmatmul.mubr.msk.f32.vlgmr.msra.gmra.mrb[54].mxu1 %vm635_vm6, %v4939_v7 }
0x28b6   :  { %13648 = vmatpush3.msk.msra.mxu1 %vm639_vm5, %v5108_v55  ;;  %13649 = vmatprep.mubr.msk.f32.mxu1 %vm15133_vm2, %v15132_v29 }
0x28b7   :  { %13657 = vmatprep.subr.mxu1 %v15132_v29 }
0x28d8   :  { %v5104_v3 = vpop.xlane.xlu0 %5103 }
0x28d9   :  { %15037 = vrcp.f32 %v5104_v3 }
0x28da   :  { %15039 = vrcp.f32 %v5271_v2 }
0x28dc   :  { %v5455_v31 = vpop.xlane.xlu0 %5454 }
0x28dd   :  { %15041 = vrcp.f32 %v5455_v31 }
0x28e0   :  { %v5789_v17 = vpop.xlane.xlu0 %5788 }
0x28e3   :  { %v15038_v8 = vpop.eup %15037 }
0x28e4   :  { %v5106_v5 = vmul.f32 %v15038_v8, %v15024_v42  ;;  %v5622_v10 = vpop.xlane.xlu1 %5621  ;;  %v15040_v30 = vpop.eup %15039  ;;  %v12255_v42 = vld [vmem:[%s18732_s17 + $0x40] sm:$0xff] }
0x28e5   :  { %15043 = vrcp.f32 %v5622_v10  ;;  %v5273_v11 = vmul.f32 %v15040_v30, %v16752_v25  ;;  %v14256_v20 = vpack.c.bf16 %v12256_v49, %v12255_v42 }
0x28e6   :  { %13650 = vmatmul.mubr.msk.f32.vlgmr.msra.gmra.mrb[56].mxu1 %vm635_vm6, %v5106_v5  ;;  %15045 = vrcp.f32 %v5789_v17  ;;  %v6063_v17 = vrot.slane %v16640_v45, %v15833_v24 }
0x28e7   :  { %13658 = vmatpush3.msk.msra.mxu1 %vm639_vm5, %v5275_v59  ;;  %13659 = vmatprep.mubr.msk.f32.mxu1 %vm15133_vm2, %v15132_v29  ;;  %v15042_v12 = vpop.eup %15041 }
0x28e8   :  { %13667 = vmatprep.subr.mxu1 %v15132_v29  ;;  %v5457_v13 = vmul.f32 %v15042_v12, %v15026_v36  ;;  %v5960_v52 = vpop.permute.xlu1 %5959  ;;  %14257 = vmatprep.subr.bf16.mxu0 %v14256_v20 }
0x28e9   :  { %14259 = vmatpush3.bf16.msra.mxu0 %v14256_v20 }
0x28ea   :  { %13660 = vmatmul.mubr.msk.f32.vlgmr.msra.gmra.mrb[58].mxu1 %vm635_vm6, %v5273_v11  ;;  %14261 = vmatprep.subr.bf16.mxu0 %v14260_v15 }
0x28eb   :  { %13668 = vmatpush3.msk.msra.mxu1 %vm639_vm5, %v5459_v46  ;;  %13669 = vmatprep.mubr.msk.f32.mxu1 %vm15133_vm2, %v15132_v29 }
0x28ec   :  { %v5956_v19 = vpop.xlane.xlu0 %5955  ;;  %13677 = vmatprep.subr.mxu1 %v15132_v29 }
0x28ed   :  { %15047 = vrcp.f32 %v5956_v19  ;;  %14263 = vmatpush3.bf16.msra.mxu0 %v14260_v15 }
0x28ee   :  { %13670 = vmatmul.mubr.msk.f32.vlgmr.msra.gmra.mrb[60].mxu1 %vm635_vm6, %v5457_v13 }
0x28ef   :  { %v15044_v56 = vpop.eup %15043  ;;  %13678 = vmatpush3.msk.msra.mxu1 %vm639_vm5, %v5626_v4  ;;  %13679 = vmatprep.mubr.msk.f32.mxu1 %vm15133_vm2, %v15132_v29 }
0x28f0   :  { %v5624_v22 = vmul.f32 %v15044_v56, %v15030_v47  ;;  %v5793_v23 = vpop.permute.xlu0 %5792  ;;  %13687 = vmatprep.subr.mxu1 %v15132_v29  ;;  %v15046_v25 = vpop.eup %15045 }
0x28f1   :  { %v5791_v26 = vmul.f32 %v15046_v25, %v16763_v34 }
0x28f2   :  { %13680 = vmatmul.mubr.msk.f32.vlgmr.msra.gmra.mrb[62].mxu1 %vm635_vm6, %v5624_v22 }
0x28f3   :  { %13688 = vmatpush3.msk.msra.mxu1 %vm639_vm5, %v5793_v23  ;;  %13689 = vmatprep.mubr.msk.f32.mxu1 %vm15133_vm2, %v15132_v29 }
0x28f4   :  { %13697 = vmatprep.subr.mxu1 %v15132_v29 }
0x28f6   :  { %13690 = vmatmul.mubr.msk.f32.vlgmr.msra.gmra.mrb[64].mxu1 %vm635_vm6, %v5791_v26 }
0x28f7   :  { %v15048_v27 = vpop.eup %15047  ;;  %13698 = vmatpush3.msk.msra.mxu1 %vm639_vm5, %v5960_v52  ;;  %13699 = vmatprep.mubr.msk.f32.mxu1 %vm15133_vm2, %v15132_v29 }
0x28f8   :  { %v5958_v28 = vmul.f32 %v15048_v27, %v16768_v50 }
0x28fa   :  { %13700 = vmatmul.mubr.msk.f32.vlgmr.msra.gmra.mrb[66].mxu1 %vm635_vm6, %v5958_v28 }
0x2984   :  { %v4846_v33 = vpop.f32.mrb[52].mxu1 }
0x2985   :  { %v13631_v35 = vpop.f32.mrb[53].mxu1 }
0x2988   :  { %v5013_v37 = vpop.f32.mrb[54].mxu1 }
0x2989   :  { %5352 = vrot.lane.b32.xlu0 %v5013_v37, %s18728_s20  ;;  %v13641_v38 = vpop.f32.mrb[55].mxu1  ;;  %v12261_v37 = vld [vmem:[%s18735_s16 + $0x40] sm:$0xff] }
0x298a   :  { %v12262_v38 = vld [vmem:[%s18735_s16 + $0x48] sm:$0xff] }
0x29b9   :  { %v5180_v39 = vpop.f32.mrb[56].mxu1 }
0x29ba   :  { %v13651_v54 = vpop.f32.mrb[57].mxu1 }
0x29bb   :  { %v12263_v54 = vld [vmem:[%s18735_s16 + $0x50] sm:$0xff] }
0x29bd   :  { %v5347_v41 = vpop.f32.mrb[58].mxu1 }
0x29be   :  { %v13661_v36 = vpop.f32.mrb[59].mxu1 }
0x29c1   :  { %v5531_v40 = vpop.f32.mrb[60].mxu1 }
0x29c2   :  { %v13671_v34 = vpop.f32.mrb[61].mxu1 }
0x29c5   :  { %v5698_v47 = vpop.f32.mrb[62].mxu1 }
0x29c6   :  { %6037 = vrot.lane.b32.xlu0 %v5698_v47, %s18728_s20  ;;  %v13681_v48 = vpop.f32.mrb[63].mxu1 }
0x29c7   :  { %v6181_v48 = vrot.slane %v16640_v45, %v15867_v58 }
0x29c9   :  { %v5865_v50 = vpop.f32.mrb[64].mxu1 }
0x29ca   :  { %5356 = vrot.lane.b32.xlu0 %v5180_v39, %s18733_s29  ;;  %6041 = vrot.lane.b32.xlu1 %v5865_v50, %s18733_s29  ;;  %v13691_v51 = vpop.f32.mrb[65].mxu1  ;;  %v14264_v39 = vpack.c.bf16 %v12262_v38, %v12261_v37 }
0x29cc   :  { %14265 = vmatprep.subr.bf16.mxu1 %v14264_v39 }
0x29cd   :  { %v6032_v55 = vpop.f32.mrb[66].mxu1  ;;  %14267 = vmatpush3.bf16.msra.mxu1 %v14264_v39 }
0x29ce   :  { %6045 = vrot.lane.b32.xlu1 %v6032_v55, %s18734_s12  ;;  %v13701_v59 = vpop.f32.mrb[67].mxu1 }
0x29d2   :  { %5360 = vrot.lane.b32.xlu1 %v5347_v41, %s18734_s12  ;;  %v12264_v41 = vld [vmem:[%s18735_s16 + $0x58] sm:$0xff] }
0x29d3   :  { %v14268_v42 = vpack.c.bf16 %v12264_v41, %v12263_v54 }
0x29d5   :  { %14269 = vmatprep.subr.bf16.mxu1 %v14268_v42 }
0x29d6   :  { %14271 = vmatpush3.bf16.msra.mxu1 %v14268_v42 }
0x29fb   :  { %v5353_v46 = vpop.permute.xlu0 %5352 }
0x29fc   :  { %v5363_v2 = vsel %vm545_vm3, %v4846_v33, %v5353_v46 }
0x2a38   :  { %v6038_v60 = vpop.permute.xlu0 %6037 }
0x2a39   :  { %v6048_v53 = vsel %vm545_vm3, %v5531_v40, %v6038_v60 }
0x2a3c   :  { %v6042_v61 = vpop.permute.xlu1 %6041  ;;  %v5357_v1 = vpop.permute.xlu0 %5356 }
0x2a3d   :  { %v6049_v63 = vsel %vm1226_vm8, %v6048_v53, %v6042_v61  ;;  %v5364_v3 = vsel %vm1226_vm8, %v5363_v2, %v5357_v1  ;;  %v12269_v61 = vld [vmem:[%s18622_s9 + $0x100] sm:$0xff]  ;;  %v12270_v53 = vld [vmem:[%s18622_s9 + $0x108] sm:$0xff]  ;;  %v12272_v1 = vld [vmem:[%s18622_s9 + $0x118] sm:$0xff] }
0x2a3e   :  { %v12273_v2 = vld [vmem:[%s18622_s9 + $0x120] sm:$0xff] }
0x2a40   :  { %v6046_v0 = vpop.permute.xlu1 %6045 }
0x2a41   :  { %v6050_v7 = vsel %vm1228_vm9, %v6049_v63, %v6046_v0  ;;  %v14272_v63 = vpack.c.bf16 %v12270_v53, %v12269_v61  ;;  %v12271_v0 = vld [vmem:[%s18622_s9 + $0x110] sm:$0xff] }
0x2a42   :  { %v6052_v31 = vrot.slane %v6050_v7, 3  ;;  %v14276_v7 = vpack.c.bf16 %v12272_v1, %v12271_v0 }
0x2a43   :  { %14273 = vmatprep.subr.bf16.mxu0 %v14272_v63 }
0x2a44   :  { %v5361_v4 = vpop.permute.xlu1 %5360 }
0x2a45   :  { %v5365_v8 = vsel %vm1228_vm9, %v5364_v3, %v5361_v4  ;;  %v12274_v3 = vld [vmem:[%s18622_s9 + $0x128] sm:$0xff]  ;;  %v12275_v4 = vld [vmem:[%s18622_s9 + $0x130] sm:$0xff] }
0x2a46   :  { %v6054_v5 = vsel %vm639_vm5, %v5365_v8, %v6052_v31  ;;  %v12276_v8 = vld [vmem:[%s18622_s9 + $0x138] sm:$0xff] }
0x2a47   :  { %13710 = vmatprep.mubr.msk.f32.mxu0 %vm409_vm0, %v6054_v5  ;;  %v14284_v5 = vpack.c.bf16 %v12276_v8, %v12275_v4 }
0x2a48   :  { %13711 = vmatmul.mubr.msk.f32.vlgmr.msra.gmra.mrb[72].mxu0 %vm409_vm0, %v6052_v31  ;;  %v14280_v31 = vpack.c.bf16 %v12274_v3, %v12273_v2 }
0x2a49   :  { %14275 = vmatpush3.bf16.msra.mxu0 %v14272_v63 }
0x2a4a   :  { %14277 = vmatprep.subr.bf16.mxu0 %v14276_v7 }
0x2a4d   :  { %14279 = vmatpush3.bf16.msra.mxu0 %v14276_v7 }
0x2a4e   :  { %14281 = vmatprep.subr.bf16.mxu0 %v14280_v31 }
0x2a51   :  { %14283 = vmatpush3.bf16.msra.mxu0 %v14280_v31 }
0x2a52   :  { %14285 = vmatprep.subr.bf16.mxu0 %v14284_v5 }
0x2a55   :  { %14287 = vmatpush3.bf16.msra.mxu0 %v14284_v5 }
0x2b1b   :  { %v13712_v10 = vpop.f32.mrb[72].mxu0 }
0x2b1c   :  { %v6141_v30 = vadd.f32 %v13712_v10, %v6063_v17  ;;  %v6135_v11 = vpop.f32.mrb[73].mxu0  ;;  %v12278_v10 = vld [vmem:[%s18622_s9 + $0x148] sm:$0xff] }
0x2b1d   :  { %v6136_v12 = vadd.f32 %v6135_v11, %v6063_v17  ;;  %v12277_v17 = vld [vmem:[%s18622_s9 + $0x140] sm:$0xff] }
0x2b1e   :  { %v16845_v13 = vadd.f32 %v6141_v30, %v16616_v21  ;;  %v12279_v30 = vld [vmem:[%s18622_s9 + $0x150] sm:$0xff]  ;;  %v14288_v11 = vpack.c.bf16 %v12278_v10, %v12277_v17  ;;  %v12286_v17 = vld [vmem:[%s18713_s3 + $0x60] sm:$0xff]  ;;  %v12287_v10 = vld [vmem:[%s18713_s3 + $0x68] sm:$0xff] }
0x2b1f   :  { %v16848_v19 = vadd.f32 %v6136_v12, %v16612_v32  ;;  %v12280_v12 = vld [vmem:[%s18622_s9 + $0x158] sm:$0xff] }
0x2b20   :  { %v6149_v56 = vsel %vm413_vm1, %v16845_v13, 0.0  ;;  %14289 = vmatprep.subr.bf16.mxu0 %v14288_v11 }
0x2b21   :  { %6150 = vadd.xlane.f32.xlu1 %v6149_v56  ;;  %v6146_v22 = vsel %vm409_vm0, %v16848_v19, 0.0  ;;  %v14292_v56 = vpack.c.bf16 %v12280_v12, %v12279_v30  ;;  %14291 = vmatpush3.bf16.msra.mxu0 %v14288_v11  ;;  %v14304_v30 = vpack.c.bf16 %v12287_v10, %v12286_v17  ;;  %v12288_v11 = vld [vmem:[%s18713_s3 + $0x70] sm:$0xff]  ;;  %v12289_v12 = vld [vmem:[%s18713_s3 + $0x78] sm:$0xff]  ;;  %s18739_s3 = sld [smem:[#allocation17_spill]] }
0x2b22   :  { %6147 = vadd.xlane.f32.xlu0 %v6146_v22  ;;  %v12281_v22 = vld [vmem:[%s18622_s9 + $0x160] sm:$0xff] }
0x2b23   :  { %14293 = vmatprep.subr.bf16.mxu0 %v14292_v56  ;;  %14305 = vmatprep.subr.bf16.mxu1 %v14304_v30 }
0x2b25   :  { %14295 = vmatpush3.bf16.msra.mxu0 %v14292_v56  ;;  %v14308_v56 = vpack.c.bf16 %v12289_v12, %v12288_v11 }
0x2bae   :  { %v6151_v23 = vpop.xlane.xlu1 %6150 }
0x2baf   :  { %v6153_v25 = vmul.f32 0.03125, %v6151_v23  ;;  %v6148_v26 = vpop.xlane.xlu0 %6147  ;;  %v12282_v23 = vld [vmem:[%s18622_s9 + $0x168] sm:$0xff] }
0x2bb0   :  { %v6152_v52 = vmul.f32 0.03125, %v6148_v26  ;;  %v12283_v26 = vld [vmem:[%s18622_s9 + $0x170] sm:$0xff] }
0x2bb1   :  { %v6155_v27 = vsub.f32 %v16845_v13, %v6153_v25  ;;  %v14296_v25 = vpack.c.bf16 %v12282_v23, %v12281_v22 }
0x2bb2   :  { %v6154_v21 = vsub.f32 %v16848_v19, %v6152_v52  ;;  %v12284_v52 = vld [vmem:[%s18622_s9 + $0x178] sm:$0xff] }
0x2bb3   :  { %v6157_v33 = vmul.f32 %v6155_v27, %v6155_v27  ;;  %14297 = vmatprep.subr.bf16.mxu0 %v14296_v25 }
0x2bb4   :  { %v6156_v28 = vmul.f32 %v6154_v21, %v6154_v21  ;;  %14299 = vmatpush3.bf16.msra.mxu0 %v14296_v25 }
0x2bb5   :  { %v6161_v35 = vsel %vm413_vm1, %v6157_v33, 0.0 }
0x2bb6   :  { %v6158_v32 = vsel %vm409_vm0, %v6156_v28, 0.0 }
0x2bb7   :  { %6159 = vadd.xlane.f32.xlu0 %v6158_v32 }
0x2bbb   :  { %6162 = vadd.xlane.f32.xlu0 %v6161_v35 }
0x2c44   :  { %v6160_v49 = vpop.xlane.xlu0 %6159 }
0x2c45   :  { %v6164_v36 = vmul.f32 0.03125, %v6160_v49 }
0x2c47   :  { %v6166_v20 = vadd.f32 1e-12, %v6164_v36 }
0x2c48   :  { %v6163_v40 = vpop.xlane.xlu0 %6162 }
0x2c49   :  { %15049 = vrsqrt.f32 %v6166_v20  ;;  %v6165_v34 = vmul.f32 0.03125, %v6163_v40 }
0x2c4b   :  { %v6167_v6 = vadd.f32 1e-12, %v6165_v34 }
0x2c4d   :  { %15051 = vrsqrt.f32 %v6167_v6 }
0x2c53   :  { %v15050_v15 = vpop.eup %15049 }
0x2c54   :  { %v6170_v47 = vmul.f32 %v15050_v15, %v6154_v21  ;;  %v12266_v21 = vld [vmem:[%s18621_s8 + $0x2] ss:$0 sm:$0xff] }
0x2c56   :  { %v6176_v50 = vmul.f32 %v6175_v44, %v6170_v47 }
0x2c57   :  { %v15052_v51 = vpop.eup %15051 }
0x2c58   :  { %v6171_v55 = vmul.f32 %v15052_v51, %v6155_v27  ;;  %v6182_v59 = vadd.f32 %v6181_v48, %v6176_v50  ;;  %v14300_v27 = vpack.c.bf16 %v12284_v52, %v12283_v26 }
0x2c5a   :  { %v6177_v46 = vmul.f32 %v6175_v44, %v6171_v55  ;;  %13721 = vmatprep.mubr.msk.f32.mxu1 %vm409_vm0, %v6182_v59  ;;  %14301 = vmatprep.subr.bf16.mxu0 %v14300_v27  ;;  %v6393_v55 = vrot.slane %v16640_v45, %v15930_v62 }
0x2c5b   :  { %14303 = vmatpush3.bf16.msra.mxu0 %v14300_v27 }
0x2c5c   :  { %v6183_v60 = vadd.f32 %v6181_v48, %v6177_v46  ;;  %13800 = vmatprep.subr.mxu0 %v15132_v29 }
0x2c5e   :  { %13722 = vmatmul.mubr.msk.f32.vlgmr.msra.gmra.mrb[68].mxu1 %vm409_vm0, %v6183_v60 }
0x2c5f   :  { %14307 = vmatpush3.bf16.msra.mxu1 %v14304_v30 }
0x2c60   :  { %14309 = vmatprep.subr.bf16.mxu1 %v14308_v56 }
0x2c63   :  { %14311 = vmatpush3.bf16.msra.mxu1 %v14308_v56 }
0x2c64   :  { %13770 = vmatprep.subr.mxu1 %v15132_v29 }
0x2d31   :  { %v13723_v28 = vpop.f32.mrb[68].mxu1 }
0x2d32   :  { %v6275_v32 = vadd.f32 %v13723_v28, %v12266_v21  ;;  %v6269_v33 = vpop.f32.mrb[69].mxu1 }
0x2d33   :  { %v6270_v35 = vadd.f32 %v12266_v21, %v6269_v33  ;;  %v16962_v21 = vld [vmem:[%s18714_s26 + $0x18] sm:$0x3f] }
0x2d34   :  { %v6279_v37 = vmul.f32 %v6275_v32, %v6275_v32  ;;  %v6427_v28 = vrot.slane %v16962_v21, %v15623_v16 }
0x2d35   :  { %v6278_v38 = vmul.f32 %v6270_v35, %v6270_v35 }
0x2d36   :  { %v6281_v39 = vmul.f32 %v6279_v37, %v6275_v32 }
0x2d37   :  { %v6280_v54 = vmul.f32 %v6278_v38, %v6270_v35  ;;  %v6433_v38 = vrot.slane %v16962_v21, %v15631_v18 }
0x2d38   :  { %v6283_v41 = vmul.f32 0.044715, %v6281_v39 }
0x2d39   :  { %v6282_v42 = vmul.f32 0.044715, %v6280_v54 }
0x2d3a   :  { %v6285_v49 = vadd.f32 %v6283_v41, %v6275_v32 }
0x2d3b   :  { %v6284_v36 = vadd.f32 %v6282_v42, %v6270_v35 }
0x2d3c   :  { %v6287_v20 = vmul.f32 0.7978846, %v6285_v49  ;;  %v12291_v49 = vld [vmem:[%s18715_s28 + $0x3] ss:$0 sm:$0xff]  ;;  %s18746_s28 = sld [smem:[#allocation22_spill]] }
0x2d3d   :  { %v6286_v40 = vmul.f32 0.7978846, %v6284_v36 }
0x2d3e   :  { %15053 = vtanh.f32 %v6287_v20 }
0x2d3f   :  { %15055 = vtanh.f32 %v6286_v40 }
0x2d48   :  { %v15054_v34 = vpop.eup %15053 }
0x2d49   :  { %v15056_v6 = vpop.eup %15055  ;;  %v6291_v44 = vadd.f32 1.0, %v15054_v34 }
0x2d4a   :  { %v6290_v15 = vadd.f32 1.0, %v15056_v6 }
0x2d4b   :  { %v6293_v47 = vmul.f32 0.5, %v6291_v44 }
0x2d4c   :  { %v6292_v48 = vmul.f32 0.5, %v6290_v15 }
0x2d4d   :  { %v6295_v51 = vmul.f32 %v6293_v47, %v6275_v32 }
0x2d4e   :  { %v6294_v50 = vmul.f32 %v6292_v48, %v6270_v35 }
0x2d50   :  { %13756 = vmatprep.mubr.f32.mxu0 %v6294_v50 }
0x2d51   :  { %13757 = vmatmul.mubr.f32.vlgmr.msra.gmra.mrb[74].mxu0 %v6295_v51 }
0x2d52   :  { %13802 = vmatprep.mubr.msk.f32.mxu0 %vm15133_vm2, %v15132_v29 }
0x2e24   :  { %v13758_v59 = vpop.f32.mrb[74].mxu0 }
0x2e25   :  { %v6389_v46 = vadd.f32 %v13758_v59, %v16845_v13  ;;  %v6379_v60 = vpop.f32.mrb[75].mxu0 }
0x2e26   :  { %v6388_v61 = vadd.f32 %v6379_v60, %v16848_v19 }
0x2e27   :  { %v16934_v53 = vadd.f32 %v6393_v55, %v6389_v46 }
0x2e28   :  { %v16936_v63 = vadd.f32 %v6393_v55, %v6388_v61 }
0x2e29   :  { %v6401_v0 = vsel %vm413_vm1, %v16934_v53, 0.0 }
0x2e2a   :  { %6402 = vadd.xlane.f32.xlu1 %v6401_v0  ;;  %v6398_v1 = vsel %vm409_vm0, %v16936_v63, 0.0 }
0x2e2b   :  { %6399 = vadd.xlane.f32.xlu0 %v6398_v1 }
0x2eb7   :  { %v6403_v7 = vpop.xlane.xlu1 %6402 }
0x2eb8   :  { %v6405_v45 = vmul.f32 0.03125, %v6403_v7  ;;  %v6400_v2 = vpop.xlane.xlu0 %6399 }
0x2eb9   :  { %v6404_v3 = vmul.f32 0.03125, %v6400_v2 }
0x2eba   :  { %v6407_v13 = vsub.f32 %v16934_v53, %v6405_v45 }
0x2ebb   :  { %v6406_v19 = vsub.f32 %v16936_v63, %v6404_v3 }
0x2ebc   :  { %v6409_v31 = vmul.f32 %v6407_v13, %v6407_v13 }
0x2ebd   :  { %v6408_v4 = vmul.f32 %v6406_v19, %v6406_v19 }
0x2ebe   :  { %v6413_v8 = vsel %vm413_vm1, %v6409_v31, 0.0 }
0x2ebf   :  { %6414 = vadd.xlane.f32.xlu1 %v6413_v8  ;;  %v6410_v5 = vsel %vm409_vm0, %v6408_v4, 0.0 }
0x2ec0   :  { %6411 = vadd.xlane.f32.xlu0 %v6410_v5 }
0x2f4c   :  { %v6415_v22 = vpop.xlane.xlu1 %6414 }
0x2f4d   :  { %v6417_v23 = vmul.f32 0.03125, %v6415_v22  ;;  %v6412_v25 = vpop.xlane.xlu0 %6411 }
0x2f4e   :  { %v6416_v26 = vmul.f32 0.03125, %v6412_v25 }
0x2f4f   :  { %v6419_v52 = vadd.f32 1e-12, %v6417_v23 }
0x2f50   :  { %v6418_v27 = vadd.f32 1e-12, %v6416_v26 }
0x2f51   :  { %15057 = vrsqrt.f32 %v6419_v52 }
0x2f52   :  { %15059 = vrsqrt.f32 %v6418_v27 }
0x2f5b   :  { %v15058_v32 = vpop.eup %15057 }
0x2f5c   :  { %v15060_v33 = vpop.eup %15059  ;;  %v6423_v35 = vmul.f32 %v15058_v32, %v6407_v13 }
0x2f5d   :  { %v6422_v37 = vmul.f32 %v15060_v33, %v6406_v19 }
0x2f5e   :  { %v6429_v39 = vmul.f32 %v6427_v28, %v6423_v35 }
0x2f5f   :  { %v6428_v54 = vmul.f32 %v6427_v28, %v6422_v37 }
0x2f60   :  { %v6435_v42 = vadd.f32 %v6433_v38, %v6429_v39 }
0x2f61   :  { %v6434_v41 = vadd.f32 %v6433_v38, %v6428_v54 }
0x2f63   :  { %13767 = vmatprep.mubr.msk.f32.mxu1 %vm409_vm0, %v6434_v41 }
0x2f64   :  { %13768 = vmatmul.mubr.msk.f32.vlgmr.msra.gmra.mrb[70].mxu1 %vm409_vm0, %v6435_v42 }
0x2f65   :  { %13772 = vmatprep.mubr.msk.f32.mxu1 %vm15133_vm2, %v15132_v29 }
0x3037   :  { %v13769_v36 = vpop.f32.mrb[70].mxu1 }
0x3038   :  { %v6527_v20 = vadd.f32 %v13769_v36, %v12291_v49  ;;  %v6521_v40 = vpop.f32.mrb[71].mxu1 }
0x3039   :  { %v16975_v34 = vadd.f32 %v12291_v49, %v6521_v40 }
0x303a   :  { %v7214_v17 = vrot.slane %v6527_v20, 5 }
0x303b   :  { %6531 = vrot.lane.b32.xlu0 %v16975_v34, %s18718_s21  ;;  %v7213_v10 = vrot.slane %v16975_v34, 5 }
0x303d   :  { %v17022_v30 = vsel %vm1231_vm7, %v7213_v10, %v7214_v17 }
0x303f   :  { %6698 = vrot.lane.b32.xlu0 %v16975_v34, %s18719_s22 }
0x30ad   :  { %v6532_v6 = vpop.permute.xlu0 %6531 }
0x30ae   :  { %13771 = vmatpush3.xpose.msk.msra.mxu1 %vm545_vm3, %v6532_v6 }
0x30af   :  { %13775 = vmatprep.subr.mxu1 %v15132_v29 }
0x30b1   :  { %13773 = vmatmul.mubr.msk.f32.vlgmr.msra.gmra.mrb[72].mxu1 %vm545_vm3, %v16975_v34  ;;  %v6699_v3 = vpop.permute.xlu0 %6698 }
0x30b2   :  { %13777 = vmatprep.mubr.msk.f32.mxu1 %vm15133_vm2, %v15132_v29 }
0x3184   :  { %v6603_v44 = vpop.f32.mrb[72].mxu1 }
0x3185   :  { %v6607_v15 = vmul.f32 0.35355338, %v6603_v44  ;;  %v13774_v47 = vpop.f32.mrb[73].mxu1 }
0x3187   :  { %v6608_v48 = vsel %vm621_vm4, %v6607_v15, -inf }
0x3188   :  { %6609 = vmax.xlane.f32.xlu1 %v6608_v48 }
0x3199   :  { %6619 = vrot.lane.b32.xlu1 %v16975_v34, %s18716_s27 }
0x3215   :  { %v6610_v50 = vpop.xlane.xlu1 %6609 }
0x3216   :  { %v6611_v51 = vsub.f32 %v6607_v15, %v6610_v50 }
0x3218   :  { %v6612_v55 = vmul.f32 1.442695, %v6611_v51 }
0x3219   :  { %v6620_v59 = vpop.permute.xlu1 %6619 }
0x321a   :  { %15061 = vpow2.f32 %v6612_v55  ;;  %13776 = vmatpush3.msk.msra.mxu1 %vm639_vm5, %v6620_v59 }
0x321b   :  { %13780 = vmatprep.subr.mxu1 %v15132_v29 }
0x3224   :  { %v15062_v46 = vpop.eup %15061 }
0x3225   :  { %v6614_v60 = vsel %vm621_vm4, %v15062_v46, 0.0 }
0x3226   :  { %6615 = vadd.xlane.f32.xlu1 %v6614_v60 }
0x3237   :  { %6696 = vrot.lane.b32.xlu1 %v16975_v34, %s18720_s19 }
0x323b   :  { %6865 = vrot.lane.b32.xlu1 %v16975_v34, %s18721_s4 }
0x323f   :  { %7032 = vrot.lane.b32.xlu1 %v16975_v34, %s18722_s23 }
0x32b3   :  { %v6616_v61 = vpop.xlane.xlu1 %6615 }
0x32b4   :  { %15063 = vrcp.f32 %v6616_v61 }
0x32b7   :  { %v6697_v0 = vpop.permute.xlu1 %6696 }
0x32bb   :  { %v16999_v1 = vpop.permute.xlu1 %6865 }
0x32be   :  { %v15064_v7 = vpop.eup %15063 }
0x32bf   :  { %v6618_v45 = vmul.f32 %v15064_v7, %v15062_v46  ;;  %v7033_v2 = vpop.permute.xlu1 %7032 }
0x32c0   :  { %13801 = vmatpush3.xpose.msk.msra.mxu0 %vm545_vm3, %v7033_v2 }
0x32c1   :  { %13778 = vmatmul.mubr.msk.f32.vlgmr.msra.gmra.mrb[74].mxu1 %vm635_vm6, %v6618_v45  ;;  %13810 = vmatprep.subr.mxu0 %v15132_v29 }
0x32c2   :  { %13781 = vmatpush3.xpose.msk.msra.mxu1 %vm545_vm3, %v6699_v3  ;;  %13782 = vmatprep.mubr.msk.f32.mxu1 %vm15133_vm2, %v15132_v29 }
0x32c3   :  { %13785 = vmatprep.subr.mxu1 %v15132_v29 }
0x32c5   :  { %13783 = vmatmul.mubr.msk.f32.vlgmr.msra.gmra.mrb[76].mxu1 %vm545_vm3, %v6697_v0 }
0x32c6   :  { %13787 = vmatprep.mubr.msk.f32.mxu1 %vm15133_vm2, %v15132_v29 }
0x3394   :  { %v17011_v13 = vpop.f32.mrb[74].mxu1 }
0x3395   :  { %v13779_v19 = vpop.f32.mrb[75].mxu1 }
0x3398   :  { %v6770_v31 = vpop.f32.mrb[76].mxu1 }
0x3399   :  { %v6774_v4 = vmul.f32 0.35355338, %v6770_v31  ;;  %v13784_v8 = vpop.f32.mrb[77].mxu1 }
0x339b   :  { %v6775_v5 = vsel %vm621_vm4, %v6774_v4, -inf }
0x339c   :  { %6776 = vmax.xlane.f32.xlu0 %v6775_v5 }
0x33b2   :  { %6786 = vrot.lane.b32.xlu0 %v16975_v34, %s18731_s14 }
0x33b6   :  { %6863 = vrot.lane.b32.xlu0 %v16975_v34, %s18724_s30 }
0x33ba   :  { %7030 = vrot.lane.b32.xlu0 %v16975_v34, %s18725_s0 }
0x33be   :  { %7383 = vrot.lane.b32.xlu0 %v17022_v30, %s18719_s22  ;;  %s18747_s22 = sld [smem:[#allocation24_spill]] }
0x33c2   :  { %7550 = vrot.lane.b32.xlu0 %v17022_v30, %s18721_s4  ;;  %s15150_s4 = smov [#allocation2]  }
0x33c6   :  { %7717 = vrot.lane.b32.xlu0 %v17022_v30, %s18722_s23 }
0x3429   :  { %v6777_v11 = vpop.xlane.xlu0 %6776 }
0x342a   :  { %v6778_v12 = vsub.f32 %v6774_v4, %v6777_v11 }
0x342c   :  { %v6779_v56 = vmul.f32 1.442695, %v6778_v12 }
0x342d   :  { %v6787_v22 = vpop.permute.xlu0 %6786 }
0x342e   :  { %15065 = vpow2.f32 %v6779_v56  ;;  %13786 = vmatpush3.msk.msra.mxu1 %vm639_vm5, %v6787_v22 }
0x342f   :  { %13790 = vmatprep.subr.mxu1 %v15132_v29 }
0x3431   :  { %v6864_v23 = vpop.permute.xlu0 %6863 }
0x3435   :  { %v7031_v25 = vpop.permute.xlu0 %7030 }
0x3436   :  { %13803 = vmatmul.mubr.msk.f32.vlgmr.msra.gmra.mrb[76].mxu0 %vm545_vm3, %v7031_v25 }
0x3437   :  { %13812 = vmatprep.mubr.msk.f32.mxu0 %vm15133_vm2, %v15132_v29 }
0x3438   :  { %v15066_v26 = vpop.eup %15065 }
0x3439   :  { %v6781_v52 = vsel %vm621_vm4, %v15066_v26, 0.0  ;;  %v7384_v28 = vpop.permute.xlu0 %7383 }
0x343a   :  { %6782 = vadd.xlane.f32.xlu1 %v6781_v52 }
0x343d   :  { %v7551_v35 = vpop.permute.xlu0 %7550 }
0x3441   :  { %v7718_v54 = vpop.permute.xlu0 %7717 }
0x344b   :  { %7216 = vrot.lane.b32.xlu1 %v17022_v30, %s18718_s21 }
0x344f   :  { %7381 = vrot.lane.b32.xlu1 %v17022_v30, %s18720_s19  ;;  %s18738_s19 = sld [smem:[#allocation15_spill]] }
0x3453   :  { %7548 = vrot.lane.b32.xlu1 %v17022_v30, %s18724_s30 }
0x3457   :  { %7715 = vrot.lane.b32.xlu1 %v17022_v30, %s18725_s0 }
0x34c7   :  { %v6783_v27 = vpop.xlane.xlu1 %6782 }
0x34c8   :  { %15067 = vrcp.f32 %v6783_v27 }
0x34cb   :  { %v7217_v32 = vpop.permute.xlu1 %7216 }
0x34cc   :  { %13811 = vmatpush3.xpose.msk.msra.mxu0 %vm545_vm3, %v7217_v32 }
0x34cd   :  { %13820 = vmatprep.subr.mxu0 %v15132_v29 }
0x34cf   :  { %13813 = vmatmul.mubr.msk.f32.vlgmr.msra.gmra.mrb[78].mxu0 %vm545_vm3, %v17022_v30  ;;  %v7382_v33 = vpop.permute.xlu1 %7381 }
0x34d0   :  { %13821 = vmatpush3.xpose.msk.msra.mxu0 %vm545_vm3, %v7384_v28  ;;  %13822 = vmatprep.mubr.msk.f32.mxu0 %vm15133_vm2, %v15132_v29 }
0x34d1   :  { %13830 = vmatprep.subr.mxu0 %v15132_v29 }
0x34d2   :  { %v15068_v37 = vpop.eup %15067 }
0x34d3   :  { %v6785_v38 = vmul.f32 %v15068_v37, %v15066_v26  ;;  %13823 = vmatmul.mubr.msk.f32.vlgmr.msra.gmra.mrb[80].mxu0 %vm545_vm3, %v7382_v33  ;;  %v7549_v39 = vpop.permute.xlu1 %7548 }
0x34d4   :  { %13831 = vmatpush3.xpose.msk.msra.mxu0 %vm545_vm3, %v7551_v35  ;;  %13832 = vmatprep.mubr.msk.f32.mxu0 %vm15133_vm2, %v15132_v29 }
0x34d5   :  { %13788 = vmatmul.mubr.msk.f32.vlgmr.msra.gmra.mrb[78].mxu1 %vm635_vm6, %v6785_v38  ;;  %13840 = vmatprep.subr.mxu0 %v15132_v29 }
0x34d6   :  { %13791 = vmatpush3.xpose.msk.msra.mxu1 %vm545_vm3, %v16999_v1  ;;  %13792 = vmatprep.mubr.msk.f32.mxu1 %vm15133_vm2, %v15132_v29 }
0x34d7   :  { %13833 = vmatmul.mubr.msk.f32.vlgmr.msra.gmra.mrb[82].mxu0 %vm545_vm3, %v7549_v39  ;;  %13795 = vmatprep.subr.mxu1 %v15132_v29  ;;  %v7716_v41 = vpop.permute.xlu1 %7715 }
0x34d8   :  { %13841 = vmatpush3.xpose.msk.msra.mxu0 %vm545_vm3, %v7718_v54  ;;  %13842 = vmatprep.mubr.msk.f32.mxu0 %vm15133_vm2, %v15132_v29 }
0x34d9   :  { %13793 = vmatmul.mubr.msk.f32.vlgmr.msra.gmra.mrb[80].mxu1 %vm545_vm3, %v6864_v23 }
0x34da   :  { %13797 = vmatprep.mubr.msk.f32.mxu1 %vm15133_vm2, %v15132_v29 }
0x34db   :  { %13843 = vmatmul.mubr.msk.f32.vlgmr.msra.gmra.mrb[84].mxu0 %vm545_vm3, %v7716_v41 }
0x3509   :  { %v7104_v42 = vpop.f32.mrb[76].mxu0 }
0x350a   :  { %v7108_v49 = vmul.f32 0.35355338, %v7104_v42  ;;  %v13804_v36 = vpop.f32.mrb[77].mxu0 }
0x350c   :  { %v7109_v20 = vsel %vm621_vm4, %v7108_v49, -inf }
0x350d   :  { %7110 = vmax.xlane.f32.xlu1 %v7109_v20 }
0x359a   :  { %v7111_v40 = vpop.xlane.xlu1 %7110 }
0x359b   :  { %v7112_v6 = vsub.f32 %v7108_v49, %v7111_v40 }
0x359d   :  { %v7113_v47 = vmul.f32 1.442695, %v7112_v6 }
0x359f   :  { %15069 = vpow2.f32 %v7113_v47 }
0x35a2   :  { %v7288_v44 = vpop.f32.mrb[78].mxu0 }
0x35a3   :  { %v13814_v15 = vpop.f32.mrb[79].mxu0  ;;  %v7292_v7 = vmul.f32 0.35355338, %v7288_v44 }
0x35a5   :  { %v7293_v8 = vsel %vm621_vm4, %v7292_v7, -inf }
0x35a6   :  { %v7455_v48 = vpop.f32.mrb[80].mxu0 }
0x35a7   :  { %v13824_v50 = vpop.f32.mrb[81].mxu0  ;;  %v7459_v4 = vmul.f32 0.35355338, %v7455_v48 }
0x35a8   :  { %v17072_v51 = vpop.f32.mrb[78].mxu1 }
0x35a9   :  { %v13789_v55 = vpop.f32.mrb[79].mxu1  ;;  %v17076_v31 = vpop.eup %15069  ;;  %v7460_v10 = vsel %vm621_vm4, %v7459_v4, -inf }
0x35aa   :  { %v7622_v59 = vpop.f32.mrb[82].mxu0  ;;  %v7115_v5 = vsel %vm621_vm4, %v17076_v31, 0.0 }
0x35ab   :  { %v13834_v46 = vpop.f32.mrb[83].mxu0  ;;  %v7626_v17 = vmul.f32 0.35355338, %v7622_v59 }
0x35ac   :  { %v6937_v60 = vpop.f32.mrb[80].mxu1 }
0x35ad   :  { %v6941_v61 = vmul.f32 0.35355338, %v6937_v60  ;;  %v13794_v0 = vpop.f32.mrb[81].mxu1  ;;  %v7627_v11 = vsel %vm621_vm4, %v7626_v17, -inf }
0x35ae   :  { %v7789_v1 = vpop.f32.mrb[84].mxu0 }
0x35af   :  { %v7793_v45 = vmul.f32 0.35355338, %v7789_v1  ;;  %v13844_v2 = vpop.f32.mrb[85].mxu0  ;;  %v6942_v3 = vsel %vm621_vm4, %v6941_v61, -inf }
0x35b0   :  { %6943 = vmax.xlane.f32.xlu0 %v6942_v3 }
0x35b1   :  { %v7794_v19 = vsel %vm621_vm4, %v7793_v45, -inf }
0x35b2   :  { %7795 = vmax.xlane.f32.xlu1 %v7794_v19 }
0x35b4   :  { %7294 = vmax.xlane.f32.xlu0 %v7293_v8 }
0x35b6   :  { %7116 = vadd.xlane.f32.xlu1 %v7115_v5 }
0x35b8   :  { %7461 = vmax.xlane.f32.xlu0 %v7460_v10 }
0x35bc   :  { %7628 = vmax.xlane.f32.xlu0 %v7627_v11 }
0x363d   :  { %v6944_v12 = vpop.xlane.xlu0 %6943 }
0x363e   :  { %v6945_v28 = vsub.f32 %v6941_v61, %v6944_v12 }
0x363f   :  { %v7796_v56 = vpop.xlane.xlu1 %7795 }
0x3640   :  { %v7797_v25 = vsub.f32 %v7793_v45, %v7796_v56  ;;  %v6946_v38 = vmul.f32 1.442695, %v6945_v28  ;;  %v12328_v28 = vld [vmem:[%s18732_s17 + $0x70] sm:$0xff] }
0x3641   :  { %v7295_v22 = vpop.xlane.xlu0 %7294 }
0x3642   :  { %v7296_v23 = vsub.f32 %v7292_v7, %v7295_v22  ;;  %v7798_v32 = vmul.f32 1.442695, %v7797_v25  ;;  %v12326_v22 = vld [vmem:[%s18732_s17 + $0x60] sm:$0xff] }
0x3643   :  { %v7117_v48 = vpop.xlane.xlu1 %7116 }
0x3644   :  { %v7297_v26 = vmul.f32 1.442695, %v7296_v23  ;;  %v12327_v23 = vld [vmem:[%s18732_s17 + $0x68] sm:$0xff] }
0x3645   :  { %v7462_v52 = vpop.xlane.xlu0 %7461 }
0x3646   :  { %15071 = vpow2.f32 %v7297_v26  ;;  %v7463_v27 = vsub.f32 %v7459_v4, %v7462_v52  ;;  %v14312_v26 = vpack.c.bf16 %v12327_v23, %v12326_v22 }
0x3648   :  { %v7464_v33 = vmul.f32 1.442695, %v7463_v27  ;;  %14313 = vmatprep.subr.bf16.mxu0 %v14312_v26 }
0x3649   :  { %v7629_v35 = vpop.xlane.xlu0 %7628  ;;  %14315 = vmatpush3.bf16.msra.mxu0 %v14312_v26 }
0x364a   :  { %15073 = vpow2.f32 %v7464_v33  ;;  %v7630_v37 = vsub.f32 %v7626_v17, %v7629_v35 }
0x364b   :  { %15075 = vpow2.f32 %v7798_v32  ;;  %v12329_v32 = vld [vmem:[%s18732_s17 + $0x78] sm:$0xff]  ;;  %s18745_s17 = sld [smem:[#allocation23_spill]] }
0x364c   :  { %v7631_v39 = vmul.f32 1.442695, %v7630_v37  ;;  %v14316_v33 = vpack.c.bf16 %v12329_v32, %v12328_v28  ;;  %v8021_v32 = vrot.slane %v16962_v21, %v15864_v57 }
0x364e   :  { %15077 = vpow2.f32 %v7631_v39  ;;  %14317 = vmatprep.subr.bf16.mxu0 %v14316_v33 }
0x364f   :  { %15079 = vpow2.f32 %v6946_v38  ;;  %14319 = vmatpush3.bf16.msra.mxu0 %v14316_v33 }
0x3650   :  { %v15072_v54 = vpop.eup %15071 }
0x3651   :  { %v7299_v41 = vsel %vm621_vm4, %v15072_v54, 0.0 }
0x3652   :  { %7300 = vadd.xlane.f32.xlu0 %v7299_v41 }
0x3654   :  { %v15074_v42 = vpop.eup %15073 }
0x3655   :  { %v7466_v49 = vsel %vm621_vm4, %v15074_v42, 0.0  ;;  %v17085_v36 = vpop.eup %15075 }
0x3656   :  { %7467 = vadd.xlane.f32.xlu1 %v7466_v49  ;;  %v7800_v6 = vsel %vm621_vm4, %v17085_v36, 0.0 }
0x3658   :  { %v15078_v20 = vpop.eup %15077 }
0x3659   :  { %v7633_v40 = vsel %vm621_vm4, %v15078_v20, 0.0  ;;  %v15080_v44 = vpop.eup %15079 }
0x365a   :  { %7634 = vadd.xlane.f32.xlu0 %v7633_v40  ;;  %7801 = vadd.xlane.f32.xlu1 %v7800_v6  ;;  %v6948_v15 = vsel %vm621_vm4, %v15080_v44, 0.0 }
0x365e   :  { %6949 = vadd.xlane.f32.xlu0 %v6948_v15 }
0x366b   :  { %7120 = vrot.lane.b32.xlu1 %v16975_v34, %s18726_s6 }
0x366f   :  { %7304 = vrot.lane.b32.xlu1 %v17022_v30, %s18716_s27  ;;  %s18737_s27 = sld [smem:[#allocation13_spill]] }
0x3673   :  { %7471 = vrot.lane.b32.xlu1 %v17022_v30, %s18731_s14 }
0x3674   :  { %6953 = vrot.lane.b32.xlu0 %v16975_v34, %s18727_s2 }
0x3677   :  { %7805 = vrot.lane.b32.xlu1 %v17022_v30, %s18726_s6 }
0x3678   :  { %7638 = vrot.lane.b32.xlu0 %v17022_v30, %s18727_s2  ;;  %s18744_s2 = sld [smem:[#allocation20_spill]] }
0x367c   :  { %7198 = vrot.lane.b32.xlu0 %v17072_v51, %s18728_s20 }
0x36df   :  { %v7301_v47 = vpop.xlane.xlu0 %7300 }
0x36e3   :  { %v7468_v55 = vpop.xlane.xlu1 %7467 }
0x36e7   :  { %v7635_v50 = vpop.xlane.xlu0 %7634  ;;  %v7802_v46 = vpop.xlane.xlu1 %7801 }
0x36eb   :  { %v6950_v59 = vpop.xlane.xlu0 %6949  ;;  %v7121_v34 = vpop.permute.xlu1 %7120 }
0x36ec   :  { %15081 = vrcp.f32 %v6950_v59 }
0x36ed   :  { %15083 = vrcp.f32 %v7117_v48 }
0x36ee   :  { %15085 = vrcp.f32 %v7301_v47 }
0x36ef   :  { %v6954_v60 = vpop.permute.xlu0 %6953  ;;  %15087 = vrcp.f32 %v7468_v55  ;;  %v7305_v1 = vpop.permute.xlu1 %7304 }
0x36f0   :  { %13796 = vmatpush3.msk.msra.mxu1 %vm639_vm5, %v6954_v60  ;;  %15089 = vrcp.f32 %v7635_v50  ;;  %v7909_v60 = vrot.slane %v16962_v21, %v15833_v24 }
0x36f1   :  { %13805 = vmatprep.subr.mxu1 %v15132_v29  ;;  %15091 = vrcp.f32 %v7802_v46 }
0x36f3   :  { %v7472_v3 = vpop.permute.xlu1 %7471  ;;  %v7639_v4 = vpop.permute.xlu0 %7638 }
0x36f6   :  { %v15082_v61 = vpop.eup %15081 }
0x36f7   :  { %v6952_v30 = vmul.f32 %v15082_v61, %v15080_v44  ;;  %v15084_v0 = vpop.eup %15083  ;;  %v7806_v17 = vpop.permute.xlu1 %7805 }
0x36f8   :  { %v7119_v51 = vmul.f32 %v15084_v0, %v17076_v31  ;;  %v15086_v7 = vpop.eup %15085 }
0x36f9   :  { %13798 = vmatmul.mubr.msk.f32.vlgmr.msra.gmra.mrb[82].mxu1 %vm635_vm6, %v6952_v30  ;;  %v7303_v45 = vmul.f32 %v15086_v7, %v15072_v54  ;;  %v15088_v2 = vpop.eup %15087 }
0x36fa   :  { %13806 = vmatpush3.msk.msra.mxu1 %vm639_vm5, %v7121_v34  ;;  %13807 = vmatprep.mubr.msk.f32.mxu1 %vm15133_vm2, %v15132_v29  ;;  %v7470_v19 = vmul.f32 %v15088_v2, %v15074_v42  ;;  %v15090_v31 = vpop.eup %15089  ;;  %v7199_v42 = vpop.permute.xlu0 %7198 }
0x36fb   :  { %13815 = vmatprep.subr.mxu1 %v15132_v29  ;;  %v7637_v8 = vmul.f32 %v15090_v31, %v15078_v20  ;;  %v15092_v5 = vpop.eup %15091  ;;  %v7209_v47 = vsel %vm545_vm3, %v17011_v13, %v7199_v42 }
0x36fc   :  { %v7804_v10 = vmul.f32 %v15092_v5, %v17085_v36 }
0x36fd   :  { %13808 = vmatmul.mubr.msk.f32.vlgmr.msra.gmra.mrb[84].mxu1 %vm635_vm6, %v7119_v51 }
0x36fe   :  { %13816 = vmatpush3.msk.msra.mxu1 %vm639_vm5, %v7305_v1  ;;  %13817 = vmatprep.mubr.msk.f32.mxu1 %vm15133_vm2, %v15132_v29 }
0x36ff   :  { %13825 = vmatprep.subr.mxu1 %v15132_v29 }
0x3701   :  { %13818 = vmatmul.mubr.msk.f32.vlgmr.msra.gmra.mrb[86].mxu1 %vm635_vm6, %v7303_v45 }
0x3702   :  { %13826 = vmatpush3.msk.msra.mxu1 %vm639_vm5, %v7472_v3  ;;  %13827 = vmatprep.mubr.msk.f32.mxu1 %vm15133_vm2, %v15132_v29 }
0x3703   :  { %13835 = vmatprep.subr.mxu1 %v15132_v29 }
0x3705   :  { %13828 = vmatmul.mubr.msk.f32.vlgmr.msra.gmra.mrb[88].mxu1 %vm635_vm6, %v7470_v19 }
0x3706   :  { %13836 = vmatpush3.msk.msra.mxu1 %vm639_vm5, %v7639_v4  ;;  %13837 = vmatprep.mubr.msk.f32.mxu1 %vm15133_vm2, %v15132_v29 }
0x3707   :  { %13845 = vmatprep.subr.mxu1 %v15132_v29 }
0x3709   :  { %13838 = vmatmul.mubr.msk.f32.vlgmr.msra.gmra.mrb[90].mxu1 %vm635_vm6, %v7637_v8 }
0x370a   :  { %13846 = vmatpush3.msk.msra.mxu1 %vm639_vm5, %v7806_v17  ;;  %13847 = vmatprep.mubr.msk.f32.mxu1 %vm15133_vm2, %v15132_v29  ;;  %v12332_v17 = vld [vmem:[%s18735_s16 + $0x60] sm:$0xff] }
0x370d   :  { %13848 = vmatmul.mubr.msk.f32.vlgmr.msra.gmra.mrb[92].mxu1 %vm635_vm6, %v7804_v10  ;;  %v12333_v10 = vld [vmem:[%s18735_s16 + $0x68] sm:$0xff] }
0x37cc   :  { %v7026_v11 = vpop.f32.mrb[82].mxu1 }
0x37cd   :  { %v13799_v12 = vpop.f32.mrb[83].mxu1 }
0x37ce   :  { %v12334_v12 = vld [vmem:[%s18735_s16 + $0x70] sm:$0xff] }
0x37d0   :  { %v7193_v56 = vpop.f32.mrb[84].mxu1 }
0x37d1   :  { %v13809_v25 = vpop.f32.mrb[85].mxu1 }
0x37d4   :  { %v7377_v52 = vpop.f32.mrb[86].mxu1 }
0x37d5   :  { %v13819_v27 = vpop.f32.mrb[87].mxu1 }
0x37d8   :  { %v7544_v35 = vpop.f32.mrb[88].mxu1 }
0x37d9   :  { %7883 = vrot.lane.b32.xlu0 %v7544_v35, %s18728_s20  ;;  %v13829_v37 = vpop.f32.mrb[89].mxu1 }
0x37da   :  { %v8027_v37 = vrot.slane %v16962_v21, %v15867_v58  ;;  %v12341_v58 = vld [vmem:[%s18622_s9 + $0x188] sm:$0xff] }
0x37dc   :  { %v7711_v38 = vpop.f32.mrb[90].mxu1 }
0x37dd   :  { %7202 = vrot.lane.b32.xlu0 %v7026_v11, %s18733_s29  ;;  %7887 = vrot.lane.b32.xlu1 %v7711_v38, %s18733_s29  ;;  %v13839_v39 = vpop.f32.mrb[91].mxu1  ;;  %v14320_v11 = vpack.c.bf16 %v12333_v10, %v12332_v17 }
0x37df   :  { %14321 = vmatprep.subr.bf16.mxu1 %v14320_v11 }
0x37e0   :  { %v7878_v54 = vpop.f32.mrb[92].mxu1  ;;  %14323 = vmatpush3.bf16.msra.mxu1 %v14320_v11 }
0x37e1   :  { %7891 = vrot.lane.b32.xlu1 %v7878_v54, %s18734_s12  ;;  %v13849_v41 = vpop.f32.mrb[93].mxu1 }
0x37e5   :  { %7206 = vrot.lane.b32.xlu1 %v7193_v56, %s18734_s12  ;;  %v12335_v56 = vld [vmem:[%s18735_s16 + $0x78] sm:$0xff] }
0x37e6   :  { %v14324_v22 = vpack.c.bf16 %v12335_v56, %v12334_v12 }
0x37e8   :  { %14325 = vmatprep.subr.bf16.mxu1 %v14324_v22 }
0x37e9   :  { %14327 = vmatpush3.bf16.msra.mxu1 %v14324_v22 }
0x37ea   :  { %14360 = vmatprep.subr.bf16.mxu1 %v15148_v43 }
0x384b   :  { %v7884_v49 = vpop.permute.xlu0 %7883 }
0x384c   :  { %v7894_v20 = vsel %vm545_vm3, %v7377_v52, %v7884_v49 }
0x384f   :  { %v7888_v36 = vpop.permute.xlu1 %7887  ;;  %v7203_v44 = vpop.permute.xlu0 %7202 }
0x3850   :  { %v7895_v40 = vsel %vm1226_vm8, %v7894_v20, %v7888_v36  ;;  %v7210_v48 = vsel %vm1226_vm8, %v7209_v47, %v7203_v44  ;;  %v12340_v36 = vld [vmem:[%s18622_s9 + $0x180] sm:$0xff]  ;;  %v12345_v47 = vld [vmem:[%s18622_s9 + $0x1a8] sm:$0xff] }
0x3851   :  { %v14328_v20 = vpack.c.bf16 %v12341_v58, %v12340_v36 }
0x3853   :  { %v7892_v6 = vpop.permute.xlu1 %7891  ;;  %14329 = vmatprep.subr.bf16.mxu0 %v14328_v20 }
0x3854   :  { %v7896_v15 = vsel %vm1228_vm9, %v7895_v40, %v7892_v6  ;;  %v12342_v40 = vld [vmem:[%s18622_s9 + $0x190] sm:$0xff]  ;;  %v12343_v6 = vld [vmem:[%s18622_s9 + $0x198] sm:$0xff] }
0x3855   :  { %v7898_v50 = vrot.slane %v7896_v15, 3  ;;  %v14332_v44 = vpack.c.bf16 %v12343_v6, %v12342_v40  ;;  %v12344_v15 = vld [vmem:[%s18622_s9 + $0x1a0] sm:$0xff] }
0x3857   :  { %v7207_v55 = vpop.permute.xlu1 %7206 }
0x3858   :  { %v7211_v59 = vsel %vm1228_vm9, %v7210_v48, %v7207_v55  ;;  %v14336_v48 = vpack.c.bf16 %v12345_v47, %v12344_v15  ;;  %v12347_v55 = vld [vmem:[%s18622_s9 + $0x1b8] sm:$0xff] }
0x3859   :  { %v7900_v46 = vsel %vm639_vm5, %v7211_v59, %v7898_v50 }
0x385a   :  { %13858 = vmatprep.mubr.msk.f32.mxu0 %vm409_vm0, %v7900_v46  ;;  %v12348_v46 = vld [vmem:[%s18622_s9 + $0x1c0] sm:$0xff] }
0x385b   :  { %13859 = vmatmul.mubr.msk.f32.vlgmr.msra.gmra.mrb[86].mxu0 %vm409_vm0, %v7898_v50  ;;  %v12346_v50 = vld [vmem:[%s18622_s9 + $0x1b0] sm:$0xff] }
0x385c   :  { %14331 = vmatpush3.bf16.msra.mxu0 %v14328_v20  ;;  %v14340_v59 = vpack.c.bf16 %v12347_v55, %v12346_v50  ;;  %v12360_v50 = vld [vmem:[%s18736_s11 + $0x38] sm:$0xff] }
0x385d   :  { %14333 = vmatprep.subr.bf16.mxu0 %v14332_v44 }
0x3860   :  { %14335 = vmatpush3.bf16.msra.mxu0 %v14332_v44 }
0x3861   :  { %14337 = vmatprep.subr.bf16.mxu0 %v14336_v48 }
0x3864   :  { %14339 = vmatpush3.bf16.msra.mxu0 %v14336_v48  ;;  %v12359_v48 = vld [vmem:[%s18736_s11 + $0x30] sm:$0xff] }
0x3865   :  { %14341 = vmatprep.subr.bf16.mxu0 %v14340_v59  ;;  %v14364_v55 = vpack.c.bf16 %v12360_v50, %v12359_v48 }
0x3868   :  { %14343 = vmatpush3.bf16.msra.mxu0 %v14340_v59 }
0x392e   :  { %v13860_v34 = vpop.f32.mrb[86].mxu0 }
0x392f   :  { %v7987_v61 = vadd.f32 %v13860_v34, %v7909_v60  ;;  %v7981_v30 = vpop.f32.mrb[87].mxu0  ;;  %v12350_v34 = vld [vmem:[%s18622_s9 + $0x1d0] sm:$0xff] }
0x3930   :  { %v7982_v0 = vadd.f32 %v7981_v30, %v7909_v60  ;;  %v12349_v60 = vld [vmem:[%s18622_s9 + $0x1c8] sm:$0xff]  ;;  %v12351_v30 = vld [vmem:[%s18622_s9 + $0x1d8] sm:$0xff] }
0x3931   :  { %v7991_v13 = vadd.f32 %v7987_v61, %v16934_v53  ;;  %v14344_v61 = vpack.c.bf16 %v12349_v60, %v12348_v46 }
0x3932   :  { %v17165_v51 = vadd.f32 %v7982_v0, %v16936_v63  ;;  %v14348_v0 = vpack.c.bf16 %v12351_v30, %v12350_v34  ;;  %v12356_v34 = vld [vmem:[%s18737_s27 + $0x4] sm:$0x7] }
0x3933   :  { %v7995_v1 = vsel %vm413_vm1, %v7991_v13, 0.0  ;;  %14345 = vmatprep.subr.bf16.mxu0 %v14344_v61 }
0x3934   :  { %7996 = vadd.xlane.f32.xlu1 %v7995_v1  ;;  %v7992_v7 = vsel %vm409_vm0, %v17165_v51, 0.0  ;;  %v12353_v1 = vld [vmem:[%s18622_s9 + $0x1e8] sm:$0xff]  ;;  %14347 = vmatpush3.bf16.msra.mxu0 %v14344_v61 }
0x3935   :  { %7993 = vadd.xlane.f32.xlu0 %v7992_v7  ;;  %14349 = vmatprep.subr.bf16.mxu0 %v14348_v0 }
0x3938   :  { %14351 = vmatpush3.bf16.msra.mxu0 %v14348_v0  ;;  %v8266_v0 = vrot.slane %v12356_v34, %v15631_v18 }
0x39c1   :  { %v7997_v45 = vpop.xlane.xlu1 %7996 }
0x39c2   :  { %v7999_v2 = vmul.f32 0.03125, %v7997_v45  ;;  %v7994_v3 = vpop.xlane.xlu0 %7993  ;;  %v12354_v45 = vld [vmem:[%s18622_s9 + $0x1f0] sm:$0xff] }
0x39c3   :  { %v7998_v19 = vmul.f32 0.03125, %v7994_v3 }
0x39c4   :  { %v8001_v31 = vsub.f32 %v7991_v13, %v7999_v2  ;;  %v12352_v13 = vld [vmem:[%s18622_s9 + $0x1e0] sm:$0xff]  ;;  %v12355_v2 = vld [vmem:[%s18622_s9 + $0x1f8] sm:$0xff] }
0x39c5   :  { %v8000_v4 = vsub.f32 %v17165_v51, %v7998_v19  ;;  %v14352_v7 = vpack.c.bf16 %v12353_v1, %v12352_v13  ;;  %v14356_v3 = vpack.c.bf16 %v12355_v2, %v12354_v45  ;;  %v12337_v19 = vld [vmem:[%s18621_s8 + $0x3] ss:$0 sm:$0xff]  ;;  %v12365_v2 = vld [vmem:[%s18738_s19 + $0x98] sm:$0xff] }
0x39c6   :  { %v8003_v5 = vmul.f32 %v8001_v31, %v8001_v31  ;;  %v12366_v45 = vld [vmem:[%s18738_s19 + $0xa0] sm:$0xff] }
0x39c7   :  { %v8002_v8 = vmul.f32 %v8000_v4, %v8000_v4  ;;  %14353 = vmatprep.subr.bf16.mxu0 %v14352_v7 }
0x39c8   :  { %v8007_v63 = vsel %vm413_vm1, %v8003_v5, 0.0  ;;  %14355 = vmatpush3.bf16.msra.mxu0 %v14352_v7  ;;  %v12362_v7 = vld [vmem:[%s18738_s19 + $0x80] sm:$0xff] }
0x39c9   :  { %v8004_v53 = vsel %vm409_vm0, %v8002_v8, 0.0  ;;  %14357 = vmatprep.subr.bf16.mxu0 %v14356_v3 }
0x39ca   :  { %8005 = vadd.xlane.f32.xlu0 %v8004_v53 }
0x39cc   :  { %14359 = vmatpush3.bf16.msra.mxu0 %v14356_v3  ;;  %v12379_v3 = vcombine.high %v12362_v7, %v12366_v45 }
0x39ce   :  { %8008 = vadd.xlane.f32.xlu0 %v8007_v63 }
0x3a57   :  { %v8006_v23 = vpop.xlane.xlu0 %8005 }
0x3a58   :  { %v8010_v25 = vmul.f32 0.03125, %v8006_v23 }
0x3a5a   :  { %v8012_v26 = vadd.f32 1e-12, %v8010_v25 }
0x3a5b   :  { %v8009_v52 = vpop.xlane.xlu0 %8008 }
0x3a5c   :  { %15093 = vrsqrt.f32 %v8012_v26  ;;  %v8011_v27 = vmul.f32 0.03125, %v8009_v52 }
0x3a5e   :  { %v8013_v28 = vadd.f32 1e-12, %v8011_v27 }
0x3a60   :  { %15095 = vrsqrt.f32 %v8013_v28 }
0x3a66   :  { %v15094_v33 = vpop.eup %15093 }
0x3a67   :  { %v8016_v35 = vmul.f32 %v15094_v33, %v8000_v4 }
0x3a69   :  { %v8022_v38 = vmul.f32 %v8021_v32, %v8016_v35 }
0x3a6a   :  { %v15096_v39 = vpop.eup %15095 }
0x3a6b   :  { %v8017_v54 = vmul.f32 %v15096_v39, %v8001_v31  ;;  %v8028_v41 = vadd.f32 %v8027_v37, %v8022_v38  ;;  %v8237_v39 = vrot.slane %v16962_v21, %v15930_v62  ;;  %v12357_v21 = vld [vmem:[%s18736_s11 + $0x20] sm:$0xff] }
0x3a6d   :  { %v8023_v42 = vmul.f32 %v8021_v32, %v8017_v54  ;;  %13869 = vmatprep.mubr.msk.f32.mxu1 %vm409_vm0, %v8028_v41 }
0x3a6f   :  { %v8029_v49 = vadd.f32 %v8027_v37, %v8023_v42 }
0x3a71   :  { %13870 = vmatmul.mubr.msk.f32.vlgmr.msra.gmra.mrb[94].mxu1 %vm409_vm0, %v8029_v49 }
0x3a72   :  { %13915 = vmatprep.mubr.msk.f32.mxu1 %vm15133_vm2, %v15132_v29 }
0x3b44   :  { %v13871_v31 = vpop.f32.mrb[94].mxu1 }
0x3b45   :  { %v8121_v4 = vadd.f32 %v13871_v31, %v12337_v19  ;;  %v8115_v8 = vpop.f32.mrb[95].mxu1  ;;  %v12378_v31 = vcombine.low %v12362_v7, %v12366_v45  ;;  %v8352_v45 = vld [vmem:[%s18738_s19] sm:$0xff] }
0x3b46   :  { %v8116_v53 = vadd.f32 %v12337_v19, %v8115_v8  ;;  %v12369_v19 = vld [vmem:[%s18738_s19 + $0xb8] sm:$0xff] }
0x3b47   :  { %v8125_v5 = vmul.f32 %v8121_v4, %v8121_v4  ;;  %v12385_v8 = vcombine.high %v12365_v2, %v12369_v19 }
0x3b48   :  { %v8124_v63 = vmul.f32 %v8116_v53, %v8116_v53 }
0x3b49   :  { %v8127_v17 = vmul.f32 %v8125_v5, %v8121_v4  ;;  %8591 = vmatprep.subr.bf16.mxu0 %v12385_v8  ;;  %v12374_v5 = vld [vmem:[%s18738_s19 + $0xe0] sm:$0xff] }
0x3b4a   :  { %v8126_v10 = vmul.f32 %v8124_v63, %v8116_v53  ;;  %v12373_v63 = vld [vmem:[%s18738_s19 + $0xd8] sm:$0xff]  ;;  %v8360_v8 = vld [vmem:[%s18738_s19 + $0x40] sm:$0xff] }
0x3b4b   :  { %v8129_v11 = vmul.f32 0.044715, %v8127_v17 }
0x3b4c   :  { %v8128_v12 = vmul.f32 0.044715, %v8126_v10  ;;  %v12377_v10 = vld [vmem:[%s18738_s19 + $0xf8] sm:$0xff] }
0x3b4d   :  { %v8131_v56 = vadd.f32 %v8129_v11, %v8121_v4 }
0x3b4e   :  { %v8130_v22 = vadd.f32 %v8128_v12, %v8116_v53  ;;  %v12392_v12 = vcombine.low %v12373_v63, %v12377_v10 }
0x3b4f   :  { %v8133_v23 = vmul.f32 0.7978846, %v8131_v56  ;;  %v12393_v56 = vcombine.high %v12373_v63, %v12377_v10  ;;  %v8354_v10 = vld [vmem:[%s18738_s19 + $0x10] sm:$0xff] }
0x3b50   :  { %v8132_v25 = vmul.f32 0.7978846, %v8130_v22  ;;  %v12363_v22 = vld [vmem:[%s18738_s19 + $0x88] sm:$0xff] }
0x3b51   :  { %15097 = vtanh.f32 %v8133_v23  ;;  %v12367_v23 = vld [vmem:[%s18738_s19 + $0xa8] sm:$0xff] }
0x3b52   :  { %15099 = vtanh.f32 %v8132_v25  ;;  %v8353_v25 = vld [vmem:[%s18738_s19 + $0x8] sm:$0xff] }
0x3b5b   :  { %v15098_v26 = vpop.eup %15097 }
0x3b5c   :  { %v15100_v52 = vpop.eup %15099  ;;  %v8137_v27 = vadd.f32 1.0, %v15098_v26  ;;  %v15149_v26 = vmov 0  }
0x3b5d   :  { %v8136_v28 = vadd.f32 1.0, %v15100_v52  ;;  %v12381_v52 = vcombine.high %v12363_v22, %v12367_v23 }
0x3b5e   :  { %v8139_v32 = vmul.f32 0.5, %v8137_v27  ;;  %v8357_v27 = vld [vmem:[%s18738_s19 + $0x28] sm:$0xff] }
0x3b5f   :  { %v8138_v33 = vmul.f32 0.5, %v8136_v28  ;;  %v12380_v28 = vcombine.low %v12363_v22, %v12367_v23  ;;  %v14428_v23 = vld [vmem:[%s18739_s3 + $0x28] ss:$16 sps:$4 sm:$0xff]  }
0x3b60   :  { %v8141_v37 = vmul.f32 %v8139_v32, %v8121_v4  ;;  %v12384_v4 = vcombine.low %v12365_v2, %v12369_v19  ;;  %v12400_v32 = vcombine.low %v8353_v25, %v8357_v27  ;;  %v8356_v2 = vld [vmem:[%s18738_s19 + $0x20] sm:$0xff] }
0x3b61   :  { %v8140_v35 = vmul.f32 %v8138_v33, %v8116_v53  ;;  %v12370_v53 = vld [vmem:[%s18738_s19 + $0xc0] sm:$0xff]  ;;  %v12401_v33 = vcombine.high %v8353_v25, %v8357_v27  ;;  %v8362_v25 = vld [vmem:[%s18738_s19 + $0x50] sm:$0xff]  ;;  %v14436_v27 = vld [vmem:[%s18739_s3 + $0x4c] ss:$16 sps:$4 sm:$0xff]  }
0x3b62   :  { %v12387_v17 = vcombine.high %v12370_v53, %v12374_v5  ;;  %v12386_v11 = vcombine.low %v12370_v53, %v12374_v5  ;;  %v8364_v53 = vld [vmem:[%s18738_s19 + $0x60] sm:$0xff]  ;;  %v12398_v5 = vcombine.low %v8352_v45, %v8356_v2 }
0x3b63   :  { %13904 = vmatprep.mubr.f32.mxu0 %v8140_v35  ;;  %v8276_v35 = vrot.slane %v12356_v34, %v15864_v57  ;;  %v12407_v63 = vcombine.high %v8360_v8, %v8364_v53 }
0x3b64   :  { %13905 = vmatmul.mubr.f32.vlgmr.msra.gmra.mrb[88].mxu0 %v8141_v37 }
0x3b65   :  { %8592 = vmatpush1.bf16.msra.mxu0 %v12384_v4  ;;  %8623 = vmatprep.mubr.bf16.mxu0 %v15149_v26  ;;  %v14424_v4 = vld [vmem:[%s18739_s3 + $0xc] ss:$16 sps:$4 sm:$0xff]  }
0x3b66   :  { %8593 = vmatprep.subr.bf16.mxu0 %v12393_v56  ;;  %v12406_v56 = vcombine.low %v8360_v8, %v8364_v53  ;;  %v14490_v8 = vld [vmem:[%s18739_s3 + $0x16c] ss:$16 sps:$4 sm:$0xff]   ;;  %v14485_v53 = vld [vmem:[%s18739_s3 + $0x160] ss:$16 sps:$4 sm:$0xff]  }
0x3b69   :  { %8594 = vmatpush1.bf16.msra.mxu0 %v12392_v12  ;;  %v14430_v12 = vld [vmem:[%s18739_s3 + $0x2c] ss:$16 sps:$4 sm:$0xff]  }
0x3b6a   :  { %8756 = vmatprep.subr.bf16.mxu0 %v12401_v33  ;;  %v14434_v33 = vld [vmem:[%s18739_s3 + $0x48] ss:$16 sps:$4 sm:$0xff]  }
0x3c37   :  { %v13906_v38 = vpop.f32.mrb[88].mxu0 }
0x3c38   :  { %v8225_v54 = vpop.f32.mrb[89].mxu0  ;;  %v15107_v38 = vld [vmem:[%s18737_s27] sm:$0x7]  ;;  %s11984_s27 = sshll.u32 %s15150_s4, 4  ;;  %s11985_s27 = int_to_ptr.vmem [resolvable:$true] %s11984_s27 }
0x3c39   :  { %v8233_v41 = vadd.f32 %v8225_v54, %v17165_v51  ;;  %v12358_v51 = vld [vmem:[%s18736_s11 + $0x28] sm:$0xff]  ;;  %s18741_s11 = sld [smem:[#allocation19_spill]]  ;;  %s15108_s23 = scalar_lea.vmem %s11985_s27, 32 }
0x3c3a   :  { %v14361_v47 = vpack.c.bf16 %v12358_v51, %v12357_v21  ;;  %v12368_v21 = vld [vmem:[%s18738_s19 + $0xb0] sm:$0xff]  ;;  %v8355_v51 = vld [vmem:[%s18738_s19 + $0x18] sm:$0xff]  ;;  %p15109_p0 = scmp.ne.s32.totalorder %s11985_s27, %s15108_s23  ;;  %p15113_p1 = scmp.lt.s32.totalorder %s11985_s27, %s11985_s27 }
0x3c3b   :  { %v8238_v42 = vadd.f32 %v8237_v39, %v8233_v41  ;;  %v4136_v39 = vrot.slane %v15107_v38, %v15864_v57  ;;  %v14421_v38 = vld [vmem:[%s18739_s3 + $0x4] ss:$16 sps:$4 sm:$0xff]   ;;  %p15114_p2 = scmp.lt.s32.totalorder %s15108_s23, %s15108_s23 }
0x3c3c   :  { %14362 = vmatpush3.bf16.msra.mxu1 %v14361_v47  ;;  %v8359_v47 = vld [vmem:[%s18738_s19 + $0x38] sm:$0xff] }
0x3c3d   :  { %v8242_v49 = vrot.slane %v8238_v42, 4  ;;  %14363 = vmatprep.subr.bf16.mxu1 %v15148_v43  ;;  %v8261_v43 = vrot.slane %v12356_v34, %v15623_v16  ;;  %v12376_v34 = vld [vmem:[%s18738_s19 + $0xf0] sm:$0xff]  ;;  %p15115_p3 = por %p15114_p2, %p15113_p1 }
0x3c3f   :  { %v8244_v36 = vsel %vm4104_vm10, %v8238_v42, %v8242_v49  ;;  %v4207_v42 = vadd.f32 %v16604_v9, %v4136_v39  ;;  %v12371_v49 = vld [vmem:[%s18738_s19 + $0xc8] sm:$0xff]  ;;  %p15116_p4 = pnand %p15115_p3, %p15109_p0 }
0x3c40   :  { %v8245_v58 = vsel %vm413_vm1, %v8244_v36, 0.0  ;;  %14365 = vmatpush3.bf16.msra.mxu1 %v14364_v55  ;;  %v14440_v39 = vld [vmem:[%s18739_s3 + $0x68] ss:$16 sps:$4 sm:$0xff]  }
0x3c41   :  { %8246 = vadd.xlane.f32.xlu0 %v8245_v58  ;;  %8468 = vmatprep.subr.bf16.mxu1 %v12379_v3  ;;  %v8361_v58 = vld [vmem:[%s18738_s19 + $0x48] sm:$0xff] }
0x3cce   :  { %v8247_v20 = vpop.xlane.xlu0 %8246 }
0x3ccf   :  { %v8248_v40 = vmul.f32 0.03125, %v8247_v20  ;;  %v8365_v20 = vld [vmem:[%s18738_s19 + $0x68] sm:$0xff] }
0x3cd0   :  { %v12408_v50 = vcombine.low %v8361_v58, %v8365_v20 }
0x3cd1   :  { %v8249_v6 = vsub.f32 %v8244_v36, %v8248_v40  ;;  %v12375_v36 = vld [vmem:[%s18738_s19 + $0xe8] sm:$0xff] }
0x3cd2   :  { %v12389_v9 = vcombine.high %v12371_v49, %v12375_v36  ;;  %v12388_v48 = vcombine.low %v12371_v49, %v12375_v36  ;;  %v14454_v49 = vld [vmem:[%s18739_s3 + $0xac] ss:$16 sps:$4 sm:$0xff]   ;;  %v14425_v36 = vld [vmem:[%s18739_s3 + $0x20] ss:$16 sps:$4 sm:$0xff]  }
0x3cd3   :  { %v8250_v44 = vmul.f32 %v8249_v6, %v8249_v6 }
0x3cd5   :  { %v8251_v15 = vsel %vm413_vm1, %v8250_v44, 0.0  ;;  %v12409_v44 = vcombine.high %v8361_v58, %v8365_v20  ;;  %v14433_v58 = vld [vmem:[%s18739_s3 + $0x44] ss:$16 sps:$4 sm:$0xff]   ;;  %v14452_v20 = vld [vmem:[%s18739_s3 + $0xa8] ss:$16 sps:$4 sm:$0xff]  }
0x3cd6   :  { %8252 = vadd.xlane.f32.xlu1 %v8251_v15  ;;  %v12364_v15 = vld [vmem:[%s18738_s19 + $0x90] sm:$0xff] }
0x3cd7   :  { %v12383_v55 = vcombine.high %v12364_v15, %v12368_v21 }
0x3d63   :  { %v8253_v59 = vpop.xlane.xlu1 %8252 }
0x3d64   :  { %v8254_v46 = vmul.f32 0.03125, %v8253_v59  ;;  %v12405_v59 = vcombine.high %v8355_v51, %v8359_v47 }
0x3d66   :  { %v8255_v60 = vadd.f32 1e-12, %v8254_v46  ;;  %v12372_v46 = vld [vmem:[%s18738_s19 + $0xd0] sm:$0xff] }
0x3d67   :  { %v12390_v3 = vcombine.low %v12372_v46, %v12376_v34 }
0x3d68   :  { %15101 = vrsqrt.f32 %v8255_v60 }
0x3d72   :  { %v15102_v61 = vpop.eup %15101 }
0x3d73   :  { %v8257_v30 = vmul.f32 %v15102_v61, %v8249_v6  ;;  %v8367_v61 = vld [vmem:[%s18738_s19 + $0x78] sm:$0xff] }
0x3d75   :  { %v8262_v13 = vmul.f32 %v8261_v43, %v8257_v30  ;;  %v8363_v43 = vld [vmem:[%s18738_s19 + $0x58] sm:$0xff]  ;;  %v12382_v30 = vcombine.low %v12364_v15, %v12368_v21  ;;  %v14443_v15 = vld [vmem:[%s18739_s3 + $0x80] ss:$16 sps:$4 sm:$0xff]   ;;  %v14451_v21 = vld [vmem:[%s18739_s3 + $0xa4] ss:$16 sps:$4 sm:$0xff]  }
0x3d76   :  { %v12413_v7 = vcombine.high %v8363_v43, %v8367_v61  ;;  %v12412_v19 = vcombine.low %v8363_v43, %v8367_v61  ;;  %v14469_v43 = vld [vmem:[%s18739_s3 + $0x104] ss:$16 sps:$4 sm:$0xff]   ;;  %v14472_v61 = vld [vmem:[%s18739_s3 + $0x10c] ss:$16 sps:$4 sm:$0xff]  }
0x3d77   :  { %v8267_v1 = vadd.f32 %v8266_v0, %v8262_v13  ;;  %v12404_v0 = vcombine.low %v8355_v51, %v8359_v47  ;;  %v14449_v51 = vld [vmem:[%s18739_s3 + $0xa0] ss:$16 sps:$4 sm:$0xff]   ;;  %v14457_v47 = vld [vmem:[%s18739_s3 + $0xc4] ss:$16 sps:$4 sm:$0xff]  }
0x3d79   :  { %13916 = vmatmul.mubr.msk.f32.vlgmr.msra.gmra.mrb[96].mxu1 %vm409_vm0, %v8267_v1  ;;  %v12391_v1 = vcombine.high %v12372_v46, %v12376_v34  ;;  %v14463_v46 = vld [vmem:[%s18739_s3 + $0xe4] ss:$16 sps:$4 sm:$0xff]   ;;  %v14466_v34 = vld [vmem:[%s18739_s3 + $0xec] ss:$16 sps:$4 sm:$0xff]  }
0x3d7a   :  { %8469 = vmatpush1.bf16.msra.mxu1 %v12378_v31  ;;  %8500 = vmatprep.mubr.bf16.mxu1 %v15149_v26  ;;  %v12399_v31 = vcombine.high %v8352_v45, %v8356_v2  ;;  %v14476_v45 = vld [vmem:[%s18739_s3 + $0x128] ss:$16 sps:$4 sm:$0xff]   ;;  %v14481_v2 = vld [vmem:[%s18739_s3 + $0x144] ss:$16 sps:$4 sm:$0xff]  }
0x3d7b   :  { %8470 = vmatprep.subr.bf16.mxu1 %v12387_v17  ;;  %v14422_v17 = vld [vmem:[%s18739_s3 + $0x8] ss:$16 sps:$4 sm:$0xff]  }
0x3d7e   :  { %8471 = vmatpush1.bf16.msra.mxu1 %v12386_v11  ;;  %v8358_v11 = vld [vmem:[%s18738_s19 + $0x30] sm:$0xff] }
0x3d7f   :  { %8509 = vmatprep.subr.bf16.mxu1 %v12381_v52  ;;  %v12403_v22 = vcombine.high %v8354_v10, %v8358_v11  ;;  %v8366_v52 = vld [vmem:[%s18738_s19 + $0x70] sm:$0xff]  ;;  %s18740_s19 = sld [smem:[#allocation16_spill]] }
0x3e4c   :  { %v8346_v37 = vpop.f32.mrb[96].mxu1 }
0x3e4d   :  { %v8347_v54 = vadd.f32 %v8346_v37, %v8276_v35  ;;  %v13917_v41 = vpop.f32.mrb[97].mxu1  ;;  %v14442_v35 = vld [vmem:[%s18739_s3 + $0x6c] ss:$16 sps:$4 sm:$0xff]   ;;  %v12410_v37 = vcombine.low %v8362_v25, %v8366_v52 }
0x3e4e   :  { %v14427_v41 = vld [vmem:[%s18739_s3 + $0x24] ss:$16 sps:$4 sm:$0xff]  }
0x3e4f   :  { %15103 = vtanh.f32 %v8347_v54  ;;  %v14448_v54 = vld [vmem:[%s18739_s3 + $0x8c] ss:$16 sps:$4 sm:$0xff]  }
0x3e50   :  { %15105 = vtanh.f32 %v4207_v42  ;;  %v14446_v42 = vld [vmem:[%s18739_s3 + $0x88] ss:$16 sps:$4 sm:$0xff]  }
0x3e59   :  { %v15104_v40 = vpop.eup %15103 }
0x3e5a   :  { %v8351_v6 = vpack.c.bf16 %v15104_v40, %v15104_v40  ;;  %v15106_v60 = vpop.eup %15105  ;;  %v14431_v40 = vld [vmem:[%s18739_s3 + $0x40] ss:$16 sps:$4 sm:$0xff]  }
0x3e5b   :  { %v17354_v13 = vpack.c.bf16 %v15106_v60, %v15106_v60  ;;  %v14464_v60 = vld [vmem:[%s18739_s3 + $0xe8] ss:$16 sps:$4 sm:$0xff]  }
0x3e5c   :  { %12394 = vmatmul.mubr.msk.bf16.vlgmr.msra.gmra.mrb[100].mxu1 %vm409_vm0, %v8351_v6  ;;  %12397 = vmatmul.mubr.msk.bf16.vlgmr.msra.gmra.mrb[92].mxu0 %vm409_vm0, %v8351_v6 }
0x3e5d   :  { %8510 = vmatpush1.bf16.msra.mxu1 %v12380_v28  ;;  %8757 = vmatpush1.bf16.msra.mxu0 %v12400_v32  ;;  %v12402_v28 = vcombine.low %v8354_v10, %v8358_v11  ;;  %v12411_v32 = vcombine.high %v8362_v25, %v8366_v52  ;;  %v14491_v10 = vld [vmem:[%s18739_s3 + $0x180] ss:$16 sps:$4 sm:$0xff]   ;;  %v14494_v11 = vld [vmem:[%s18739_s3 + $0x188] ss:$16 sps:$4 sm:$0xff]   ;;  %v14505_v25 = vld [vmem:[%s18739_s3 + $0x1c4] ss:$16 sps:$4 sm:$0xff]  }
0x3e5e   :  { %8511 = vmatprep.subr.bf16.mxu1 %v12389_v9  ;;  %8758 = vmatprep.subr.bf16.mxu0 %v12409_v44  ;;  %v14437_v9 = vld [vmem:[%s18739_s3 + $0x60] ss:$16 sps:$4 sm:$0xff]   ;;  %v14445_v44 = vld [vmem:[%s18739_s3 + $0x84] ss:$16 sps:$4 sm:$0xff]   ;;  %v14508_v52 = vld [vmem:[%s18739_s3 + $0x1cc] ss:$16 sps:$4 sm:$0xff]  }
0x3e5f   :  { %8541 = vmatprep.mubr.bf16.mxu1 %v15149_v26  ;;  %8788 = vmatprep.mubr.bf16.mxu0 %v15149_v26 }
0x3e61   :  { %8512 = vmatpush1.bf16.msra.mxu1 %v12388_v48  ;;  %8759 = vmatpush1.bf16.msra.mxu0 %v12408_v50  ;;  %v14460_v48 = vld [vmem:[%s18739_s3 + $0xcc] ss:$16 sps:$4 sm:$0xff]   ;;  %v14455_v50 = vld [vmem:[%s18739_s3 + $0xc0] ss:$16 sps:$4 sm:$0xff]  }
0x3e62   :  { %8550 = vmatprep.subr.bf16.mxu1 %v12383_v55  ;;  %8838 = vmatprep.subr.bf16.mxu0 %v12405_v59  ;;  %v14458_v55 = vld [vmem:[%s18739_s3 + $0xc8] ss:$16 sps:$4 sm:$0xff]   ;;  %v14461_v59 = vld [vmem:[%s18739_s3 + $0xe0] ss:$16 sps:$4 sm:$0xff]  }
0x3e64   :  { %12395 = vmatmul.mubr.msk.bf16.vlgmr.msra.gmra.mrb[104].mxu1 %vm409_vm0, %v8351_v6  ;;  %12415 = vmatmul.mubr.msk.bf16.vlgmr.msra.gmra.mrb[96].mxu0 %vm409_vm0, %v17354_v13 }
0x3e65   :  { %8551 = vmatpush1.bf16.msra.mxu1 %v12382_v30  ;;  %8839 = vmatpush1.bf16.msra.mxu0 %v12404_v0  ;;  %v14467_v30 = vld [vmem:[%s18739_s3 + $0x100] ss:$16 sps:$4 sm:$0xff]   ;;  %v14470_v0 = vld [vmem:[%s18739_s3 + $0x108] ss:$16 sps:$4 sm:$0xff]  }
0x3e66   :  { %8552 = vmatprep.subr.bf16.mxu1 %v12391_v1  ;;  %8840 = vmatprep.subr.bf16.mxu0 %v12413_v7  ;;  %v14478_v1 = vld [vmem:[%s18739_s3 + $0x12c] ss:$16 sps:$4 sm:$0xff]   ;;  %v14473_v7 = vld [vmem:[%s18739_s3 + $0x120] ss:$16 sps:$4 sm:$0xff]  }
0x3e67   :  { %8582 = vmatprep.mubr.bf16.mxu1 %v15149_v26  ;;  %8870 = vmatprep.mubr.bf16.mxu0 %v15149_v26 }
0x3e69   :  { %8553 = vmatpush1.bf16.msra.mxu1 %v12390_v3  ;;  %8841 = vmatpush1.bf16.msra.mxu0 %v12412_v19  ;;  %v14484_v3 = vld [vmem:[%s18739_s3 + $0x14c] ss:$16 sps:$4 sm:$0xff]   ;;  %v14479_v19 = vld [vmem:[%s18739_s3 + $0x140] ss:$16 sps:$4 sm:$0xff]  }
0x3e6a   :  { %8715 = vmatprep.subr.bf16.mxu1 %v12399_v31  ;;  %10891 = vmatprep.subr.bf16.mxu0 %v14424_v4  ;;  %v14482_v31 = vld [vmem:[%s18739_s3 + $0x148] ss:$16 sps:$4 sm:$0xff]   ;;  %v14487_v4 = vld [vmem:[%s18739_s3 + $0x164] ss:$16 sps:$4 sm:$0xff]  }
0x3e6c   :  { %12396 = vmatmul.mubr.msk.bf16.vlgmr.msra.gmra.mrb[108].mxu1 %vm409_vm0, %v8351_v6  ;;  %12417 = vmatmul.mubr.msk.bf16.vlgmr.msra.gmra.mrb[100].mxu0 %vm409_vm0, %v17354_v13  ;;  %v14439_v6 = vld [vmem:[%s18739_s3 + $0x64] ss:$16 sps:$4 sm:$0xff]  }
0x3e6d   :  { %8716 = vmatpush1.bf16.msra.mxu1 %v12398_v5  ;;  %8747 = vmatprep.mubr.bf16.mxu1 %v15149_v26  ;;  %v14488_v5 = vld [vmem:[%s18739_s3 + $0x168] ss:$16 sps:$4 sm:$0xff]  }
0x3e6e   :  { %8717 = vmatprep.subr.bf16.mxu1 %v12407_v63  ;;  %10892 = vmatpush1.bf16.msra.mxu0 %v14422_v17  ;;  %v14493_v63 = vld [vmem:[%s18739_s3 + $0x184] ss:$16 sps:$4 sm:$0xff]   ;;  %v14496_v17 = vld [vmem:[%s18739_s3 + $0x18c] ss:$16 sps:$4 sm:$0xff]  }
0x3e6f   :  { %10893 = vmatprep.subr.bf16.mxu0 %v14430_v12  ;;  %v14499_v12 = vld [vmem:[%s18739_s3 + $0x1a4] ss:$16 sps:$4 sm:$0xff]  }
0x3e71   :  { %8718 = vmatpush1.bf16.msra.mxu1 %v12406_v56  ;;  %v14502_v56 = vld [vmem:[%s18739_s3 + $0x1ac] ss:$16 sps:$4 sm:$0xff]  }
0x3e72   :  { %8797 = vmatprep.subr.bf16.mxu1 %v12403_v22  ;;  %10894 = vmatpush1.bf16.msra.mxu0 %v14428_v23  ;;  %v14497_v22 = vld [vmem:[%s18739_s3 + $0x1a0] ss:$16 sps:$4 sm:$0xff]   ;;  %v14500_v23 = vld [vmem:[%s18739_s3 + $0x1a8] ss:$16 sps:$4 sm:$0xff]  }
0x3e73   :  { %10895 = vmatprep.subr.bf16.mxu0 %v14436_v27  ;;  %v14503_v27 = vld [vmem:[%s18739_s3 + $0x1c0] ss:$16 sps:$4 sm:$0xff]  }
0x3e74   :  { %12414 = vmatmul.mubr.msk.bf16.vlgmr.msra.gmra.mrb[112].mxu1 %vm409_vm0, %v17354_v13 }
0x3e75   :  { %8798 = vmatpush1.bf16.msra.mxu1 %v12402_v28  ;;  %8829 = vmatprep.mubr.bf16.mxu1 %v15149_v26  ;;  %v14419_v26 = vld [vmem:[%s18739_s3] ss:$16 sps:$4 sm:$0xff]   ;;  %v14506_v28 = vld [vmem:[%s18739_s3 + $0x1c8] ss:$16 sps:$4 sm:$0xff]  }
0x3e76   :  { %8799 = vmatprep.subr.bf16.mxu1 %v12411_v32  ;;  %10896 = vmatpush1.bf16.msra.mxu0 %v14434_v33  ;;  %v14511_v32 = vld [vmem:[%s18739_s3 + $0x1e4] ss:$16 sps:$4 sm:$0xff]   ;;  %v14514_v33 = vld [vmem:[%s18739_s3 + $0x1ec] ss:$16 sps:$4 sm:$0xff]  }
0x3e77   :  { %10897 = vmatprep.subr.bf16.mxu0 %v14442_v35  ;;  %v14509_v35 = vld [vmem:[%s18739_s3 + $0x1e0] ss:$16 sps:$4 sm:$0xff]  }
0x3e79   :  { %8800 = vmatpush1.bf16.msra.mxu1 %v12410_v37  ;;  %v14512_v37 = vld [vmem:[%s18739_s3 + $0x1e8] ss:$16 sps:$4 sm:$0xff]  }
0x3e7a   :  { %10727 = vmatprep.subr.bf16.mxu1 %v14421_v38  ;;  %10898 = vmatpush1.bf16.msra.mxu0 %v14440_v39  ;;  %v14517_v38 = vld [vmem:[%s18739_s3 + $0x204] ss:$16 sps:$4 sm:$0xff]   ;;  %v14520_v39 = vld [vmem:[%s18739_s3 + $0x20c] ss:$16 sps:$4 sm:$0xff]  }
0x3e7b   :  { %10899 = vmatprep.subr.bf16.mxu0 %v14448_v54 }
0x3e7c   :  { %12416 = vmatmul.mubr.msk.bf16.vlgmr.msra.gmra.mrb[116].mxu1 %vm409_vm0, %v17354_v13  ;;  %v14475_v13 = vld [vmem:[%s18739_s3 + $0x124] ss:$16 sps:$4 sm:$0xff]  }
0x3e7d   :  { %10728 = vmatpush1.bf16.msra.mxu1 %v14419_v26 }
0x3e7e   :  { %10729 = vmatprep.subr.bf16.mxu1 %v14427_v41  ;;  %10900 = vmatpush1.bf16.msra.mxu0 %v14446_v42  ;;  %v17597_v41 = vld [vmem:[%s18740_s19 + $0x8] sm:$0x77] }
0x3e7f   :  { %10901 = vmatprep.subr.bf16.mxu0 %v14454_v49 }
0x3e81   :  { %10730 = vmatpush1.bf16.msra.mxu1 %v14425_v36 }
0x3e82   :  { %10731 = vmatprep.subr.bf16.mxu1 %v14433_v58  ;;  %10902 = vmatpush1.bf16.msra.mxu0 %v14452_v20 }
0x3e83   :  { %10903 = vmatprep.subr.bf16.mxu0 %v14460_v48  ;;  %v9066_v48 = vrot.slane %v17597_v41, %v15864_v57 }
0x3e85   :  { %10732 = vmatpush1.bf16.msra.mxu1 %v14431_v40 }
0x3e86   :  { %10733 = vmatprep.subr.bf16.mxu1 %v14439_v6  ;;  %10904 = vmatpush1.bf16.msra.mxu0 %v14458_v55  ;;  %v8898_v6 = vrot.slane %v17597_v41, %v15623_v16 }
0x3e87   :  { %10905 = vmatprep.subr.bf16.mxu0 %v14466_v34 }
0x3e89   :  { %10734 = vmatpush1.bf16.msra.mxu1 %v14437_v9  ;;  %v8938_v9 = vrot.slane %v8898_v6, %v15623_v16 }
0x3e8a   :  { %10735 = vmatprep.subr.bf16.mxu1 %v14445_v44  ;;  %10906 = vmatpush1.bf16.msra.mxu0 %v14464_v60  ;;  %v8986_v44 = vrot.slane %v17597_v41, %v15631_v18 }
0x3e8b   :  { %10907 = vmatprep.subr.bf16.mxu0 %v14472_v61 }
0x3e8d   :  { %10736 = vmatpush1.bf16.msra.mxu1 %v14443_v15 }
0x3e8e   :  { %10737 = vmatprep.subr.bf16.mxu1 %v14451_v21  ;;  %10908 = vmatpush1.bf16.msra.mxu0 %v14470_v0 }
0x3e8f   :  { %10909 = vmatprep.subr.bf16.mxu0 %v14478_v1  ;;  %v9106_v1 = vrot.slane %v9066_v48, %v15864_v57 }
0x3e91   :  { %10738 = vmatpush1.bf16.msra.mxu1 %v14449_v51  ;;  %v17609_v51 = vld [vmem:[%s18740_s19 + $0x18] sm:$0x77] }
0x3e92   :  { %10739 = vmatprep.subr.bf16.mxu1 %v14457_v47  ;;  %10910 = vmatpush1.bf16.msra.mxu0 %v14476_v45  ;;  %v8914_v0 = vrot.slane %v17609_v51, %v15623_v16 }
0x3e93   :  { %10911 = vmatprep.subr.bf16.mxu0 %v14484_v3  ;;  %v9002_v3 = vrot.slane %v17609_v51, %v15631_v18 }
0x3e95   :  { %10740 = vmatpush1.bf16.msra.mxu1 %v14455_v50 }
0x3e96   :  { %10741 = vmatprep.subr.bf16.mxu1 %v14463_v46  ;;  %10912 = vmatpush1.bf16.msra.mxu0 %v14482_v31 }
0x3e97   :  { %10913 = vmatprep.subr.bf16.mxu0 %v14490_v8 }
0x3e99   :  { %10742 = vmatpush1.bf16.msra.mxu1 %v14461_v59 }
0x3e9a   :  { %10743 = vmatprep.subr.bf16.mxu1 %v14469_v43  ;;  %10914 = vmatpush1.bf16.msra.mxu0 %v14488_v5  ;;  %v9026_v43 = vrot.slane %v8986_v44, %v15631_v18 }
0x3e9b   :  { %10915 = vmatprep.subr.bf16.mxu0 %v14496_v17 }
0x3e9d   :  { %10744 = vmatpush1.bf16.msra.mxu1 %v14467_v30 }
0x3e9e   :  { %10745 = vmatprep.subr.bf16.mxu1 %v14475_v13  ;;  %10916 = vmatpush1.bf16.msra.mxu0 %v14494_v11 }
0x3e9f   :  { %10917 = vmatprep.subr.bf16.mxu0 %v14502_v56 }
0x3ea1   :  { %10746 = vmatpush1.bf16.msra.mxu1 %v14473_v7  ;;  %v8902_v7 = vrot.slane %v17597_v41, %v15833_v24 }
0x3ea2   :  { %10747 = vmatprep.subr.bf16.mxu1 %v14481_v2  ;;  %10918 = vmatpush1.bf16.msra.mxu0 %v14500_v23  ;;  %v8954_v2 = vrot.slane %v8914_v0, %v15623_v16  ;;  %v9042_v23 = vrot.slane %v9002_v3, %v15631_v18 }
0x3ea3   :  { %10919 = vmatprep.subr.bf16.mxu0 %v14508_v52 }
0x3ea5   :  { %10748 = vmatpush1.bf16.msra.mxu1 %v14479_v19 }
0x3ea6   :  { %10749 = vmatprep.subr.bf16.mxu1 %v14487_v4  ;;  %10920 = vmatpush1.bf16.msra.mxu0 %v14506_v28  ;;  %v8879_v4 = vld [vmem:[%s18740_s19] sm:$0x77]  ;;  %v8990_v28 = vrot.slane %v17597_v41, %v15930_v62 }
0x3ea7   :  { %10921 = vmatprep.subr.bf16.mxu0 %v14514_v33  ;;  %v17638_v33 = vsub.s32 6, %v15620_v14  ;;  %v17649_v14 = vld [vmem:[%s18740_s19 + $0x10] sm:$0x77] }
0x3ea9   :  { %10750 = vmatpush1.bf16.msra.mxu1 %v14485_v53  ;;  %v8942_v53 = vrot.slane %v8902_v7, %v15623_v16  ;;  %v9070_v6 = vrot.slane %v17597_v41, %v17638_v33  ;;  %v8906_v41 = vrot.slane %v17649_v14, %v15623_v16 }
0x3eaa   :  { %10751 = vmatprep.subr.bf16.mxu1 %v14493_v63  ;;  %10922 = vmatpush1.bf16.msra.mxu0 %v14512_v37  ;;  %v9082_v63 = vrot.slane %v17609_v51, %v15864_v57 }
0x3eab   :  { %10932 = vmatprep.subr.bf16.mxu0 %v14520_v39  ;;  %v9110_v0 = vrot.slane %v9070_v6, %v15864_v57  ;;  %v8946_v7 = vrot.slane %v8906_v41, %v15623_v16  ;;  %v14529_v6 = vld [vmem:[%s18739_s3 + $0x244] ss:$16 sps:$4 sm:$0xff]   ;;  %v14542_v41 = vld [vmem:[%s18739_s3 + $0x288] ss:$16 sps:$4 sm:$0xff]  }
0x3ead   :  { %10752 = vmatpush1.bf16.msra.mxu1 %v14491_v10 }
0x3eae   :  { %10753 = vmatprep.subr.bf16.mxu1 %v14499_v12 }
0x3eb1   :  { %10754 = vmatpush1.bf16.msra.mxu1 %v14497_v22 }
0x3eb2   :  { %10755 = vmatprep.subr.bf16.mxu1 %v14505_v25 }
0x3eb5   :  { %10756 = vmatpush1.bf16.msra.mxu1 %v14503_v27  ;;  %v8890_v27 = vrot.slane %v8879_v4, %v15623_v16 }
0x3eb6   :  { %10757 = vmatprep.subr.bf16.mxu1 %v14511_v32  ;;  %v8894_v32 = vrot.slane %v8879_v4, %v15833_v24 }
0x3eb9   :  { %10758 = vmatpush1.bf16.msra.mxu1 %v14509_v35 }
0x3eba   :  { %10768 = vmatprep.subr.bf16.mxu1 %v14517_v38  ;;  %v9122_v38 = vrot.slane %v9082_v63, %v15864_v57 }
0x3f2f   :  { %v17592_v54 = vpop.f32.mrb[100].mxu1  ;;  %v8625_v26 = vpop.f32.mrb[92].mxu0 }
0x3f30   :  { %v17599_v42 = vpop.f32.mrb[101].mxu1  ;;  %v8627_v49 = vpop.f32.mrb[93].mxu0 }
0x3f31   :  { %v8506_v36 = vpop.f32.mrb[102].mxu1  ;;  %v8629_v58 = vpop.f32.mrb[94].mxu0 }
0x3f32   :  { %v8507_v20 = vpop.f32.mrb[103].mxu1  ;;  %v8630_v40 = vpop.f32.mrb[95].mxu0  ;;  %v9030_v36 = vrot.slane %v8990_v28, %v15631_v18 }
0x3f33   :  { %v8934_v20 = vrot.slane %v8894_v32, %v15623_v16  ;;  %v8982_v40 = vrot.slane %v8879_v4, %v15930_v62 }
0x3f37   :  { %v8543_v15 = vpop.f32.mrb[104].mxu1  ;;  %v8790_v21 = vpop.f32.mrb[96].mxu0 }
0x3f38   :  { %v8791_v47 = vadd.f32 %v8790_v21, %v8543_v15  ;;  %v8545_v50 = vpop.f32.mrb[105].mxu1  ;;  %v8792_v55 = vpop.f32.mrb[97].mxu0  ;;  %v9058_v21 = vrot.slane %v8879_v4, %v15864_v57 }
0x3f39   :  { %v8793_v59 = vadd.f32 %v8792_v55, %v8545_v50  ;;  %v8547_v46 = vpop.f32.mrb[106].mxu1  ;;  %v8794_v60 = vpop.f32.mrb[98].mxu0  ;;  %v9062_v55 = vrot.slane %v8879_v4, %v17638_v33 }
0x3f3a   :  { %v8961_v34 = vadd.f32 %v8938_v9, %v8791_v47  ;;  %v8548_v61 = vpop.f32.mrb[107].mxu1  ;;  %v8795_v30 = vpop.f32.mrb[99].mxu0 }
0x3f3b   :  { %v8962_v35 = vadd.f32 %v8942_v53, %v8793_v59  ;;  %v9098_v30 = vrot.slane %v9058_v21, %v15864_v57  ;;  %v9074_v53 = vrot.slane %v17649_v14, %v15864_v57  ;;  %v14530_v21 = vld [vmem:[%s18739_s3 + $0x248] ss:$16 sps:$4 sm:$0xff]  }
0x3f3c   :  { %v8969_v13 = vmul.f32 0.999995, %v8961_v34 }
0x3f3d   :  { %v8970_v9 = vmul.f32 0.999995, %v8962_v35  ;;  %v9114_v32 = vrot.slane %v9074_v53, %v15864_v57  ;;  %v14566_v53 = vld [vmem:[%s18739_s3 + $0x308] ss:$16 sps:$4 sm:$0xff]  }
0x3f3e   :  { %v9049_v45 = vmul.f32 %v9026_v43, %v8969_v13  ;;  %v9022_v43 = vrot.slane %v8982_v40, %v15631_v18  ;;  %v9102_v13 = vrot.slane %v9062_v55, %v15864_v57  ;;  %v14524_v40 = vld [vmem:[%s18739_s3 + $0x228] ss:$16 sps:$4 sm:$0xff]  }
0x3f3f   :  { %v8584_v19 = vpop.f32.mrb[108].mxu1  ;;  %v8872_v31 = vpop.f32.mrb[100].mxu0  ;;  %v9050_v61 = vmul.f32 %v9030_v36, %v8970_v9  ;;  %v14532_v9 = vld [vmem:[%s18739_s3 + $0x24c] ss:$16 sps:$4 sm:$0xff]   ;;  %v14536_v55 = vld [vmem:[%s18739_s3 + $0x268] ss:$16 sps:$4 sm:$0xff]  }
0x3f40   :  { %v17625_v8 = vadd.f32 %v9106_v1, %v9049_v45  ;;  %v8873_v5 = vadd.f32 %v8872_v31, %v8625_v26  ;;  %v8586_v17 = vpop.f32.mrb[109].mxu1  ;;  %v8874_v10 = vpop.f32.mrb[101].mxu0  ;;  %v8930_v26 = vrot.slane %v8890_v27, %v15623_v16  ;;  %v8994_v45 = vrot.slane %v17649_v14, %v15631_v18 }
0x3f41   :  { %v17630_v11 = vadd.f32 %v8874_v10, %v8627_v49  ;;  %v8588_v12 = vpop.f32.mrb[110].mxu1  ;;  %v8876_v56 = vpop.f32.mrb[102].mxu0  ;;  %v8978_v49 = vrot.slane %v8879_v4, %v15631_v18  ;;  %v9130_v63 = vadd.f32 %v9110_v0, %v9050_v61  ;;  %v14545_v61 = vld [vmem:[%s18739_s3 + $0x2a0] ss:$16 sps:$4 sm:$0xff]   ;;  %v14556_v0 = vld [vmem:[%s18739_s3 + $0x2cc] ss:$16 sps:$4 sm:$0xff]  }
0x3f42   :  { %v8965_v22 = vadd.f32 %v8954_v2, %v8873_v5  ;;  %v8589_v25 = vpop.f32.mrb[111].mxu1  ;;  %v8877_v52 = vpop.f32.mrb[103].mxu0 }
0x3f43   :  { %v9018_v46 = vrot.slane %v8978_v49, %v15631_v18  ;;  %v9034_v25 = vrot.slane %v8994_v45, %v15631_v18  ;;  %v9138_v35 = vmax.f32 %v9130_v63, 0.0  ;;  %v14526_v49 = vld [vmem:[%s18739_s3 + $0x22c] ss:$16 sps:$4 sm:$0xff]   ;;  %v14557_v45 = vld [vmem:[%s18739_s3 + $0x2e0] ss:$16 sps:$4 sm:$0xff]  }
0x3f44   :  { %v8973_v37 = vmul.f32 0.999995, %v8965_v22  ;;  %v14574_v63 = vld [vmem:[%s18739_s3 + $0x32c] ss:$16 sps:$4 sm:$0xff]  }
0x3f46   :  { %v9053_v39 = vmul.f32 %v9042_v23, %v8973_v37  ;;  %v14515_v37 = vld [vmem:[%s18739_s3 + $0x200] ss:$16 sps:$4 sm:$0xff]  }
0x3f47   :  { %v8749_v58 = vpop.f32.mrb[112].mxu1 }
0x3f48   :  { %v17653_v44 = vadd.f32 %v9122_v38, %v9053_v39  ;;  %v8750_v15 = vadd.f32 %v8749_v58, %v17592_v54  ;;  %v8751_v47 = vpop.f32.mrb[113].mxu1  ;;  %v9146_v58 = vpack.c.bf16 %v9138_v35, %v9138_v35 }
0x3f49   :  { %v8752_v48 = vadd.f32 %v8751_v47, %v17599_v42  ;;  %v8753_v50 = vpop.f32.mrb[114].mxu1  ;;  %v14535_v47 = vld [vmem:[%s18739_s3 + $0x264] ss:$16 sps:$4 sm:$0xff]  }
0x3f4a   :  { %v8959_v59 = vadd.f32 %v8930_v26, %v8750_v15  ;;  %v8754_v60 = vpop.f32.mrb[115].mxu1  ;;  %v14523_v26 = vld [vmem:[%s18739_s3 + $0x224] ss:$16 sps:$4 sm:$0xff]   ;;  %v14527_v15 = vld [vmem:[%s18739_s3 + $0x240] ss:$16 sps:$4 sm:$0xff]  }
0x3f4b   :  { %v8960_v34 = vadd.f32 %v8934_v20, %v8752_v48  ;;  %v14521_v20 = vld [vmem:[%s18739_s3 + $0x220] ss:$16 sps:$4 sm:$0xff]   ;;  %v14538_v48 = vld [vmem:[%s18739_s3 + $0x26c] ss:$16 sps:$4 sm:$0xff]  }
0x3f4c   :  { %v8967_v54 = vmul.f32 0.999995, %v8959_v59  ;;  %v14533_v50 = vld [vmem:[%s18739_s3 + $0x260] ss:$16 sps:$4 sm:$0xff]   ;;  %v14541_v59 = vld [vmem:[%s18739_s3 + $0x284] ss:$16 sps:$4 sm:$0xff]  }
0x3f4d   :  { %v8968_v42 = vmul.f32 0.999995, %v8960_v34  ;;  %v14539_v60 = vld [vmem:[%s18739_s3 + $0x280] ss:$16 sps:$4 sm:$0xff]   ;;  %v14547_v34 = vld [vmem:[%s18739_s3 + $0x2a4] ss:$16 sps:$4 sm:$0xff]  }
0x3f4e   :  { %v9047_v1 = vmul.f32 %v9018_v46, %v8967_v54  ;;  %v14544_v46 = vld [vmem:[%s18739_s3 + $0x28c] ss:$16 sps:$4 sm:$0xff]   ;;  %v14548_v54 = vld [vmem:[%s18739_s3 + $0x2a8] ss:$16 sps:$4 sm:$0xff]  }
0x3f4f   :  { %v9048_v2 = vmul.f32 %v9022_v43, %v8968_v42  ;;  %v8831_v3 = vpop.f32.mrb[116].mxu1  ;;  %v14550_v43 = vld [vmem:[%s18739_s3 + $0x2ac] ss:$16 sps:$4 sm:$0xff]   ;;  %v14551_v42 = vld [vmem:[%s18739_s3 + $0x2c0] ss:$16 sps:$4 sm:$0xff]  }
0x3f50   :  { %v9127_v31 = vadd.f32 %v9098_v30, %v9047_v1  ;;  %v8832_v4 = vadd.f32 %v8831_v3, %v8584_v19  ;;  %v8833_v5 = vpop.f32.mrb[117].mxu1  ;;  %v14553_v30 = vld [vmem:[%s18739_s3 + $0x2c4] ss:$16 sps:$4 sm:$0xff]  }
0x3f51   :  { %v17671_v10 = vadd.f32 %v8833_v5, %v8586_v17  ;;  %v8835_v12 = vpop.f32.mrb[118].mxu1  ;;  %v9128_v56 = vadd.f32 %v9102_v13, %v9048_v2  ;;  %v14518_v17 = vld [vmem:[%s18739_s3 + $0x208] ss:$16 sps:$4 sm:$0xff]   ;;  %v14559_v1 = vld [vmem:[%s18739_s3 + $0x2e4] ss:$16 sps:$4 sm:$0xff]  }
0x3f52   :  { %v9135_v22 = vmax.f32 %v9127_v31, 0.0  ;;  %v8963_v23 = vadd.f32 %v8946_v7, %v8832_v4  ;;  %v8836_v52 = vpop.f32.mrb[119].mxu1  ;;  %v14554_v13 = vld [vmem:[%s18739_s3 + $0x2c8] ss:$16 sps:$4 sm:$0xff]   ;;  %v14562_v7 = vld [vmem:[%s18739_s3 + $0x2ec] ss:$16 sps:$4 sm:$0xff]  }
0x3f53   :  { %v9136_v27 = vmax.f32 %v9128_v56, 0.0  ;;  %v14560_v2 = vld [vmem:[%s18739_s3 + $0x2e8] ss:$16 sps:$4 sm:$0xff]   ;;  %v14565_v3 = vld [vmem:[%s18739_s3 + $0x304] ss:$16 sps:$4 sm:$0xff]  }
0x3f54   :  { %v8971_v28 = vmul.f32 0.999995, %v8963_v23  ;;  %v9143_v39 = vpack.c.bf16 %v9135_v22, %v9135_v22  ;;  %v14568_v31 = vld [vmem:[%s18739_s3 + $0x30c] ss:$16 sps:$4 sm:$0xff]   ;;  %v14563_v4 = vld [vmem:[%s18739_s3 + $0x300] ss:$16 sps:$4 sm:$0xff]  }
0x3f55   :  { %v9144_v19 = vpack.c.bf16 %v9136_v27, %v9136_v27  ;;  %v14571_v5 = vld [vmem:[%s18739_s3 + $0x324] ss:$16 sps:$4 sm:$0xff]   ;;  %v14569_v12 = vld [vmem:[%s18739_s3 + $0x320] ss:$16 sps:$4 sm:$0xff]   ;;  %v14572_v56 = vld [vmem:[%s18739_s3 + $0x328] ss:$16 sps:$4 sm:$0xff]  }
0x3f56   :  { %v9051_v38 = vmul.f32 %v9034_v25, %v8971_v28  ;;  %v14577_v22 = vld [vmem:[%s18739_s3 + $0x344] ss:$16 sps:$4 sm:$0xff]   ;;  %v14580_v23 = vld [vmem:[%s18739_s3 + $0x34c] ss:$16 sps:$4 sm:$0xff]   ;;  %v8910_v25 = vrot.slane %v17649_v14, %v15833_v24  ;;  %v14575_v52 = vld [vmem:[%s18739_s3 + $0x340] ss:$16 sps:$4 sm:$0xff]  }
0x3f57   :  { %10759 = vmatprep.mubr.bf16.mxu1 %v9144_v19  ;;  %10923 = vmatprep.mubr.bf16.mxu0 %v9144_v19  ;;  %v14578_v27 = vld [vmem:[%s18739_s3 + $0x348] ss:$16 sps:$4 sm:$0xff]   ;;  %v14583_v28 = vld [vmem:[%s18739_s3 + $0x364] ss:$16 sps:$4 sm:$0xff]   ;;  %v14581_v19 = vld [vmem:[%s18739_s3 + $0x360] ss:$16 sps:$4 sm:$0xff]  }
0x3f58   :  { %v17687_v36 = vadd.f32 %v9114_v32, %v9051_v38  ;;  %10760 = vmatmul.mubr.bf16.vlgmr.msra.gmra.mrb[120].mxu1 %v9143_v39  ;;  %10924 = vmatmul.mubr.bf16.vlgmr.msra.gmra.mrb[104].mxu0 %v9143_v39  ;;  %v14586_v32 = vld [vmem:[%s18739_s3 + $0x36c] ss:$16 sps:$4 sm:$0xff]   ;;  %v8950_v35 = vrot.slane %v8910_v25, %v15623_v16 }
0x3f59   :  { %10769 = vmatpush1.bf16.msra.mxu1 %v14515_v37  ;;  %10933 = vmatpush1.bf16.msra.mxu0 %v14518_v17  ;;  %v14584_v37 = vld [vmem:[%s18739_s3 + $0x368] ss:$16 sps:$4 sm:$0xff]   ;;  %v14589_v17 = vld [vmem:[%s18739_s3 + $0x384] ss:$16 sps:$4 sm:$0xff]   ;;  %v14592_v38 = vld [vmem:[%s18739_s3 + $0x38c] ss:$16 sps:$4 sm:$0xff]  }
0x3f5a   :  { %10800 = vmatprep.mubr.bf16.mxu1 %v9146_v58  ;;  %10964 = vmatprep.mubr.bf16.mxu0 %v9146_v58  ;;  %v8964_v39 = vadd.f32 %v8950_v35, %v17671_v10  ;;  %v14590_v58 = vld [vmem:[%s18739_s3 + $0x388] ss:$16 sps:$4 sm:$0xff]   ;;  %v14598_v10 = vld [vmem:[%s18739_s3 + $0x3ac] ss:$16 sps:$4 sm:$0xff]   ;;  %v14641_v35 = vld [vmem:[%s18739_s3 + $0x4a0] ss:$16 sps:$4 sm:$0xff]  }
0x3f5b   :  { %10770 = vmatprep.subr.bf16.mxu1 %v14523_v26  ;;  %10934 = vmatprep.subr.bf16.mxu0 %v14526_v49  ;;  %v8998_v26 = vrot.slane %v17649_v14, %v15930_v62  ;;  %v14587_v49 = vld [vmem:[%s18739_s3 + $0x380] ss:$16 sps:$4 sm:$0xff]   ;;  %v14640_v25 = vld [vmem:[%s18739_s3 + $0x48c] ss:$16 sps:$4 sm:$0xff]  }
0x3f5d   :  { %10771 = vmatpush1.bf16.msra.mxu1 %v14521_v20  ;;  %10935 = vmatpush1.bf16.msra.mxu0 %v14524_v40  ;;  %v14595_v20 = vld [vmem:[%s18739_s3 + $0x3a4] ss:$16 sps:$4 sm:$0xff]   ;;  %v8972_v40 = vmul.f32 0.999995, %v8964_v39  ;;  %v14650_v39 = vld [vmem:[%s18739_s3 + $0x4c8] ss:$16 sps:$4 sm:$0xff]  }
0x3f5e   :  { %10772 = vmatprep.subr.bf16.mxu1 %v14529_v6  ;;  %10936 = vmatprep.subr.bf16.mxu0 %v14532_v9  ;;  %v9038_v6 = vrot.slane %v8998_v26, %v15631_v18  ;;  %v9078_v9 = vrot.slane %v17649_v14, %v17638_v33  ;;  %v14604_v14 = vld [vmem:[%s18739_s3 + $0x3cc] ss:$16 sps:$4 sm:$0xff]   ;;  %v14655_v26 = vld [vmem:[%s18739_s3 + $0x4e4] ss:$16 sps:$4 sm:$0xff]  }
0x3f61   :  { %10773 = vmatpush1.bf16.msra.mxu1 %v14527_v15  ;;  %10937 = vmatpush1.bf16.msra.mxu0 %v14530_v21  ;;  %v14593_v15 = vld [vmem:[%s18739_s3 + $0x3a0] ss:$16 sps:$4 sm:$0xff]   ;;  %v14596_v21 = vld [vmem:[%s18739_s3 + $0x3a8] ss:$16 sps:$4 sm:$0xff]  }
0x3f62   :  { %10774 = vmatprep.subr.bf16.mxu1 %v14535_v47  ;;  %10938 = vmatprep.subr.bf16.mxu0 %v14538_v48  ;;  %v14601_v47 = vld [vmem:[%s18739_s3 + $0x3c4] ss:$16 sps:$4 sm:$0xff]   ;;  %v9052_v48 = vmul.f32 %v9038_v6, %v8972_v40  ;;  %v14664_v40 = vld [vmem:[%s18739_s3 + $0x50c] ss:$16 sps:$4 sm:$0xff]   ;;  %v14659_v6 = vld [vmem:[%s18739_s3 + $0x500] ss:$16 sps:$4 sm:$0xff]  }
0x3f65   :  { %10775 = vmatpush1.bf16.msra.mxu1 %v14533_v50  ;;  %10939 = vmatpush1.bf16.msra.mxu0 %v14536_v55  ;;  %v9118_v50 = vrot.slane %v9078_v9, %v15864_v57  ;;  %v14599_v55 = vld [vmem:[%s18739_s3 + $0x3c0] ss:$16 sps:$4 sm:$0xff]   ;;  %v14662_v9 = vld [vmem:[%s18739_s3 + $0x508] ss:$16 sps:$4 sm:$0xff]  }
0x3f66   :  { %10776 = vmatprep.subr.bf16.mxu1 %v14541_v59  ;;  %10940 = vmatprep.subr.bf16.mxu0 %v14544_v46  ;;  %v14602_v59 = vld [vmem:[%s18739_s3 + $0x3c8] ss:$16 sps:$4 sm:$0xff]   ;;  %v14607_v46 = vld [vmem:[%s18739_s3 + $0x3e4] ss:$16 sps:$4 sm:$0xff]  }
0x3f69   :  { %10777 = vmatpush1.bf16.msra.mxu1 %v14539_v60  ;;  %10941 = vmatpush1.bf16.msra.mxu0 %v14542_v41  ;;  %v14610_v60 = vld [vmem:[%s18739_s3 + $0x3ec] ss:$16 sps:$4 sm:$0xff]   ;;  %v9132_v41 = vadd.f32 %v9118_v50, %v9052_v48  ;;  %v14673_v48 = vld [vmem:[%s18739_s3 + $0x544] ss:$16 sps:$4 sm:$0xff]  }
0x3f6a   :  { %10778 = vmatprep.subr.bf16.mxu1 %v14547_v34  ;;  %10942 = vmatprep.subr.bf16.mxu0 %v14550_v43  ;;  %v14605_v34 = vld [vmem:[%s18739_s3 + $0x3e0] ss:$16 sps:$4 sm:$0xff]   ;;  %v14608_v43 = vld [vmem:[%s18739_s3 + $0x3e8] ss:$16 sps:$4 sm:$0xff]   ;;  %v14676_v50 = vld [vmem:[%s18739_s3 + $0x54c] ss:$16 sps:$4 sm:$0xff]  }
0x3f6d   :  { %10779 = vmatpush1.bf16.msra.mxu1 %v14545_v61  ;;  %10943 = vmatpush1.bf16.msra.mxu0 %v14548_v54  ;;  %v9137_v61 = vmax.f32 %v17625_v8, 0.0  ;;  %v14613_v54 = vld [vmem:[%s18739_s3 + $0x404] ss:$16 sps:$4 sm:$0xff]   ;;  %v14614_v8 = vld [vmem:[%s18739_s3 + $0x408] ss:$16 sps:$4 sm:$0xff]  }
0x3f6e   :  { %10780 = vmatprep.subr.bf16.mxu1 %v14553_v30  ;;  %10944 = vmatprep.subr.bf16.mxu0 %v14556_v0  ;;  %v14616_v30 = vld [vmem:[%s18739_s3 + $0x40c] ss:$16 sps:$4 sm:$0xff]   ;;  %v9140_v0 = vmax.f32 %v9132_v41, 0.0 }
0x3f6f   :  { %v14682_v41 = vld [vmem:[%s18739_s3 + $0x56c] ss:$16 sps:$4 sm:$0xff]  }
0x3f71   :  { %10781 = vmatpush1.bf16.msra.mxu1 %v14551_v42  ;;  %10945 = vmatpush1.bf16.msra.mxu0 %v14554_v13  ;;  %v14611_v42 = vld [vmem:[%s18739_s3 + $0x400] ss:$16 sps:$4 sm:$0xff]   ;;  %v9145_v13 = vpack.c.bf16 %v9137_v61, %v9137_v61  ;;  %v14680_v61 = vld [vmem:[%s18739_s3 + $0x568] ss:$16 sps:$4 sm:$0xff]  }
0x3f72   :  { %10782 = vmatprep.subr.bf16.mxu1 %v14559_v1  ;;  %10946 = vmatprep.subr.bf16.mxu0 %v14562_v7  ;;  %v9148_v1 = vpack.c.bf16 %v9140_v0, %v9140_v0  ;;  %v14619_v7 = vld [vmem:[%s18739_s3 + $0x424] ss:$16 sps:$4 sm:$0xff]  }
0x3f75   :  { %10783 = vmatpush1.bf16.msra.mxu1 %v14557_v45  ;;  %10947 = vmatpush1.bf16.msra.mxu0 %v14560_v2  ;;  %v14622_v45 = vld [vmem:[%s18739_s3 + $0x42c] ss:$16 sps:$4 sm:$0xff]   ;;  %v14617_v2 = vld [vmem:[%s18739_s3 + $0x420] ss:$16 sps:$4 sm:$0xff]  }
0x3f76   :  { %10784 = vmatprep.subr.bf16.mxu1 %v14565_v3  ;;  %10948 = vmatprep.subr.bf16.mxu0 %v14568_v31  ;;  %v14620_v3 = vld [vmem:[%s18739_s3 + $0x428] ss:$16 sps:$4 sm:$0xff]   ;;  %v14625_v31 = vld [vmem:[%s18739_s3 + $0x444] ss:$16 sps:$4 sm:$0xff]  }
0x3f79   :  { %10785 = vmatpush1.bf16.msra.mxu1 %v14563_v4  ;;  %10949 = vmatpush1.bf16.msra.mxu0 %v14566_v53  ;;  %v14628_v4 = vld [vmem:[%s18739_s3 + $0x44c] ss:$16 sps:$4 sm:$0xff]   ;;  %v14623_v53 = vld [vmem:[%s18739_s3 + $0x440] ss:$16 sps:$4 sm:$0xff]  }
0x3f7a   :  { %10786 = vmatprep.subr.bf16.mxu1 %v14571_v5  ;;  %10950 = vmatprep.subr.bf16.mxu0 %v14574_v63  ;;  %v14626_v5 = vld [vmem:[%s18739_s3 + $0x448] ss:$16 sps:$4 sm:$0xff]   ;;  %v14631_v63 = vld [vmem:[%s18739_s3 + $0x464] ss:$16 sps:$4 sm:$0xff]  }
0x3f7d   :  { %10787 = vmatpush1.bf16.msra.mxu1 %v14569_v12  ;;  %10951 = vmatpush1.bf16.msra.mxu0 %v14572_v56  ;;  %v14634_v12 = vld [vmem:[%s18739_s3 + $0x46c] ss:$16 sps:$4 sm:$0xff]   ;;  %v14629_v56 = vld [vmem:[%s18739_s3 + $0x460] ss:$16 sps:$4 sm:$0xff]  }
0x3f7e   :  { %10788 = vmatprep.subr.bf16.mxu1 %v14577_v22  ;;  %10952 = vmatprep.subr.bf16.mxu0 %v14580_v23  ;;  %v14632_v22 = vld [vmem:[%s18739_s3 + $0x468] ss:$16 sps:$4 sm:$0xff]   ;;  %v14637_v23 = vld [vmem:[%s18739_s3 + $0x484] ss:$16 sps:$4 sm:$0xff]  }
0x3f81   :  { %10789 = vmatpush1.bf16.msra.mxu1 %v14575_v52  ;;  %10953 = vmatpush1.bf16.msra.mxu0 %v14578_v27  ;;  %v14635_v52 = vld [vmem:[%s18739_s3 + $0x480] ss:$16 sps:$4 sm:$0xff]   ;;  %v14638_v27 = vld [vmem:[%s18739_s3 + $0x488] ss:$16 sps:$4 sm:$0xff]  }
0x3f82   :  { %10790 = vmatprep.subr.bf16.mxu1 %v14583_v28  ;;  %10954 = vmatprep.subr.bf16.mxu0 %v14586_v32  ;;  %v14643_v28 = vld [vmem:[%s18739_s3 + $0x4a4] ss:$16 sps:$4 sm:$0xff]   ;;  %v14646_v32 = vld [vmem:[%s18739_s3 + $0x4ac] ss:$16 sps:$4 sm:$0xff]  }
0x3f85   :  { %10791 = vmatpush1.bf16.msra.mxu1 %v14581_v19  ;;  %10955 = vmatpush1.bf16.msra.mxu0 %v14584_v37  ;;  %v14644_v19 = vld [vmem:[%s18739_s3 + $0x4a8] ss:$16 sps:$4 sm:$0xff]   ;;  %v14649_v37 = vld [vmem:[%s18739_s3 + $0x4c4] ss:$16 sps:$4 sm:$0xff]  }
0x3f86   :  { %10792 = vmatprep.subr.bf16.mxu1 %v14589_v17  ;;  %10956 = vmatprep.subr.bf16.mxu0 %v14592_v38  ;;  %v14652_v17 = vld [vmem:[%s18739_s3 + $0x4cc] ss:$16 sps:$4 sm:$0xff]   ;;  %v14647_v38 = vld [vmem:[%s18739_s3 + $0x4c0] ss:$16 sps:$4 sm:$0xff]  }
0x3f89   :  { %10793 = vmatpush1.bf16.msra.mxu1 %v14587_v49  ;;  %10957 = vmatpush1.bf16.msra.mxu0 %v14590_v58  ;;  %v14658_v49 = vld [vmem:[%s18739_s3 + $0x4ec] ss:$16 sps:$4 sm:$0xff]   ;;  %v14653_v58 = vld [vmem:[%s18739_s3 + $0x4e0] ss:$16 sps:$4 sm:$0xff]  }
0x3f8a   :  { %10794 = vmatprep.subr.bf16.mxu1 %v14595_v20  ;;  %10958 = vmatprep.subr.bf16.mxu0 %v14598_v10  ;;  %v14656_v20 = vld [vmem:[%s18739_s3 + $0x4e8] ss:$16 sps:$4 sm:$0xff]   ;;  %v14661_v10 = vld [vmem:[%s18739_s3 + $0x504] ss:$16 sps:$4 sm:$0xff]  }
0x3f8d   :  { %10795 = vmatpush1.bf16.msra.mxu1 %v14593_v15  ;;  %10959 = vmatpush1.bf16.msra.mxu0 %v14596_v21  ;;  %v14667_v15 = vld [vmem:[%s18739_s3 + $0x524] ss:$16 sps:$4 sm:$0xff]   ;;  %v14670_v21 = vld [vmem:[%s18739_s3 + $0x52c] ss:$16 sps:$4 sm:$0xff]  }
0x3f8e   :  { %10796 = vmatprep.subr.bf16.mxu1 %v14601_v47  ;;  %10960 = vmatprep.subr.bf16.mxu0 %v14604_v14  ;;  %v14665_v47 = vld [vmem:[%s18739_s3 + $0x520] ss:$16 sps:$4 sm:$0xff]   ;;  %v14668_v14 = vld [vmem:[%s18739_s3 + $0x528] ss:$16 sps:$4 sm:$0xff]  }
0x3f91   :  { %10797 = vmatpush1.bf16.msra.mxu1 %v14599_v55  ;;  %10961 = vmatpush1.bf16.msra.mxu0 %v14602_v59  ;;  %v8918_v55 = vrot.slane %v17609_v51, %v15833_v24  ;;  %v14671_v59 = vld [vmem:[%s18739_s3 + $0x540] ss:$16 sps:$4 sm:$0xff]  }
0x3f92   :  { %10798 = vmatprep.subr.bf16.mxu1 %v14607_v46  ;;  %10962 = vmatprep.subr.bf16.mxu0 %v14610_v60  ;;  %v14674_v46 = vld [vmem:[%s18739_s3 + $0x548] ss:$16 sps:$4 sm:$0xff]   ;;  %v14679_v60 = vld [vmem:[%s18739_s3 + $0x564] ss:$16 sps:$4 sm:$0xff]  }
0x3f95   :  { %10799 = vmatpush1.bf16.msra.mxu1 %v14605_v34  ;;  %10963 = vmatpush1.bf16.msra.mxu0 %v14608_v43  ;;  %v8958_v34 = vrot.slane %v8918_v55, %v15623_v16  ;;  %v14677_v43 = vld [vmem:[%s18739_s3 + $0x560] ss:$16 sps:$4 sm:$0xff]   ;;  %v14739_v55 = vld [vmem:[%s18739_s3 + $0x6a4] ss:$16 sps:$4 sm:$0xff]  }
0x3f96   :  { %10809 = vmatprep.subr.bf16.mxu1 %v14613_v54  ;;  %10973 = vmatprep.subr.bf16.mxu0 %v14616_v30  ;;  %v14685_v54 = vld [vmem:[%s18739_s3 + $0x584] ss:$16 sps:$4 sm:$0xff]   ;;  %v14688_v30 = vld [vmem:[%s18739_s3 + $0x58c] ss:$16 sps:$4 sm:$0xff]  }
0x3f97   :  { %v8966_v0 = vadd.f32 %v8958_v34, %v17630_v11  ;;  %v14694_v11 = vld [vmem:[%s18739_s3 + $0x5ac] ss:$16 sps:$4 sm:$0xff]  }
0x3f98   :  { %10801 = vmatmul.mubr.bf16.vlgmr.msra.gmra.mrb[120].mxu1 %v9145_v13  ;;  %10965 = vmatmul.mubr.bf16.vlgmr.msra.gmra.mrb[104].mxu0 %v9145_v13  ;;  %v14683_v13 = vld [vmem:[%s18739_s3 + $0x580] ss:$16 sps:$4 sm:$0xff]   ;;  %v14748_v34 = vld [vmem:[%s18739_s3 + $0x6cc] ss:$16 sps:$4 sm:$0xff]  }
0x3f99   :  { %10810 = vmatpush1.bf16.msra.mxu1 %v14611_v42  ;;  %10841 = vmatprep.mubr.bf16.mxu1 %v9148_v1  ;;  %v9006_v42 = vrot.slane %v17609_v51, %v15930_v62 }
0x3f9a   :  { %10974 = vmatpush1.bf16.msra.mxu0 %v14614_v8  ;;  %11005 = vmatprep.mubr.bf16.mxu0 %v9148_v1  ;;  %v14686_v8 = vld [vmem:[%s18739_s3 + $0x588] ss:$16 sps:$4 sm:$0xff]   ;;  %v14691_v1 = vld [vmem:[%s18739_s3 + $0x5a4] ss:$16 sps:$4 sm:$0xff]  }
0x3f9b   :  { %10811 = vmatprep.subr.bf16.mxu1 %v14619_v7  ;;  %10975 = vmatprep.subr.bf16.mxu0 %v14622_v45  ;;  %v8974_v7 = vmul.f32 0.999995, %v8966_v0  ;;  %v9046_v45 = vrot.slane %v9006_v42, %v15631_v18  ;;  %v14749_v0 = vld [vmem:[%s18739_s3 + $0x6e0] ss:$16 sps:$4 sm:$0xff]   ;;  %v14752_v42 = vld [vmem:[%s18739_s3 + $0x6e8] ss:$16 sps:$4 sm:$0xff]  }
0x3f9d   :  { %10812 = vmatpush1.bf16.msra.mxu1 %v14617_v2  ;;  %v9086_v2 = vrot.slane %v17609_v51, %v17638_v33  ;;  %v14700_v51 = vld [vmem:[%s18739_s3 + $0x5cc] ss:$16 sps:$4 sm:$0xff]  }
0x3f9e   :  { %10976 = vmatpush1.bf16.msra.mxu0 %v14620_v3  ;;  %10813 = vmatprep.subr.bf16.mxu1 %v14625_v31  ;;  %v14689_v3 = vld [vmem:[%s18739_s3 + $0x5a0] ss:$16 sps:$4 sm:$0xff]   ;;  %v14692_v31 = vld [vmem:[%s18739_s3 + $0x5a8] ss:$16 sps:$4 sm:$0xff]  }
0x3f9f   :  { %10977 = vmatprep.subr.bf16.mxu0 %v14628_v4  ;;  %v14697_v4 = vld [vmem:[%s18739_s3 + $0x5c4] ss:$16 sps:$4 sm:$0xff]  }
0x3fa1   :  { %10814 = vmatpush1.bf16.msra.mxu1 %v14623_v53  ;;  %v9054_v53 = vmul.f32 %v9046_v45, %v8974_v7  ;;  %v14763_v7 = vld [vmem:[%s18739_s3 + $0x724] ss:$16 sps:$4 sm:$0xff]   ;;  %v14766_v45 = vld [vmem:[%s18739_s3 + $0x72c] ss:$16 sps:$4 sm:$0xff]  }
0x3fa2   :  { %10978 = vmatpush1.bf16.msra.mxu0 %v14626_v5  ;;  %10815 = vmatprep.subr.bf16.mxu1 %v14631_v63  ;;  %v9126_v5 = vrot.slane %v9086_v2, %v15864_v57  ;;  %v14695_v63 = vld [vmem:[%s18739_s3 + $0x5c0] ss:$16 sps:$4 sm:$0xff]  }
0x3fa3   :  { %10979 = vmatprep.subr.bf16.mxu0 %v14634_v12  ;;  %v14698_v12 = vld [vmem:[%s18739_s3 + $0x5c8] ss:$16 sps:$4 sm:$0xff]   ;;  %v14761_v2 = vld [vmem:[%s18739_s3 + $0x720] ss:$16 sps:$4 sm:$0xff]  }
0x3fa5   :  { %10816 = vmatpush1.bf16.msra.mxu1 %v14629_v56  ;;  %v14703_v56 = vld [vmem:[%s18739_s3 + $0x5e4] ss:$16 sps:$4 sm:$0xff]  }
0x3fa6   :  { %10980 = vmatpush1.bf16.msra.mxu0 %v14632_v22  ;;  %10817 = vmatprep.subr.bf16.mxu1 %v14637_v23  ;;  %v14706_v22 = vld [vmem:[%s18739_s3 + $0x5ec] ss:$16 sps:$4 sm:$0xff]   ;;  %v9134_v23 = vadd.f32 %v9126_v5, %v9054_v53  ;;  %v14770_v53 = vld [vmem:[%s18739_s3 + $0x748] ss:$16 sps:$4 sm:$0xff]   ;;  %v14775_v5 = vld [vmem:[%s18739_s3 + $0x764] ss:$16 sps:$4 sm:$0xff]  }
0x3fa7   :  { %10981 = vmatprep.subr.bf16.mxu0 %v14640_v25  ;;  %v14701_v25 = vld [vmem:[%s18739_s3 + $0x5e0] ss:$16 sps:$4 sm:$0xff]  }
0x3fa9   :  { %10818 = vmatpush1.bf16.msra.mxu1 %v14635_v52  ;;  %v9139_v52 = vmax.f32 %v17687_v36, 0.0  ;;  %v14707_v36 = vld [vmem:[%s18739_s3 + $0x600] ss:$16 sps:$4 sm:$0xff]  }
0x3faa   :  { %10982 = vmatpush1.bf16.msra.mxu0 %v14638_v27  ;;  %10819 = vmatprep.subr.bf16.mxu1 %v14643_v28  ;;  %v14704_v27 = vld [vmem:[%s18739_s3 + $0x5e8] ss:$16 sps:$4 sm:$0xff]   ;;  %v14709_v28 = vld [vmem:[%s18739_s3 + $0x604] ss:$16 sps:$4 sm:$0xff]  }
0x3fab   :  { %10983 = vmatprep.subr.bf16.mxu0 %v14646_v32  ;;  %v14712_v32 = vld [vmem:[%s18739_s3 + $0x60c] ss:$16 sps:$4 sm:$0xff]  }
0x3fad   :  { %10820 = vmatpush1.bf16.msra.mxu1 %v14641_v35  ;;  %v9142_v35 = vmax.f32 %v9134_v23, 0.0  ;;  %v14784_v23 = vld [vmem:[%s18739_s3 + $0x78c] ss:$16 sps:$4 sm:$0xff]  }
0x3fae   :  { %10984 = vmatpush1.bf16.msra.mxu0 %v14644_v19  ;;  %10821 = vmatprep.subr.bf16.mxu1 %v14649_v37  ;;  %v9147_v19 = vpack.c.bf16 %v9139_v52, %v9139_v52  ;;  %v14710_v37 = vld [vmem:[%s18739_s3 + $0x608] ss:$16 sps:$4 sm:$0xff]  }
0x3faf   :  { %10985 = vmatprep.subr.bf16.mxu0 %v14652_v17  ;;  %v14715_v17 = vld [vmem:[%s18739_s3 + $0x624] ss:$16 sps:$4 sm:$0xff]   ;;  %v14782_v52 = vld [vmem:[%s18739_s3 + $0x788] ss:$16 sps:$4 sm:$0xff]  }
0x3fb1   :  { %10822 = vmatpush1.bf16.msra.mxu1 %v14647_v38  ;;  %v9150_v38 = vpack.c.bf16 %v9142_v35, %v9142_v35  ;;  %v14788_v35 = vld [vmem:[%s18739_s3 + $0x7a8] ss:$16 sps:$4 sm:$0xff]  }
0x3fb2   :  { %10986 = vmatpush1.bf16.msra.mxu0 %v14650_v39  ;;  %10823 = vmatprep.subr.bf16.mxu1 %v14655_v26  ;;  %v14718_v39 = vld [vmem:[%s18739_s3 + $0x62c] ss:$16 sps:$4 sm:$0xff]   ;;  %v14713_v26 = vld [vmem:[%s18739_s3 + $0x620] ss:$16 sps:$4 sm:$0xff]  }
0x3fb3   :  { %10987 = vmatprep.subr.bf16.mxu0 %v14658_v49  ;;  %v14716_v49 = vld [vmem:[%s18739_s3 + $0x628] ss:$16 sps:$4 sm:$0xff]  }
0x3fb5   :  { %10824 = vmatpush1.bf16.msra.mxu1 %v14653_v58  ;;  %v14721_v58 = vld [vmem:[%s18739_s3 + $0x644] ss:$16 sps:$4 sm:$0xff]  }
0x3fb6   :  { %10988 = vmatpush1.bf16.msra.mxu0 %v14656_v20  ;;  %10825 = vmatprep.subr.bf16.mxu1 %v14661_v10  ;;  %v14724_v20 = vld [vmem:[%s18739_s3 + $0x64c] ss:$16 sps:$4 sm:$0xff]   ;;  %v14719_v10 = vld [vmem:[%s18739_s3 + $0x640] ss:$16 sps:$4 sm:$0xff]  }
0x3fb7   :  { %10989 = vmatprep.subr.bf16.mxu0 %v14664_v40  ;;  %v14722_v40 = vld [vmem:[%s18739_s3 + $0x648] ss:$16 sps:$4 sm:$0xff]  }
0x3fb9   :  { %10826 = vmatpush1.bf16.msra.mxu1 %v14659_v6  ;;  %v14727_v6 = vld [vmem:[%s18739_s3 + $0x664] ss:$16 sps:$4 sm:$0xff]  }
0x3fba   :  { %10990 = vmatpush1.bf16.msra.mxu0 %v14662_v9  ;;  %10827 = vmatprep.subr.bf16.mxu1 %v14667_v15  ;;  %v14730_v9 = vld [vmem:[%s18739_s3 + $0x66c] ss:$16 sps:$4 sm:$0xff]   ;;  %v14725_v15 = vld [vmem:[%s18739_s3 + $0x660] ss:$16 sps:$4 sm:$0xff]  }
0x3fbb   :  { %10991 = vmatprep.subr.bf16.mxu0 %v14670_v21  ;;  %v14728_v21 = vld [vmem:[%s18739_s3 + $0x668] ss:$16 sps:$4 sm:$0xff]  }
0x3fbd   :  { %10828 = vmatpush1.bf16.msra.mxu1 %v14665_v47  ;;  %v14733_v47 = vld [vmem:[%s18739_s3 + $0x684] ss:$16 sps:$4 sm:$0xff]  }
0x3fbe   :  { %10992 = vmatpush1.bf16.msra.mxu0 %v14668_v14  ;;  %10829 = vmatprep.subr.bf16.mxu1 %v14673_v48  ;;  %v14736_v14 = vld [vmem:[%s18739_s3 + $0x68c] ss:$16 sps:$4 sm:$0xff]   ;;  %v14731_v48 = vld [vmem:[%s18739_s3 + $0x680] ss:$16 sps:$4 sm:$0xff]  }
0x3fbf   :  { %10993 = vmatprep.subr.bf16.mxu0 %v14676_v50  ;;  %v14734_v50 = vld [vmem:[%s18739_s3 + $0x688] ss:$16 sps:$4 sm:$0xff]  }
0x3fc1   :  { %10830 = vmatpush1.bf16.msra.mxu1 %v14671_v59  ;;  %v14742_v59 = vld [vmem:[%s18739_s3 + $0x6ac] ss:$16 sps:$4 sm:$0xff]  }
0x3fc2   :  { %10994 = vmatpush1.bf16.msra.mxu0 %v14674_v46  ;;  %10831 = vmatprep.subr.bf16.mxu1 %v14679_v60  ;;  %v14737_v46 = vld [vmem:[%s18739_s3 + $0x6a0] ss:$16 sps:$4 sm:$0xff]   ;;  %v14740_v60 = vld [vmem:[%s18739_s3 + $0x6a8] ss:$16 sps:$4 sm:$0xff]  }
0x3fc3   :  { %10995 = vmatprep.subr.bf16.mxu0 %v14682_v41  ;;  %v14745_v41 = vld [vmem:[%s18739_s3 + $0x6c4] ss:$16 sps:$4 sm:$0xff]  }
0x3fc5   :  { %10832 = vmatpush1.bf16.msra.mxu1 %v14677_v43  ;;  %v14743_v43 = vld [vmem:[%s18739_s3 + $0x6c0] ss:$16 sps:$4 sm:$0xff]  }
0x3fc6   :  { %10996 = vmatpush1.bf16.msra.mxu0 %v14680_v61  ;;  %10833 = vmatprep.subr.bf16.mxu1 %v14685_v54  ;;  %v14746_v61 = vld [vmem:[%s18739_s3 + $0x6c8] ss:$16 sps:$4 sm:$0xff]   ;;  %v14751_v54 = vld [vmem:[%s18739_s3 + $0x6e4] ss:$16 sps:$4 sm:$0xff]  }
0x3fc7   :  { %10997 = vmatprep.subr.bf16.mxu0 %v14688_v30  ;;  %v14754_v30 = vld [vmem:[%s18739_s3 + $0x6ec] ss:$16 sps:$4 sm:$0xff]  }
0x3fc9   :  { %10834 = vmatpush1.bf16.msra.mxu1 %v14683_v13  ;;  %v14757_v13 = vld [vmem:[%s18739_s3 + $0x704] ss:$16 sps:$4 sm:$0xff]  }
0x3fca   :  { %10998 = vmatpush1.bf16.msra.mxu0 %v14686_v8  ;;  %10835 = vmatprep.subr.bf16.mxu1 %v14691_v1  ;;  %v14760_v8 = vld [vmem:[%s18739_s3 + $0x70c] ss:$16 sps:$4 sm:$0xff]   ;;  %v14755_v1 = vld [vmem:[%s18739_s3 + $0x700] ss:$16 sps:$4 sm:$0xff]  }
0x3fcb   :  { %10999 = vmatprep.subr.bf16.mxu0 %v14694_v11  ;;  %v14758_v11 = vld [vmem:[%s18739_s3 + $0x708] ss:$16 sps:$4 sm:$0xff]  }
0x3fcd   :  { %10836 = vmatpush1.bf16.msra.mxu1 %v14689_v3  ;;  %v14764_v3 = vld [vmem:[%s18739_s3 + $0x728] ss:$16 sps:$4 sm:$0xff]  }
0x3fce   :  { %11000 = vmatpush1.bf16.msra.mxu0 %v14692_v31  ;;  %10837 = vmatprep.subr.bf16.mxu1 %v14697_v4  ;;  %v14769_v31 = vld [vmem:[%s18739_s3 + $0x744] ss:$16 sps:$4 sm:$0xff]   ;;  %v14772_v4 = vld [vmem:[%s18739_s3 + $0x74c] ss:$16 sps:$4 sm:$0xff]  }
0x3fcf   :  { %11001 = vmatprep.subr.bf16.mxu0 %v14700_v51  ;;  %v14767_v51 = vld [vmem:[%s18739_s3 + $0x740] ss:$16 sps:$4 sm:$0xff]  }
0x3fd1   :  { %10838 = vmatpush1.bf16.msra.mxu1 %v14695_v63  ;;  %v14778_v63 = vld [vmem:[%s18739_s3 + $0x76c] ss:$16 sps:$4 sm:$0xff]  }
0x3fd2   :  { %11002 = vmatpush1.bf16.msra.mxu0 %v14698_v12  ;;  %10839 = vmatprep.subr.bf16.mxu1 %v14703_v56  ;;  %v14773_v12 = vld [vmem:[%s18739_s3 + $0x760] ss:$16 sps:$4 sm:$0xff]   ;;  %v14776_v56 = vld [vmem:[%s18739_s3 + $0x768] ss:$16 sps:$4 sm:$0xff]  }
0x3fd3   :  { %11003 = vmatprep.subr.bf16.mxu0 %v14706_v22  ;;  %v14781_v22 = vld [vmem:[%s18739_s3 + $0x784] ss:$16 sps:$4 sm:$0xff]  }
0x3fd5   :  { %10840 = vmatpush1.bf16.msra.mxu1 %v14701_v25  ;;  %v14779_v25 = vld [vmem:[%s18739_s3 + $0x780] ss:$16 sps:$4 sm:$0xff]  }
0x3fd6   :  { %11004 = vmatpush1.bf16.msra.mxu0 %v14704_v27  ;;  %10850 = vmatprep.subr.bf16.mxu1 %v14709_v28  ;;  %v14787_v27 = vld [vmem:[%s18739_s3 + $0x7a4] ss:$16 sps:$4 sm:$0xff]   ;;  %v14790_v28 = vld [vmem:[%s18739_s3 + $0x7ac] ss:$16 sps:$4 sm:$0xff]  }
0x3fd7   :  { %11014 = vmatprep.subr.bf16.mxu0 %v14712_v32  ;;  %v14785_v32 = vld [vmem:[%s18739_s3 + $0x7a0] ss:$16 sps:$4 sm:$0xff]  }
0x3fd8   :  { %10842 = vmatmul.mubr.bf16.vlgmr.msra.gmra.mrb[120].mxu1 %v9147_v19 }
0x3fd9   :  { %11006 = vmatmul.mubr.bf16.vlgmr.msra.gmra.mrb[104].mxu0 %v9147_v19  ;;  %10851 = vmatpush1.bf16.msra.mxu1 %v14707_v36  ;;  %v14793_v36 = vld [vmem:[%s18739_s3 + $0x7c4] ss:$16 sps:$4 sm:$0xff]   ;;  %v14796_v19 = vld [vmem:[%s18739_s3 + $0x7cc] ss:$16 sps:$4 sm:$0xff]  }
0x3fda   :  { %10882 = vmatprep.mubr.bf16.mxu1 %v9150_v38  ;;  %11015 = vmatpush1.bf16.msra.mxu0 %v14710_v37  ;;  %v14791_v37 = vld [vmem:[%s18739_s3 + $0x7c0] ss:$16 sps:$4 sm:$0xff]  }
0x3fdb   :  { %11046 = vmatprep.mubr.bf16.mxu0 %v9150_v38  ;;  %10852 = vmatprep.subr.bf16.mxu1 %v14715_v17  ;;  %v14794_v17 = vld [vmem:[%s18739_s3 + $0x7c8] ss:$16 sps:$4 sm:$0xff]   ;;  %v14799_v38 = vld [vmem:[%s18739_s3 + $0x7e4] ss:$16 sps:$4 sm:$0xff]  }
0x3fdc   :  { %11016 = vmatprep.subr.bf16.mxu0 %v14718_v39  ;;  %v14802_v39 = vld [vmem:[%s18739_s3 + $0x7ec] ss:$16 sps:$4 sm:$0xff]  }
0x3fdd   :  { %10853 = vmatpush1.bf16.msra.mxu1 %v14713_v26  ;;  %v14797_v26 = vld [vmem:[%s18739_s3 + $0x7e0] ss:$16 sps:$4 sm:$0xff]  }
0x3fde   :  { %11017 = vmatpush1.bf16.msra.mxu0 %v14716_v49  ;;  %10854 = vmatprep.subr.bf16.mxu1 %v14721_v58  ;;  %v9141_v49 = vmax.f32 %v17653_v44, 0.0  ;;  %v14800_v58 = vld [vmem:[%s18739_s3 + $0x7e8] ss:$16 sps:$4 sm:$0xff]   ;;  %v14808_v44 = vld [vmem:[%s18741_s11 + $0x14] ss:$8 sps:$4 sm:$0xff]  }
0x3fdf   :  { %11018 = vmatprep.subr.bf16.mxu0 %v14724_v20  ;;  %v14805_v20 = vld [vmem:[%s18741_s11 + $0x4] ss:$8 sps:$4 sm:$0xff]  }
0x3fe1   :  { %10855 = vmatpush1.bf16.msra.mxu1 %v14719_v10  ;;  %v14803_v10 = vld [vmem:[%s18741_s11] ss:$8 sps:$4 sm:$0xff]  }
0x3fe2   :  { %11019 = vmatpush1.bf16.msra.mxu0 %v14722_v40  ;;  %10856 = vmatprep.subr.bf16.mxu1 %v14727_v6  ;;  %v9149_v40 = vpack.c.bf16 %v9141_v49, %v9141_v49  ;;  %v14806_v6 = vld [vmem:[%s18741_s11 + $0x10] ss:$8 sps:$4 sm:$0xff]  }
0x3fe3   :  { %11020 = vmatprep.subr.bf16.mxu0 %v14730_v9  ;;  %v14811_v9 = vld [vmem:[%s18741_s11 + $0x24] ss:$8 sps:$4 sm:$0xff]  }
0x3fe5   :  { %10857 = vmatpush1.bf16.msra.mxu1 %v14725_v15  ;;  %v14809_v15 = vld [vmem:[%s18741_s11 + $0x20] ss:$8 sps:$4 sm:$0xff]  }
0x3fe6   :  { %11021 = vmatpush1.bf16.msra.mxu0 %v14728_v21  ;;  %10858 = vmatprep.subr.bf16.mxu1 %v14733_v47  ;;  %v14814_v21 = vld [vmem:[%s18741_s11 + $0x34] ss:$8 sps:$4 sm:$0xff]   ;;  %v14812_v47 = vld [vmem:[%s18741_s11 + $0x30] ss:$8 sps:$4 sm:$0xff]  }
0x3fe7   :  { %11022 = vmatprep.subr.bf16.mxu0 %v14736_v14  ;;  %v14817_v14 = vld [vmem:[%s18741_s11 + $0x44] ss:$8 sps:$4 sm:$0xff]  }
0x3fe9   :  { %10859 = vmatpush1.bf16.msra.mxu1 %v14731_v48  ;;  %v14815_v48 = vld [vmem:[%s18741_s11 + $0x40] ss:$8 sps:$4 sm:$0xff]  }
0x3fea   :  { %11023 = vmatpush1.bf16.msra.mxu0 %v14734_v50  ;;  %10860 = vmatprep.subr.bf16.mxu1 %v14739_v55  ;;  %v14820_v50 = vld [vmem:[%s18741_s11 + $0x54] ss:$8 sps:$4 sm:$0xff]   ;;  %v14818_v55 = vld [vmem:[%s18741_s11 + $0x50] ss:$8 sps:$4 sm:$0xff]  }
0x3feb   :  { %11024 = vmatprep.subr.bf16.mxu0 %v14742_v59  ;;  %v14823_v59 = vld [vmem:[%s18741_s11 + $0x64] ss:$8 sps:$4 sm:$0xff]  }
0x3fed   :  { %10861 = vmatpush1.bf16.msra.mxu1 %v14737_v46  ;;  %v14821_v46 = vld [vmem:[%s18741_s11 + $0x60] ss:$8 sps:$4 sm:$0xff]  }
0x3fee   :  { %11025 = vmatpush1.bf16.msra.mxu0 %v14740_v60  ;;  %10862 = vmatprep.subr.bf16.mxu1 %v14745_v41  ;;  %v14826_v60 = vld [vmem:[%s18741_s11 + $0x74] ss:$8 sps:$4 sm:$0xff]   ;;  %v14824_v41 = vld [vmem:[%s18741_s11 + $0x70] ss:$8 sps:$4 sm:$0xff]  }
0x3fef   :  { %11026 = vmatprep.subr.bf16.mxu0 %v14748_v34  ;;  %v14829_v34 = vld [vmem:[%s18741_s11 + $0x84] ss:$8 sps:$4 sm:$0xff]  }
0x3ff1   :  { %10863 = vmatpush1.bf16.msra.mxu1 %v14743_v43  ;;  %v14827_v43 = vld [vmem:[%s18741_s11 + $0x80] ss:$8 sps:$4 sm:$0xff]  }
0x3ff2   :  { %11027 = vmatpush1.bf16.msra.mxu0 %v14746_v61  ;;  %10864 = vmatprep.subr.bf16.mxu1 %v14751_v54  ;;  %v14832_v61 = vld [vmem:[%s18741_s11 + $0x94] ss:$8 sps:$4 sm:$0xff]   ;;  %v14830_v54 = vld [vmem:[%s18741_s11 + $0x90] ss:$8 sps:$4 sm:$0xff]  }
0x3ff3   :  { %11028 = vmatprep.subr.bf16.mxu0 %v14754_v30  ;;  %v14835_v30 = vld [vmem:[%s18741_s11 + $0xa4] ss:$8 sps:$4 sm:$0xff]  }
0x3ff5   :  { %10865 = vmatpush1.bf16.msra.mxu1 %v14749_v0  ;;  %v14833_v0 = vld [vmem:[%s18741_s11 + $0xa0] ss:$8 sps:$4 sm:$0xff]  }
0x3ff6   :  { %11029 = vmatpush1.bf16.msra.mxu0 %v14752_v42  ;;  %10866 = vmatprep.subr.bf16.mxu1 %v14757_v13  ;;  %v14838_v42 = vld [vmem:[%s18741_s11 + $0xb4] ss:$8 sps:$4 sm:$0xff]   ;;  %v14836_v13 = vld [vmem:[%s18741_s11 + $0xb0] ss:$8 sps:$4 sm:$0xff]  }
0x3ff7   :  { %11030 = vmatprep.subr.bf16.mxu0 %v14760_v8  ;;  %v14841_v8 = vld [vmem:[%s18741_s11 + $0xc4] ss:$8 sps:$4 sm:$0xff]  }
0x3ff9   :  { %10867 = vmatpush1.bf16.msra.mxu1 %v14755_v1  ;;  %v14839_v1 = vld [vmem:[%s18741_s11 + $0xc0] ss:$8 sps:$4 sm:$0xff]  }
0x3ffa   :  { %11031 = vmatpush1.bf16.msra.mxu0 %v14758_v11  ;;  %10868 = vmatprep.subr.bf16.mxu1 %v14763_v7  ;;  %v14844_v11 = vld [vmem:[%s18741_s11 + $0xd4] ss:$8 sps:$4 sm:$0xff]   ;;  %v14842_v7 = vld [vmem:[%s18741_s11 + $0xd0] ss:$8 sps:$4 sm:$0xff]  }
0x3ffb   :  { %11032 = vmatprep.subr.bf16.mxu0 %v14766_v45  ;;  %v14847_v45 = vld [vmem:[%s18741_s11 + $0xe4] ss:$8 sps:$4 sm:$0xff]  }
0x3ffd   :  { %10869 = vmatpush1.bf16.msra.mxu1 %v14761_v2  ;;  %v14845_v2 = vld [vmem:[%s18741_s11 + $0xe0] ss:$8 sps:$4 sm:$0xff]  }
0x3ffe   :  { %11033 = vmatpush1.bf16.msra.mxu0 %v14764_v3  ;;  %10870 = vmatprep.subr.bf16.mxu1 %v14769_v31  ;;  %v14850_v3 = vld [vmem:[%s18741_s11 + $0xf4] ss:$8 sps:$4 sm:$0xff]   ;;  %v14848_v31 = vld [vmem:[%s18741_s11 + $0xf0] ss:$8 sps:$4 sm:$0xff]  }
0x3fff   :  { %11034 = vmatprep.subr.bf16.mxu0 %v14772_v4  ;;  %v14853_v4 = vld [vmem:[%s18741_s11 + $0x104] ss:$8 sps:$4 sm:$0xff]  }
0x4001   :  { %10871 = vmatpush1.bf16.msra.mxu1 %v14767_v51  ;;  %v14899_v51 = vld [vmem:[%s18742_s15 + $0x40] sm:$0xff]  }
0x4002   :  { %11035 = vmatpush1.bf16.msra.mxu0 %v14770_v53  ;;  %10872 = vmatprep.subr.bf16.mxu1 %v14775_v5  ;;  %v14900_v53 = vld [vmem:[%s18742_s15] sm:$0xff]   ;;  %v14901_v5 = vld [vmem:[%s18742_s15 + $0x48] sm:$0xff]  }
0x4003   :  { %11036 = vmatprep.subr.bf16.mxu0 %v14778_v63  ;;  %v14902_v63 = vld [vmem:[%s18742_s15 + $0x8] sm:$0xff]  }
0x4005   :  { %10873 = vmatpush1.bf16.msra.mxu1 %v14773_v12  ;;  %v14903_v12 = vld [vmem:[%s18742_s15 + $0x50] sm:$0xff]  }
0x4006   :  { %11037 = vmatpush1.bf16.msra.mxu0 %v14776_v56  ;;  %10874 = vmatprep.subr.bf16.mxu1 %v14781_v22  ;;  %v14904_v56 = vld [vmem:[%s18742_s15 + $0x10] sm:$0xff]   ;;  %v14905_v22 = vld [vmem:[%s18742_s15 + $0x58] sm:$0xff]  }
0x4007   :  { %11038 = vmatprep.subr.bf16.mxu0 %v14784_v23  ;;  %v14906_v23 = vld [vmem:[%s18742_s15 + $0x18] sm:$0xff]  }
0x4009   :  { %10875 = vmatpush1.bf16.msra.mxu1 %v14779_v25  ;;  %v14907_v25 = vld [vmem:[%s18742_s15 + $0x60] sm:$0xff]  }
0x400a   :  { %11039 = vmatpush1.bf16.msra.mxu0 %v14782_v52  ;;  %10876 = vmatprep.subr.bf16.mxu1 %v14787_v27  ;;  %v9407_v52 = vld [vmem:[%s18743_s13] sm:$0x77]  ;;  %v9408_v27 = vld [vmem:[%s18743_s13 + $0x8] sm:$0x77] }
0x400b   :  { %11040 = vmatprep.subr.bf16.mxu0 %v14790_v28  ;;  %v9414_v28 = vrot.slane %v9407_v52, %v15623_v16  ;;  %v11102_v49 = vrot.slane %v9407_v52, %v15864_v57 }
0x400d   :  { %10877 = vmatpush1.bf16.msra.mxu1 %v14785_v32  ;;  %v9422_v32 = vrot.slane %v9408_v27, %v15623_v16 }
0x400e   :  { %11041 = vmatpush1.bf16.msra.mxu0 %v14788_v35  ;;  %10878 = vmatprep.subr.bf16.mxu1 %v14793_v36  ;;  %v9418_v35 = vrot.slane %v9407_v52, %v15833_v24  ;;  %v9426_v36 = vrot.slane %v9408_v27, %v15833_v24 }
0x400f   :  { %11042 = vmatprep.subr.bf16.mxu0 %v14796_v19  ;;  %v9434_v19 = vrot.slane %v9414_v28, %v15623_v16  ;;  %v14859_v28 = vld [vmem:[%s18741_s11 + $0x124] ss:$8 sps:$4 sm:$0xff]  }
0x4011   :  { %10879 = vmatpush1.bf16.msra.mxu1 %v14791_v37  ;;  %v11062_v37 = vrot.slane %v9407_v52, %v15631_v18 }
0x4012   :  { %11043 = vmatpush1.bf16.msra.mxu0 %v14794_v17  ;;  %10880 = vmatprep.subr.bf16.mxu1 %v14799_v38  ;;  %v9442_v17 = vrot.slane %v9422_v32, %v15623_v16  ;;  %v11070_v38 = vrot.slane %v9408_v27, %v15631_v18  ;;  %v14857_v32 = vld [vmem:[%s18741_s11 + $0x120] ss:$8 sps:$4 sm:$0xff]  }
0x4013   :  { %11044 = vmatprep.subr.bf16.mxu0 %v14802_v39  ;;  %v9438_v39 = vrot.slane %v9418_v35, %v15623_v16  ;;  %v14862_v35 = vld [vmem:[%s18741_s11 + $0x134] ss:$8 sps:$4 sm:$0xff]  }
0x4015   :  { %10881 = vmatpush1.bf16.msra.mxu1 %v14797_v26  ;;  %v11066_v26 = vrot.slane %v9407_v52, %v15930_v62 }
0x4016   :  { %11045 = vmatpush1.bf16.msra.mxu0 %v14800_v58  ;;  %11551 = vmatprep.subr.bf16.mxu1 %v14805_v20  ;;  %v9446_v58 = vrot.slane %v9426_v36, %v15623_v16  ;;  %v11074_v20 = vrot.slane %v9408_v27, %v15930_v62  ;;  %v14860_v36 = vld [vmem:[%s18741_s11 + $0x130] ss:$8 sps:$4 sm:$0xff]  }
0x4017   :  { %13273 = vmatprep.subr.bf16.mxu0 %v14899_v51 }
0x4018   :  { %10883 = vmatmul.mubr.bf16.vlgmr.msra.gmra.mrb[120].mxu1 %v9149_v40 }
0x4019   :  { %11047 = vmatmul.mubr.bf16.vlgmr.msra.gmra.mrb[104].mxu0 %v9149_v40  ;;  %11552 = vmatpush1.bf16.msra.mxu1 %v14803_v10  ;;  %v11110_v40 = vrot.slane %v9408_v27, %v15864_v57 }
0x401a   :  { %11553 = vmatprep.subr.bf16.mxu1 %v14808_v44  ;;  %13274 = vmatpush3.bf16.msra.mxu0 %v14900_v53  ;;  %v11106_v44 = vrot.slane %v9407_v52, %v17638_v33 }
0x401b   :  { %13275 = vmatprep.subr.bf16.mxu0 %v14901_v5 }
0x401d   :  { %11554 = vmatpush1.bf16.msra.mxu1 %v14806_v6 }
0x401e   :  { %11555 = vmatprep.subr.bf16.mxu1 %v14811_v9  ;;  %13276 = vmatpush3.bf16.msra.mxu0 %v14902_v63  ;;  %v11082_v9 = vrot.slane %v11062_v37, %v15631_v18  ;;  %v14863_v37 = vld [vmem:[%s18741_s11 + $0x140] ss:$8 sps:$4 sm:$0xff]  }
0x401f   :  { %13277 = vmatprep.subr.bf16.mxu0 %v14903_v12 }
0x4021   :  { %11556 = vmatpush1.bf16.msra.mxu1 %v14809_v15 }
0x4022   :  { %11557 = vmatprep.subr.bf16.mxu1 %v14814_v21  ;;  %13278 = vmatpush3.bf16.msra.mxu0 %v14904_v56 }
0x4023   :  { %13279 = vmatprep.subr.bf16.mxu0 %v14905_v22  ;;  %v14851_v22 = vld [vmem:[%s18741_s11 + $0x100] ss:$8 sps:$4 sm:$0xff]  }
0x4025   :  { %11558 = vmatpush1.bf16.msra.mxu1 %v14812_v47  ;;  %v11114_v47 = vrot.slane %v9408_v27, %v17638_v33  ;;  %v14854_v27 = vld [vmem:[%s18741_s11 + $0x110] ss:$8 sps:$4 sm:$0xff]  }
0x4026   :  { %11559 = vmatprep.subr.bf16.mxu1 %v14817_v14  ;;  %13280 = vmatpush3.bf16.msra.mxu0 %v14906_v23 }
0x4027   :  { %13281 = vmatprep.subr.bf16.mxu0 %v14907_v25  ;;  %v14856_v25 = vld [vmem:[%s18741_s11 + $0x114] ss:$8 sps:$4 sm:$0xff]  }
0x4029   :  { %11560 = vmatpush1.bf16.msra.mxu1 %v14815_v48  ;;  %v11090_v48 = vrot.slane %v11070_v38, %v15631_v18  ;;  %v14866_v38 = vld [vmem:[%s18741_s11 + $0x150] ss:$8 sps:$4 sm:$0xff]  }
0x402a   :  { %11561 = vmatprep.subr.bf16.mxu1 %v14820_v50 }
0x402d   :  { %11562 = vmatpush1.bf16.msra.mxu1 %v14818_v55  ;;  %v11086_v55 = vrot.slane %v11066_v26, %v15631_v18  ;;  %v14869_v26 = vld [vmem:[%s18741_s11 + $0x160] ss:$8 sps:$4 sm:$0xff]  }
0x402e   :  { %11563 = vmatprep.subr.bf16.mxu1 %v14823_v59 }
0x4031   :  { %11564 = vmatpush1.bf16.msra.mxu1 %v14821_v46 }
0x4032   :  { %11565 = vmatprep.subr.bf16.mxu1 %v14826_v60 }
0x4035   :  { %11566 = vmatpush1.bf16.msra.mxu1 %v14824_v41  ;;  %v11122_v41 = vrot.slane %v11102_v49, %v15864_v57  ;;  %v14874_v49 = vld [vmem:[%s18741_s11 + $0x174] ss:$8 sps:$4 sm:$0xff]  }
0x4036   :  { %11567 = vmatprep.subr.bf16.mxu1 %v14829_v34 }
0x4039   :  { %11568 = vmatpush1.bf16.msra.mxu1 %v14827_v43  ;;  %v11094_v43 = vrot.slane %v11074_v20, %v15631_v18  ;;  %v14877_v20 = vld [vmem:[%s18741_s11 + $0x184] ss:$8 sps:$4 sm:$0xff]  }
0x403a   :  { %11569 = vmatprep.subr.bf16.mxu1 %v14832_v61 }
0x403d   :  { %11570 = vmatpush1.bf16.msra.mxu1 %v14830_v54 }
0x403e   :  { %11571 = vmatprep.subr.bf16.mxu1 %v14835_v30 }
0x4041   :  { %11572 = vmatpush1.bf16.msra.mxu1 %v14833_v0  ;;  %v11130_v0 = vrot.slane %v11110_v40, %v15864_v57  ;;  %v14880_v40 = vld [vmem:[%s18741_s11 + $0x194] ss:$8 sps:$4 sm:$0xff]  }
0x4042   :  { %11573 = vmatprep.subr.bf16.mxu1 %v14838_v42 }
0x4045   :  { %11574 = vmatpush1.bf16.msra.mxu1 %v14836_v13 }
0x4046   :  { %11575 = vmatprep.subr.bf16.mxu1 %v14841_v8  ;;  %v11126_v8 = vrot.slane %v11106_v44, %v15864_v57  ;;  %v14878_v44 = vld [vmem:[%s18741_s11 + $0x190] ss:$8 sps:$4 sm:$0xff]  }
0x4049   :  { %11576 = vmatpush1.bf16.msra.mxu1 %v14839_v1 }
0x404a   :  { %11577 = vmatprep.subr.bf16.mxu1 %v14844_v11 }
0x404d   :  { %11578 = vmatpush1.bf16.msra.mxu1 %v14842_v7  ;;  %v11134_v7 = vrot.slane %v11114_v47, %v15864_v57  ;;  %v14889_v47 = vld [vmem:[%s18741_s11 + $0x1c4] ss:$8 sps:$4 sm:$0xff]  }
0x404e   :  { %11579 = vmatprep.subr.bf16.mxu1 %v14847_v45 }
0x4051   :  { %11580 = vmatpush1.bf16.msra.mxu1 %v14845_v2 }
0x4052   :  { %11581 = vmatprep.subr.bf16.mxu1 %v14850_v3 }
0x4055   :  { %11582 = vmatpush1.bf16.msra.mxu1 %v14848_v31 }
0x4056   :  { %11592 = vmatprep.subr.bf16.mxu1 %v14853_v4 }
0x40eb   :  { %v10884_v10 = vpop.f32.mrb[120].mxu1 }
0x40ec   :  { %v14366_v6 = vadd.f32 %v10884_v10, %v9434_v19  ;;  %v11048_v15 = vpop.f32.mrb[104].mxu0  ;;  %v10886_v21 = vpop.f32.mrb[121].mxu1  ;;  %v14865_v19 = vld [vmem:[%s18741_s11 + $0x144] ss:$8 sps:$4 sm:$0xff]   ;;  %v14875_v10 = vld [vmem:[%s18741_s11 + $0x180] ss:$8 sps:$4 sm:$0xff]  }
0x40ed   :  { %v14368_v14 = vadd.f32 %v11048_v15, %v9442_v17  ;;  %v14367_v50 = vadd.f32 %v10886_v21, %v9438_v39  ;;  %v11050_v59 = vpop.f32.mrb[105].mxu0  ;;  %v10888_v46 = vpop.f32.mrb[122].mxu1  ;;  %v14868_v17 = vld [vmem:[%s18741_s11 + $0x154] ss:$8 sps:$4 sm:$0xff]   ;;  %v14871_v39 = vld [vmem:[%s18741_s11 + $0x164] ss:$8 sps:$4 sm:$0xff]  }
0x40ee   :  { %v11055_v60 = vmul.f32 0.999995, %v14366_v6  ;;  %v14369_v34 = vadd.f32 %v11050_v59, %v9446_v58  ;;  %v11052_v61 = vpop.f32.mrb[106].mxu0  ;;  %v10889_v54 = vpop.f32.mrb[123].mxu1  ;;  %v14872_v58 = vld [vmem:[%s18741_s11 + $0x170] ss:$8 sps:$4 sm:$0xff]  }
0x40ef   :  { %v11057_v30 = vmul.f32 0.999995, %v14368_v14  ;;  %v11056_v42 = vmul.f32 0.999995, %v14367_v50  ;;  %v11053_v13 = vpop.f32.mrb[107].mxu0  ;;  %v14909_v61 = vld [vmem:[%s18742_s15 + $0x68] sm:$0xff]  }
0x40f0   :  { %v11095_v1 = vmul.f32 %v11082_v9, %v11055_v60  ;;  %v11058_v11 = vmul.f32 0.999995, %v14369_v34  ;;  %v14883_v6 = vld [vmem:[%s18741_s11 + $0x1a4] ss:$8 sps:$4 sm:$0xff]   ;;  %v14881_v9 = vld [vmem:[%s18741_s11 + $0x1a0] ss:$8 sps:$4 sm:$0xff]  }
0x40f1   :  { %v11097_v45 = vmul.f32 %v11090_v48, %v11057_v30  ;;  %v11096_v2 = vmul.f32 %v11086_v55, %v11056_v42  ;;  %v14886_v15 = vld [vmem:[%s18741_s11 + $0x1b4] ss:$8 sps:$4 sm:$0xff]   ;;  %v14884_v21 = vld [vmem:[%s18741_s11 + $0x1b0] ss:$8 sps:$4 sm:$0xff]   ;;  %v14887_v14 = vld [vmem:[%s18741_s11 + $0x1c0] ss:$8 sps:$4 sm:$0xff]  }
0x40f2   :  { %v11135_v3 = vadd.f32 %v11122_v41, %v11095_v1  ;;  %v11098_v31 = vmul.f32 %v11094_v43, %v11058_v11  ;;  %v14892_v48 = vld [vmem:[%s18741_s11 + $0x1d4] ss:$8 sps:$4 sm:$0xff]   ;;  %v14890_v50 = vld [vmem:[%s18741_s11 + $0x1d0] ss:$8 sps:$4 sm:$0xff]   ;;  %v14895_v55 = vld [vmem:[%s18741_s11 + $0x1e4] ss:$8 sps:$4 sm:$0xff]  }
0x40f3   :  { %v18426_v4 = vadd.f32 %v11130_v0, %v11097_v45  ;;  %v11136_v51 = vadd.f32 %v11126_v8, %v11096_v2  ;;  %v14893_v59 = vld [vmem:[%s18741_s11 + $0x1e0] ss:$8 sps:$4 sm:$0xff]   ;;  %v14898_v46 = vld [vmem:[%s18741_s11 + $0x1f4] ss:$8 sps:$4 sm:$0xff]   ;;  %v14896_v60 = vld [vmem:[%s18741_s11 + $0x1f0] ss:$8 sps:$4 sm:$0xff]  }
0x40f4   :  { %v11139_v53 = vmax.f32 %v11135_v3, 0.0  ;;  %v11138_v5 = vadd.f32 %v11134_v7, %v11098_v31  ;;  %v14908_v43 = vld [vmem:[%s18742_s15 + $0x20] sm:$0xff]   ;;  %v14910_v54 = vld [vmem:[%s18742_s15 + $0x28] sm:$0xff]   ;;  %v14911_v30 = vld [vmem:[%s18742_s15 + $0x70] sm:$0xff]  }
0x40f5   :  { %v11140_v63 = vmax.f32 %v11136_v51, 0.0  ;;  %v11141_v41 = vmax.f32 %v18426_v4, 0.0  ;;  %13282 = vmatpush3.bf16.msra.mxu0 %v14908_v43  ;;  %v14912_v0 = vld [vmem:[%s18742_s15 + $0x30] sm:$0xff]   ;;  %v14913_v42 = vld [vmem:[%s18742_s15 + $0x78] sm:$0xff]   ;;  %v11211_v8 = vld [vmem:[%s18744_s2] sm:$0x77] }
0x40f6   :  { %v11142_v12 = vmax.f32 %v11138_v5, 0.0  ;;  %v11143_v23 = vpack.c.bf16 %v11139_v53, %v11139_v53  ;;  %13283 = vmatprep.subr.bf16.mxu0 %v14909_v61  ;;  %v14914_v13 = vld [vmem:[%s18742_s15 + $0x38] sm:$0xff]   ;;  %v11216_v1 = vrot.slane %v11211_v8, %v15623_v16  ;;  %v11220_v11 = vrot.slane %v11211_v8, %v15833_v24 }
0x40f7   :  { %v11144_v56 = vpack.c.bf16 %v11140_v63, %v11140_v63  ;;  %v11145_v34 = vpack.c.bf16 %v11141_v41, %v11141_v41  ;;  %v11638_v45 = vrot.slane %v11211_v8, %v15631_v18  ;;  %v11642_v3 = vrot.slane %v11211_v8, %v15930_v62  ;;  %v12754_v41 = vld [vmem:[%s18747_s22] ss:$0 sm:$0xff] }
0x40f8   :  { %v11146_v52 = vpack.c.bf16 %v11142_v12, %v11142_v12  ;;  %v11226_v7 = vrot.slane %v11216_v1, %v15623_v16  ;;  %v11230_v2 = vrot.slane %v11220_v11, %v15623_v16  ;;  %v11658_v31 = vrot.slane %v11211_v8, %v15864_v57 }
0x40f9   :  { %11583 = vmatprep.mubr.bf16.mxu1 %v11144_v56  ;;  %13284 = vmatpush3.bf16.msra.mxu0 %v14910_v54  ;;  %v11662_v51 = vrot.slane %v11211_v8, %v17638_v33  ;;  %v11648_v5 = vrot.slane %v11638_v45, %v15631_v18  ;;  %v11652_v24 = vrot.slane %v11642_v3, %v15631_v18 }
0x40fa   :  { %11584 = vmatmul.mubr.bf16.vlgmr.msra.gmra.mrb[124].mxu1 %v11143_v23  ;;  %13285 = vmatprep.subr.bf16.mxu0 %v14911_v30  ;;  %v11668_v23 = vrot.slane %v11658_v31, %v15864_v57 }
0x40fb   :  { %11593 = vmatpush1.bf16.msra.mxu1 %v14851_v22  ;;  %11624 = vmatprep.mubr.bf16.mxu1 %v11146_v52  ;;  %v11672_v62 = vrot.slane %v11662_v51, %v15864_v57 }
0x40fc   :  { %11594 = vmatprep.subr.bf16.mxu1 %v14856_v25 }
0x40fd   :  { %13286 = vmatpush3.bf16.msra.mxu0 %v14912_v0 }
0x40fe   :  { %13287 = vmatprep.subr.bf16.mxu0 %v14913_v42 }
0x40ff   :  { %11595 = vmatpush1.bf16.msra.mxu1 %v14854_v27 }
0x4100   :  { %11596 = vmatprep.subr.bf16.mxu1 %v14859_v28 }
0x4101   :  { %13288 = vmatpush3.bf16.msra.mxu0 %v14914_v13 }
0x4102   :  { %13918 = vmatprep.subr.bf16.mxu0 %v15132_v29 }
0x4103   :  { %11597 = vmatpush1.bf16.msra.mxu1 %v14857_v32 }
0x4104   :  { %11598 = vmatprep.subr.bf16.mxu1 %v14862_v35 }
0x4107   :  { %11599 = vmatpush1.bf16.msra.mxu1 %v14860_v36 }
0x4108   :  { %11600 = vmatprep.subr.bf16.mxu1 %v14865_v19 }
0x410b   :  { %11601 = vmatpush1.bf16.msra.mxu1 %v14863_v37  ;;  %v14915_v37 = vld [vmem:[%s18745_s17] sm:$0xff]  }
0x410c   :  { %11602 = vmatprep.subr.bf16.mxu1 %v14868_v17 }
0x410f   :  { %11603 = vmatpush1.bf16.msra.mxu1 %v14866_v38  ;;  %v14916_v38 = vld [vmem:[%s18745_s17 + $0x8] sm:$0xff]  }
0x4110   :  { %11604 = vmatprep.subr.bf16.mxu1 %v14871_v39  ;;  %v14917_v39 = vld [vmem:[%s18745_s17 + $0x10] sm:$0xff]  }
0x4113   :  { %11605 = vmatpush1.bf16.msra.mxu1 %v14869_v26  ;;  %v14918_v26 = vld [vmem:[%s18745_s17 + $0x18] sm:$0xff]  }
0x4114   :  { %11606 = vmatprep.subr.bf16.mxu1 %v14874_v49  ;;  %v14919_v49 = vld [vmem:[%s18745_s17 + $0x20] sm:$0xff]  }
0x4117   :  { %11607 = vmatpush1.bf16.msra.mxu1 %v14872_v58  ;;  %v14920_v58 = vld [vmem:[%s18745_s17 + $0x28] sm:$0xff]  }
0x4118   :  { %11608 = vmatprep.subr.bf16.mxu1 %v14877_v20  ;;  %v14921_v20 = vld [vmem:[%s18745_s17 + $0x30] sm:$0xff]  }
0x411b   :  { %11609 = vmatpush1.bf16.msra.mxu1 %v14875_v10  ;;  %v14922_v10 = vld [vmem:[%s18745_s17 + $0x38] sm:$0xff]  }
0x411c   :  { %11610 = vmatprep.subr.bf16.mxu1 %v14880_v40  ;;  %v11711_v40 = vld [vmem:[%s18746_s28] sm:$0x7] }
0x411f   :  { %11611 = vmatpush1.bf16.msra.mxu1 %v14878_v44 }
0x4120   :  { %11612 = vmatprep.subr.bf16.mxu1 %v14883_v6  ;;  %v11715_v6 = vrot.slane %v11711_v40, %v15623_v16 }
0x4123   :  { %11613 = vmatpush1.bf16.msra.mxu1 %v14881_v9 }
0x4124   :  { %11614 = vmatprep.subr.bf16.mxu1 %v14886_v15 }
0x4127   :  { %11615 = vmatpush1.bf16.msra.mxu1 %v14884_v21 }
0x4128   :  { %11616 = vmatprep.subr.bf16.mxu1 %v14889_v47 }
0x412b   :  { %11617 = vmatpush1.bf16.msra.mxu1 %v14887_v14 }
0x412c   :  { %11618 = vmatprep.subr.bf16.mxu1 %v14892_v48  ;;  %v11856_v48 = vrot.slane %v11711_v40, %v15631_v18 }
0x412f   :  { %11619 = vmatpush1.bf16.msra.mxu1 %v14890_v50  ;;  %v11861_v50 = vrot.slane %v11711_v40, %v15864_v57 }
0x4130   :  { %11620 = vmatprep.subr.bf16.mxu1 %v14895_v55 }
0x4133   :  { %11621 = vmatpush1.bf16.msra.mxu1 %v14893_v59 }
0x4134   :  { %11622 = vmatprep.subr.bf16.mxu1 %v14898_v46 }
0x4137   :  { %11623 = vmatpush1.bf16.msra.mxu1 %v14896_v60 }
0x413a   :  { %11625 = vmatmul.mubr.bf16.vlgmr.msra.gmra.mrb[124].mxu1 %v11145_v34 }
0x420d   :  { %v11626_v4 = vpop.f32.mrb[124].mxu1 }
0x420e   :  { %v14370_v53 = vadd.f32 %v11626_v4, %v11226_v7  ;;  %v11628_v63 = vpop.f32.mrb[125].mxu1 }
0x420f   :  { %v14371_v12 = vadd.f32 %v11628_v63, %v11230_v2  ;;  %v11630_v56 = vpop.f32.mrb[126].mxu1 }
0x4210   :  { %v11633_v22 = vmul.f32 0.999995, %v14370_v53  ;;  %v11631_v25 = vpop.f32.mrb[127].mxu1 }
0x4211   :  { %v11634_v52 = vmul.f32 0.999995, %v14371_v12 }
0x4212   :  { %v11653_v27 = vmul.f32 %v11648_v5, %v11633_v22 }
0x4213   :  { %v11654_v28 = vmul.f32 %v11652_v24, %v11634_v52 }
0x4214   :  { %v11673_v32 = vadd.f32 %v11668_v23, %v11653_v27 }
0x4215   :  { %v11674_v35 = vadd.f32 %v11672_v62, %v11654_v28 }
0x4216   :  { %v11675_v33 = vmax.f32 %v11673_v32, 0.0 }
0x4217   :  { %v11676_v36 = vmax.f32 %v11674_v35, 0.0 }
0x4218   :  { %v11677_v17 = vpack.c.bf16 %v11675_v33, %v11675_v33 }
0x4219   :  { %v11678_v19 = vpack.c.bf16 %v11676_v36, %v11676_v36 }
0x421b   :  { %11844 = vmatprep.mubr.bf16.mxu0 %v11678_v19 }
0x421c   :  { %11845 = vmatmul.mubr.bf16.vlgmr.msra.gmra.mrb[108].mxu0 %v11677_v17 }
0x421d   :  { %13919 = vmatpush3.bf16.msra.mxu0 %v14915_v37  ;;  %13934 = vmatprep.mubr.msk.bf16.mxu0 %vm15133_vm2, %v15132_v29 }
0x421e   :  { %13920 = vmatprep.subr.bf16.mxu0 %v15132_v29 }
0x4221   :  { %13921 = vmatpush3.bf16.msra.mxu0 %v14916_v38 }
0x4222   :  { %13922 = vmatprep.subr.bf16.mxu0 %v15132_v29 }
0x4225   :  { %13923 = vmatpush3.bf16.msra.mxu0 %v14917_v39 }
0x4226   :  { %13924 = vmatprep.subr.bf16.mxu0 %v15132_v29 }
0x4229   :  { %13925 = vmatpush3.bf16.msra.mxu0 %v14918_v26 }
0x422a   :  { %13926 = vmatprep.subr.bf16.mxu0 %v15132_v29 }
0x422d   :  { %13927 = vmatpush3.bf16.msra.mxu0 %v14919_v49 }
0x422e   :  { %13928 = vmatprep.subr.bf16.mxu0 %v15132_v29 }
0x4231   :  { %13929 = vmatpush3.bf16.msra.mxu0 %v14920_v58 }
0x4232   :  { %13930 = vmatprep.subr.bf16.mxu0 %v15132_v29 }
0x4235   :  { %13931 = vmatpush3.bf16.msra.mxu0 %v14921_v20 }
0x4236   :  { %13932 = vmatprep.subr.bf16.mxu0 %v15132_v29 }
0x4239   :  { %13933 = vmatpush3.bf16.msra.mxu0 %v14922_v10 }
0x42ef   :  { %v13289_v44 = vpop.f32.mrb[108].mxu0 }
0x42f0   :  { %v13290_v9 = vpop.f32.mrb[109].mxu0 }
0x42f1   :  { %v13291_v15 = vadd.f32 %v13290_v9, %v13289_v44  ;;  %v13292_v21 = vpop.f32.mrb[110].mxu0 }
0x42f2   :  { %v13293_v47 = vpop.f32.mrb[111].mxu0 }
0x42f3   :  { %v11847_v14 = vadd.f32 %v13291_v15, %v11715_v6 }
0x42f5   :  { %v11852_v29 = vmul.f32 0.999995, %v11847_v14 }
0x42f7   :  { %v11857_v55 = vmul.f32 %v11856_v48, %v11852_v29 }
0x42f9   :  { %v11862_v59 = vadd.f32 %v11861_v50, %v11857_v55 }
0x42fb   :  { %v11863_v46 = vmax.f32 %v11862_v59, 0.0 }
0x42fd   :  { %v11864_v60 = vpack.c.bf16 %v11863_v46, %v11863_v46 }
0x42ff   :  { %13935 = vmatmul.mubr.bf16.vlgmr.msra.gmra.mrb[112].mxu0 %v11864_v60 }
0x43d2   :  { %v11970_v16 = vpop.f32.mrb[112].mxu0 }
0x43d3   :  { %v11971_v34 = vadd.f32 %v12754_v41, %v11970_v16  ;;  %v13936_v43 = vpop.f32.mrb[113].mxu0 }
0x43d4   :  { %v11973_v18 = vpop.f32.mrb[114].mxu0 }
0x43d5   :  { %v13937_v61 = vpop.f32.mrb[115].mxu0  ;;  %11977 = vst.msk [vmem:[#allocation2] sm:$0x3] %vm11976_vm11, %v11971_v34 }
0x43d6   :  { %15119 = shalt.err (!%p15116_p4)
}
0x43d7   :  { %s18748_s0 = sld [smem:[#allocation25_spill]] }
0x43dd   :  { %s15120_s6 = scalar_lea.hbm %s18748_s0, 32 }
0x43de   :  { %p15121_p5 = scmp.ne.s32.totalorder %s18748_s0, %s15120_s6  ;;  %p15124_p6 = scmp.lt.u32.totalorder %s15120_s6, %s18748_s0 }
0x43e0   :  { %p15126_p7 = pnand %p15124_p6, %p15121_p5 }
0x43e2   :  { %15129 = shalt.err (!%p15126_p7)
}
0x43e3   :  { %11987 = dma.vmem_to_hbm [thread:$0]  %s11985_s27, 32, %s18748_s0, [#allocation3]  }
0x43e4   :  { %15130 = dma.done.wait [#allocation3], 32  }
0x43e5   :  { %15131 = vsyncadd [#allocation3], 4294967264 }
0x43e6   :  { %11991 = vsyncpa [#allocation3], 1 }

</bundles_post_ra>
